<compile_context>
chip_gen: v7x
topology: tpu7x:2x2x1
jax: 0.10.0
libtpu: 0.0.40
codegen_flags: <defaults>
</compile_context>

<pallas_src>
import jax
import jax.numpy as jnp
from jax import lax
from jax.experimental import pallas as pl
from jax.experimental.pallas import tpu as pltpu


def _scale_matmul_kernel(x_ref, s_ref, w_ref, o_ref):
    # x_ref: (HWp, K) f32, s_ref: (1, K) f32, w_ref: (Cout, K) bf16,
    # o_ref: (HWp, Cout) f32
    xs = (x_ref[...] * s_ref[...]).astype(w_ref.dtype)   # VPU scale + bf16 cast
    o_ref[...] = lax.dot_general(                         # MXU, contract K ("NT")
        xs, w_ref[...],
        dimension_numbers=(((1,), (1,)), ((), ())),
        preferred_element_type=jnp.float32,               # f32 accumulation
    ).astype(o_ref.dtype)


def scale_matmul(x3d, scale3d, weight):
    """x3d: (N, HWp, K) f32, scale3d: (N, 1, K) f32, weight: (Cout, K) bf16
    -> (N, HWp, Cout) f32."""
    N, HWp, K = x3d.shape
    Cout, K2 = weight.shape
    assert K == K2
    assert HWp % 16 == 0 and K % 128 == 0 and Cout % 128 == 0

    flops = 2 * N * HWp * K * Cout
    bytes_accessed = (x3d.size * 4 + scale3d.size * 4
                      + weight.size * weight.dtype.itemsize
                      + N * HWp * Cout * 4)

    return pl.pallas_call(
        _scale_matmul_kernel,
        out_shape=jax.ShapeDtypeStruct((N, HWp, Cout), jnp.float32),
        grid_spec=pltpu.PrefetchScalarGridSpec(
            num_scalar_prefetch=0,
            grid=(N,),                       # one step per batch image
            in_specs=[
                # full-K X block per batch
                pl.BlockSpec((None, HWp, K), lambda n: (n, 0, 0)),
                # per-batch channel scale
                pl.BlockSpec((None, 1, K), lambda n: (n, 0, 0)),
                # full bf16 weight, untransposed
                pl.BlockSpec((Cout, K), lambda n: (0, 0)),
            ],
            out_specs=pl.BlockSpec((None, HWp, Cout), lambda n: (n, 0, 0)),
        ),
        compiler_params=pltpu.CompilerParams(
            dimension_semantics=("parallel",),
        ),
        cost_estimate=pl.CostEstimate(
            flops=flops, transcendentals=0, bytes_accessed=bytes_accessed),
    )(x3d, scale3d, weight)


def module_forward(x789, x794, weight_bf16):
    """Equivalent of M.forward.

    x789       : (N, C_in, H, W)  NCHW, float32
    x794       : (N, C_in, 1, 1)  per-(batch, channel) scale, float32
    weight_bf16: (C_out, C_in)    1x1 conv weight (kernel dims squeezed), bf16
    returns (N, C_out, H, W) float32
    """
    N, Cin, H, W = x789.shape
    Cout = weight_bf16.shape[0]
    HW = H * W
    HWp = ((HW + 15) // 16) * 16      # multiple of 16 for bf16 sublane packing

    # NCHW -> row-major (N, HW, Cin), pad rows
    x_rows = jnp.transpose(x789, (0, 2, 3, 1)).reshape(N, HW, Cin)
    if HWp != HW:
        x_rows = jnp.pad(x_rows, ((0, 0), (0, HWp - HW), (0, 0)))

    scale = x794.reshape(N, 1, Cin)

    out_rows = scale_matmul(x_rows, scale, weight_bf16)   # (N, HWp, Cout)
    out_rows = out_rows[:, :HW, :]
    return out_rows.reshape(N, H, W, Cout).transpose(0, 3, 1, 2)


if __name__ == "__main__":
    key = jax.random.PRNGKey(0)
    k1, k2, k3 = jax.random.split(key, 3)

    # shapes implied by the module (channel dims are fixed by the conv)
    N, Cin, H, W, Cout = 1, 3840, 7, 7, 640

    x789 = jax.random.normal(k1, (N, Cin, H, W), dtype=jnp.float32)
    x794 = jax.random.normal(k2, (N, Cin, 1, 1), dtype=jnp.float32)
    weight = jax.random.normal(k3, (Cout, Cin), dtype=jnp.float32) * (1.0 / Cin) ** 0.5

    # weight stored once in bf16 (halves the HBM-bound weight stream)
    weight_bf16 = weight.astype(jnp.bfloat16)

    fwd = jax.jit(module_forward)
    out = jax.block_until_ready(fwd(x789, x794, weight_bf16))
    assert out.shape == (N, Cout, H, W)

    # reference 1: same-precision math (bf16 inputs, f32 accumulation) -> tight
    xs = x789 * x794
    ref_bf16 = jnp.einsum(
        "nchw,oc->nohw",
        xs.astype(jnp.bfloat16).astype(jnp.float32),
        weight_bf16.astype(jnp.float32),
    )
    assert jnp.allclose(out, ref_bf16, atol=1e-3, rtol=1e-3)

    # reference 2: full f32 math -> loose (bf16 input rounding only)
    ref_f32 = jnp.einsum("nchw,oc->nohw", xs, weight)
    assert jnp.allclose(out, ref_f32, atol=1e-1, rtol=1e-1)

    print("KERNEL_OK")
</pallas_src>

<mosaic_0001>
module attributes {stable_mosaic.version = 11 : i64} {
  func.func @_scale_matmul_kernel(%arg0: i32, %arg1: memref<1x64x3840xf32, #tpu.memory_space<vmem>>, %arg2: memref<1x1x3840xf32, #tpu.memory_space<vmem>>, %arg3: memref<640x3840xbf16, #tpu.memory_space<vmem>>, %arg4: memref<1x64x640xf32, #tpu.memory_space<vmem>>) attributes {dimension_semantics = [#tpu.dimension_semantics<parallel>], iteration_bounds = array<i64: 1>, scalar_prefetch = 0 : i64, scratch_operands = 0 : i64, tpu.core_type = #tpu.core_type<tc>, window_params = [{transform_indices = @transform_0, window_bounds = array<i64: 1, 64, 3840>}, {transform_indices = @transform_1, window_bounds = array<i64: 1, 1, 3840>}, {pipeline_mode = #tpu.pipeline_mode<synchronous>, transform_indices = @transform_2, window_bounds = array<i64: 640, 3840>}, {transform_indices = @transform_3, window_bounds = array<i64: 1, 64, 640>}]} {
    %c0 = arith.constant 0 : index
    %c0_0 = arith.constant 0 : index
    %c0_1 = arith.constant 0 : index
    %0 = vector.load %arg1[%c0, %c0_0, %c0_1] : memref<1x64x3840xf32, #tpu.memory_space<vmem>>, vector<1x64x3840xf32>
    %1 = vector.shape_cast %0 : vector<1x64x3840xf32> to vector<64x3840xf32>
    %c0_2 = arith.constant 0 : index
    %c0_3 = arith.constant 0 : index
    %c0_4 = arith.constant 0 : index
    %2 = vector.load %arg2[%c0_2, %c0_3, %c0_4] : memref<1x1x3840xf32, #tpu.memory_space<vmem>>, vector<1x1x3840xf32>
    %3 = vector.shape_cast %2 : vector<1x1x3840xf32> to vector<1x3840xf32>
    %4 = vector.broadcast %3 : vector<1x3840xf32> to vector<64x3840xf32>
    %5 = arith.mulf %1, %4 : vector<64x3840xf32>
    %6 = arith.truncf %5 : vector<64x3840xf32> to vector<64x3840xbf16>
    %c0_5 = arith.constant 0 : index
    %c0_6 = arith.constant 0 : index
    %7 = vector.load %arg3[%c0_5, %c0_6] : memref<640x3840xbf16, #tpu.memory_space<vmem>>, vector<640x3840xbf16>
    %cst = arith.constant dense<0.000000e+00> : vector<64x640xf32>
    %8 = tpu.matmul %6, %7, %cst {dimension_numbers = #tpu.dot_dimension_numbers<[1], [1], [0], [0], [0, 0, 1, 0], [], []>} : vector<64x3840xbf16>, vector<640x3840xbf16>, vector<64x640xf32> -> vector<64x640xf32>
    %c0_7 = arith.constant 0 : index
    %c0_8 = arith.constant 0 : index
    %c0_9 = arith.constant 0 : index
    %9 = vector.load %arg4[%c0_7, %c0_8, %c0_9] : memref<1x64x640xf32, #tpu.memory_space<vmem>>, vector<1x64x640xf32>
    %10 = vector.shape_cast %9 : vector<1x64x640xf32> to vector<64x640xf32>
    %11 = vector.shape_cast %8 : vector<64x640xf32> to vector<1x64x640xf32>
    tpu.vector_store %arg4[%c0_7, %c0_8, %c0_9], %11 {strides = array<i32>} : memref<1x64x640xf32, #tpu.memory_space<vmem>>, vector<1x64x640xf32>,
    return
  }
  func.func @transform_0(%arg0: i32) -> (i32, i32, i32) {
    %c0_i32 = arith.constant 0 : i32
    %c0_i32_0 = arith.constant 0 : i32
    %c0_i32_1 = arith.constant 0 : i32
    return %arg0, %c0_i32, %c0_i32_0 : i32, i32, i32
  }
  func.func @transform_1(%arg0: i32) -> (i32, i32, i32) {
    %c0_i32 = arith.constant 0 : i32
    %c0_i32_0 = arith.constant 0 : i32
    %c0_i32_1 = arith.constant 0 : i32
    return %arg0, %c0_i32, %c0_i32_0 : i32, i32, i32
  }
  func.func @transform_2(%arg0: i32) -> (i32, i32) {
    %c0_i32 = arith.constant 0 : i32
    %c0_i32_0 = arith.constant 0 : i32
    %c0_i32_1 = arith.constant 0 : i32
    return %c0_i32, %c0_i32_0 : i32, i32
  }
  func.func @transform_3(%arg0: i32) -> (i32, i32, i32) {
    %c0_i32 = arith.constant 0 : i32
    %c0_i32_0 = arith.constant 0 : i32
    %c0_i32_1 = arith.constant 0 : i32
    return %arg0, %c0_i32, %c0_i32_0 : i32, i32, i32
  }
}

</mosaic_0001>

<bundles_post_ra>
// kernel: module_forward.1
= control target key start
LH: loop header
LB: loop body
LE: loop exit
PB: predicated region body
PF: predicated region fallthrough
CT: control target
= control target key end

     0   :  { %8 = vsyncpa [#allocation3], 0  ;;  %s16886_s0 = inlined_call_operand.vmem [shape: f32[1,64,3840], index: 0, kind: input, shape index: {}]   ;;  %s16887_s1 = inlined_call_operand.hbm [shape: f32[1,1,3840], index: 1, kind: input, shape index: {}]   ;;  %s16888_s2 = inlined_call_operand.hbm [shape: bf16[640,3840], index: 2, kind: input, shape index: {}]   ;;  %s16889_s3 = inlined_call_operand.vmem [shape: f32[1,64,640], index: 3, kind: output, shape index: {}]  }
   0x1   :  { %9 = vsyncpa [#allocation5], 0  ;;  %s14941_s12 = smov [#allocation2]   ;;  %s14942_s14 = smov [#allocation4]  }
   0x2   :  { %s18_s13 = sshll.u32 %s14941_s12, 4  ;;  %s27_s15 = sshll.u32 %s14942_s14, 4  ;;  %s19_s13 = int_to_ptr.vmem [resolvable:$true] %s18_s13  ;;  %s14965_s15 = int_to_ptr.vmem [resolvable:$true] %s27_s15 }
   0x3   :  { %s14893_s18 = scalar_lea.hbm %s16887_s1, 480 }
   0x4   :  { %p14894_p0 = scmp.ne.s32.totalorder %s16887_s1, %s14893_s18  ;;  %p14897_p1 = scmp.lt.u32.totalorder %s14893_s18, %s16887_s1 }
   0x6   :  { %p14899_p2 = pnand %p14897_p1, %p14894_p0 }
   0x8   :  { %14902 = shalt.err (!%p14899_p2)
}
   0x9   :  { %s14903_s23 = scalar_lea.vmem %s19_s13, 480  ;;  %p14908_p4 = scmp.lt.s32.totalorder %s19_s13, %s19_s13 }
   0xa   :  { %p14904_p3 = scmp.ne.s32.totalorder %s19_s13, %s14903_s23  ;;  %p14909_p5 = scmp.lt.s32.totalorder %s14903_s23, %s14903_s23 }
   0xc   :  { %p14910_p6 = por %p14909_p5, %p14908_p4 }
   0xe   :  { %p14911_p7 = pnand %p14910_p6, %p14904_p3 }
  0x10   :  { %14914 = shalt.err (!%p14911_p7)
}
  0x11   :  { %21 = dma.hbm_to_vmem [thread:$0]  %s16887_s1, 480, %s19_s13, [#allocation3]  }
  0x12   :  { %s14915_s28 = scalar_lea.hbm %s16888_s2, 153600 }
  0x13   :  { %p14916_p8 = scmp.ne.s32.totalorder %s16888_s2, %s14915_s28  ;;  %p14919_p9 = scmp.lt.u32.totalorder %s14915_s28, %s16888_s2 }
  0x15   :  { %p14921_p10 = pnand %p14919_p9, %p14916_p8 }
  0x17   :  { %14924 = shalt.err (!%p14921_p10)
}
  0x18   :  { %s14925_s6 = scalar_lea.vmem %s14965_s15, 153600  ;;  %p14930_p12 = scmp.lt.s32.totalorder %s14965_s15, %s14965_s15 }
  0x19   :  { %p14926_p11 = scmp.ne.s32.totalorder %s14965_s15, %s14925_s6  ;;  %p14931_p13 = scmp.lt.s32.totalorder %s14925_s6, %s14925_s6 }
  0x1b   :  { %p14932_p0 = por %p14931_p13, %p14930_p12 }
  0x1d   :  { %p14933_p1 = pnand %p14932_p0, %p14926_p11 }
  0x1f   :  { %14936 = shalt.err (!%p14933_p1)
}
  0x20   :  { %s14943_s1 = smov 1920   ;;  %s14944_s7 = smov 120  }
  0x21   :  { %33 = dma.hbm_to_vmem [thread:$0]  %s16888_s2, 153600, %s14965_s15, [#allocation5], %s14943_s1, %s14943_s1, %s14944_s7  }
  0x22   :  { %14937 = dma.done.wait [#allocation3], 480  }
  0x23   :  { %14938 = vsyncadd [#allocation3], 4294966816 }
  0x24   :  { %14939 = dma.done.wait [#allocation5], 153600  }
  0x25   :  { %14940 = vsyncadd [#allocation5], 4294813696  ;;  %v13086_v0 = vld [vmem:[#allocation4 + $0x4] ss:$120 sps:$4 sm:$0xff]   ;;  %v13090_v2 = vld [vmem:[#allocation4] ss:$120 sps:$4 sm:$0xff]   ;;  %v289_v21 = vlaneseq }
  0x26   :  { %v13088_v1 = vld [vmem:[#allocation4 + $0x24] ss:$120 sps:$4 sm:$0xff]   ;;  %7999 = vmatprep.subr.bf16.mxu1 %v13086_v0  ;;  %v13091_v3 = vld [vmem:[#allocation4 + $0x20] ss:$120 sps:$4 sm:$0xff]   ;;  %v13092_v4 = vld [vmem:[#allocation4 + $0xf4] ss:$120 sps:$4 sm:$0xff]  }
  0x27   :  { %8291 = vmatprep.subr.bf16.mxu0 %v13088_v1  ;;  %8000 = vmatpush1.bf16.xpose.msra.mxu1 %v13090_v2  ;;  %v13094_v5 = vld [vmem:[#allocation4 + $0x114] ss:$120 sps:$4 sm:$0xff]   ;;  %v13096_v6 = vld [vmem:[#allocation4 + $0xf0] ss:$120 sps:$4 sm:$0xff]   ;;  %v13098_v8 = vld [vmem:[#allocation4 + $0x1e4] ss:$120 sps:$4 sm:$0xff]  }
  0x28   :  { %8292 = vmatpush1.bf16.xpose.msra.mxu0 %v13091_v3  ;;  %8001 = vmatprep.subr.bf16.mxu1 %v13092_v4  ;;  %v13097_v7 = vld [vmem:[#allocation4 + $0x110] ss:$120 sps:$4 sm:$0xff]   ;;  %v13100_v9 = vld [vmem:[#allocation4 + $0x204] ss:$120 sps:$4 sm:$0xff]   ;;  %v13102_v10 = vld [vmem:[#allocation4 + $0x1e0] ss:$120 sps:$4 sm:$0xff]  }
  0x29   :  { %8293 = vmatprep.subr.bf16.mxu0 %v13094_v5  ;;  %v13103_v11 = vld [vmem:[#allocation4 + $0x200] ss:$120 sps:$4 sm:$0xff]   ;;  %v13104_v12 = vld [vmem:[#allocation4 + $0x2d4] ss:$120 sps:$4 sm:$0xff]   ;;  %v13108_v14 = vld [vmem:[#allocation4 + $0x2d0] ss:$120 sps:$4 sm:$0xff]  }
  0x2a   :  { %v13106_v13 = vld [vmem:[#allocation4 + $0x2f4] ss:$120 sps:$4 sm:$0xff]   ;;  %v13109_v15 = vld [vmem:[#allocation4 + $0x2f0] ss:$120 sps:$4 sm:$0xff]   ;;  %v13110_v16 = vld [vmem:[#allocation4 + $0x3c4] ss:$120 sps:$4 sm:$0xff]  }
  0x2b   :  { %v13112_v17 = vld [vmem:[#allocation4 + $0x3e4] ss:$120 sps:$4 sm:$0xff]   ;;  %v13114_v18 = vld [vmem:[#allocation4 + $0x3c0] ss:$120 sps:$4 sm:$0xff]   ;;  %v13116_v20 = vld [vmem:[#allocation4 + $0x4b4] ss:$120 sps:$4 sm:$0xff]  }
  0x2c   :  { %v13115_v19 = vld [vmem:[#allocation4 + $0x3e0] ss:$120 sps:$4 sm:$0xff]   ;;  %v13118_v22 = vld [vmem:[#allocation4 + $0x4d4] ss:$120 sps:$4 sm:$0xff]   ;;  %v14996_v23 = vshrl.u32 %v289_v21, 7 }
  0x2d   :  { %v13120_v24 = vld [vmem:[#allocation4 + $0x4b0] ss:$120 sps:$4 sm:$0xff]   ;;  %v13122_v26 = vld [vmem:[#allocation4 + $0x5a4] ss:$120 sps:$4 sm:$0xff]   ;;  %v13126_v39 = vld [vmem:[#allocation4 + $0x5a0] ss:$120 sps:$4 sm:$0xff]  }
  0x2e   :  { %v13121_v25 = vld [vmem:[#allocation4 + $0x4d0] ss:$120 sps:$4 sm:$0xff]   ;;  %v14999_v27 = vsub.s32 1, %v14996_v23  ;;  %v13124_v28 = vld [vmem:[#allocation4 + $0x5c4] ss:$120 sps:$4 sm:$0xff]  }
  0x2f   :  { %8002 = vmatpush1.bf16.xpose.msra.mxu1 %v13096_v6  ;;  %v42_v29 = vld [vmem:[%s16886_s0 + $0x8] sm:$0xff]  ;;  %v72_v30 = vld [vmem:[%s16886_s0 + $0xf8] sm:$0xff]  ;;  %v15007_v31 = vld [vmem:[#allocation2] sm:$0xff] }
  0x30   :  { %8294 = vmatpush1.bf16.xpose.msra.mxu0 %v13097_v7  ;;  %8003 = vmatprep.subr.bf16.mxu1 %v13098_v8  ;;  %v15011_v32 = vrot.slane %v15007_v31, %v14999_v27  ;;  %v50_v33 = vld [vmem:[%s16886_s0 + $0x48] sm:$0xff]  ;;  %v80_v34 = vld [vmem:[%s16886_s0 + $0x138] sm:$0xff]  ;;  %v71_v21 = vld [vmem:[%s16886_s0 + $0xf0] sm:$0xff] }
  0x31   :  { %8295 = vmatprep.subr.bf16.mxu0 %v13100_v9  ;;  %v15019_v35 = vld [vmem:[#allocation2 + $0x8] sm:$0xff]  ;;  %v13127_v40 = vld [vmem:[#allocation4 + $0x5c0] ss:$120 sps:$4 sm:$0xff]   ;;  %v13134_v49 = vld [vmem:[#allocation4 + $0x784] ss:$120 sps:$4 sm:$0xff]  }
  0x32   :  { %v440_v36 = vmul.f32 %v15011_v32, %v42_v29  ;;  %v470_v37 = vmul.f32 %v15011_v32, %v72_v30  ;;  %v15025_v38 = vrot.slane %v15019_v35, %v14999_v27  ;;  %v13128_v44 = vld [vmem:[#allocation4 + $0x694] ss:$120 sps:$4 sm:$0xff]   ;;  %v13132_v47 = vld [vmem:[#allocation4 + $0x690] ss:$120 sps:$4 sm:$0xff]   ;;  %v13136_v50 = vld [vmem:[#allocation4 + $0x7a4] ss:$120 sps:$4 sm:$0xff]  }
  0x33   :  { %v13130_v45 = vld [vmem:[#allocation4 + $0x6b4] ss:$120 sps:$4 sm:$0xff]   ;;  %v13133_v48 = vld [vmem:[#allocation4 + $0x6b0] ss:$120 sps:$4 sm:$0xff]   ;;  %v13138_v51 = vld [vmem:[#allocation4 + $0x780] ss:$120 sps:$4 sm:$0xff]  }
  0x34   :  { %v15027_v41 = vpack.c.bf16 %v470_v37, %v440_v36  ;;  %v448_v42 = vmul.f32 %v15025_v38, %v50_v33  ;;  %v478_v43 = vmul.f32 %v15025_v38, %v80_v34  ;;  %v13139_v52 = vld [vmem:[#allocation4 + $0x7a0] ss:$120 sps:$4 sm:$0xff]   ;;  %v13140_v53 = vld [vmem:[#allocation4 + $0x874] ss:$120 sps:$4 sm:$0xff]   ;;  %v13144_v55 = vld [vmem:[#allocation4 + $0x870] ss:$120 sps:$4 sm:$0xff]  }
  0x35   :  { %v13142_v54 = vld [vmem:[#allocation4 + $0x894] ss:$120 sps:$4 sm:$0xff]   ;;  %v13145_v56 = vld [vmem:[#allocation4 + $0x890] ss:$120 sps:$4 sm:$0xff]   ;;  %v13146_v57 = vld [vmem:[#allocation4 + $0x964] ss:$120 sps:$4 sm:$0xff]  }
  0x36   :  { %8031 = vmatprep.mubr.bf16.mxu1 %v15027_v41  ;;  %v15032_v46 = vpack.c.bf16 %v478_v43, %v448_v42  ;;  %v13148_v58 = vld [vmem:[#allocation4 + $0x984] ss:$120 sps:$4 sm:$0xff]   ;;  %v13150_v59 = vld [vmem:[#allocation4 + $0x960] ss:$120 sps:$4 sm:$0xff]   ;;  %v13152_v61 = vld [vmem:[#allocation4 + $0xa54] ss:$120 sps:$4 sm:$0xff]  }
  0x37   :  { %8004 = vmatpush1.bf16.xpose.msra.mxu1 %v13102_v10  ;;  %v13151_v60 = vld [vmem:[#allocation4 + $0x980] ss:$120 sps:$4 sm:$0xff]   ;;  %v13154_v62 = vld [vmem:[#allocation4 + $0xa74] ss:$120 sps:$4 sm:$0xff]   ;;  %v13156_v63 = vld [vmem:[#allocation4 + $0xa50] ss:$120 sps:$4 sm:$0xff]  }
  0x38   :  { %8296 = vmatpush1.bf16.xpose.msra.mxu0 %v13103_v11  ;;  %8005 = vmatprep.subr.bf16.mxu1 %v13104_v12  ;;  %v13157_v0 = vld [vmem:[#allocation4 + $0xa70] ss:$120 sps:$4 sm:$0xff]   ;;  %v13158_v1 = vld [vmem:[#allocation4 + $0xb44] ss:$120 sps:$4 sm:$0xff]   ;;  %v13162_v3 = vld [vmem:[#allocation4 + $0xb40] ss:$120 sps:$4 sm:$0xff]  }
  0x39   :  { %8297 = vmatprep.subr.bf16.mxu0 %v13106_v13  ;;  %8323 = vmatprep.mubr.bf16.mxu0 %v15032_v46  ;;  %v13160_v2 = vld [vmem:[#allocation4 + $0xb64] ss:$120 sps:$4 sm:$0xff]   ;;  %v13163_v4 = vld [vmem:[#allocation4 + $0xb60] ss:$120 sps:$4 sm:$0xff]   ;;  %v13164_v5 = vld [vmem:[#allocation4 + $0xc34] ss:$120 sps:$4 sm:$0xff]  }
  0x3a   :  { %v13166_v6 = vld [vmem:[#allocation4 + $0xc54] ss:$120 sps:$4 sm:$0xff]   ;;  %v13168_v7 = vld [vmem:[#allocation4 + $0xc30] ss:$120 sps:$4 sm:$0xff]   ;;  %v13170_v9 = vld [vmem:[#allocation4 + $0xd24] ss:$120 sps:$4 sm:$0xff]  }
  0x3b   :  { %v13169_v8 = vld [vmem:[#allocation4 + $0xc50] ss:$120 sps:$4 sm:$0xff]   ;;  %v13172_v10 = vld [vmem:[#allocation4 + $0xd44] ss:$120 sps:$4 sm:$0xff]   ;;  %v13174_v11 = vld [vmem:[#allocation4 + $0xd20] ss:$120 sps:$4 sm:$0xff]  }
  0x3c   :  { %v13175_v12 = vld [vmem:[#allocation4 + $0xd40] ss:$120 sps:$4 sm:$0xff]   ;;  %v13176_v13 = vld [vmem:[#allocation4 + $0xe14] ss:$120 sps:$4 sm:$0xff]  }
  0x3d   :  { %v132_v29 = vld [vmem:[%s16886_s0 + $0x2d8] sm:$0xff]  ;;  %v110_v30 = vld [vmem:[%s16886_s0 + $0x228] sm:$0xff] }
  0x3e   :  { %v140_v33 = vld [vmem:[%s16886_s0 + $0x318] sm:$0xff] }
  0x3f   :  { %8006 = vmatpush1.bf16.xpose.msra.mxu1 %v13108_v14  ;;  %v13178_v14 = vld [vmem:[#allocation4 + $0xe34] ss:$120 sps:$4 sm:$0xff]   ;;  %v13185_v42 = vld [vmem:[#allocation4 + $0x28] ss:$120 sps:$4 sm:$0xff]  }
  0x40   :  { %8298 = vmatpush1.bf16.xpose.msra.mxu0 %v13109_v15  ;;  %8007 = vmatprep.subr.bf16.mxu1 %v13110_v16  ;;  %v15036_v15 = vsub.s32 0, %v14996_v23  ;;  %v13180_v16 = vld [vmem:[#allocation4 + $0xe10] ss:$120 sps:$4 sm:$0xff]  }
  0x41   :  { %8299 = vmatprep.subr.bf16.mxu0 %v13112_v17  ;;  %v13181_v17 = vld [vmem:[#allocation4 + $0xe30] ss:$120 sps:$4 sm:$0xff]  }
  0x47   :  { %8008 = vmatpush1.bf16.xpose.msra.mxu1 %v13114_v18  ;;  %v41_v18 = vld [vmem:[%s16886_s0] sm:$0xff] }
  0x48   :  { %8300 = vmatpush1.bf16.xpose.msra.mxu0 %v13115_v19  ;;  %8009 = vmatprep.subr.bf16.mxu1 %v13116_v20  ;;  %v13184_v19 = vld [vmem:[#allocation4 + $0xc] ss:$120 sps:$4 sm:$0xff]  }
  0x49   :  { %8301 = vmatprep.subr.bf16.mxu0 %v13118_v22  ;;  %v13187_v20 = vld [vmem:[#allocation4 + $0x2c] ss:$120 sps:$4 sm:$0xff]   ;;  %v15046_v22 = vrot.slane %v15007_v31, %v15036_v15 }
  0x4b   :  { %v439_v34 = vmul.f32 %v15046_v22, %v41_v18  ;;  %v469_v36 = vmul.f32 %v15046_v22, %v71_v21  ;;  %v252_v18 = vld [vmem:[%s16886_s0 + $0x698] sm:$0xff] }
  0x4f   :  { %8010 = vmatpush1.bf16.xpose.msra.mxu1 %v13120_v24  ;;  %v49_v24 = vld [vmem:[%s16886_s0 + $0x40] sm:$0xff] }
  0x50   :  { %8302 = vmatpush1.bf16.xpose.msra.mxu0 %v13121_v25  ;;  %8011 = vmatprep.subr.bf16.mxu1 %v13122_v26  ;;  %v79_v25 = vld [vmem:[%s16886_s0 + $0x130] sm:$0xff]  ;;  %v15056_v26 = vrot.slane %v15019_v35, %v15036_v15 }
  0x51   :  { %8303 = vmatprep.subr.bf16.mxu0 %v13124_v28  ;;  %v102_v28 = vld [vmem:[%s16886_s0 + $0x1e8] sm:$0xff] }
  0x52   :  { %v447_v37 = vmul.f32 %v15056_v26, %v49_v24  ;;  %v500_v43 = vmul.f32 %v15011_v32, %v102_v28 }
  0x57   :  { %8012 = vmatpush1.bf16.xpose.msra.mxu1 %v13126_v39  ;;  %v477_v39 = vmul.f32 %v15056_v26, %v79_v25 }
  0x58   :  { %8304 = vmatpush1.bf16.xpose.msra.mxu0 %v13127_v40  ;;  %8013 = vmatprep.subr.bf16.mxu1 %v13128_v44  ;;  %v13182_v40 = vld [vmem:[#allocation4 + $0x8] ss:$120 sps:$4 sm:$0xff]   ;;  %v530_v44 = vmul.f32 %v15011_v32, %v132_v29 }
  0x59   :  { %8305 = vmatprep.subr.bf16.mxu0 %v13130_v45  ;;  %v508_v45 = vmul.f32 %v15025_v38, %v110_v30 }
  0x5f   :  { %8014 = vmatpush1.bf16.xpose.msra.mxu1 %v13132_v47  ;;  %v538_v47 = vmul.f32 %v15025_v38, %v140_v33 }
  0x60   :  { %8306 = vmatpush1.bf16.xpose.msra.mxu0 %v13133_v48  ;;  %8015 = vmatprep.subr.bf16.mxu1 %v13134_v49  ;;  %v101_v48 = vld [vmem:[%s16886_s0 + $0x1e0] sm:$0xff]  ;;  %v15081_v49 = vpack.c.bf16 %v469_v36, %v439_v34  ;;  %v15165_v36 = vsub.s32 3, %v14996_v23 }
  0x61   :  { %8307 = vmatprep.subr.bf16.mxu0 %v13136_v50  ;;  %v15083_v50 = vpack.c.bf16 %v477_v39, %v447_v37  ;;  %v221_v34 = vld [vmem:[%s16886_s0 + $0x5a0] sm:$0xff] }
  0x62   :  { %v13194_v37 = vld [vmem:[#allocation4 + $0x1e8] ss:$120 sps:$4 sm:$0xff]  }
  0x63   :  { %17054 = vst [vmem:[#allocation8_spill] sm:$0xff] %v15083_v50  ;;  %v13197_v39 = vld [vmem:[#allocation4 + $0x208] ss:$120 sps:$4 sm:$0xff]  }
  0x67   :  { %8016 = vmatpush1.bf16.xpose.msra.mxu1 %v13138_v51  ;;  %v13190_v51 = vld [vmem:[#allocation4 + $0xfc] ss:$120 sps:$4 sm:$0xff]  }
  0x68   :  { %8308 = vmatpush1.bf16.xpose.msra.mxu0 %v13139_v52  ;;  %8017 = vmatprep.subr.bf16.mxu1 %v13140_v53  ;;  %v13193_v52 = vld [vmem:[#allocation4 + $0x11c] ss:$120 sps:$4 sm:$0xff]  }
  0x69   :  { %8309 = vmatprep.subr.bf16.mxu0 %v13142_v54  ;;  %v131_v53 = vld [vmem:[%s16886_s0 + $0x2d0] sm:$0xff]  ;;  %v109_v54 = vld [vmem:[%s16886_s0 + $0x220] sm:$0xff] }
  0x6f   :  { %8018 = vmatpush1.bf16.xpose.msra.mxu1 %v13144_v55  ;;  %v139_v55 = vld [vmem:[%s16886_s0 + $0x310] sm:$0xff] }
  0x70   :  { %8310 = vmatpush1.bf16.xpose.msra.mxu0 %v13145_v56  ;;  %8019 = vmatprep.subr.bf16.mxu1 %v13146_v57  ;;  %v162_v56 = vld [vmem:[%s16886_s0 + $0x3c8] sm:$0xff]  ;;  %v192_v57 = vld [vmem:[%s16886_s0 + $0x4b8] sm:$0xff] }
  0x71   :  { %8311 = vmatprep.subr.bf16.mxu0 %v13148_v58  ;;  %v170_v58 = vld [vmem:[%s16886_s0 + $0x408] sm:$0xff] }
  0x77   :  { %8020 = vmatpush1.bf16.xpose.msra.mxu1 %v13150_v59  ;;  %v200_v59 = vld [vmem:[%s16886_s0 + $0x4f8] sm:$0xff] }
  0x78   :  { %8312 = vmatpush1.bf16.xpose.msra.mxu0 %v13151_v60  ;;  %8021 = vmatprep.subr.bf16.mxu1 %v13152_v61  ;;  %v15106_v60 = vpack.c.bf16 %v530_v44, %v500_v43  ;;  %v15108_v61 = vpack.c.bf16 %v538_v47, %v508_v45  ;;  %v251_v44 = vld [vmem:[%s16886_s0 + $0x690] sm:$0xff]  ;;  %v229_v45 = vld [vmem:[%s16886_s0 + $0x5e0] sm:$0xff] }
  0x79   :  { %8313 = vmatprep.subr.bf16.mxu0 %v13154_v62  ;;  %v499_v62 = vmul.f32 %v15046_v22, %v101_v48  ;;  %v259_v47 = vld [vmem:[%s16886_s0 + $0x6d0] sm:$0xff] }
  0x7a   :  { %17055 = vst [vmem:[#allocation9_spill] sm:$0xff] %v15108_v61  ;;  %v13202_v48 = vld [vmem:[#allocation4 + $0x2dc] ss:$120 sps:$4 sm:$0xff]  }
  0x7f   :  { %8022 = vmatpush1.bf16.xpose.msra.mxu1 %v13156_v63  ;;  %v529_v63 = vmul.f32 %v15046_v22, %v131_v53  ;;  %v74_v53 = vld [vmem:[%s16886_s0 + $0x108] sm:$0xff] }
  0x80   :  { %8314 = vmatpush1.bf16.xpose.msra.mxu0 %v13157_v0  ;;  %8023 = vmatprep.subr.bf16.mxu1 %v13158_v1  ;;  %v507_v0 = vmul.f32 %v15056_v26, %v109_v54  ;;  %v537_v1 = vmul.f32 %v15056_v26, %v139_v55  ;;  %v15193_v54 = vrot.slane %v15007_v31, %v15165_v36  ;;  %v52_v55 = vld [vmem:[%s16886_s0 + $0x58] sm:$0xff] }
  0x81   :  { %8315 = vmatprep.subr.bf16.mxu0 %v13160_v2  ;;  %v560_v2 = vmul.f32 %v15011_v32, %v162_v56  ;;  %v82_v56 = vld [vmem:[%s16886_s0 + $0x148] sm:$0xff]  ;;  %v649_v31 = vmul.f32 %v15046_v22, %v251_v44  ;;  %v13241_v44 = vld [vmem:[#allocation4 + $0x89c] ss:$120 sps:$4 sm:$0xff]  }
  0x87   :  { %8024 = vmatpush1.bf16.xpose.msra.mxu1 %v13162_v3  ;;  %v161_v3 = vld [vmem:[%s16886_s0 + $0x3c0] sm:$0xff] }
  0x88   :  { %8316 = vmatpush1.bf16.xpose.msra.mxu0 %v13163_v4  ;;  %8025 = vmatprep.subr.bf16.mxu1 %v13164_v5  ;;  %v13188_v4 = vld [vmem:[#allocation4 + $0xf8] ss:$120 sps:$4 sm:$0xff]   ;;  %v559_v25 = vmul.f32 %v15046_v22, %v161_v3 }
  0x89   :  { %8317 = vmatprep.subr.bf16.mxu0 %v13166_v6  ;;  %v13191_v5 = vld [vmem:[#allocation4 + $0x118] ss:$120 sps:$4 sm:$0xff]   ;;  %v590_v6 = vmul.f32 %v15011_v32, %v192_v57 }
  0x8a   :  { %v13203_v3 = vld [vmem:[#allocation4 + $0x2f8] ss:$120 sps:$4 sm:$0xff]  }
  0x8b   :  { %v15150_v21 = vpack.c.bf16 %v590_v6, %v560_v2  ;;  %v13200_v2 = vld [vmem:[#allocation4 + $0x2d8] ss:$120 sps:$4 sm:$0xff]  }
  0x8f   :  { %8026 = vmatpush1.bf16.xpose.msra.mxu1 %v13168_v7  ;;  %v568_v7 = vmul.f32 %v15025_v38, %v170_v58 }
  0x90   :  { %8318 = vmatpush1.bf16.xpose.msra.mxu0 %v13169_v8  ;;  %8027 = vmatprep.subr.bf16.mxu1 %v13170_v9  ;;  %v598_v8 = vmul.f32 %v15025_v38, %v200_v59  ;;  %v191_v9 = vld [vmem:[%s16886_s0 + $0x4b0] sm:$0xff]  ;;  %v619_v59 = vmul.f32 %v15046_v22, %v221_v34 }
  0x91   :  { %8319 = vmatprep.subr.bf16.mxu0 %v13172_v10  ;;  %v169_v10 = vld [vmem:[%s16886_s0 + $0x400] sm:$0xff]  ;;  %v589_v28 = vmul.f32 %v15046_v22, %v191_v9  ;;  %v13227_v34 = vld [vmem:[#allocation4 + $0x6b8] ss:$120 sps:$4 sm:$0xff]  }
  0x92   :  { %v15152_v24 = vpack.c.bf16 %v598_v8, %v568_v7  ;;  %v567_v29 = vmul.f32 %v15056_v26, %v169_v10  ;;  %v15221_v6 = vpack.c.bf16 %v649_v31, %v619_v59  ;;  %v13206_v10 = vld [vmem:[#allocation4 + $0x3c8] ss:$120 sps:$4 sm:$0xff]   ;;  %v13248_v59 = vld [vmem:[#allocation4 + $0xa58] ss:$120 sps:$4 sm:$0xff]  }
  0x93   :  { %v13251_v31 = vld [vmem:[#allocation4 + $0xa78] ss:$120 sps:$4 sm:$0xff]  }
  0x94   :  { %17057 = vst [vmem:[#allocation11_spill] sm:$0xff] %v15152_v24 }
  0x97   :  { %8028 = vmatpush1.bf16.xpose.msra.mxu1 %v13174_v11  ;;  %v199_v11 = vld [vmem:[%s16886_s0 + $0x4f0] sm:$0xff] }
  0x98   :  { %8320 = vmatpush1.bf16.xpose.msra.mxu0 %v13175_v12  ;;  %8029 = vmatprep.subr.bf16.mxu1 %v13176_v13  ;;  %v13196_v12 = vld [vmem:[#allocation4 + $0x1ec] ss:$120 sps:$4 sm:$0xff]   ;;  %v597_v30 = vmul.f32 %v15056_v26, %v199_v11  ;;  %v13209_v11 = vld [vmem:[#allocation4 + $0x3e8] ss:$120 sps:$4 sm:$0xff]  }
  0x99   :  { %8321 = vmatprep.subr.bf16.mxu0 %v13178_v14  ;;  %v13199_v13 = vld [vmem:[#allocation4 + $0x20c] ss:$120 sps:$4 sm:$0xff]   ;;  %v15134_v14 = vpack.c.bf16 %v529_v63, %v499_v62  ;;  %v15208_v62 = vrot.slane %v15019_v35, %v15165_v36  ;;  %v627_v63 = vmul.f32 %v15056_v26, %v229_v45  ;;  %v472_v35 = vmul.f32 %v15193_v54, %v74_v53  ;;  %v13236_v45 = vld [vmem:[#allocation4 + $0x878] ss:$120 sps:$4 sm:$0xff]   ;;  %v13245_v53 = vld [vmem:[#allocation4 + $0x988] ss:$120 sps:$4 sm:$0xff]  }
  0x9b   :  { %v450_v22 = vmul.f32 %v15208_v62, %v52_v55  ;;  %v13250_v55 = vld [vmem:[#allocation4 + $0xa5c] ss:$120 sps:$4 sm:$0xff]  }
  0x9f   :  { %8030 = vmatpush1.bf16.xpose.msra.mxu1 %v13180_v16  ;;  %v15136_v16 = vpack.c.bf16 %v537_v1, %v507_v0  ;;  %v657_v0 = vmul.f32 %v15056_v26, %v259_v47  ;;  %v13211_v26 = vld [vmem:[#allocation4 + $0x3ec] ss:$120 sps:$4 sm:$0xff]   ;;  %v13239_v47 = vld [vmem:[#allocation4 + $0x898] ss:$120 sps:$4 sm:$0xff]  }
  0xa0   :  { %8322 = vmatpush1.bf16.xpose.msra.mxu0 %v13181_v17  ;;  %8072 = vmatprep.subr.bf16.mxu1 %v13184_v19  ;;  %v222_v17 = vld [vmem:[%s16886_s0 + $0x5a8] sm:$0xff] }
  0xa1   :  { %8364 = vmatprep.subr.bf16.mxu0 %v13187_v20  ;;  %17056 = vst [vmem:[#allocation10_spill] sm:$0xff] %v15136_v16  ;;  %v230_v19 = vld [vmem:[%s16886_s0 + $0x5e8] sm:$0xff]  ;;  %v260_v20 = vld [vmem:[%s16886_s0 + $0x6d8] sm:$0xff]  ;;  %v620_v33 = vmul.f32 %v15011_v32, %v222_v17  ;;  %v15223_v7 = vpack.c.bf16 %v657_v0, %v627_v63 }
  0xa2   :  { %v658_v43 = vmul.f32 %v15025_v38, %v260_v20  ;;  %v13212_v17 = vld [vmem:[#allocation4 + $0x4b8] ss:$120 sps:$4 sm:$0xff]   ;;  %v13223_v20 = vld [vmem:[#allocation4 + $0x5cc] ss:$120 sps:$4 sm:$0xff]  }
  0xa3   :  { %17060 = vst [vmem:[#allocation14_spill] sm:$0xff] %v15223_v7  ;;  %v13256_v63 = vld [vmem:[#allocation4 + $0xb4c] ss:$120 sps:$4 sm:$0xff]  }
  0xa4   :  { %v13259_v0 = vld [vmem:[#allocation4 + $0xb6c] ss:$120 sps:$4 sm:$0xff]  }
  0xa6   :  { %8032 = vmatmul.mubr.bf16.vlgmr.msra.gmra.mrb[0].mxu1 %v15081_v49 }
  0xa7   :  { %8324 = vmatmul.mubr.bf16.vlgmr.msra.gmra.mrb[0].mxu0 %v15083_v50  ;;  %8073 = vmatpush1.bf16.xpose.msra.mxu1 %v13182_v40  ;;  %v650_v40 = vmul.f32 %v15011_v32, %v252_v18  ;;  %v15183_v32 = vpack.c.bf16 %v597_v30, %v567_v29  ;;  %v13215_v18 = vld [vmem:[#allocation4 + $0x4d8] ss:$120 sps:$4 sm:$0xff]   ;;  %v13226_v29 = vld [vmem:[#allocation4 + $0x69c] ss:$120 sps:$4 sm:$0xff]  }
  0xa8   :  { %8365 = vmatpush1.bf16.xpose.msra.mxu0 %v13185_v42  ;;  %8074 = vmatprep.subr.bf16.mxu1 %v13190_v51  ;;  %v628_v42 = vmul.f32 %v15025_v38, %v230_v19  ;;  %v13205_v51 = vld [vmem:[#allocation4 + $0x2fc] ss:$120 sps:$4 sm:$0xff]   ;;  %v13220_v19 = vld [vmem:[#allocation4 + $0x5ac] ss:$120 sps:$4 sm:$0xff]  }
  0xa9   :  { %8366 = vmatprep.subr.bf16.mxu0 %v13193_v52  ;;  %8041 = vmatprep.mubr.bf16.mxu1 %v15106_v60  ;;  %v15181_v52 = vpack.c.bf16 %v589_v28, %v559_v25  ;;  %17058 = vst [vmem:[#allocation12_spill] sm:$0xff] %v15183_v32  ;;  %v44_v38 = vld [vmem:[%s16886_s0 + $0x18] sm:$0xff]  ;;  %v15201_v57 = vpack.c.bf16 %v650_v40, %v620_v33 }
  0xaa   :  { %8333 = vmatprep.mubr.bf16.mxu0 %v15108_v61  ;;  %v15203_v58 = vpack.c.bf16 %v658_v43, %v628_v42  ;;  %v442_v1 = vmul.f32 %v15193_v54, %v44_v38  ;;  %v13218_v25 = vld [vmem:[#allocation4 + $0x5a8] ss:$120 sps:$4 sm:$0xff]   ;;  %v13229_v30 = vld [vmem:[#allocation4 + $0x6bc] ss:$120 sps:$4 sm:$0xff]   ;;  %v13224_v33 = vld [vmem:[#allocation4 + $0x698] ss:$120 sps:$4 sm:$0xff]  }
  0xab   :  { %v13221_v28 = vld [vmem:[#allocation4 + $0x5c8] ss:$120 sps:$4 sm:$0xff]   ;;  %v13238_v43 = vld [vmem:[#allocation4 + $0x87c] ss:$120 sps:$4 sm:$0xff]  }
  0xac   :  { %17059 = vst [vmem:[#allocation13_spill] sm:$0xff] %v15203_v58  ;;  %v15225_v8 = vpack.c.bf16 %v472_v35, %v442_v1  ;;  %v13230_v40 = vld [vmem:[#allocation4 + $0x788] ss:$120 sps:$4 sm:$0xff]   ;;  %v13265_v35 = vld [vmem:[#allocation4 + $0xc5c] ss:$120 sps:$4 sm:$0xff]  }
  0xad   :  { %v13233_v42 = vld [vmem:[#allocation4 + $0x7a8] ss:$120 sps:$4 sm:$0xff]  }
  0xae   :  { %8042 = vmatmul.mubr.bf16.gmra.mrb[4].mxu1 %v15134_v14  ;;  %v13242_v38 = vld [vmem:[#allocation4 + $0x968] ss:$120 sps:$4 sm:$0xff]  }
  0xaf   :  { %8334 = vmatmul.mubr.bf16.gmra.mrb[4].mxu0 %v15136_v16  ;;  %8075 = vmatpush1.bf16.xpose.msra.mxu1 %v13188_v4  ;;  %v480_v4 = vmul.f32 %v15208_v62, %v82_v56  ;;  %v13253_v56 = vld [vmem:[#allocation4 + $0xa7c] ss:$120 sps:$4 sm:$0xff]   ;;  %v13254_v1 = vld [vmem:[#allocation4 + $0xb48] ss:$120 sps:$4 sm:$0xff]  }
  0xb0   :  { %8367 = vmatpush1.bf16.xpose.msra.mxu0 %v13191_v5  ;;  %8076 = vmatprep.subr.bf16.mxu1 %v13196_v12  ;;  %v13208_v5 = vld [vmem:[#allocation4 + $0x3cc] ss:$120 sps:$4 sm:$0xff]   ;;  %v13214_v12 = vld [vmem:[#allocation4 + $0x4bc] ss:$120 sps:$4 sm:$0xff]  }
  0xb1   :  { %8368 = vmatprep.subr.bf16.mxu0 %v13199_v13  ;;  %8051 = vmatprep.mubr.bf16.mxu1 %v15150_v21  ;;  %v15227_v9 = vpack.c.bf16 %v480_v4, %v450_v22  ;;  %v13217_v13 = vld [vmem:[#allocation4 + $0x4dc] ss:$120 sps:$4 sm:$0xff]   ;;  %v13260_v22 = vld [vmem:[#allocation4 + $0xc38] ss:$120 sps:$4 sm:$0xff]  }
  0xb2   :  { %8343 = vmatprep.mubr.bf16.mxu0 %v15152_v24  ;;  %v13263_v4 = vld [vmem:[#allocation4 + $0xc58] ss:$120 sps:$4 sm:$0xff]  }
  0xb3   :  { %17061 = vst [vmem:[#allocation15_spill] sm:$0xff] %v15227_v9  ;;  %v236_v16 = vld [vmem:[%s16886_s0 + $0x618] sm:$0xff] }
  0xb6   :  { %8052 = vmatmul.mubr.bf16.gmra.mrb[8].mxu1 %v15181_v52 }
  0xb7   :  { %8344 = vmatmul.mubr.bf16.gmra.mrb[8].mxu0 %v15183_v32  ;;  %8077 = vmatpush1.bf16.xpose.msra.mxu1 %v13194_v37  ;;  %v13232_v37 = vld [vmem:[#allocation4 + $0x78c] ss:$120 sps:$4 sm:$0xff]   ;;  %v176_v32 = vld [vmem:[%s16886_s0 + $0x438] sm:$0xff] }
  0xb8   :  { %8369 = vmatpush1.bf16.xpose.msra.mxu0 %v13197_v39  ;;  %8078 = vmatprep.subr.bf16.mxu1 %v13202_v48  ;;  %v13235_v39 = vld [vmem:[#allocation4 + $0x7ac] ss:$120 sps:$4 sm:$0xff]  }
  0xb9   :  { %8370 = vmatprep.subr.bf16.mxu0 %v13205_v51  ;;  %8061 = vmatprep.mubr.bf16.mxu1 %v15201_v57  ;;  %v13244_v48 = vld [vmem:[#allocation4 + $0x96c] ss:$120 sps:$4 sm:$0xff]  }
  0xba   :  { %8353 = vmatprep.mubr.bf16.mxu0 %v15203_v58  ;;  %v13247_v51 = vld [vmem:[#allocation4 + $0x98c] ss:$120 sps:$4 sm:$0xff]  }
  0xbe   :  { %8062 = vmatmul.mubr.bf16.gmra.mrb[12].mxu1 %v15221_v6 }
  0xbf   :  { %8354 = vmatmul.mubr.bf16.gmra.mrb[12].mxu0 %v15223_v7  ;;  %8079 = vmatpush1.bf16.xpose.msra.mxu1 %v13200_v2  ;;  %v13257_v2 = vld [vmem:[#allocation4 + $0xb68] ss:$120 sps:$4 sm:$0xff]  }
  0xc0   :  { %8371 = vmatpush1.bf16.xpose.msra.mxu0 %v13203_v3  ;;  %8080 = vmatprep.subr.bf16.mxu1 %v13208_v5  ;;  %v13262_v3 = vld [vmem:[#allocation4 + $0xc3c] ss:$120 sps:$4 sm:$0xff]   ;;  %v13268_v5 = vld [vmem:[#allocation4 + $0xd2c] ss:$120 sps:$4 sm:$0xff]   ;;  %v13470_v7 = vld [vmem:[#allocation4 + $0x40] ss:$120 sps:$4 sm:$0xff]  }
  0xc1   :  { %8372 = vmatprep.subr.bf16.mxu0 %v13211_v26  ;;  %8104 = vmatprep.mubr.bf16.mxu1 %v15225_v8  ;;  %v13271_v26 = vld [vmem:[#allocation4 + $0xd4c] ss:$120 sps:$4 sm:$0xff]  }
  0xc2   :  { %8396 = vmatprep.mubr.bf16.mxu0 %v15227_v9 }
  0xc7   :  { %8081 = vmatpush1.bf16.xpose.msra.mxu1 %v13206_v10  ;;  %v13266_v10 = vld [vmem:[#allocation4 + $0xd28] ss:$120 sps:$4 sm:$0xff]  }
  0xc8   :  { %8373 = vmatpush1.bf16.xpose.msra.mxu0 %v13209_v11  ;;  %8082 = vmatprep.subr.bf16.mxu1 %v13214_v12  ;;  %v13269_v11 = vld [vmem:[#allocation4 + $0xd48] ss:$120 sps:$4 sm:$0xff]   ;;  %v13274_v12 = vld [vmem:[#allocation4 + $0xe1c] ss:$120 sps:$4 sm:$0xff]  }
  0xc9   :  { %8374 = vmatprep.subr.bf16.mxu0 %v13217_v13  ;;  %v13277_v13 = vld [vmem:[#allocation4 + $0xe3c] ss:$120 sps:$4 sm:$0xff]  }
  0xcf   :  { %8083 = vmatpush1.bf16.xpose.msra.mxu1 %v13212_v17  ;;  %v15234_v17 = vsub.s32 2, %v14996_v23 }
  0xd0   :  { %8375 = vmatpush1.bf16.xpose.msra.mxu0 %v13215_v18  ;;  %8084 = vmatprep.subr.bf16.mxu1 %v13220_v19  ;;  %v13272_v18 = vld [vmem:[#allocation4 + $0xe18] ss:$120 sps:$4 sm:$0xff]  }
  0xd1   :  { %8376 = vmatprep.subr.bf16.mxu0 %v13223_v20  ;;  %v13275_v19 = vld [vmem:[#allocation4 + $0xe38] ss:$120 sps:$4 sm:$0xff]  }
  0xd2   :  { %v43_v20 = vld [vmem:[%s16886_s0 + $0x10] sm:$0xff] }
  0xd7   :  { %8085 = vmatpush1.bf16.xpose.msra.mxu1 %v13218_v25  ;;  %v13280_v25 = vld [vmem:[#allocation4 + $0x14] ss:$120 sps:$4 sm:$0xff]  }
  0xd8   :  { %8377 = vmatpush1.bf16.xpose.msra.mxu0 %v13221_v28  ;;  %8086 = vmatprep.subr.bf16.mxu1 %v13226_v29  ;;  %v13283_v28 = vld [vmem:[#allocation4 + $0x34] ss:$120 sps:$4 sm:$0xff]   ;;  %v73_v29 = vld [vmem:[%s16886_s0 + $0x100] sm:$0xff] }
  0xd9   :  { %8378 = vmatprep.subr.bf16.mxu0 %v13229_v30  ;;  %v15242_v30 = vld [vmem:[#allocation2] sm:$0xff] }
  0xdf   :  { %8087 = vmatpush1.bf16.xpose.msra.mxu1 %v13224_v33  ;;  %v15246_v33 = vrot.slane %v15242_v30, %v15234_v17 }
  0xe0   :  { %8379 = vmatpush1.bf16.xpose.msra.mxu0 %v13227_v34  ;;  %8088 = vmatprep.subr.bf16.mxu1 %v13232_v37  ;;  %v51_v34 = vld [vmem:[%s16886_s0 + $0x50] sm:$0xff]  ;;  %v81_v37 = vld [vmem:[%s16886_s0 + $0x140] sm:$0xff] }
  0xe1   :  { %8380 = vmatprep.subr.bf16.mxu0 %v13235_v39  ;;  %v15254_v39 = vld [vmem:[#allocation2 + $0x8] sm:$0xff] }
  0xe7   :  { %8089 = vmatpush1.bf16.xpose.msra.mxu1 %v13230_v40  ;;  %v15258_v40 = vrot.slane %v15254_v39, %v15234_v17 }
  0xe8   :  { %8381 = vmatpush1.bf16.xpose.msra.mxu0 %v13233_v42  ;;  %8090 = vmatprep.subr.bf16.mxu1 %v13238_v43  ;;  %v104_v42 = vld [vmem:[%s16886_s0 + $0x1f8] sm:$0xff]  ;;  %v134_v43 = vld [vmem:[%s16886_s0 + $0x2e8] sm:$0xff] }
  0xe9   :  { %8382 = vmatprep.subr.bf16.mxu0 %v13241_v44  ;;  %v112_v44 = vld [vmem:[%s16886_s0 + $0x238] sm:$0xff] }
  0xef   :  { %8091 = vmatpush1.bf16.xpose.msra.mxu1 %v13236_v45  ;;  %v142_v45 = vld [vmem:[%s16886_s0 + $0x328] sm:$0xff] }
  0xf0   :  { %8383 = vmatpush1.bf16.xpose.msra.mxu0 %v13239_v47  ;;  %8092 = vmatprep.subr.bf16.mxu1 %v13244_v48  ;;  %v441_v47 = vmul.f32 %v15246_v33, %v43_v20  ;;  %v471_v48 = vmul.f32 %v15246_v33, %v73_v29 }
  0xf1   :  { %8384 = vmatprep.subr.bf16.mxu0 %v13247_v51  ;;  %v449_v51 = vmul.f32 %v15258_v40, %v51_v34  ;;  %v163_v34 = vld [vmem:[%s16886_s0 + $0x3d0] sm:$0xff] }
  0xf7   :  { %8093 = vmatpush1.bf16.xpose.msra.mxu1 %v13242_v38  ;;  %v479_v38 = vmul.f32 %v15258_v40, %v81_v37  ;;  %v13284_v37 = vld [vmem:[#allocation4 + $0x100] ss:$120 sps:$4 sm:$0xff]  }
  0xf8   :  { %8385 = vmatpush1.bf16.xpose.msra.mxu0 %v13245_v53  ;;  %8094 = vmatprep.subr.bf16.mxu1 %v13250_v55  ;;  %v13278_v53 = vld [vmem:[#allocation4 + $0x10] ss:$120 sps:$4 sm:$0xff]  }
  0xf9   :  { %8386 = vmatprep.subr.bf16.mxu0 %v13253_v56  ;;  %v13281_v55 = vld [vmem:[#allocation4 + $0x30] ss:$120 sps:$4 sm:$0xff]   ;;  %v502_v56 = vmul.f32 %v15193_v54, %v104_v42  ;;  %v13287_v42 = vld [vmem:[#allocation4 + $0x120] ss:$120 sps:$4 sm:$0xff]  }
  0xff   :  { %8095 = vmatpush1.bf16.xpose.msra.mxu1 %v13248_v59  ;;  %v532_v59 = vmul.f32 %v15193_v54, %v134_v43 }
 0x100   :  { %8387 = vmatpush1.bf16.xpose.msra.mxu0 %v13251_v31  ;;  %8096 = vmatprep.subr.bf16.mxu1 %v13256_v63  ;;  %v510_v31 = vmul.f32 %v15208_v62, %v112_v44  ;;  %v540_v63 = vmul.f32 %v15208_v62, %v142_v45 }
 0x101   :  { %8388 = vmatprep.subr.bf16.mxu0 %v13259_v0  ;;  %v103_v0 = vld [vmem:[%s16886_s0 + $0x1f0] sm:$0xff] }
 0x107   :  { %8097 = vmatpush1.bf16.xpose.msra.mxu1 %v13254_v1  ;;  %v15283_v1 = vpack.c.bf16 %v471_v48, %v441_v47  ;;  %v193_v47 = vld [vmem:[%s16886_s0 + $0x4c0] sm:$0xff]  ;;  %v171_v48 = vld [vmem:[%s16886_s0 + $0x410] sm:$0xff] }
 0x108   :  { %8389 = vmatpush1.bf16.xpose.msra.mxu0 %v13257_v2  ;;  %8098 = vmatprep.subr.bf16.mxu1 %v13262_v3  ;;  %v15285_v2 = vpack.c.bf16 %v479_v38, %v449_v51  ;;  %v13286_v3 = vld [vmem:[#allocation4 + $0x104] ss:$120 sps:$4 sm:$0xff]   ;;  %v13292_v38 = vld [vmem:[#allocation4 + $0x1f4] ss:$120 sps:$4 sm:$0xff]  }
 0x109   :  { %8390 = vmatprep.subr.bf16.mxu0 %v13265_v35  ;;  %v13289_v35 = vld [vmem:[#allocation4 + $0x124] ss:$120 sps:$4 sm:$0xff]  }
 0x10a   :  { %17062 = vst [vmem:[#allocation16_spill] sm:$0xff] %v15285_v2  ;;  %v201_v51 = vld [vmem:[%s16886_s0 + $0x500] sm:$0xff] }
 0x10f   :  { %8099 = vmatpush1.bf16.xpose.msra.mxu1 %v13260_v22  ;;  %v133_v22 = vld [vmem:[%s16886_s0 + $0x2e0] sm:$0xff] }
 0x110   :  { %8391 = vmatpush1.bf16.xpose.msra.mxu0 %v13263_v4  ;;  %8100 = vmatprep.subr.bf16.mxu1 %v13268_v5  ;;  %v111_v4 = vld [vmem:[%s16886_s0 + $0x230] sm:$0xff]  ;;  %v141_v5 = vld [vmem:[%s16886_s0 + $0x320] sm:$0xff]  ;;  %v531_v20 = vmul.f32 %v15246_v33, %v133_v22  ;;  %v561_v22 = vmul.f32 %v15246_v33, %v163_v34 }
 0x111   :  { %8392 = vmatprep.subr.bf16.mxu0 %v13271_v26  ;;  %v164_v26 = vld [vmem:[%s16886_s0 + $0x3d8] sm:$0xff]  ;;  %v253_v34 = vld [vmem:[%s16886_s0 + $0x6a0] sm:$0xff] }
 0x112   :  { %v562_v29 = vmul.f32 %v15193_v54, %v164_v26  ;;  %v599_v26 = vmul.f32 %v15258_v40, %v201_v51  ;;  %v54_v51 = vld [vmem:[%s16886_s0 + $0x68] sm:$0xff] }
 0x117   :  { %8101 = vmatpush1.bf16.xpose.msra.mxu1 %v13266_v10  ;;  %v194_v10 = vld [vmem:[%s16886_s0 + $0x4c8] sm:$0xff] }
 0x118   :  { %8393 = vmatpush1.bf16.xpose.msra.mxu0 %v13269_v11  ;;  %8102 = vmatprep.subr.bf16.mxu1 %v13274_v12  ;;  %v172_v11 = vld [vmem:[%s16886_s0 + $0x418] sm:$0xff]  ;;  %v202_v12 = vld [vmem:[%s16886_s0 + $0x508] sm:$0xff]  ;;  %v592_v43 = vmul.f32 %v15193_v54, %v194_v10 }
 0x119   :  { %8394 = vmatprep.subr.bf16.mxu0 %v13277_v13  ;;  %v15308_v13 = vpack.c.bf16 %v532_v59, %v502_v56  ;;  %v570_v44 = vmul.f32 %v15208_v62, %v172_v11  ;;  %v600_v45 = vmul.f32 %v15208_v62, %v202_v12  ;;  %v224_v59 = vld [vmem:[%s16886_s0 + $0x5b8] sm:$0xff]  ;;  %v223_v11 = vld [vmem:[%s16886_s0 + $0x5b0] sm:$0xff]  ;;  %v15367_v12 = vsub.s32 5, %v14996_v23 }
 0x11a   :  { %v622_v10 = vmul.f32 %v15193_v54, %v224_v59 }
 0x11f   :  { %8103 = vmatpush1.bf16.xpose.msra.mxu1 %v13272_v18  ;;  %v15310_v18 = vpack.c.bf16 %v540_v63, %v510_v31  ;;  %v254_v31 = vld [vmem:[%s16886_s0 + $0x6a8] sm:$0xff]  ;;  %v232_v63 = vld [vmem:[%s16886_s0 + $0x5f8] sm:$0xff] }
 0x120   :  { %8395 = vmatpush1.bf16.xpose.msra.mxu0 %v13275_v19  ;;  %8145 = vmatprep.subr.bf16.mxu1 %v13280_v25  ;;  %v501_v19 = vmul.f32 %v15246_v33, %v103_v0  ;;  %v509_v25 = vmul.f32 %v15258_v40, %v111_v4  ;;  %v262_v0 = vld [vmem:[%s16886_s0 + $0x6e8] sm:$0xff]  ;;  %v591_v4 = vmul.f32 %v15246_v33, %v193_v47  ;;  %v76_v47 = vld [vmem:[%s16886_s0 + $0x118] sm:$0xff] }
 0x121   :  { %8437 = vmatprep.subr.bf16.mxu0 %v13283_v28  ;;  %17063 = vst [vmem:[#allocation17_spill] sm:$0xff] %v15310_v18  ;;  %v539_v28 = vmul.f32 %v15258_v40, %v141_v5  ;;  %v569_v5 = vmul.f32 %v15258_v40, %v171_v48  ;;  %v15395_v48 = vrot.slane %v15242_v30, %v15367_v12 }
 0x122   :  { %v651_v30 = vmul.f32 %v15246_v33, %v253_v34  ;;  %v13305_v34 = vld [vmem:[#allocation4 + $0x3f0] ss:$120 sps:$4 sm:$0xff]  }
 0x123   :  { %v15338_v56 = vpack.c.bf16 %v539_v28, %v509_v25  ;;  %v652_v25 = vmul.f32 %v15193_v54, %v254_v31  ;;  %v630_v28 = vmul.f32 %v15208_v62, %v232_v63  ;;  %v15385_v54 = vpack.c.bf16 %v599_v26, %v569_v5  ;;  %v13296_v5 = vld [vmem:[#allocation4 + $0x2e0] ss:$120 sps:$4 sm:$0xff]  }
 0x124   :  { %v621_v31 = vmul.f32 %v15246_v33, %v223_v11  ;;  %v15410_v63 = vrot.slane %v15254_v39, %v15367_v12  ;;  %v13299_v26 = vld [vmem:[#allocation4 + $0x300] ss:$120 sps:$4 sm:$0xff]   ;;  %v474_v39 = vmul.f32 %v15395_v48, %v76_v47  ;;  %v13304_v11 = vld [vmem:[#allocation4 + $0x3d4] ss:$120 sps:$4 sm:$0xff]  }
 0x125   :  { %17064 = vst [vmem:[#allocation18_spill] sm:$0xff] %v15338_v56  ;;  %17066 = vst [vmem:[#allocation20_spill] sm:$0xff] %v15385_v54  ;;  %v13319_v47 = vld [vmem:[#allocation4 + $0x5d4] ss:$120 sps:$4 sm:$0xff]  }
 0x126   :  { %8105 = vmatmul.mubr.bf16.vlgmr.msra.gmra.mrb[0].mxu1 %v15283_v1  ;;  %v452_v33 = vmul.f32 %v15410_v63, %v54_v51  ;;  %v13314_v51 = vld [vmem:[#allocation4 + $0x5b0] ss:$120 sps:$4 sm:$0xff]  }
 0x127   :  { %8397 = vmatmul.mubr.bf16.vlgmr.msra.gmra.mrb[0].mxu0 %v15285_v2  ;;  %8146 = vmatpush1.bf16.xpose.msra.mxu1 %v13278_v53  ;;  %v13295_v53 = vld [vmem:[#allocation4 + $0x214] ss:$120 sps:$4 sm:$0xff]  }
 0x128   :  { %8438 = vmatpush1.bf16.xpose.msra.mxu0 %v13281_v55  ;;  %8147 = vmatprep.subr.bf16.mxu1 %v13286_v3  ;;  %v15336_v55 = vpack.c.bf16 %v531_v20, %v501_v19  ;;  %v15352_v3 = vpack.c.bf16 %v592_v43, %v562_v29  ;;  %v13290_v19 = vld [vmem:[#allocation4 + $0x1f0] ss:$120 sps:$4 sm:$0xff]   ;;  %v660_v29 = vmul.f32 %v15208_v62, %v262_v0  ;;  %v13298_v43 = vld [vmem:[#allocation4 + $0x2e4] ss:$120 sps:$4 sm:$0xff]  }
 0x129   :  { %8439 = vmatprep.subr.bf16.mxu0 %v13289_v35  ;;  %8114 = vmatprep.mubr.bf16.mxu1 %v15308_v13  ;;  %v15354_v35 = vpack.c.bf16 %v600_v45, %v570_v44  ;;  %v13293_v20 = vld [vmem:[#allocation4 + $0x210] ss:$120 sps:$4 sm:$0xff]   ;;  %v13301_v44 = vld [vmem:[#allocation4 + $0x304] ss:$120 sps:$4 sm:$0xff]   ;;  %v15383_v45 = vpack.c.bf16 %v591_v4, %v561_v22 }
 0x12a   :  { %8406 = vmatprep.mubr.bf16.mxu0 %v15310_v18  ;;  %v46_v62 = vld [vmem:[%s16886_s0 + $0x28] sm:$0xff]  ;;  %v15405_v59 = vpack.c.bf16 %v660_v29, %v630_v28 }
 0x12b   :  { %17065 = vst [vmem:[#allocation19_spill] sm:$0xff] %v15354_v35  ;;  %v444_v4 = vmul.f32 %v15395_v48, %v46_v62  ;;  %v13302_v29 = vld [vmem:[#allocation4 + $0x3d0] ss:$120 sps:$4 sm:$0xff]   ;;  %v13316_v62 = vld [vmem:[#allocation4 + $0x5b4] ss:$120 sps:$4 sm:$0xff]  }
 0x12c   :  { %17067 = vst [vmem:[#allocation21_spill] sm:$0xff] %v15405_v59 }
 0x12e   :  { %8115 = vmatmul.mubr.bf16.gmra.mrb[4].mxu1 %v15336_v55 }
 0x12f   :  { %8407 = vmatmul.mubr.bf16.gmra.mrb[4].mxu0 %v15338_v56  ;;  %8148 = vmatpush1.bf16.xpose.msra.mxu1 %v13284_v37  ;;  %v231_v37 = vld [vmem:[%s16886_s0 + $0x5f0] sm:$0xff]  ;;  %v13383_v56 = vld [vmem:[#allocation4 + $0x128] ss:$120 sps:$4 sm:$0xff]  }
 0x130   :  { %8440 = vmatpush1.bf16.xpose.msra.mxu0 %v13287_v42  ;;  %8149 = vmatprep.subr.bf16.mxu1 %v13292_v38  ;;  %v261_v42 = vld [vmem:[%s16886_s0 + $0x6e0] sm:$0xff]  ;;  %v84_v38 = vld [vmem:[%s16886_s0 + $0x158] sm:$0xff]  ;;  %v629_v0 = vmul.f32 %v15258_v40, %v231_v37 }
 0x131   :  { %8441 = vmatprep.subr.bf16.mxu0 %v13295_v53  ;;  %8124 = vmatprep.mubr.bf16.mxu1 %v15352_v3  ;;  %v15403_v53 = vpack.c.bf16 %v652_v25, %v622_v10  ;;  %v659_v22 = vmul.f32 %v15258_v40, %v261_v42  ;;  %v482_v10 = vmul.f32 %v15410_v63, %v84_v38  ;;  %v13307_v40 = vld [vmem:[#allocation4 + $0x3f4] ss:$120 sps:$4 sm:$0xff]   ;;  %v13310_v37 = vld [vmem:[#allocation4 + $0x4c4] ss:$120 sps:$4 sm:$0xff]   ;;  %v13317_v38 = vld [vmem:[#allocation4 + $0x5d0] ss:$120 sps:$4 sm:$0xff]  }
 0x132   :  { %8416 = vmatprep.mubr.bf16.mxu0 %v15354_v35  ;;  %v15427_v25 = vpack.c.bf16 %v474_v39, %v444_v4  ;;  %v13313_v42 = vld [vmem:[#allocation4 + $0x4e4] ss:$120 sps:$4 sm:$0xff]   ;;  %v13328_v4 = vld [vmem:[#allocation4 + $0x794] ss:$120 sps:$4 sm:$0xff]   ;;  %v13329_v39 = vld [vmem:[#allocation4 + $0x7b0] ss:$120 sps:$4 sm:$0xff]  }
 0x133   :  { %v15429_v28 = vpack.c.bf16 %v482_v10, %v452_v33  ;;  %v13334_v33 = vld [vmem:[#allocation4 + $0x884] ss:$120 sps:$4 sm:$0xff]  }
 0x134   :  { %v13337_v10 = vld [vmem:[#allocation4 + $0x8a4] ss:$120 sps:$4 sm:$0xff]  }
 0x135   :  { %17069 = vst [vmem:[#allocation23_spill] sm:$0xff] %v15429_v28 }
 0x136   :  { %8125 = vmatmul.mubr.bf16.gmra.mrb[8].mxu1 %v15383_v45 }
 0x137   :  { %8417 = vmatmul.mubr.bf16.gmra.mrb[8].mxu0 %v15385_v54  ;;  %8150 = vmatpush1.bf16.xpose.msra.mxu1 %v13290_v19  ;;  %v15423_v19 = vpack.c.bf16 %v651_v30, %v621_v31  ;;  %v13322_v31 = vld [vmem:[#allocation4 + $0x6a4] ss:$120 sps:$4 sm:$0xff]  }
 0x138   :  { %8442 = vmatpush1.bf16.xpose.msra.mxu0 %v13293_v20  ;;  %8151 = vmatprep.subr.bf16.mxu1 %v13298_v43  ;;  %v15425_v20 = vpack.c.bf16 %v659_v22, %v629_v0  ;;  %v13308_v43 = vld [vmem:[#allocation4 + $0x4c0] ss:$120 sps:$4 sm:$0xff]   ;;  %v13325_v30 = vld [vmem:[#allocation4 + $0x6c4] ss:$120 sps:$4 sm:$0xff]  }
 0x139   :  { %8443 = vmatprep.subr.bf16.mxu0 %v13301_v44  ;;  %8134 = vmatprep.mubr.bf16.mxu1 %v15403_v53  ;;  %v13311_v44 = vld [vmem:[#allocation4 + $0x4e0] ss:$120 sps:$4 sm:$0xff]  }
 0x13a   :  { %8426 = vmatprep.mubr.bf16.mxu0 %v15405_v59  ;;  %17068 = vst [vmem:[#allocation22_spill] sm:$0xff] %v15425_v20  ;;  %v13320_v0 = vld [vmem:[#allocation4 + $0x6a0] ss:$120 sps:$4 sm:$0xff]  }
 0x13b   :  { %v13323_v22 = vld [vmem:[#allocation4 + $0x6c0] ss:$120 sps:$4 sm:$0xff]  }
 0x13c   :  { %v204_v54 = vld [vmem:[%s16886_s0 + $0x518] sm:$0xff] }
 0x13e   :  { %8135 = vmatmul.mubr.bf16.gmra.mrb[12].mxu1 %v15423_v19 }
 0x13f   :  { %8427 = vmatmul.mubr.bf16.gmra.mrb[12].mxu0 %v15425_v20  ;;  %8152 = vmatpush1.bf16.xpose.msra.mxu1 %v13296_v5  ;;  %v13331_v5 = vld [vmem:[#allocation4 + $0x7b4] ss:$120 sps:$4 sm:$0xff]  }
 0x140   :  { %8444 = vmatpush1.bf16.xpose.msra.mxu0 %v13299_v26  ;;  %8153 = vmatprep.subr.bf16.mxu1 %v13304_v11  ;;  %v13326_v26 = vld [vmem:[#allocation4 + $0x790] ss:$120 sps:$4 sm:$0xff]   ;;  %v13332_v11 = vld [vmem:[#allocation4 + $0x880] ss:$120 sps:$4 sm:$0xff]  }
 0x141   :  { %8445 = vmatprep.subr.bf16.mxu0 %v13307_v40  ;;  %8177 = vmatprep.mubr.bf16.mxu1 %v15427_v25  ;;  %v13335_v40 = vld [vmem:[#allocation4 + $0x8a0] ss:$120 sps:$4 sm:$0xff]  }
 0x142   :  { %8469 = vmatprep.mubr.bf16.mxu0 %v15429_v28  ;;  %v13377_v28 = vld [vmem:[#allocation4 + $0x38] ss:$120 sps:$4 sm:$0xff]  }
 0x147   :  { %8154 = vmatpush1.bf16.xpose.msra.mxu1 %v13302_v29  ;;  %v13340_v29 = vld [vmem:[#allocation4 + $0x974] ss:$120 sps:$4 sm:$0xff]  }
 0x148   :  { %8446 = vmatpush1.bf16.xpose.msra.mxu0 %v13305_v34  ;;  %8155 = vmatprep.subr.bf16.mxu1 %v13310_v37  ;;  %v13343_v34 = vld [vmem:[#allocation4 + $0x994] ss:$120 sps:$4 sm:$0xff]   ;;  %v13338_v37 = vld [vmem:[#allocation4 + $0x970] ss:$120 sps:$4 sm:$0xff]  }
 0x149   :  { %8447 = vmatprep.subr.bf16.mxu0 %v13313_v42  ;;  %v13341_v42 = vld [vmem:[#allocation4 + $0x990] ss:$120 sps:$4 sm:$0xff]  }
 0x14f   :  { %8156 = vmatpush1.bf16.xpose.msra.mxu1 %v13308_v43  ;;  %v13346_v43 = vld [vmem:[#allocation4 + $0xa64] ss:$120 sps:$4 sm:$0xff]  }
 0x150   :  { %8448 = vmatpush1.bf16.xpose.msra.mxu0 %v13311_v44  ;;  %8157 = vmatprep.subr.bf16.mxu1 %v13316_v62  ;;  %v13349_v44 = vld [vmem:[#allocation4 + $0xa84] ss:$120 sps:$4 sm:$0xff]   ;;  %v13344_v62 = vld [vmem:[#allocation4 + $0xa60] ss:$120 sps:$4 sm:$0xff]  }
 0x151   :  { %8449 = vmatprep.subr.bf16.mxu0 %v13319_v47  ;;  %v13347_v47 = vld [vmem:[#allocation4 + $0xa80] ss:$120 sps:$4 sm:$0xff]  }
 0x157   :  { %8158 = vmatpush1.bf16.xpose.msra.mxu1 %v13314_v51  ;;  %v13352_v51 = vld [vmem:[#allocation4 + $0xb54] ss:$120 sps:$4 sm:$0xff]  }
 0x158   :  { %8450 = vmatpush1.bf16.xpose.msra.mxu0 %v13317_v38  ;;  %8159 = vmatprep.subr.bf16.mxu1 %v13322_v31  ;;  %v13355_v38 = vld [vmem:[#allocation4 + $0xb74] ss:$120 sps:$4 sm:$0xff]   ;;  %v13350_v31 = vld [vmem:[#allocation4 + $0xb50] ss:$120 sps:$4 sm:$0xff]  }
 0x159   :  { %8451 = vmatprep.subr.bf16.mxu0 %v13325_v30  ;;  %v13353_v30 = vld [vmem:[#allocation4 + $0xb70] ss:$120 sps:$4 sm:$0xff]  }
 0x15f   :  { %8160 = vmatpush1.bf16.xpose.msra.mxu1 %v13320_v0  ;;  %v13358_v0 = vld [vmem:[#allocation4 + $0xc44] ss:$120 sps:$4 sm:$0xff]  }
 0x160   :  { %8452 = vmatpush1.bf16.xpose.msra.mxu0 %v13323_v22  ;;  %8161 = vmatprep.subr.bf16.mxu1 %v13328_v4  ;;  %v13361_v22 = vld [vmem:[#allocation4 + $0xc64] ss:$120 sps:$4 sm:$0xff]   ;;  %v13356_v4 = vld [vmem:[#allocation4 + $0xc40] ss:$120 sps:$4 sm:$0xff]  }
 0x161   :  { %8453 = vmatprep.subr.bf16.mxu0 %v13331_v5  ;;  %v13359_v5 = vld [vmem:[#allocation4 + $0xc60] ss:$120 sps:$4 sm:$0xff]  }
 0x167   :  { %8162 = vmatpush1.bf16.xpose.msra.mxu1 %v13326_v26  ;;  %v13364_v26 = vld [vmem:[#allocation4 + $0xd34] ss:$120 sps:$4 sm:$0xff]  }
 0x168   :  { %8454 = vmatpush1.bf16.xpose.msra.mxu0 %v13329_v39  ;;  %8163 = vmatprep.subr.bf16.mxu1 %v13334_v33  ;;  %v13367_v39 = vld [vmem:[#allocation4 + $0xd54] ss:$120 sps:$4 sm:$0xff]   ;;  %v13362_v33 = vld [vmem:[#allocation4 + $0xd30] ss:$120 sps:$4 sm:$0xff]  }
 0x169   :  { %8455 = vmatprep.subr.bf16.mxu0 %v13337_v10  ;;  %v13365_v10 = vld [vmem:[#allocation4 + $0xd50] ss:$120 sps:$4 sm:$0xff]  }
 0x16f   :  { %8164 = vmatpush1.bf16.xpose.msra.mxu1 %v13332_v11  ;;  %v13370_v11 = vld [vmem:[#allocation4 + $0xe24] ss:$120 sps:$4 sm:$0xff]  }
 0x170   :  { %8456 = vmatpush1.bf16.xpose.msra.mxu0 %v13335_v40  ;;  %8165 = vmatprep.subr.bf16.mxu1 %v13340_v29  ;;  %v13373_v40 = vld [vmem:[#allocation4 + $0xe44] ss:$120 sps:$4 sm:$0xff]   ;;  %v15436_v29 = vsub.s32 4, %v14996_v23 }
 0x171   :  { %8457 = vmatprep.subr.bf16.mxu0 %v13343_v34  ;;  %v13368_v34 = vld [vmem:[#allocation4 + $0xe20] ss:$120 sps:$4 sm:$0xff]  }
 0x177   :  { %8166 = vmatpush1.bf16.xpose.msra.mxu1 %v13338_v37  ;;  %v13371_v37 = vld [vmem:[#allocation4 + $0xe40] ss:$120 sps:$4 sm:$0xff]  }
 0x178   :  { %8458 = vmatpush1.bf16.xpose.msra.mxu0 %v13341_v42  ;;  %8167 = vmatprep.subr.bf16.mxu1 %v13346_v43  ;;  %v45_v42 = vld [vmem:[%s16886_s0 + $0x20] sm:$0xff]  ;;  %v13376_v43 = vld [vmem:[#allocation4 + $0x1c] ss:$120 sps:$4 sm:$0xff]  }
 0x179   :  { %8459 = vmatprep.subr.bf16.mxu0 %v13349_v44  ;;  %v13379_v44 = vld [vmem:[#allocation4 + $0x3c] ss:$120 sps:$4 sm:$0xff]  }
 0x17f   :  { %8168 = vmatpush1.bf16.xpose.msra.mxu1 %v13344_v62  ;;  %v75_v62 = vld [vmem:[%s16886_s0 + $0x110] sm:$0xff] }
 0x180   :  { %8460 = vmatpush1.bf16.xpose.msra.mxu0 %v13347_v47  ;;  %8169 = vmatprep.subr.bf16.mxu1 %v13352_v51  ;;  %v15444_v47 = vld [vmem:[#allocation2] sm:$0xff] }
 0x181   :  { %8461 = vmatprep.subr.bf16.mxu0 %v13355_v38  ;;  %v15448_v51 = vrot.slane %v15444_v47, %v15436_v29  ;;  %v53_v38 = vld [vmem:[%s16886_s0 + $0x60] sm:$0xff] }
 0x187   :  { %8170 = vmatpush1.bf16.xpose.msra.mxu1 %v13350_v31  ;;  %v83_v31 = vld [vmem:[%s16886_s0 + $0x150] sm:$0xff] }
 0x188   :  { %8462 = vmatpush1.bf16.xpose.msra.mxu0 %v13353_v30  ;;  %8171 = vmatprep.subr.bf16.mxu1 %v13358_v0  ;;  %v15456_v30 = vld [vmem:[#allocation2 + $0x8] sm:$0xff] }
 0x189   :  { %8463 = vmatprep.subr.bf16.mxu0 %v13361_v22  ;;  %v15460_v0 = vrot.slane %v15456_v30, %v15436_v29  ;;  %v106_v22 = vld [vmem:[%s16886_s0 + $0x208] sm:$0xff] }
 0x18a   :  { %v504_v20 = vmul.f32 %v15395_v48, %v106_v22  ;;  %v113_v22 = vld [vmem:[%s16886_s0 + $0x240] sm:$0xff] }
 0x18f   :  { %8172 = vmatpush1.bf16.xpose.msra.mxu1 %v13356_v4  ;;  %v136_v4 = vld [vmem:[%s16886_s0 + $0x2f8] sm:$0xff] }
 0x190   :  { %8464 = vmatpush1.bf16.xpose.msra.mxu0 %v13359_v5  ;;  %8173 = vmatprep.subr.bf16.mxu1 %v13364_v26  ;;  %v114_v5 = vld [vmem:[%s16886_s0 + $0x248] sm:$0xff]  ;;  %v144_v26 = vld [vmem:[%s16886_s0 + $0x338] sm:$0xff]  ;;  %v534_v59 = vmul.f32 %v15395_v48, %v136_v4  ;;  %v143_v4 = vld [vmem:[%s16886_s0 + $0x330] sm:$0xff] }
 0x191   :  { %8465 = vmatprep.subr.bf16.mxu0 %v13367_v39  ;;  %v443_v39 = vmul.f32 %v15448_v51, %v45_v42  ;;  %v105_v42 = vld [vmem:[%s16886_s0 + $0x200] sm:$0xff] }
 0x197   :  { %8174 = vmatpush1.bf16.xpose.msra.mxu1 %v13362_v33  ;;  %v473_v33 = vmul.f32 %v15448_v51, %v75_v62  ;;  %v135_v62 = vld [vmem:[%s16886_s0 + $0x2f0] sm:$0xff] }
 0x198   :  { %8466 = vmatpush1.bf16.xpose.msra.mxu0 %v13365_v10  ;;  %8175 = vmatprep.subr.bf16.mxu1 %v13370_v11  ;;  %v451_v10 = vmul.f32 %v15460_v0, %v53_v38  ;;  %v481_v11 = vmul.f32 %v15460_v0, %v83_v31  ;;  %v512_v38 = vmul.f32 %v15410_v63, %v114_v5  ;;  %v13385_v31 = vld [vmem:[#allocation4 + $0x12c] ss:$120 sps:$4 sm:$0xff]  }
 0x199   :  { %8467 = vmatprep.subr.bf16.mxu0 %v13373_v40  ;;  %v13374_v40 = vld [vmem:[#allocation4 + $0x18] ss:$120 sps:$4 sm:$0xff]   ;;  %v533_v35 = vmul.f32 %v15448_v51, %v135_v62 }
 0x19a   :  { %v166_v5 = vld [vmem:[%s16886_s0 + $0x3e8] sm:$0xff] }
 0x19f   :  { %8176 = vmatpush1.bf16.xpose.msra.mxu1 %v13368_v34  ;;  %v542_v34 = vmul.f32 %v15410_v63, %v144_v26  ;;  %v196_v26 = vld [vmem:[%s16886_s0 + $0x4d8] sm:$0xff] }
 0x1a0   :  { %8468 = vmatpush1.bf16.xpose.msra.mxu0 %v13371_v37  ;;  %8218 = vmatprep.subr.bf16.mxu1 %v13376_v43  ;;  %v15488_v37 = vpack.c.bf16 %v473_v33, %v443_v39  ;;  %v15490_v43 = vpack.c.bf16 %v481_v11, %v451_v10  ;;  %v15504_v39 = vpack.c.bf16 %v534_v59, %v504_v20  ;;  %v174_v11 = vld [vmem:[%s16886_s0 + $0x428] sm:$0xff] }
 0x1a1   :  { %8510 = vmatprep.subr.bf16.mxu0 %v13379_v44  ;;  %v13382_v44 = vld [vmem:[#allocation4 + $0x10c] ss:$120 sps:$4 sm:$0xff]   ;;  %v503_v33 = vmul.f32 %v15448_v51, %v105_v42  ;;  %v15507_v10 = vpack.c.bf16 %v542_v34, %v512_v38  ;;  %v511_v59 = vmul.f32 %v15460_v0, %v113_v22  ;;  %v541_v20 = vmul.f32 %v15460_v0, %v143_v4  ;;  %v13380_v34 = vld [vmem:[#allocation4 + $0x108] ss:$120 sps:$4 sm:$0xff]   ;;  %v203_v22 = vld [vmem:[%s16886_s0 + $0x510] sm:$0xff] }
 0x1a2   :  { %17070 = vst [vmem:[#allocation24_spill] sm:$0xff] %v15490_v43  ;;  %v564_v42 = vmul.f32 %v15395_v48, %v166_v5  ;;  %v165_v38 = vld [vmem:[%s16886_s0 + $0x3e0] sm:$0xff]  ;;  %v594_v62 = vmul.f32 %v15395_v48, %v196_v26  ;;  %v13388_v4 = vld [vmem:[#allocation4 + $0x1fc] ss:$120 sps:$4 sm:$0xff]  }
 0x1a3   :  { %17071 = vst [vmem:[#allocation25_spill] sm:$0xff] %v15507_v10  ;;  %v13391_v5 = vld [vmem:[#allocation4 + $0x21c] ss:$120 sps:$4 sm:$0xff]   ;;  %v15540_v26 = vpack.c.bf16 %v541_v20, %v511_v59  ;;  %v563_v18 = vmul.f32 %v15448_v51, %v165_v38 }
 0x1a5   :  { %17072 = vst [vmem:[#allocation26_spill] sm:$0xff] %v15540_v26 }
 0x1a6   :  { %8178 = vmatmul.mubr.bf16.vlgmr.msra.gmra.mrb[0].mxu1 %v15488_v37 }
 0x1a7   :  { %8470 = vmatmul.mubr.bf16.vlgmr.msra.gmra.mrb[0].mxu0 %v15490_v43  ;;  %8219 = vmatpush1.bf16.xpose.msra.mxu1 %v13374_v40  ;;  %v572_v40 = vmul.f32 %v15410_v63, %v174_v11  ;;  %v226_v11 = vld [vmem:[%s16886_s0 + $0x5c8] sm:$0xff]  ;;  %v15548_v43 = vpack.c.bf16 %v594_v62, %v564_v42  ;;  %v601_v42 = vmul.f32 %v15460_v0, %v203_v22  ;;  %v225_v62 = vld [vmem:[%s16886_s0 + $0x5c0] sm:$0xff] }
 0x1a8   :  { %8511 = vmatpush1.bf16.xpose.msra.mxu0 %v13377_v28  ;;  %8220 = vmatprep.subr.bf16.mxu1 %v13382_v44  ;;  %v195_v28 = vld [vmem:[%s16886_s0 + $0x4d0] sm:$0xff]  ;;  %v602_v44 = vmul.f32 %v15410_v63, %v204_v54  ;;  %v256_v54 = vld [vmem:[%s16886_s0 + $0x6b8] sm:$0xff]  ;;  %v624_v38 = vmul.f32 %v15395_v48, %v226_v11  ;;  %v233_v22 = vld [vmem:[%s16886_s0 + $0x600] sm:$0xff]  ;;  %v623_v9 = vmul.f32 %v15448_v51, %v225_v62 }
 0x1a9   :  { %8512 = vmatprep.subr.bf16.mxu0 %v13385_v31  ;;  %8187 = vmatprep.mubr.bf16.mxu1 %v15504_v39  ;;  %v173_v31 = vld [vmem:[%s16886_s0 + $0x420] sm:$0xff]  ;;  %v593_v59 = vmul.f32 %v15448_v51, %v195_v28 }
 0x1aa   :  { %8479 = vmatprep.mubr.bf16.mxu0 %v15507_v10  ;;  %v15538_v10 = vpack.c.bf16 %v533_v35, %v503_v33  ;;  %v15551_v2 = vpack.c.bf16 %v602_v44, %v572_v40  ;;  %v234_v35 = vld [vmem:[%s16886_s0 + $0x608] sm:$0xff]  ;;  %v264_v33 = vld [vmem:[%s16886_s0 + $0x6f8] sm:$0xff]  ;;  %v571_v20 = vmul.f32 %v15460_v0, %v173_v31  ;;  %v15569_v40 = vsub.s32 7, %v14996_v23 }
 0x1ab   :  { %v13386_v44 = vld [vmem:[#allocation4 + $0x1f8] ss:$120 sps:$4 sm:$0xff]   ;;  %v632_v28 = vmul.f32 %v15410_v63, %v234_v35  ;;  %v662_v31 = vmul.f32 %v15410_v63, %v264_v33  ;;  %v13397_v11 = vld [vmem:[#allocation4 + $0x30c] ss:$120 sps:$4 sm:$0xff]  }
 0x1ac   :  { %17073 = vst [vmem:[#allocation27_spill] sm:$0xff] %v15551_v2  ;;  %v78_v63 = vld [vmem:[%s16886_s0 + $0x128] sm:$0xff]  ;;  %v15597_v35 = vrot.slane %v15444_v47, %v15569_v40 }
 0x1ae   :  { %8188 = vmatmul.mubr.bf16.gmra.mrb[4].mxu1 %v15538_v10 }
 0x1af   :  { %8480 = vmatmul.mubr.bf16.gmra.mrb[4].mxu0 %v15540_v26  ;;  %8221 = vmatpush1.bf16.xpose.msra.mxu1 %v13380_v34  ;;  %v13389_v26 = vld [vmem:[#allocation4 + $0x218] ss:$120 sps:$4 sm:$0xff]   ;;  %v654_v34 = vmul.f32 %v15395_v48, %v256_v54  ;;  %v15587_v48 = vpack.c.bf16 %v601_v42, %v571_v20  ;;  %v15612_v42 = vrot.slane %v15456_v30, %v15569_v40 }
 0x1b0   :  { %8513 = vmatpush1.bf16.xpose.msra.mxu0 %v13383_v56  ;;  %8222 = vmatprep.subr.bf16.mxu1 %v13388_v4  ;;  %v255_v56 = vld [vmem:[%s16886_s0 + $0x6b0] sm:$0xff]  ;;  %v48_v54 = vld [vmem:[%s16886_s0 + $0x38] sm:$0xff]  ;;  %v86_v20 = vld [vmem:[%s16886_s0 + $0x168] sm:$0xff]  ;;  %v476_v30 = vmul.f32 %v15597_v35, %v78_v63 }
 0x1b1   :  { %8514 = vmatprep.subr.bf16.mxu0 %v13391_v5  ;;  %8197 = vmatprep.mubr.bf16.mxu1 %v15548_v43  ;;  %v263_v4 = vld [vmem:[%s16886_s0 + $0x6f0] sm:$0xff]  ;;  %v13394_v5 = vld [vmem:[#allocation4 + $0x2ec] ss:$120 sps:$4 sm:$0xff]   ;;  %17074 = vst [vmem:[#allocation28_spill] sm:$0xff] %v15587_v48  ;;  %v15599_v33 = vpack.c.bf16 %v654_v34, %v624_v38  ;;  %v653_v47 = vmul.f32 %v15448_v51, %v255_v56 }
 0x1b2   :  { %8489 = vmatprep.mubr.bf16.mxu0 %v15551_v2  ;;  %v15585_v2 = vpack.c.bf16 %v593_v59, %v563_v18  ;;  %v15602_v18 = vpack.c.bf16 %v662_v31, %v632_v28  ;;  %v56_v59 = vld [vmem:[%s16886_s0 + $0x78] sm:$0xff]  ;;  %v631_v38 = vmul.f32 %v15460_v0, %v233_v22  ;;  %v661_v62 = vmul.f32 %v15460_v0, %v263_v4  ;;  %v13409_v63 = vld [vmem:[#allocation4 + $0x4ec] ss:$120 sps:$4 sm:$0xff]  }
 0x1b3   :  { %v446_v34 = vmul.f32 %v15597_v35, %v48_v54  ;;  %v13392_v28 = vld [vmem:[#allocation4 + $0x2e8] ss:$120 sps:$4 sm:$0xff]   ;;  %v454_v51 = vmul.f32 %v15612_v42, %v56_v59  ;;  %v484_v56 = vmul.f32 %v15612_v42, %v86_v20  ;;  %v15625_v22 = vpack.c.bf16 %v653_v47, %v623_v9  ;;  %v13401_v54 = vld [vmem:[#allocation4 + $0x3f8] ss:$120 sps:$4 sm:$0xff]   ;;  %v13406_v9 = vld [vmem:[#allocation4 + $0x4cc] ss:$120 sps:$4 sm:$0xff]  }
 0x1b4   :  { %17075 = vst [vmem:[#allocation29_spill] sm:$0xff] %v15602_v18  ;;  %v13395_v31 = vld [vmem:[#allocation4 + $0x308] ss:$120 sps:$4 sm:$0xff]   ;;  %v15627_v0 = vpack.c.bf16 %v661_v62, %v631_v38  ;;  %v13412_v47 = vld [vmem:[#allocation4 + $0x5bc] ss:$120 sps:$4 sm:$0xff]  }
 0x1b5   :  { %v15629_v4 = vpack.c.bf16 %v476_v30, %v446_v34  ;;  %v13404_v59 = vld [vmem:[#allocation4 + $0x4c8] ss:$120 sps:$4 sm:$0xff]   ;;  %v13415_v38 = vld [vmem:[#allocation4 + $0x5dc] ss:$120 sps:$4 sm:$0xff]   ;;  %v13410_v62 = vld [vmem:[#allocation4 + $0x5b8] ss:$120 sps:$4 sm:$0xff]  }
 0x1b6   :  { %8198 = vmatmul.mubr.bf16.gmra.mrb[8].mxu1 %v15585_v2  ;;  %17076 = vst [vmem:[#allocation30_spill] sm:$0xff] %v15627_v0  ;;  %v13407_v20 = vld [vmem:[#allocation4 + $0x4e8] ss:$120 sps:$4 sm:$0xff]   ;;  %v13413_v34 = vld [vmem:[#allocation4 + $0x5d8] ss:$120 sps:$4 sm:$0xff]  }
 0x1b7   :  { %8490 = vmatmul.mubr.bf16.gmra.mrb[8].mxu0 %v15587_v48  ;;  %8223 = vmatpush1.bf16.xpose.msra.mxu1 %v13386_v44  ;;  %v13403_v44 = vld [vmem:[#allocation4 + $0x3fc] ss:$120 sps:$4 sm:$0xff]   ;;  %v13416_v30 = vld [vmem:[#allocation4 + $0x6a8] ss:$120 sps:$4 sm:$0xff]  }
 0x1b8   :  { %8515 = vmatpush1.bf16.xpose.msra.mxu0 %v13389_v26  ;;  %8224 = vmatprep.subr.bf16.mxu1 %v13394_v5  ;;  %v13400_v26 = vld [vmem:[#allocation4 + $0x3dc] ss:$120 sps:$4 sm:$0xff]   ;;  %v15631_v5 = vpack.c.bf16 %v484_v56, %v454_v51  ;;  %v13419_v51 = vld [vmem:[#allocation4 + $0x6c8] ss:$120 sps:$4 sm:$0xff]  }
 0x1b9   :  { %8516 = vmatprep.subr.bf16.mxu0 %v13397_v11  ;;  %8207 = vmatprep.mubr.bf16.mxu1 %v15599_v33  ;;  %v13398_v11 = vld [vmem:[#allocation4 + $0x3d8] ss:$120 sps:$4 sm:$0xff]   ;;  %v13424_v56 = vld [vmem:[#allocation4 + $0x79c] ss:$120 sps:$4 sm:$0xff]  }
 0x1ba   :  { %8499 = vmatprep.mubr.bf16.mxu0 %v15602_v18  ;;  %17077 = vst [vmem:[#allocation31_spill] sm:$0xff] %v15631_v5  ;;  %v107_v48 = vld [vmem:[%s16886_s0 + $0x210] sm:$0xff] }
 0x1be   :  { %8208 = vmatmul.mubr.bf16.gmra.mrb[12].mxu1 %v15625_v22 }
 0x1bf   :  { %8500 = vmatmul.mubr.bf16.gmra.mrb[12].mxu0 %v15627_v0  ;;  %8225 = vmatpush1.bf16.xpose.msra.mxu1 %v13392_v28  ;;  %v13418_v28 = vld [vmem:[#allocation4 + $0x6ac] ss:$120 sps:$4 sm:$0xff]  }
 0x1c0   :  { %8517 = vmatpush1.bf16.xpose.msra.mxu0 %v13395_v31  ;;  %8226 = vmatprep.subr.bf16.mxu1 %v13400_v26  ;;  %v13421_v31 = vld [vmem:[#allocation4 + $0x6cc] ss:$120 sps:$4 sm:$0xff]   ;;  %v13427_v26 = vld [vmem:[#allocation4 + $0x7bc] ss:$120 sps:$4 sm:$0xff]  }
 0x1c1   :  { %8518 = vmatprep.subr.bf16.mxu0 %v13403_v44  ;;  %8250 = vmatprep.mubr.bf16.mxu1 %v15629_v4  ;;  %v13422_v44 = vld [vmem:[#allocation4 + $0x798] ss:$120 sps:$4 sm:$0xff]  }
 0x1c2   :  { %8542 = vmatprep.mubr.bf16.mxu0 %v15631_v5 }
 0x1c7   :  { %8227 = vmatpush1.bf16.xpose.msra.mxu1 %v13398_v11  ;;  %v13425_v11 = vld [vmem:[#allocation4 + $0x7b8] ss:$120 sps:$4 sm:$0xff]  }
 0x1c8   :  { %8519 = vmatpush1.bf16.xpose.msra.mxu0 %v13401_v54  ;;  %8228 = vmatprep.subr.bf16.mxu1 %v13406_v9  ;;  %v13430_v54 = vld [vmem:[#allocation4 + $0x88c] ss:$120 sps:$4 sm:$0xff]  }
 0x1c9   :  { %8520 = vmatprep.subr.bf16.mxu0 %v13409_v63  ;;  %v13433_v9 = vld [vmem:[#allocation4 + $0x8ac] ss:$120 sps:$4 sm:$0xff]   ;;  %v13428_v63 = vld [vmem:[#allocation4 + $0x888] ss:$120 sps:$4 sm:$0xff]  }
 0x1cf   :  { %8229 = vmatpush1.bf16.xpose.msra.mxu1 %v13404_v59  ;;  %v13431_v59 = vld [vmem:[#allocation4 + $0x8a8] ss:$120 sps:$4 sm:$0xff]  }
 0x1d0   :  { %8521 = vmatpush1.bf16.xpose.msra.mxu0 %v13407_v20  ;;  %8230 = vmatprep.subr.bf16.mxu1 %v13412_v47  ;;  %v13436_v20 = vld [vmem:[#allocation4 + $0x97c] ss:$120 sps:$4 sm:$0xff]  }
 0x1d1   :  { %8522 = vmatprep.subr.bf16.mxu0 %v13415_v38  ;;  %v13439_v47 = vld [vmem:[#allocation4 + $0x99c] ss:$120 sps:$4 sm:$0xff]   ;;  %v13434_v38 = vld [vmem:[#allocation4 + $0x978] ss:$120 sps:$4 sm:$0xff]  }
 0x1d7   :  { %8231 = vmatpush1.bf16.xpose.msra.mxu1 %v13410_v62  ;;  %v13437_v62 = vld [vmem:[#allocation4 + $0x998] ss:$120 sps:$4 sm:$0xff]  }
 0x1d8   :  { %8523 = vmatpush1.bf16.xpose.msra.mxu0 %v13413_v34  ;;  %8232 = vmatprep.subr.bf16.mxu1 %v13418_v28  ;;  %v13442_v34 = vld [vmem:[#allocation4 + $0xa6c] ss:$120 sps:$4 sm:$0xff]  }
 0x1d9   :  { %8524 = vmatprep.subr.bf16.mxu0 %v13421_v31  ;;  %v13445_v28 = vld [vmem:[#allocation4 + $0xa8c] ss:$120 sps:$4 sm:$0xff]   ;;  %v13440_v31 = vld [vmem:[#allocation4 + $0xa68] ss:$120 sps:$4 sm:$0xff]  }
 0x1df   :  { %8233 = vmatpush1.bf16.xpose.msra.mxu1 %v13416_v30  ;;  %v13443_v30 = vld [vmem:[#allocation4 + $0xa88] ss:$120 sps:$4 sm:$0xff]  }
 0x1e0   :  { %8525 = vmatpush1.bf16.xpose.msra.mxu0 %v13419_v51  ;;  %8234 = vmatprep.subr.bf16.mxu1 %v13424_v56  ;;  %v13448_v51 = vld [vmem:[#allocation4 + $0xb5c] ss:$120 sps:$4 sm:$0xff]  }
 0x1e1   :  { %8526 = vmatprep.subr.bf16.mxu0 %v13427_v26  ;;  %v13451_v56 = vld [vmem:[#allocation4 + $0xb7c] ss:$120 sps:$4 sm:$0xff]   ;;  %v13446_v26 = vld [vmem:[#allocation4 + $0xb58] ss:$120 sps:$4 sm:$0xff]  }
 0x1e7   :  { %8235 = vmatpush1.bf16.xpose.msra.mxu1 %v13422_v44  ;;  %v13449_v44 = vld [vmem:[#allocation4 + $0xb78] ss:$120 sps:$4 sm:$0xff]  }
 0x1e8   :  { %8527 = vmatpush1.bf16.xpose.msra.mxu0 %v13425_v11  ;;  %8236 = vmatprep.subr.bf16.mxu1 %v13430_v54  ;;  %v13454_v11 = vld [vmem:[#allocation4 + $0xc4c] ss:$120 sps:$4 sm:$0xff]  }
 0x1e9   :  { %8528 = vmatprep.subr.bf16.mxu0 %v13433_v9  ;;  %v13457_v54 = vld [vmem:[#allocation4 + $0xc6c] ss:$120 sps:$4 sm:$0xff]   ;;  %v13452_v9 = vld [vmem:[#allocation4 + $0xc48] ss:$120 sps:$4 sm:$0xff]  }
 0x1ef   :  { %8237 = vmatpush1.bf16.xpose.msra.mxu1 %v13428_v63  ;;  %v13455_v63 = vld [vmem:[#allocation4 + $0xc68] ss:$120 sps:$4 sm:$0xff]  }
 0x1f0   :  { %8529 = vmatpush1.bf16.xpose.msra.mxu0 %v13431_v59  ;;  %8238 = vmatprep.subr.bf16.mxu1 %v13436_v20  ;;  %v13460_v59 = vld [vmem:[#allocation4 + $0xd3c] ss:$120 sps:$4 sm:$0xff]  }
 0x1f1   :  { %8530 = vmatprep.subr.bf16.mxu0 %v13439_v47  ;;  %v13463_v20 = vld [vmem:[#allocation4 + $0xd5c] ss:$120 sps:$4 sm:$0xff]   ;;  %v13458_v47 = vld [vmem:[#allocation4 + $0xd38] ss:$120 sps:$4 sm:$0xff]  }
 0x1f7   :  { %8239 = vmatpush1.bf16.xpose.msra.mxu1 %v13434_v38  ;;  %v13461_v38 = vld [vmem:[#allocation4 + $0xd58] ss:$120 sps:$4 sm:$0xff]  }
 0x1f8   :  { %8531 = vmatpush1.bf16.xpose.msra.mxu0 %v13437_v62  ;;  %8240 = vmatprep.subr.bf16.mxu1 %v13442_v34  ;;  %v13466_v62 = vld [vmem:[#allocation4 + $0xe2c] ss:$120 sps:$4 sm:$0xff]  }
 0x1f9   :  { %8532 = vmatprep.subr.bf16.mxu0 %v13445_v28  ;;  %v13469_v34 = vld [vmem:[#allocation4 + $0xe4c] ss:$120 sps:$4 sm:$0xff]   ;;  %v15638_v28 = vsub.s32 6, %v14996_v23 }
 0x1fa   :  { %v85_v23 = vld [vmem:[%s16886_s0 + $0x160] sm:$0xff] }
 0x1ff   :  { %8241 = vmatpush1.bf16.xpose.msra.mxu1 %v13440_v31  ;;  %v13464_v31 = vld [vmem:[#allocation4 + $0xe28] ss:$120 sps:$4 sm:$0xff]  }
 0x200   :  { %8533 = vmatpush1.bf16.xpose.msra.mxu0 %v13443_v30  ;;  %8242 = vmatprep.subr.bf16.mxu1 %v13448_v51  ;;  %v13467_v30 = vld [vmem:[#allocation4 + $0xe48] ss:$120 sps:$4 sm:$0xff]   ;;  %v47_v51 = vld [vmem:[%s16886_s0 + $0x30] sm:$0xff] }
 0x201   :  { %8534 = vmatprep.subr.bf16.mxu0 %v13451_v56  ;;  %v77_v56 = vld [vmem:[%s16886_s0 + $0x120] sm:$0xff] }
 0x207   :  { %8243 = vmatpush1.bf16.xpose.msra.mxu1 %v13446_v26  ;;  %v55_v26 = vld [vmem:[%s16886_s0 + $0x70] sm:$0xff] }
 0x208   :  { %8535 = vmatpush1.bf16.xpose.msra.mxu0 %v13449_v44  ;;  %8244 = vmatprep.subr.bf16.mxu1 %v13454_v11  ;;  %v14890_v44 = vld [vmem:[#allocation2] sm:$0xff] }
 0x209   :  { %8536 = vmatprep.subr.bf16.mxu0 %v13457_v54  ;;  %v15653_v11 = vrot.slane %v14890_v44, %v15638_v28  ;;  %v13472_v54 = vld [vmem:[#allocation4 + $0x44] ss:$120 sps:$4 sm:$0xff]  }
 0x20b   :  { %v475_v44 = vmul.f32 %v15653_v11, %v77_v56  ;;  %v137_v56 = vld [vmem:[%s16886_s0 + $0x300] sm:$0xff] }
 0x20f   :  { %8245 = vmatpush1.bf16.xpose.msra.mxu1 %v13452_v9  ;;  %v13475_v9 = vld [vmem:[#allocation4 + $0xf04] ss:$120 sps:$4 sm:$0xff]  }
 0x210   :  { %8537 = vmatpush1.bf16.xpose.msra.mxu0 %v13455_v63  ;;  %8246 = vmatprep.subr.bf16.mxu1 %v13460_v59  ;;  %v14891_v63 = vld [vmem:[#allocation2 + $0x8] sm:$0xff] }
 0x211   :  { %8538 = vmatprep.subr.bf16.mxu0 %v13463_v20  ;;  %v15656_v59 = vrot.slane %v14891_v63, %v15638_v28  ;;  %v108_v20 = vld [vmem:[%s16886_s0 + $0x218] sm:$0xff] }
 0x212   :  { %v506_v0 = vmul.f32 %v15597_v35, %v108_v20  ;;  %v13478_v20 = vld [vmem:[#allocation4 + $0x134] ss:$120 sps:$4 sm:$0xff]  }
 0x213   :  { %v453_v63 = vmul.f32 %v15656_v59, %v55_v26  ;;  %v483_v5 = vmul.f32 %v15656_v59, %v85_v23  ;;  %v145_v23 = vld [vmem:[%s16886_s0 + $0x340] sm:$0xff] }
 0x217   :  { %8247 = vmatpush1.bf16.xpose.msra.mxu1 %v13458_v47  ;;  %v138_v47 = vld [vmem:[%s16886_s0 + $0x308] sm:$0xff] }
 0x218   :  { %8539 = vmatpush1.bf16.xpose.msra.mxu0 %v13461_v38  ;;  %8248 = vmatprep.subr.bf16.mxu1 %v13466_v62  ;;  %v116_v38 = vld [vmem:[%s16886_s0 + $0x258] sm:$0xff]  ;;  %v146_v62 = vld [vmem:[%s16886_s0 + $0x348] sm:$0xff]  ;;  %v536_v18 = vmul.f32 %v15597_v35, %v138_v47 }
 0x219   :  { %8540 = vmatprep.subr.bf16.mxu0 %v13469_v34  ;;  %v445_v34 = vmul.f32 %v15653_v11, %v47_v51  ;;  %v13473_v51 = vld [vmem:[#allocation4 + $0xf00] ss:$120 sps:$4 sm:$0xff]   ;;  %v514_v26 = vmul.f32 %v15612_v42, %v116_v38  ;;  %v13481_v47 = vld [vmem:[#allocation4 + $0xff4] ss:$120 sps:$4 sm:$0xff]  }
 0x21a   :  { %v168_v38 = vld [vmem:[%s16886_s0 + $0x3f8] sm:$0xff]  ;;  %v15700_v58 = vpack.c.bf16 %v536_v18, %v506_v0  ;;  %v543_v0 = vmul.f32 %v15656_v59, %v145_v23  ;;  %v205_v23 = vld [vmem:[%s16886_s0 + $0x520] sm:$0xff] }
 0x21b   :  { %v566_v24 = vmul.f32 %v15597_v35, %v168_v38 }
 0x21f   :  { %8249 = vmatpush1.bf16.xpose.msra.mxu1 %v13464_v31  ;;  %v544_v31 = vmul.f32 %v15612_v42, %v146_v62  ;;  %v198_v62 = vld [vmem:[%s16886_s0 + $0x4e8] sm:$0xff] }
 0x220   :  { %8541 = vmatpush1.bf16.xpose.msra.mxu0 %v13467_v30  ;;  %9094 = vmatprep.subr.bf16.mxu1 %v13475_v9  ;;  %v115_v30 = vld [vmem:[%s16886_s0 + $0x250] sm:$0xff]  ;;  %v15692_v9 = vpack.c.bf16 %v483_v5, %v453_v63  ;;  %v206_v5 = vld [vmem:[%s16886_s0 + $0x528] sm:$0xff]  ;;  %v535_v63 = vmul.f32 %v15653_v11, %v137_v56  ;;  %v197_v56 = vld [vmem:[%s16886_s0 + $0x4e0] sm:$0xff] }
 0x221   :  { %8583 = vmatprep.subr.bf16.mxu0 %v13472_v54  ;;  %v15690_v54 = vpack.c.bf16 %v475_v44, %v445_v34  ;;  %v505_v34 = vmul.f32 %v15653_v11, %v107_v48  ;;  %v15709_v44 = vpack.c.bf16 %v544_v31, %v514_v26  ;;  %v513_v18 = vmul.f32 %v15656_v59, %v115_v30  ;;  %v167_v26 = vld [vmem:[%s16886_s0 + $0x3f0] sm:$0xff] }
 0x222   :  { %17078 = vst [vmem:[#allocation32_spill] sm:$0xff] %v15692_v9  ;;  %v596_v48 = vmul.f32 %v15597_v35, %v198_v62  ;;  %v13476_v31 = vld [vmem:[#allocation4 + $0x130] ss:$120 sps:$4 sm:$0xff]   ;;  %v13487_v62 = vld [vmem:[#allocation4 + $0x10e4] ss:$120 sps:$4 sm:$0xff]  }
 0x223   :  { %17079 = vst [vmem:[#allocation33_spill] sm:$0xff] %v15709_v44  ;;  %v175_v30 = vld [vmem:[%s16886_s0 + $0x430] sm:$0xff]  ;;  %v15736_v38 = vpack.c.bf16 %v543_v0, %v513_v18  ;;  %v595_v0 = vmul.f32 %v15653_v11, %v197_v56 }
 0x224   :  { %v15766_v56 = vld [vmem:[#allocation2 + $0x10] sm:$0xff] }
 0x225   :  { %17080 = vst [vmem:[#allocation34_spill] sm:$0xff] %v15736_v38 }
 0x226   :  { %8251 = vmatmul.mubr.bf16.vlgmr.msra.gmra.mrb[0].mxu1 %v15690_v54 }
 0x227   :  { %8543 = vmatmul.mubr.bf16.vlgmr.msra.gmra.mrb[0].mxu0 %v15692_v9  ;;  %9095 = vmatpush1.bf16.xpose.msra.mxu1 %v13473_v51  ;;  %v13479_v9 = vld [vmem:[#allocation4 + $0xff0] ss:$120 sps:$4 sm:$0xff]   ;;  %v604_v51 = vmul.f32 %v15612_v42, %v206_v5 }
 0x228   :  { %8584 = vmatpush1.bf16.xpose.msra.mxu0 %v13470_v7  ;;  %8260 = vmatprep.mubr.bf16.mxu1 %v15700_v58  ;;  %v574_v7 = vmul.f32 %v15612_v42, %v176_v32  ;;  %v228_v32 = vld [vmem:[%s16886_s0 + $0x5d8] sm:$0xff]  ;;  %v258_v5 = vld [vmem:[%s16886_s0 + $0x6c8] sm:$0xff] }
 0x229   :  { %8585 = vmatprep.subr.bf16.mxu0 %v13478_v20  ;;  %9096 = vmatprep.subr.bf16.mxu1 %v13481_v47  ;;  %v15734_v20 = vpack.c.bf16 %v535_v63, %v505_v34  ;;  %v13484_v47 = vld [vmem:[#allocation4 + $0x224] ss:$120 sps:$4 sm:$0xff]   ;;  %v266_v34 = vld [vmem:[%s16886_s0 + $0x708] sm:$0xff]  ;;  %v565_v63 = vmul.f32 %v15653_v11, %v167_v26  ;;  %v626_v61 = vmul.f32 %v15597_v35, %v228_v32 }
 0x22a   :  { %8552 = vmatprep.mubr.bf16.mxu0 %v15709_v44  ;;  %v15744_v44 = vpack.c.bf16 %v596_v48, %v566_v24  ;;  %v15753_v18 = vpack.c.bf16 %v604_v51, %v574_v7  ;;  %v573_v24 = vmul.f32 %v15656_v59, %v175_v30  ;;  %v603_v48 = vmul.f32 %v15656_v59, %v205_v23  ;;  %v227_v7 = vld [vmem:[%s16886_s0 + $0x5d0] sm:$0xff]  ;;  %v265_v23 = vld [vmem:[%s16886_s0 + $0x700] sm:$0xff] }
 0x22b   :  { %v656_v26 = vmul.f32 %v15597_v35, %v258_v5  ;;  %v13482_v51 = vld [vmem:[#allocation4 + $0x220] ss:$120 sps:$4 sm:$0xff]   ;;  %v664_v30 = vmul.f32 %v15612_v42, %v266_v34  ;;  %v13493_v5 = vld [vmem:[#allocation4 + $0x11d4] ss:$120 sps:$4 sm:$0xff]   ;;  %v625_v34 = vmul.f32 %v15653_v11, %v227_v7 }
 0x22c   :  { %17081 = vst [vmem:[#allocation35_spill] sm:$0xff] %v15753_v18  ;;  %v235_v35 = vld [vmem:[%s16886_s0 + $0x610] sm:$0xff]  ;;  %v15782_v32 = vpack.c.bf16 %v603_v48, %v573_v24  ;;  %v663_v24 = vmul.f32 %v15656_v59, %v265_v23 }
 0x22d   :  { %v15784_v50 = vpack.c.bf16 %v656_v26, %v626_v61  ;;  %v13488_v48 = vld [vmem:[#allocation4 + $0x310] ss:$120 sps:$4 sm:$0xff]   ;;  %v13502_v23 = vld [vmem:[#allocation4 + $0x4f4] ss:$120 sps:$4 sm:$0xff]  }
 0x22e   :  { %8261 = vmatmul.mubr.bf16.gmra.mrb[4].mxu1 %v15734_v20  ;;  %v13491_v26 = vld [vmem:[#allocation4 + $0x11d0] ss:$120 sps:$4 sm:$0xff]  }
 0x22f   :  { %8553 = vmatmul.mubr.bf16.gmra.mrb[4].mxu0 %v15736_v38  ;;  %9097 = vmatpush1.bf16.xpose.msra.mxu1 %v13479_v9  ;;  %v13485_v38 = vld [vmem:[#allocation4 + $0x10e0] ss:$120 sps:$4 sm:$0xff]  }
 0x230   :  { %8586 = vmatpush1.bf16.xpose.msra.mxu0 %v13476_v31  ;;  %8270 = vmatprep.mubr.bf16.mxu1 %v15744_v44  ;;  %v257_v9 = vld [vmem:[%s16886_s0 + $0x6c0] sm:$0xff]  ;;  %v634_v31 = vmul.f32 %v15612_v42, %v236_v16  ;;  %v58_v16 = vld [vmem:[%s16886_s0 + $0x88] sm:$0xff]  ;;  %v88_v42 = vld [vmem:[%s16886_s0 + $0x178] sm:$0xff] }
 0x231   :  { %8587 = vmatprep.subr.bf16.mxu0 %v13484_v47  ;;  %9098 = vmatprep.subr.bf16.mxu1 %v13487_v62  ;;  %v15780_v47 = vpack.c.bf16 %v595_v0, %v565_v63  ;;  %v13490_v62 = vld [vmem:[#allocation4 + $0x314] ss:$120 sps:$4 sm:$0xff]   ;;  %v15797_v63 = vrot.slane %v15766_v56, %v14999_v27  ;;  %v655_v61 = vmul.f32 %v15653_v11, %v257_v9 }
 0x232   :  { %8562 = vmatprep.mubr.bf16.mxu0 %v15753_v18  ;;  %v15793_v18 = vpack.c.bf16 %v664_v30, %v634_v31  ;;  %v633_v0 = vmul.f32 %v15656_v59, %v235_v35  ;;  %v13496_v31 = vld [vmem:[#allocation4 + $0x404] ss:$120 sps:$4 sm:$0xff]  }
 0x233   :  { %v456_v7 = vmul.f32 %v15797_v63, %v58_v16  ;;  %v486_v11 = vmul.f32 %v15797_v63, %v88_v42  ;;  %v15808_v9 = vpack.c.bf16 %v655_v61, %v625_v34  ;;  %v13499_v30 = vld [vmem:[#allocation4 + $0x12c4] ss:$120 sps:$4 sm:$0xff]   ;;  %v13503_v16 = vld [vmem:[#allocation4 + $0x13b0] ss:$120 sps:$4 sm:$0xff]   ;;  %v13506_v61 = vld [vmem:[#allocation4 + $0x5e0] ss:$120 sps:$4 sm:$0xff]  }
 0x234   :  { %v15810_v35 = vpack.c.bf16 %v663_v24, %v633_v0  ;;  %v13508_v42 = vld [vmem:[#allocation4 + $0x5e4] ss:$120 sps:$4 sm:$0xff]   ;;  %v13509_v0 = vld [vmem:[#allocation4 + $0x14a0] ss:$120 sps:$4 sm:$0xff]   ;;  %v13514_v24 = vld [vmem:[#allocation4 + $0x6d4] ss:$120 sps:$4 sm:$0xff]  }
 0x235   :  { %v15812_v59 = vpack.c.bf16 %v486_v11, %v456_v7  ;;  %v13511_v34 = vld [vmem:[#allocation4 + $0x14a4] ss:$120 sps:$4 sm:$0xff]   ;;  %v13515_v7 = vld [vmem:[#allocation4 + $0x1590] ss:$120 sps:$4 sm:$0xff]  }
 0x236   :  { %8271 = vmatmul.mubr.bf16.gmra.mrb[8].mxu1 %v15780_v47  ;;  %v13520_v11 = vld [vmem:[#allocation4 + $0x7c4] ss:$120 sps:$4 sm:$0xff]  }
 0x237   :  { %8563 = vmatmul.mubr.bf16.gmra.mrb[8].mxu0 %v15782_v32  ;;  %9099 = vmatpush1.bf16.xpose.msra.mxu1 %v13485_v38  ;;  %v13494_v38 = vld [vmem:[#allocation4 + $0x400] ss:$120 sps:$4 sm:$0xff]  }
 0x238   :  { %8588 = vmatpush1.bf16.xpose.msra.mxu0 %v13482_v51  ;;  %8280 = vmatprep.mubr.bf16.mxu1 %v15784_v50  ;;  %v13497_v51 = vld [vmem:[#allocation4 + $0x12c0] ss:$120 sps:$4 sm:$0xff]  }
 0x239   :  { %8589 = vmatprep.subr.bf16.mxu0 %v13490_v62  ;;  %9100 = vmatprep.subr.bf16.mxu1 %v13493_v5  ;;  %v13505_v62 = vld [vmem:[#allocation4 + $0x13b4] ss:$120 sps:$4 sm:$0xff]   ;;  %v13500_v5 = vld [vmem:[#allocation4 + $0x4f0] ss:$120 sps:$4 sm:$0xff]  }
 0x23a   :  { %8572 = vmatprep.mubr.bf16.mxu0 %v15793_v18 }
 0x23e   :  { %8281 = vmatmul.mubr.bf16.gmra.mrb[12].mxu1 %v15808_v9 }
 0x23f   :  { %8573 = vmatmul.mubr.bf16.gmra.mrb[12].mxu0 %v15810_v35  ;;  %9101 = vmatpush1.bf16.xpose.msra.mxu1 %v13491_v26  ;;  %v13512_v26 = vld [vmem:[#allocation4 + $0x6d0] ss:$120 sps:$4 sm:$0xff]  }
 0x240   :  { %8590 = vmatpush1.bf16.xpose.msra.mxu0 %v13488_v48  ;;  %9102 = vmatprep.subr.bf16.mxu1 %v13499_v30  ;;  %v13517_v48 = vld [vmem:[#allocation4 + $0x1594] ss:$120 sps:$4 sm:$0xff]   ;;  %v13518_v30 = vld [vmem:[#allocation4 + $0x7c0] ss:$120 sps:$4 sm:$0xff]  }
 0x241   :  { %8591 = vmatprep.subr.bf16.mxu0 %v13496_v31  ;;  %8615 = vmatprep.mubr.bf16.mxu0 %v15812_v59  ;;  %v13523_v31 = vld [vmem:[#allocation4 + $0x1684] ss:$120 sps:$4 sm:$0xff]  }
 0x242   :  { %9126 = vmatprep.mubr.bf16.mxu1 %v15027_v41 }
 0x247   :  { %9103 = vmatpush1.bf16.xpose.msra.mxu1 %v13497_v51  ;;  %v13526_v51 = vld [vmem:[#allocation4 + $0x8b4] ss:$120 sps:$4 sm:$0xff]  }
 0x248   :  { %8592 = vmatpush1.bf16.xpose.msra.mxu0 %v13494_v38  ;;  %9104 = vmatprep.subr.bf16.mxu1 %v13505_v62  ;;  %v13521_v38 = vld [vmem:[#allocation4 + $0x1680] ss:$120 sps:$4 sm:$0xff]   ;;  %v13524_v62 = vld [vmem:[#allocation4 + $0x8b0] ss:$120 sps:$4 sm:$0xff]  }
 0x249   :  { %8593 = vmatprep.subr.bf16.mxu0 %v13502_v23  ;;  %v13529_v23 = vld [vmem:[#allocation4 + $0x1774] ss:$120 sps:$4 sm:$0xff]  }
 0x24f   :  { %9105 = vmatpush1.bf16.xpose.msra.mxu1 %v13503_v16  ;;  %v13532_v16 = vld [vmem:[#allocation4 + $0x9a4] ss:$120 sps:$4 sm:$0xff]  }
 0x250   :  { %8594 = vmatpush1.bf16.xpose.msra.mxu0 %v13500_v5  ;;  %9106 = vmatprep.subr.bf16.mxu1 %v13511_v34  ;;  %v13527_v5 = vld [vmem:[#allocation4 + $0x1770] ss:$120 sps:$4 sm:$0xff]   ;;  %v13530_v34 = vld [vmem:[#allocation4 + $0x9a0] ss:$120 sps:$4 sm:$0xff]  }
 0x251   :  { %8595 = vmatprep.subr.bf16.mxu0 %v13508_v42  ;;  %v13535_v42 = vld [vmem:[#allocation4 + $0x1864] ss:$120 sps:$4 sm:$0xff]  }
 0x257   :  { %9107 = vmatpush1.bf16.xpose.msra.mxu1 %v13509_v0  ;;  %v13538_v0 = vld [vmem:[#allocation4 + $0xa94] ss:$120 sps:$4 sm:$0xff]  }
 0x258   :  { %8596 = vmatpush1.bf16.xpose.msra.mxu0 %v13506_v61  ;;  %9108 = vmatprep.subr.bf16.mxu1 %v13517_v48  ;;  %v13533_v61 = vld [vmem:[#allocation4 + $0x1860] ss:$120 sps:$4 sm:$0xff]   ;;  %v13536_v48 = vld [vmem:[#allocation4 + $0xa90] ss:$120 sps:$4 sm:$0xff]  }
 0x259   :  { %8597 = vmatprep.subr.bf16.mxu0 %v13514_v24  ;;  %v13541_v24 = vld [vmem:[#allocation4 + $0x1954] ss:$120 sps:$4 sm:$0xff]  }
 0x25f   :  { %9109 = vmatpush1.bf16.xpose.msra.mxu1 %v13515_v7  ;;  %v13544_v7 = vld [vmem:[#allocation4 + $0xb84] ss:$120 sps:$4 sm:$0xff]  }
 0x260   :  { %8598 = vmatpush1.bf16.xpose.msra.mxu0 %v13512_v26  ;;  %9110 = vmatprep.subr.bf16.mxu1 %v13523_v31  ;;  %v13539_v26 = vld [vmem:[#allocation4 + $0x1950] ss:$120 sps:$4 sm:$0xff]   ;;  %v13542_v31 = vld [vmem:[#allocation4 + $0xb80] ss:$120 sps:$4 sm:$0xff]  }
 0x261   :  { %8599 = vmatprep.subr.bf16.mxu0 %v13520_v11  ;;  %v13547_v11 = vld [vmem:[#allocation4 + $0x1a44] ss:$120 sps:$4 sm:$0xff]  }
 0x267   :  { %9111 = vmatpush1.bf16.xpose.msra.mxu1 %v13521_v38  ;;  %v13550_v38 = vld [vmem:[#allocation4 + $0xc74] ss:$120 sps:$4 sm:$0xff]  }
 0x268   :  { %8600 = vmatpush1.bf16.xpose.msra.mxu0 %v13518_v30  ;;  %9112 = vmatprep.subr.bf16.mxu1 %v13529_v23  ;;  %v13545_v30 = vld [vmem:[#allocation4 + $0x1a40] ss:$120 sps:$4 sm:$0xff]   ;;  %v13548_v23 = vld [vmem:[#allocation4 + $0xc70] ss:$120 sps:$4 sm:$0xff]  }
 0x269   :  { %8601 = vmatprep.subr.bf16.mxu0 %v13526_v51  ;;  %v13553_v51 = vld [vmem:[#allocation4 + $0x1b34] ss:$120 sps:$4 sm:$0xff]  }
 0x26f   :  { %9113 = vmatpush1.bf16.xpose.msra.mxu1 %v13527_v5  ;;  %v13556_v5 = vld [vmem:[#allocation4 + $0xd64] ss:$120 sps:$4 sm:$0xff]  }
 0x270   :  { %8602 = vmatpush1.bf16.xpose.msra.mxu0 %v13524_v62  ;;  %9114 = vmatprep.subr.bf16.mxu1 %v13535_v42  ;;  %v13551_v62 = vld [vmem:[#allocation4 + $0x1b30] ss:$120 sps:$4 sm:$0xff]   ;;  %v13554_v42 = vld [vmem:[#allocation4 + $0xd60] ss:$120 sps:$4 sm:$0xff]  }
 0x271   :  { %8603 = vmatprep.subr.bf16.mxu0 %v13532_v16  ;;  %v13559_v16 = vld [vmem:[#allocation4 + $0x1c24] ss:$120 sps:$4 sm:$0xff]  }
 0x277   :  { %9115 = vmatpush1.bf16.xpose.msra.mxu1 %v13533_v61  ;;  %v13562_v61 = vld [vmem:[#allocation4 + $0xe54] ss:$120 sps:$4 sm:$0xff]  }
 0x278   :  { %8604 = vmatpush1.bf16.xpose.msra.mxu0 %v13530_v34  ;;  %9116 = vmatprep.subr.bf16.mxu1 %v13541_v24  ;;  %v13557_v34 = vld [vmem:[#allocation4 + $0x1c20] ss:$120 sps:$4 sm:$0xff]   ;;  %v13560_v24 = vld [vmem:[#allocation4 + $0xe50] ss:$120 sps:$4 sm:$0xff]  }
 0x279   :  { %8605 = vmatprep.subr.bf16.mxu0 %v13538_v0  ;;  %v13565_v0 = vld [vmem:[#allocation4 + $0x1d14] ss:$120 sps:$4 sm:$0xff]  }
 0x27f   :  { %9117 = vmatpush1.bf16.xpose.msra.mxu1 %v13539_v26  ;;  %v13563_v26 = vld [vmem:[#allocation4 + $0x1d10] ss:$120 sps:$4 sm:$0xff]  }
 0x280   :  { %8606 = vmatpush1.bf16.xpose.msra.mxu0 %v13536_v48  ;;  %9118 = vmatprep.subr.bf16.mxu1 %v13547_v11  ;;  %v15820_v48 = vrot.slane %v15766_v56, %v15036_v15  ;;  %v87_v11 = vld [vmem:[%s16886_s0 + $0x170] sm:$0xff] }
 0x281   :  { %8607 = vmatprep.subr.bf16.mxu0 %v13544_v7  ;;  %v57_v7 = vld [vmem:[%s16886_s0 + $0x80] sm:$0xff] }
 0x287   :  { %9119 = vmatpush1.bf16.xpose.msra.mxu1 %v13545_v30  ;;  %v13571_v30 = vld [vmem:[#allocation4 + $0xf0c] ss:$120 sps:$4 sm:$0xff]  }
 0x288   :  { %8608 = vmatpush1.bf16.xpose.msra.mxu0 %v13542_v31  ;;  %9120 = vmatprep.subr.bf16.mxu1 %v13553_v51  ;;  %v13568_v31 = vld [vmem:[#allocation4 + $0x4c] ss:$120 sps:$4 sm:$0xff]   ;;  %v485_v51 = vmul.f32 %v15820_v48, %v87_v11 }
 0x289   :  { %8609 = vmatprep.subr.bf16.mxu0 %v13550_v38  ;;  %v455_v38 = vmul.f32 %v15820_v48, %v57_v7  ;;  %v147_v7 = vld [vmem:[%s16886_s0 + $0x350] sm:$0xff] }
 0x28f   :  { %9121 = vmatpush1.bf16.xpose.msra.mxu1 %v13551_v62  ;;  %v148_v62 = vld [vmem:[%s16886_s0 + $0x358] sm:$0xff] }
 0x290   :  { %8610 = vmatpush1.bf16.xpose.msra.mxu0 %v13548_v23  ;;  %9122 = vmatprep.subr.bf16.mxu1 %v13559_v16  ;;  %v118_v23 = vld [vmem:[%s16886_s0 + $0x268] sm:$0xff]  ;;  %v546_v16 = vmul.f32 %v15797_v63, %v148_v62 }
 0x291   :  { %8611 = vmatprep.subr.bf16.mxu0 %v13556_v5  ;;  %v516_v5 = vmul.f32 %v15797_v63, %v118_v23 }
 0x293   :  { %v15846_v11 = vpack.c.bf16 %v546_v16, %v516_v5  ;;  %v13572_v5 = vld [vmem:[#allocation4 + $0x138] ss:$120 sps:$4 sm:$0xff]  }
 0x295   :  { %17083 = vst [vmem:[#allocation37_spill] sm:$0xff] %v15846_v11 }
 0x297   :  { %9123 = vmatpush1.bf16.xpose.msra.mxu1 %v13557_v34  ;;  %v15838_v34 = vpack.c.bf16 %v485_v51, %v455_v38  ;;  %v178_v38 = vld [vmem:[%s16886_s0 + $0x448] sm:$0xff]  ;;  %v208_v51 = vld [vmem:[%s16886_s0 + $0x538] sm:$0xff] }
 0x298   :  { %8612 = vmatpush1.bf16.xpose.msra.mxu0 %v13554_v42  ;;  %9124 = vmatprep.subr.bf16.mxu1 %v13565_v0  ;;  %v13566_v42 = vld [vmem:[#allocation4 + $0x48] ss:$120 sps:$4 sm:$0xff]   ;;  %v576_v23 = vmul.f32 %v15797_v63, %v178_v38  ;;  %v606_v62 = vmul.f32 %v15797_v63, %v208_v51 }
 0x299   :  { %8613 = vmatprep.subr.bf16.mxu0 %v13562_v61  ;;  %17082 = vst [vmem:[#allocation36_spill] sm:$0xff] %v15838_v34  ;;  %v13569_v61 = vld [vmem:[#allocation4 + $0xf08] ss:$120 sps:$4 sm:$0xff]  }
 0x29a   :  { %v117_v0 = vld [vmem:[%s16886_s0 + $0x260] sm:$0xff]  ;;  %v238_v38 = vld [vmem:[%s16886_s0 + $0x628] sm:$0xff]  ;;  %v268_v51 = vld [vmem:[%s16886_s0 + $0x718] sm:$0xff] }
 0x29f   :  { %9125 = vmatpush1.bf16.xpose.msra.mxu1 %v13563_v26  ;;  %v13577_v26 = vld [vmem:[#allocation4 + $0xffc] ss:$120 sps:$4 sm:$0xff]  }
 0x2a0   :  { %8614 = vmatpush1.bf16.xpose.msra.mxu0 %v13560_v24  ;;  %9167 = vmatprep.subr.bf16.mxu1 %v13571_v30  ;;  %v13574_v24 = vld [vmem:[#allocation4 + $0x13c] ss:$120 sps:$4 sm:$0xff]   ;;  %v545_v30 = vmul.f32 %v15820_v48, %v147_v7  ;;  %v177_v7 = vld [vmem:[%s16886_s0 + $0x440] sm:$0xff] }
 0x2a1   :  { %8656 = vmatprep.subr.bf16.mxu0 %v13568_v31  ;;  %v515_v31 = vmul.f32 %v15820_v48, %v117_v0  ;;  %v13575_v0 = vld [vmem:[#allocation4 + $0xff8] ss:$120 sps:$4 sm:$0xff]  }
 0x2a3   :  { %v15862_v16 = vpack.c.bf16 %v545_v30, %v515_v31  ;;  %v575_v31 = vmul.f32 %v15820_v48, %v177_v7  ;;  %v13578_v7 = vld [vmem:[#allocation4 + $0x228] ss:$120 sps:$4 sm:$0xff]  }
 0x2a5   :  { %17084 = vst [vmem:[#allocation38_spill] sm:$0xff] %v15862_v16 }
 0x2a6   :  { %9127 = vmatmul.mubr.bf16.vlgmr.msra.gmra.mrb[16].mxu1 %v15081_v49 }
 0x2a7   :  { %8616 = vmatmul.mubr.bf16.vlgmr.msra.gmra.mrb[0].mxu0 %v15838_v34  ;;  %9168 = vmatpush1.bf16.xpose.msra.mxu1 %v13569_v61  ;;  %v13580_v61 = vld [vmem:[#allocation4 + $0x22c] ss:$120 sps:$4 sm:$0xff]  }
 0x2a8   :  { %8657 = vmatpush1.bf16.xpose.msra.mxu0 %v13566_v42  ;;  %9169 = vmatprep.subr.bf16.mxu1 %v13577_v26  ;;  %v207_v42 = vld [vmem:[%s16886_s0 + $0x530] sm:$0xff]  ;;  %v15870_v26 = vpack.c.bf16 %v606_v62, %v576_v23  ;;  %v636_v23 = vmul.f32 %v15797_v63, %v238_v38  ;;  %v666_v62 = vmul.f32 %v15797_v63, %v268_v51  ;;  %v90_v51 = vld [vmem:[%s16886_s0 + $0x188] sm:$0xff] }
 0x2a9   :  { %8658 = vmatprep.subr.bf16.mxu0 %v13574_v24  ;;  %8625 = vmatprep.mubr.bf16.mxu0 %v15846_v11  ;;  %v13583_v24 = vld [vmem:[#allocation4 + $0x10ec] ss:$120 sps:$4 sm:$0xff]   ;;  %v605_v30 = vmul.f32 %v15820_v48, %v207_v42  ;;  %v15898_v38 = vrot.slane %v15766_v56, %v15165_v36 }
 0x2aa   :  { %9136 = vmatprep.mubr.bf16.mxu1 %v15106_v60  ;;  %17085 = vst [vmem:[#allocation39_spill] sm:$0xff] %v15870_v26  ;;  %v237_v11 = vld [vmem:[%s16886_s0 + $0x620] sm:$0xff] }
 0x2ab   :  { %v15886_v42 = vpack.c.bf16 %v605_v30, %v575_v31  ;;  %v635_v63 = vmul.f32 %v15820_v48, %v237_v11  ;;  %v60_v30 = vld [vmem:[%s16886_s0 + $0x98] sm:$0xff] }
 0x2ac   :  { %v458_v11 = vmul.f32 %v15898_v38, %v60_v30  ;;  %v13604_v30 = vld [vmem:[#allocation4 + $0x5ec] ss:$120 sps:$4 sm:$0xff]  }
 0x2ad   :  { %17086 = vst [vmem:[#allocation40_spill] sm:$0xff] %v15886_v42 }
 0x2ae   :  { %9137 = vmatmul.mubr.bf16.gmra.mrb[20].mxu1 %v15134_v14 }
 0x2af   :  { %8626 = vmatmul.mubr.bf16.gmra.mrb[4].mxu0 %v15862_v16  ;;  %9170 = vmatpush1.bf16.xpose.msra.mxu1 %v13575_v0  ;;  %v13581_v16 = vld [vmem:[#allocation4 + $0x10e8] ss:$120 sps:$4 sm:$0xff]   ;;  %v13586_v0 = vld [vmem:[#allocation4 + $0x31c] ss:$120 sps:$4 sm:$0xff]  }
 0x2b0   :  { %8659 = vmatpush1.bf16.xpose.msra.mxu0 %v13572_v5  ;;  %9171 = vmatprep.subr.bf16.mxu1 %v13583_v24  ;;  %v267_v5 = vld [vmem:[%s16886_s0 + $0x710] sm:$0xff]  ;;  %v15894_v24 = vpack.c.bf16 %v666_v62, %v636_v23 }
 0x2b1   :  { %8660 = vmatprep.subr.bf16.mxu0 %v13580_v61  ;;  %8635 = vmatprep.mubr.bf16.mxu0 %v15870_v26  ;;  %v13589_v61 = vld [vmem:[#allocation4 + $0x11dc] ss:$120 sps:$4 sm:$0xff]   ;;  %v665_v31 = vmul.f32 %v15820_v48, %v267_v5  ;;  %v488_v48 = vmul.f32 %v15898_v38, %v90_v51  ;;  %v13584_v62 = vld [vmem:[#allocation4 + $0x318] ss:$120 sps:$4 sm:$0xff]   ;;  %v13595_v26 = vld [vmem:[#allocation4 + $0x12cc] ss:$120 sps:$4 sm:$0xff]  }
 0x2b2   :  { %9146 = vmatprep.mubr.bf16.mxu1 %v15150_v21  ;;  %17087 = vst [vmem:[#allocation41_spill] sm:$0xff] %v15894_v24  ;;  %v13587_v5 = vld [vmem:[#allocation4 + $0x11d8] ss:$120 sps:$4 sm:$0xff]   ;;  %v13607_v51 = vld [vmem:[#allocation4 + $0x14ac] ss:$120 sps:$4 sm:$0xff]  }
 0x2b3   :  { %v15914_v23 = vpack.c.bf16 %v665_v31, %v635_v63  ;;  %v15916_v34 = vpack.c.bf16 %v488_v48, %v458_v11  ;;  %v13596_v63 = vld [vmem:[#allocation4 + $0x4f8] ss:$120 sps:$4 sm:$0xff]   ;;  %v13610_v11 = vld [vmem:[#allocation4 + $0x6dc] ss:$120 sps:$4 sm:$0xff]  }
 0x2b4   :  { %v13599_v31 = vld [vmem:[#allocation4 + $0x13b8] ss:$120 sps:$4 sm:$0xff]   ;;  %v13613_v48 = vld [vmem:[#allocation4 + $0x159c] ss:$120 sps:$4 sm:$0xff]  }
 0x2b5   :  { %17088 = vst [vmem:[#allocation42_spill] sm:$0xff] %v15914_v23  ;;  %17089 = vst [vmem:[#allocation43_spill] sm:$0xff] %v15916_v34 }
 0x2b6   :  { %9147 = vmatmul.mubr.bf16.gmra.mrb[24].mxu1 %v15181_v52 }
 0x2b7   :  { %8636 = vmatmul.mubr.bf16.gmra.mrb[8].mxu0 %v15886_v42  ;;  %9172 = vmatpush1.bf16.xpose.msra.mxu1 %v13581_v16  ;;  %v13592_v42 = vld [vmem:[#allocation4 + $0x40c] ss:$120 sps:$4 sm:$0xff]   ;;  %v13590_v16 = vld [vmem:[#allocation4 + $0x408] ss:$120 sps:$4 sm:$0xff]  }
 0x2b8   :  { %8661 = vmatpush1.bf16.xpose.msra.mxu0 %v13578_v7  ;;  %9173 = vmatprep.subr.bf16.mxu1 %v13589_v61  ;;  %v13593_v7 = vld [vmem:[#allocation4 + $0x12c8] ss:$120 sps:$4 sm:$0xff]   ;;  %v13601_v61 = vld [vmem:[#allocation4 + $0x13bc] ss:$120 sps:$4 sm:$0xff]  }
 0x2b9   :  { %8662 = vmatprep.subr.bf16.mxu0 %v13586_v0  ;;  %8645 = vmatprep.mubr.bf16.mxu0 %v15894_v24  ;;  %v13598_v0 = vld [vmem:[#allocation4 + $0x4fc] ss:$120 sps:$4 sm:$0xff]   ;;  %v13647_v24 = vld [vmem:[#allocation4 + $0x1b38] ss:$120 sps:$4 sm:$0xff]  }
 0x2ba   :  { %9156 = vmatprep.mubr.bf16.mxu1 %v15201_v57 }
 0x2be   :  { %9157 = vmatmul.mubr.bf16.gmra.mrb[28].mxu1 %v15221_v6 }
 0x2bf   :  { %8646 = vmatmul.mubr.bf16.gmra.mrb[12].mxu0 %v15914_v23  ;;  %9174 = vmatpush1.bf16.xpose.msra.mxu1 %v13587_v5  ;;  %v13611_v5 = vld [vmem:[#allocation4 + $0x1598] ss:$120 sps:$4 sm:$0xff]   ;;  %v13649_v23 = vld [vmem:[#allocation4 + $0x1b3c] ss:$120 sps:$4 sm:$0xff]  }
 0x2c0   :  { %8663 = vmatpush1.bf16.xpose.msra.mxu0 %v13584_v62  ;;  %9175 = vmatprep.subr.bf16.mxu1 %v13595_v26  ;;  %v13602_v26 = vld [vmem:[#allocation4 + $0x5e8] ss:$120 sps:$4 sm:$0xff]   ;;  %v13608_v62 = vld [vmem:[#allocation4 + $0x6d8] ss:$120 sps:$4 sm:$0xff]  }
 0x2c1   :  { %8664 = vmatprep.subr.bf16.mxu0 %v13592_v42  ;;  %8688 = vmatprep.mubr.bf16.mxu0 %v15916_v34  ;;  %v13605_v42 = vld [vmem:[#allocation4 + $0x14a8] ss:$120 sps:$4 sm:$0xff]   ;;  %v13646_v34 = vld [vmem:[#allocation4 + $0xc7c] ss:$120 sps:$4 sm:$0xff]  }
 0x2c2   :  { %9199 = vmatprep.mubr.bf16.mxu1 %v15225_v8 }
 0x2c7   :  { %9176 = vmatpush1.bf16.xpose.msra.mxu1 %v13593_v7  ;;  %v13619_v7 = vld [vmem:[#allocation4 + $0x168c] ss:$120 sps:$4 sm:$0xff]  }
 0x2c8   :  { %8665 = vmatpush1.bf16.xpose.msra.mxu0 %v13590_v16  ;;  %9177 = vmatprep.subr.bf16.mxu1 %v13601_v61  ;;  %v13616_v16 = vld [vmem:[#allocation4 + $0x7cc] ss:$120 sps:$4 sm:$0xff]   ;;  %v13617_v61 = vld [vmem:[#allocation4 + $0x1688] ss:$120 sps:$4 sm:$0xff]  }
 0x2c9   :  { %8666 = vmatprep.subr.bf16.mxu0 %v13598_v0  ;;  %v13614_v0 = vld [vmem:[#allocation4 + $0x7c8] ss:$120 sps:$4 sm:$0xff]  }
 0x2cf   :  { %9178 = vmatpush1.bf16.xpose.msra.mxu1 %v13599_v31  ;;  %v13625_v31 = vld [vmem:[#allocation4 + $0x177c] ss:$120 sps:$4 sm:$0xff]  }
 0x2d0   :  { %8667 = vmatpush1.bf16.xpose.msra.mxu0 %v13596_v63  ;;  %9179 = vmatprep.subr.bf16.mxu1 %v13607_v51  ;;  %v13622_v63 = vld [vmem:[#allocation4 + $0x8bc] ss:$120 sps:$4 sm:$0xff]   ;;  %v13623_v51 = vld [vmem:[#allocation4 + $0x1778] ss:$120 sps:$4 sm:$0xff]  }
 0x2d1   :  { %8668 = vmatprep.subr.bf16.mxu0 %v13604_v30  ;;  %v13620_v30 = vld [vmem:[#allocation4 + $0x8b8] ss:$120 sps:$4 sm:$0xff]  }
 0x2d7   :  { %9180 = vmatpush1.bf16.xpose.msra.mxu1 %v13605_v42  ;;  %v13631_v42 = vld [vmem:[#allocation4 + $0x186c] ss:$120 sps:$4 sm:$0xff]  }
 0x2d8   :  { %8669 = vmatpush1.bf16.xpose.msra.mxu0 %v13602_v26  ;;  %9181 = vmatprep.subr.bf16.mxu1 %v13613_v48  ;;  %v13628_v26 = vld [vmem:[#allocation4 + $0x9ac] ss:$120 sps:$4 sm:$0xff]   ;;  %v13629_v48 = vld [vmem:[#allocation4 + $0x1868] ss:$120 sps:$4 sm:$0xff]  }
 0x2d9   :  { %8670 = vmatprep.subr.bf16.mxu0 %v13610_v11  ;;  %v13626_v11 = vld [vmem:[#allocation4 + $0x9a8] ss:$120 sps:$4 sm:$0xff]  }
 0x2df   :  { %9182 = vmatpush1.bf16.xpose.msra.mxu1 %v13611_v5  ;;  %v13637_v5 = vld [vmem:[#allocation4 + $0x195c] ss:$120 sps:$4 sm:$0xff]  }
 0x2e0   :  { %8671 = vmatpush1.bf16.xpose.msra.mxu0 %v13608_v62  ;;  %9183 = vmatprep.subr.bf16.mxu1 %v13619_v7  ;;  %v13634_v62 = vld [vmem:[#allocation4 + $0xa9c] ss:$120 sps:$4 sm:$0xff]  }
 0x2e1   :  { %8672 = vmatprep.subr.bf16.mxu0 %v13616_v16 }
 0x2e7   :  { %9184 = vmatpush1.bf16.xpose.msra.mxu1 %v13617_v61  ;;  %v13632_v61 = vld [vmem:[#allocation4 + $0xa98] ss:$120 sps:$4 sm:$0xff]  }
 0x2e8   :  { %8673 = vmatpush1.bf16.xpose.msra.mxu0 %v13614_v0  ;;  %9185 = vmatprep.subr.bf16.mxu1 %v13625_v31 }
 0x2e9   :  { %8674 = vmatprep.subr.bf16.mxu0 %v13622_v63  ;;  %v13635_v63 = vld [vmem:[#allocation4 + $0x1958] ss:$120 sps:$4 sm:$0xff]  }
 0x2ef   :  { %9186 = vmatpush1.bf16.xpose.msra.mxu1 %v13623_v51  ;;  %v13643_v51 = vld [vmem:[#allocation4 + $0x1a4c] ss:$120 sps:$4 sm:$0xff]  }
 0x2f0   :  { %8675 = vmatpush1.bf16.xpose.msra.mxu0 %v13620_v30  ;;  %9187 = vmatprep.subr.bf16.mxu1 %v13631_v42  ;;  %v13640_v30 = vld [vmem:[#allocation4 + $0xb8c] ss:$120 sps:$4 sm:$0xff]  }
 0x2f1   :  { %8676 = vmatprep.subr.bf16.mxu0 %v13628_v26 }
 0x2f7   :  { %9188 = vmatpush1.bf16.xpose.msra.mxu1 %v13629_v48  ;;  %v13638_v48 = vld [vmem:[#allocation4 + $0xb88] ss:$120 sps:$4 sm:$0xff]  }
 0x2f8   :  { %8677 = vmatpush1.bf16.xpose.msra.mxu0 %v13626_v11  ;;  %9189 = vmatprep.subr.bf16.mxu1 %v13637_v5 }
 0x2f9   :  { %8678 = vmatprep.subr.bf16.mxu0 %v13634_v62  ;;  %v15922_v16 = vpop.f32.mrb[0].mxu1  ;;  %v13641_v62 = vld [vmem:[#allocation4 + $0x1a48] ss:$120 sps:$4 sm:$0xff]  }
 0x2fa   :  { %v15924_v7 = vpop.f32.mrb[1].mxu1 }
 0x2fb   :  { %17090 = vst [vmem:[#allocation44_spill] sm:$0xff] %v15924_v7  ;;  %v15926_v0 = vpop.f32.mrb[2].mxu1  ;;  %v149_v7 = vld [vmem:[%s16886_s0 + $0x360] sm:$0xff] }
 0x2fc   :  { %17091 = vst [vmem:[#allocation45_spill] sm:$0xff] %v15926_v0  ;;  %v15928_v31 = vpop.f32.mrb[3].mxu1  ;;  %v119_v0 = vld [vmem:[%s16886_s0 + $0x270] sm:$0xff] }
 0x2fd   :  { %17092 = vst [vmem:[#allocation46_spill] sm:$0xff] %v15928_v31  ;;  %v13662_v31 = vld [vmem:[#allocation4 + $0x50] ss:$120 sps:$4 sm:$0xff]  }
 0x2ff   :  { %9190 = vmatpush1.bf16.xpose.msra.mxu1 %v13635_v63 }
 0x300   :  { %8679 = vmatpush1.bf16.xpose.msra.mxu0 %v13632_v61  ;;  %9191 = vmatprep.subr.bf16.mxu1 %v13643_v51  ;;  %v13644_v51 = vld [vmem:[#allocation4 + $0xc78] ss:$120 sps:$4 sm:$0xff]  }
 0x301   :  { %8680 = vmatprep.subr.bf16.mxu0 %v13640_v30  ;;  %v15930_v26 = vpop.f32.mrb[4].mxu1 }
 0x302   :  { %17093 = vst [vmem:[#allocation47_spill] sm:$0xff] %v15930_v26  ;;  %v15932_v42 = vpop.f32.mrb[5].mxu1  ;;  %v13655_v26 = vld [vmem:[#allocation4 + $0x1c2c] ss:$120 sps:$4 sm:$0xff]  }
 0x303   :  { %17094 = vst [vmem:[#allocation48_spill] sm:$0xff] %v15932_v42  ;;  %v15934_v11 = vpop.f32.mrb[6].mxu1 }
 0x304   :  { %17095 = vst [vmem:[#allocation49_spill] sm:$0xff] %v15934_v11  ;;  %v15936_v5 = vpop.f32.mrb[7].mxu1  ;;  %v13652_v11 = vld [vmem:[#allocation4 + $0xd6c] ss:$120 sps:$4 sm:$0xff]  }
 0x305   :  { %17096 = vst [vmem:[#allocation50_spill] sm:$0xff] %v15936_v5  ;;  %v13661_v5 = vld [vmem:[#allocation4 + $0x1d1c] ss:$120 sps:$4 sm:$0xff]  }
 0x307   :  { %9192 = vmatpush1.bf16.xpose.msra.mxu1 %v13641_v62  ;;  %v13650_v62 = vld [vmem:[#allocation4 + $0xd68] ss:$120 sps:$4 sm:$0xff]  }
 0x308   :  { %8681 = vmatpush1.bf16.xpose.msra.mxu0 %v13638_v48  ;;  %9193 = vmatprep.subr.bf16.mxu1 %v13649_v23 }
 0x309   :  { %8682 = vmatprep.subr.bf16.mxu0 %v13646_v34  ;;  %v15938_v61 = vpop.f32.mrb[8].mxu1 }
 0x30a   :  { %17097 = vst [vmem:[#allocation51_spill] sm:$0xff] %v15938_v61  ;;  %v15940_v63 = vpop.f32.mrb[9].mxu1 }
 0x30b   :  { %17098 = vst [vmem:[#allocation52_spill] sm:$0xff] %v15940_v63  ;;  %v15942_v30 = vpop.f32.mrb[10].mxu1  ;;  %v13653_v63 = vld [vmem:[#allocation4 + $0x1c28] ss:$120 sps:$4 sm:$0xff]  }
 0x30c   :  { %17099 = vst [vmem:[#allocation53_spill] sm:$0xff] %v15942_v30  ;;  %v15944_v42 = vpop.f32.mrb[11].mxu1  ;;  %v13658_v30 = vld [vmem:[#allocation4 + $0xe5c] ss:$120 sps:$4 sm:$0xff]  }
 0x30d   :  { %17100 = vst [vmem:[#allocation54_spill] sm:$0xff] %v15944_v42 }
 0x30f   :  { %9194 = vmatpush1.bf16.xpose.msra.mxu1 %v13647_v24  ;;  %v15956_v24 = vrot.slane %v15766_v56, %v15234_v17 }
 0x310   :  { %8683 = vmatpush1.bf16.xpose.msra.mxu0 %v13644_v51  ;;  %9195 = vmatprep.subr.bf16.mxu1 %v13655_v26  ;;  %v13656_v51 = vld [vmem:[#allocation4 + $0xe58] ss:$120 sps:$4 sm:$0xff]  }
 0x311   :  { %8684 = vmatprep.subr.bf16.mxu0 %v13652_v11  ;;  %v15946_v48 = vpop.f32.mrb[12].mxu1  ;;  %v13659_v26 = vld [vmem:[#allocation4 + $0x1d18] ss:$120 sps:$4 sm:$0xff]  }
 0x312   :  { %17101 = vst [vmem:[#allocation55_spill] sm:$0xff] %v15946_v48  ;;  %v15948_v34 = vpop.f32.mrb[13].mxu1  ;;  %v59_v11 = vld [vmem:[%s16886_s0 + $0x90] sm:$0xff] }
 0x313   :  { %17102 = vst [vmem:[#allocation56_spill] sm:$0xff] %v15948_v34  ;;  %v15950_v23 = vpop.f32.mrb[14].mxu1  ;;  %v13667_v34 = vld [vmem:[#allocation4 + $0xf14] ss:$120 sps:$4 sm:$0xff]  }
 0x314   :  { %17103 = vst [vmem:[#allocation57_spill] sm:$0xff] %v15950_v23  ;;  %v15952_v61 = vpop.f32.mrb[15].mxu1  ;;  %v13664_v23 = vld [vmem:[#allocation4 + $0x54] ss:$120 sps:$4 sm:$0xff]  }
 0x315   :  { %17104 = vst [vmem:[#allocation58_spill] sm:$0xff] %v15952_v61  ;;  %v89_v61 = vld [vmem:[%s16886_s0 + $0x180] sm:$0xff] }
 0x317   :  { %9196 = vmatpush1.bf16.xpose.msra.mxu1 %v13653_v63  ;;  %v457_v63 = vmul.f32 %v15956_v24, %v59_v11 }
 0x318   :  { %8685 = vmatpush1.bf16.xpose.msra.mxu0 %v13650_v62  ;;  %9197 = vmatprep.subr.bf16.mxu1 %v13661_v5  ;;  %v487_v5 = vmul.f32 %v15956_v24, %v89_v61  ;;  %v150_v62 = vld [vmem:[%s16886_s0 + $0x368] sm:$0xff] }
 0x319   :  { %8686 = vmatprep.subr.bf16.mxu0 %v13658_v30  ;;  %v120_v30 = vld [vmem:[%s16886_s0 + $0x278] sm:$0xff]  ;;  %v548_v42 = vmul.f32 %v15898_v38, %v150_v62  ;;  %v13665_v61 = vld [vmem:[#allocation4 + $0xf10] ss:$120 sps:$4 sm:$0xff]  }
 0x31a   :  { %v518_v48 = vmul.f32 %v15898_v38, %v120_v30  ;;  %v15974_v11 = vpack.c.bf16 %v487_v5, %v457_v63  ;;  %v547_v63 = vmul.f32 %v15956_v24, %v149_v7  ;;  %v180_v5 = vld [vmem:[%s16886_s0 + $0x458] sm:$0xff]  ;;  %v210_v30 = vld [vmem:[%s16886_s0 + $0x548] sm:$0xff] }
 0x31b   :  { %v608_v7 = vmul.f32 %v15898_v38, %v210_v30  ;;  %v13671_v62 = vld [vmem:[#allocation4 + $0x1000] ss:$120 sps:$4 sm:$0xff]   ;;  %v270_v30 = vld [vmem:[%s16886_s0 + $0x728] sm:$0xff] }
 0x31c   :  { %17105 = vst [vmem:[#allocation59_spill] sm:$0xff] %v15974_v11 }
 0x31f   :  { %9198 = vmatpush1.bf16.xpose.msra.mxu1 %v13659_v26  ;;  %v13673_v26 = vld [vmem:[#allocation4 + $0x1004] ss:$120 sps:$4 sm:$0xff]  }
 0x320   :  { %8687 = vmatpush1.bf16.xpose.msra.mxu0 %v13656_v51  ;;  %9240 = vmatprep.subr.bf16.mxu1 %v13667_v34  ;;  %v13670_v51 = vld [vmem:[#allocation4 + $0x144] ss:$120 sps:$4 sm:$0xff]   ;;  %v517_v34 = vmul.f32 %v15956_v24, %v119_v0  ;;  %v578_v0 = vmul.f32 %v15898_v38, %v180_v5 }
 0x321   :  { %8729 = vmatprep.subr.bf16.mxu0 %v13664_v23  ;;  %v15982_v23 = vpack.c.bf16 %v548_v42, %v518_v48  ;;  %v13668_v42 = vld [vmem:[#allocation4 + $0x140] ss:$120 sps:$4 sm:$0xff]  }
 0x322   :  { %v15998_v48 = vpack.c.bf16 %v547_v63, %v517_v34  ;;  %v240_v5 = vld [vmem:[%s16886_s0 + $0x638] sm:$0xff] }
 0x323   :  { %17106 = vst [vmem:[#allocation60_spill] sm:$0xff] %v15982_v23 }
 0x324   :  { %17107 = vst [vmem:[#allocation61_spill] sm:$0xff] %v15998_v48 }
 0x326   :  { %9200 = vmatmul.mubr.bf16.vlgmr.msra.gmra.mrb[16].mxu1 %v15283_v1 }
 0x327   :  { %8689 = vmatmul.mubr.bf16.vlgmr.msra.gmra.mrb[0].mxu0 %v15974_v11  ;;  %9241 = vmatpush1.bf16.xpose.msra.mxu1 %v13665_v61  ;;  %v179_v11 = vld [vmem:[%s16886_s0 + $0x450] sm:$0xff] }
 0x328   :  { %8730 = vmatpush1.bf16.xpose.msra.mxu0 %v13662_v31  ;;  %9242 = vmatprep.subr.bf16.mxu1 %v13673_v26  ;;  %v209_v31 = vld [vmem:[%s16886_s0 + $0x540] sm:$0xff]  ;;  %v13676_v61 = vld [vmem:[#allocation4 + $0x234] ss:$120 sps:$4 sm:$0xff]   ;;  %v16006_v26 = vpack.c.bf16 %v608_v7, %v578_v0  ;;  %v577_v34 = vmul.f32 %v15956_v24, %v179_v11  ;;  %v638_v11 = vmul.f32 %v15898_v38, %v240_v5 }
 0x329   :  { %8731 = vmatprep.subr.bf16.mxu0 %v13670_v51  ;;  %8698 = vmatprep.mubr.bf16.mxu0 %v15982_v23  ;;  %v13679_v51 = vld [vmem:[#allocation4 + $0x10f4] ss:$120 sps:$4 sm:$0xff]   ;;  %v607_v63 = vmul.f32 %v15956_v24, %v209_v31  ;;  %v668_v0 = vmul.f32 %v15898_v38, %v270_v30  ;;  %v13674_v7 = vld [vmem:[#allocation4 + $0x230] ss:$120 sps:$4 sm:$0xff]   ;;  %v16034_v5 = vrot.slane %v15766_v56, %v15367_v12  ;;  %v92_v30 = vld [vmem:[%s16886_s0 + $0x198] sm:$0xff] }
 0x32a   :  { %9209 = vmatprep.mubr.bf16.mxu1 %v15308_v13  ;;  %17108 = vst [vmem:[#allocation62_spill] sm:$0xff] %v16006_v26  ;;  %v239_v23 = vld [vmem:[%s16886_s0 + $0x630] sm:$0xff] }
 0x32b   :  { %v16022_v31 = vpack.c.bf16 %v607_v63, %v577_v34  ;;  %v637_v38 = vmul.f32 %v15956_v24, %v239_v23  ;;  %v62_v63 = vld [vmem:[%s16886_s0 + $0xa8] sm:$0xff] }
 0x32c   :  { %v460_v56 = vmul.f32 %v16034_v5, %v62_v63  ;;  %v13700_v63 = vld [vmem:[#allocation4 + $0x5f4] ss:$120 sps:$4 sm:$0xff]  }
 0x32d   :  { %17109 = vst [vmem:[#allocation63_spill] sm:$0xff] %v16022_v31 }
 0x32e   :  { %9210 = vmatmul.mubr.bf16.gmra.mrb[20].mxu1 %v15336_v55 }
 0x32f   :  { %8699 = vmatmul.mubr.bf16.gmra.mrb[4].mxu0 %v15998_v48  ;;  %9243 = vmatpush1.bf16.xpose.msra.mxu1 %v13671_v62  ;;  %v13677_v48 = vld [vmem:[#allocation4 + $0x10f0] ss:$120 sps:$4 sm:$0xff]   ;;  %v13682_v62 = vld [vmem:[#allocation4 + $0x324] ss:$120 sps:$4 sm:$0xff]  }
 0x330   :  { %8732 = vmatpush1.bf16.xpose.msra.mxu0 %v13668_v42  ;;  %9244 = vmatprep.subr.bf16.mxu1 %v13679_v51  ;;  %v269_v42 = vld [vmem:[%s16886_s0 + $0x720] sm:$0xff]  ;;  %v16030_v51 = vpack.c.bf16 %v668_v0, %v638_v11 }
 0x331   :  { %8733 = vmatprep.subr.bf16.mxu0 %v13676_v61  ;;  %8708 = vmatprep.mubr.bf16.mxu0 %v16006_v26  ;;  %v13685_v61 = vld [vmem:[#allocation4 + $0x11e4] ss:$120 sps:$4 sm:$0xff]   ;;  %v667_v34 = vmul.f32 %v15956_v24, %v269_v42  ;;  %v490_v24 = vmul.f32 %v16034_v5, %v92_v30  ;;  %v13680_v11 = vld [vmem:[#allocation4 + $0x320] ss:$120 sps:$4 sm:$0xff]   ;;  %v13688_v42 = vld [vmem:[#allocation4 + $0x414] ss:$120 sps:$4 sm:$0xff]  }
 0x332   :  { %9219 = vmatprep.mubr.bf16.mxu1 %v15352_v3  ;;  %17110 = vst [vmem:[#allocation64_spill] sm:$0xff] %v16030_v51  ;;  %v13683_v0 = vld [vmem:[#allocation4 + $0x11e0] ss:$120 sps:$4 sm:$0xff]   ;;  %v13703_v30 = vld [vmem:[#allocation4 + $0x14b4] ss:$120 sps:$4 sm:$0xff]  }
 0x333   :  { %v16050_v23 = vpack.c.bf16 %v667_v34, %v637_v38  ;;  %v16052_v26 = vpack.c.bf16 %v490_v24, %v460_v56  ;;  %v13692_v38 = vld [vmem:[#allocation4 + $0x500] ss:$120 sps:$4 sm:$0xff]   ;;  %v13701_v56 = vld [vmem:[#allocation4 + $0x14b0] ss:$120 sps:$4 sm:$0xff]   ;;  %v13706_v24 = vld [vmem:[#allocation4 + $0x6e4] ss:$120 sps:$4 sm:$0xff]  }
 0x334   :  { %v13695_v34 = vld [vmem:[#allocation4 + $0x13c0] ss:$120 sps:$4 sm:$0xff]  }
 0x335   :  { %17111 = vst [vmem:[#allocation65_spill] sm:$0xff] %v16050_v23  ;;  %17112 = vst [vmem:[#allocation66_spill] sm:$0xff] %v16052_v26 }
 0x336   :  { %9220 = vmatmul.mubr.bf16.gmra.mrb[24].mxu1 %v15383_v45 }
 0x337   :  { %8709 = vmatmul.mubr.bf16.gmra.mrb[8].mxu0 %v16022_v31  ;;  %9245 = vmatpush1.bf16.xpose.msra.mxu1 %v13677_v48  ;;  %v13691_v31 = vld [vmem:[#allocation4 + $0x12d4] ss:$120 sps:$4 sm:$0xff]   ;;  %v13686_v48 = vld [vmem:[#allocation4 + $0x410] ss:$120 sps:$4 sm:$0xff]  }
 0x338   :  { %8734 = vmatpush1.bf16.xpose.msra.mxu0 %v13674_v7  ;;  %9246 = vmatprep.subr.bf16.mxu1 %v13685_v61  ;;  %v13689_v7 = vld [vmem:[#allocation4 + $0x12d0] ss:$120 sps:$4 sm:$0xff]   ;;  %v13697_v61 = vld [vmem:[#allocation4 + $0x13c4] ss:$120 sps:$4 sm:$0xff]  }
 0x339   :  { %8735 = vmatprep.subr.bf16.mxu0 %v13682_v62  ;;  %8718 = vmatprep.mubr.bf16.mxu0 %v16030_v51  ;;  %v13694_v62 = vld [vmem:[#allocation4 + $0x504] ss:$120 sps:$4 sm:$0xff]   ;;  %v151_v51 = vld [vmem:[%s16886_s0 + $0x370] sm:$0xff] }
 0x33a   :  { %9229 = vmatprep.mubr.bf16.mxu1 %v15403_v53 }
 0x33e   :  { %9230 = vmatmul.mubr.bf16.gmra.mrb[28].mxu1 %v15423_v19 }
 0x33f   :  { %8719 = vmatmul.mubr.bf16.gmra.mrb[12].mxu0 %v16050_v23  ;;  %9247 = vmatpush1.bf16.xpose.msra.mxu1 %v13683_v0  ;;  %v13704_v0 = vld [vmem:[#allocation4 + $0x6e0] ss:$120 sps:$4 sm:$0xff]  }
 0x340   :  { %8736 = vmatpush1.bf16.xpose.msra.mxu0 %v13680_v11  ;;  %9248 = vmatprep.subr.bf16.mxu1 %v13691_v31  ;;  %v13698_v31 = vld [vmem:[#allocation4 + $0x5f0] ss:$120 sps:$4 sm:$0xff]   ;;  %v13709_v11 = vld [vmem:[#allocation4 + $0x15a4] ss:$120 sps:$4 sm:$0xff]  }
 0x341   :  { %8737 = vmatprep.subr.bf16.mxu0 %v13688_v42  ;;  %8761 = vmatprep.mubr.bf16.mxu0 %v16052_v26  ;;  %v13707_v42 = vld [vmem:[#allocation4 + $0x15a0] ss:$120 sps:$4 sm:$0xff]  }
 0x342   :  { %9272 = vmatprep.mubr.bf16.mxu1 %v15427_v25  ;;  %v13758_v26 = vld [vmem:[#allocation4 + $0x58] ss:$120 sps:$4 sm:$0xff]   ;;  %v121_v23 = vld [vmem:[%s16886_s0 + $0x280] sm:$0xff] }
 0x347   :  { %9249 = vmatpush1.bf16.xpose.msra.mxu1 %v13689_v7  ;;  %v13715_v7 = vld [vmem:[#allocation4 + $0x1694] ss:$120 sps:$4 sm:$0xff]  }
 0x348   :  { %8738 = vmatpush1.bf16.xpose.msra.mxu0 %v13686_v48  ;;  %9250 = vmatprep.subr.bf16.mxu1 %v13697_v61  ;;  %v13712_v48 = vld [vmem:[#allocation4 + $0x7d4] ss:$120 sps:$4 sm:$0xff]   ;;  %v13713_v61 = vld [vmem:[#allocation4 + $0x1690] ss:$120 sps:$4 sm:$0xff]  }
 0x349   :  { %8739 = vmatprep.subr.bf16.mxu0 %v13694_v62  ;;  %v13710_v62 = vld [vmem:[#allocation4 + $0x7d0] ss:$120 sps:$4 sm:$0xff]  }
 0x34f   :  { %9251 = vmatpush1.bf16.xpose.msra.mxu1 %v13695_v34  ;;  %v13721_v34 = vld [vmem:[#allocation4 + $0x1784] ss:$120 sps:$4 sm:$0xff]  }
 0x350   :  { %8740 = vmatpush1.bf16.xpose.msra.mxu0 %v13692_v38  ;;  %9252 = vmatprep.subr.bf16.mxu1 %v13703_v30  ;;  %v13718_v38 = vld [vmem:[#allocation4 + $0x8c4] ss:$120 sps:$4 sm:$0xff]   ;;  %v13719_v30 = vld [vmem:[#allocation4 + $0x1780] ss:$120 sps:$4 sm:$0xff]  }
 0x351   :  { %8741 = vmatprep.subr.bf16.mxu0 %v13700_v63  ;;  %v13716_v63 = vld [vmem:[#allocation4 + $0x8c0] ss:$120 sps:$4 sm:$0xff]  }
 0x357   :  { %9253 = vmatpush1.bf16.xpose.msra.mxu1 %v13701_v56  ;;  %v13727_v56 = vld [vmem:[#allocation4 + $0x1874] ss:$120 sps:$4 sm:$0xff]  }
 0x358   :  { %8742 = vmatpush1.bf16.xpose.msra.mxu0 %v13698_v31  ;;  %9254 = vmatprep.subr.bf16.mxu1 %v13709_v11  ;;  %v13724_v31 = vld [vmem:[#allocation4 + $0x9b4] ss:$120 sps:$4 sm:$0xff]   ;;  %v13725_v11 = vld [vmem:[#allocation4 + $0x1870] ss:$120 sps:$4 sm:$0xff]  }
 0x359   :  { %8743 = vmatprep.subr.bf16.mxu0 %v13706_v24  ;;  %v13722_v24 = vld [vmem:[#allocation4 + $0x9b0] ss:$120 sps:$4 sm:$0xff]  }
 0x35f   :  { %9255 = vmatpush1.bf16.xpose.msra.mxu1 %v13707_v42  ;;  %v13733_v42 = vld [vmem:[#allocation4 + $0x1964] ss:$120 sps:$4 sm:$0xff]  }
 0x360   :  { %8744 = vmatpush1.bf16.xpose.msra.mxu0 %v13704_v0  ;;  %9256 = vmatprep.subr.bf16.mxu1 %v13715_v7  ;;  %v13730_v0 = vld [vmem:[#allocation4 + $0xaa4] ss:$120 sps:$4 sm:$0xff]   ;;  %v13731_v7 = vld [vmem:[#allocation4 + $0x1960] ss:$120 sps:$4 sm:$0xff]  }
 0x361   :  { %8745 = vmatprep.subr.bf16.mxu0 %v13712_v48  ;;  %v13728_v48 = vld [vmem:[#allocation4 + $0xaa0] ss:$120 sps:$4 sm:$0xff]  }
 0x367   :  { %9257 = vmatpush1.bf16.xpose.msra.mxu1 %v13713_v61  ;;  %v13739_v61 = vld [vmem:[#allocation4 + $0x1a54] ss:$120 sps:$4 sm:$0xff]  }
 0x368   :  { %8746 = vmatpush1.bf16.xpose.msra.mxu0 %v13710_v62  ;;  %9258 = vmatprep.subr.bf16.mxu1 %v13721_v34  ;;  %v13736_v62 = vld [vmem:[#allocation4 + $0xb94] ss:$120 sps:$4 sm:$0xff]   ;;  %v13737_v34 = vld [vmem:[#allocation4 + $0x1a50] ss:$120 sps:$4 sm:$0xff]  }
 0x369   :  { %8747 = vmatprep.subr.bf16.mxu0 %v13718_v38  ;;  %v13734_v38 = vld [vmem:[#allocation4 + $0xb90] ss:$120 sps:$4 sm:$0xff]  }
 0x36f   :  { %9259 = vmatpush1.bf16.xpose.msra.mxu1 %v13719_v30  ;;  %v13745_v30 = vld [vmem:[#allocation4 + $0x1b44] ss:$120 sps:$4 sm:$0xff]  }
 0x370   :  { %8748 = vmatpush1.bf16.xpose.msra.mxu0 %v13716_v63  ;;  %9260 = vmatprep.subr.bf16.mxu1 %v13727_v56  ;;  %v13742_v63 = vld [vmem:[#allocation4 + $0xc84] ss:$120 sps:$4 sm:$0xff]   ;;  %v13743_v56 = vld [vmem:[#allocation4 + $0x1b40] ss:$120 sps:$4 sm:$0xff]  }
 0x371   :  { %8749 = vmatprep.subr.bf16.mxu0 %v13724_v31  ;;  %v13740_v31 = vld [vmem:[#allocation4 + $0xc80] ss:$120 sps:$4 sm:$0xff]  }
 0x377   :  { %9261 = vmatpush1.bf16.xpose.msra.mxu1 %v13725_v11  ;;  %v13751_v11 = vld [vmem:[#allocation4 + $0x1c34] ss:$120 sps:$4 sm:$0xff]  }
 0x378   :  { %8750 = vmatpush1.bf16.xpose.msra.mxu0 %v13722_v24  ;;  %9262 = vmatprep.subr.bf16.mxu1 %v13733_v42  ;;  %v13748_v24 = vld [vmem:[#allocation4 + $0xd74] ss:$120 sps:$4 sm:$0xff]   ;;  %v13749_v42 = vld [vmem:[#allocation4 + $0x1c30] ss:$120 sps:$4 sm:$0xff]  }
 0x379   :  { %8751 = vmatprep.subr.bf16.mxu0 %v13730_v0  ;;  %v13746_v0 = vld [vmem:[#allocation4 + $0xd70] ss:$120 sps:$4 sm:$0xff]  }
 0x37f   :  { %9263 = vmatpush1.bf16.xpose.msra.mxu1 %v13731_v7  ;;  %v13757_v7 = vld [vmem:[#allocation4 + $0x1d24] ss:$120 sps:$4 sm:$0xff]  }
 0x380   :  { %8752 = vmatpush1.bf16.xpose.msra.mxu0 %v13728_v48  ;;  %9264 = vmatprep.subr.bf16.mxu1 %v13739_v61  ;;  %v13754_v48 = vld [vmem:[#allocation4 + $0xe64] ss:$120 sps:$4 sm:$0xff]   ;;  %v16058_v61 = vld [vmem:[#allocation2 + $0x10] sm:$0xff] }
 0x381   :  { %8753 = vmatprep.subr.bf16.mxu0 %v13736_v62  ;;  %v13752_v62 = vld [vmem:[#allocation4 + $0xe60] ss:$120 sps:$4 sm:$0xff]  }
 0x387   :  { %9265 = vmatpush1.bf16.xpose.msra.mxu1 %v13737_v34  ;;  %v13755_v34 = vld [vmem:[#allocation4 + $0x1d20] ss:$120 sps:$4 sm:$0xff]  }
 0x388   :  { %8754 = vmatpush1.bf16.xpose.msra.mxu0 %v13734_v38  ;;  %9266 = vmatprep.subr.bf16.mxu1 %v13745_v30  ;;  %v16062_v38 = vrot.slane %v16058_v61, %v15436_v29  ;;  %v91_v30 = vld [vmem:[%s16886_s0 + $0x190] sm:$0xff] }
 0x389   :  { %8755 = vmatprep.subr.bf16.mxu0 %v13742_v63  ;;  %v61_v63 = vld [vmem:[%s16886_s0 + $0xa0] sm:$0xff] }
 0x38f   :  { %9267 = vmatpush1.bf16.xpose.msra.mxu1 %v13743_v56  ;;  %v13763_v56 = vld [vmem:[#allocation4 + $0xf1c] ss:$120 sps:$4 sm:$0xff]  }
 0x390   :  { %8756 = vmatpush1.bf16.xpose.msra.mxu0 %v13740_v31  ;;  %9268 = vmatprep.subr.bf16.mxu1 %v13751_v11  ;;  %v13760_v31 = vld [vmem:[#allocation4 + $0x5c] ss:$120 sps:$4 sm:$0xff]   ;;  %v489_v11 = vmul.f32 %v16062_v38, %v91_v30  ;;  %v13761_v30 = vld [vmem:[#allocation4 + $0xf18] ss:$120 sps:$4 sm:$0xff]  }
 0x391   :  { %8757 = vmatprep.subr.bf16.mxu0 %v13748_v24  ;;  %v459_v24 = vmul.f32 %v16062_v38, %v61_v63 }
 0x393   :  { %v16080_v63 = vpack.c.bf16 %v489_v11, %v459_v24  ;;  %v549_v24 = vmul.f32 %v16062_v38, %v151_v51  ;;  %v182_v11 = vld [vmem:[%s16886_s0 + $0x468] sm:$0xff] }
 0x395   :  { %17113 = vst [vmem:[#allocation67_spill] sm:$0xff] %v16080_v63 }
 0x397   :  { %9269 = vmatpush1.bf16.xpose.msra.mxu1 %v13749_v42  ;;  %v152_v42 = vld [vmem:[%s16886_s0 + $0x378] sm:$0xff] }
 0x398   :  { %8758 = vmatpush1.bf16.xpose.msra.mxu0 %v13746_v0  ;;  %9270 = vmatprep.subr.bf16.mxu1 %v13757_v7  ;;  %v122_v0 = vld [vmem:[%s16886_s0 + $0x288] sm:$0xff]  ;;  %v550_v7 = vmul.f32 %v16034_v5, %v152_v42 }
 0x399   :  { %8759 = vmatprep.subr.bf16.mxu0 %v13754_v48  ;;  %v520_v48 = vmul.f32 %v16034_v5, %v122_v0  ;;  %v212_v0 = vld [vmem:[%s16886_s0 + $0x558] sm:$0xff] }
 0x39a   :  { %v610_v51 = vmul.f32 %v16034_v5, %v212_v0  ;;  %v13764_v42 = vld [vmem:[#allocation4 + $0x148] ss:$120 sps:$4 sm:$0xff]  }
 0x39b   :  { %v272_v0 = vld [vmem:[%s16886_s0 + $0x738] sm:$0xff] }
 0x39f   :  { %9271 = vmatpush1.bf16.xpose.msra.mxu1 %v13755_v34  ;;  %v13769_v34 = vld [vmem:[#allocation4 + $0x100c] ss:$120 sps:$4 sm:$0xff]  }
 0x3a0   :  { %8760 = vmatpush1.bf16.xpose.msra.mxu0 %v13752_v62  ;;  %9313 = vmatprep.subr.bf16.mxu1 %v13763_v56  ;;  %v13766_v62 = vld [vmem:[#allocation4 + $0x14c] ss:$120 sps:$4 sm:$0xff]   ;;  %v519_v56 = vmul.f32 %v16062_v38, %v121_v23  ;;  %v580_v23 = vmul.f32 %v16034_v5, %v182_v11 }
 0x3a1   :  { %8802 = vmatprep.subr.bf16.mxu0 %v13760_v31  ;;  %v16088_v31 = vpack.c.bf16 %v550_v7, %v520_v48  ;;  %v13767_v7 = vld [vmem:[#allocation4 + $0x1008] ss:$120 sps:$4 sm:$0xff]  }
 0x3a2   :  { %v16104_v48 = vpack.c.bf16 %v549_v24, %v519_v56  ;;  %v242_v11 = vld [vmem:[%s16886_s0 + $0x648] sm:$0xff] }
 0x3a3   :  { %17114 = vst [vmem:[#allocation68_spill] sm:$0xff] %v16088_v31 }
 0x3a4   :  { %17115 = vst [vmem:[#allocation69_spill] sm:$0xff] %v16104_v48 }
 0x3a6   :  { %9273 = vmatmul.mubr.bf16.vlgmr.msra.gmra.mrb[16].mxu1 %v15488_v37 }
 0x3a7   :  { %8762 = vmatmul.mubr.bf16.vlgmr.msra.gmra.mrb[0].mxu0 %v16080_v63  ;;  %9314 = vmatpush1.bf16.xpose.msra.mxu1 %v13761_v30  ;;  %v181_v63 = vld [vmem:[%s16886_s0 + $0x460] sm:$0xff]  ;;  %v13772_v30 = vld [vmem:[#allocation4 + $0x23c] ss:$120 sps:$4 sm:$0xff]  }
 0x3a8   :  { %8803 = vmatpush1.bf16.xpose.msra.mxu0 %v13758_v26  ;;  %9315 = vmatprep.subr.bf16.mxu1 %v13769_v34  ;;  %v211_v26 = vld [vmem:[%s16886_s0 + $0x550] sm:$0xff]  ;;  %v16112_v34 = vpack.c.bf16 %v610_v51, %v580_v23  ;;  %v579_v56 = vmul.f32 %v16062_v38, %v181_v63  ;;  %v640_v63 = vmul.f32 %v16034_v5, %v242_v11 }
 0x3a9   :  { %8804 = vmatprep.subr.bf16.mxu0 %v13766_v62  ;;  %8771 = vmatprep.mubr.bf16.mxu0 %v16088_v31  ;;  %v13775_v62 = vld [vmem:[#allocation4 + $0x10fc] ss:$120 sps:$4 sm:$0xff]   ;;  %v609_v24 = vmul.f32 %v16062_v38, %v211_v26  ;;  %v670_v23 = vmul.f32 %v16034_v5, %v272_v0  ;;  %v13770_v51 = vld [vmem:[#allocation4 + $0x238] ss:$120 sps:$4 sm:$0xff]   ;;  %v241_v31 = vld [vmem:[%s16886_s0 + $0x640] sm:$0xff]  ;;  %v16140_v11 = vrot.slane %v16058_v61, %v15569_v40 }
 0x3aa   :  { %9282 = vmatprep.mubr.bf16.mxu1 %v15504_v39  ;;  %17116 = vst [vmem:[#allocation70_spill] sm:$0xff] %v16112_v34  ;;  %v639_v5 = vmul.f32 %v16062_v38, %v241_v31  ;;  %v94_v0 = vld [vmem:[%s16886_s0 + $0x1a8] sm:$0xff] }
 0x3ab   :  { %v16128_v26 = vpack.c.bf16 %v609_v24, %v579_v56  ;;  %v64_v24 = vld [vmem:[%s16886_s0 + $0xb8] sm:$0xff] }
 0x3ac   :  { %v462_v40 = vmul.f32 %v16140_v11, %v64_v24  ;;  %v13796_v24 = vld [vmem:[#allocation4 + $0x5fc] ss:$120 sps:$4 sm:$0xff]  }
 0x3ad   :  { %17117 = vst [vmem:[#allocation71_spill] sm:$0xff] %v16128_v26 }
 0x3ae   :  { %9283 = vmatmul.mubr.bf16.gmra.mrb[20].mxu1 %v15538_v10 }
 0x3af   :  { %8772 = vmatmul.mubr.bf16.gmra.mrb[4].mxu0 %v16104_v48  ;;  %9316 = vmatpush1.bf16.xpose.msra.mxu1 %v13767_v7  ;;  %v13773_v48 = vld [vmem:[#allocation4 + $0x10f8] ss:$120 sps:$4 sm:$0xff]   ;;  %v13778_v7 = vld [vmem:[#allocation4 + $0x32c] ss:$120 sps:$4 sm:$0xff]  }
 0x3b0   :  { %8805 = vmatpush1.bf16.xpose.msra.mxu0 %v13764_v42  ;;  %9317 = vmatprep.subr.bf16.mxu1 %v13775_v62  ;;  %v271_v42 = vld [vmem:[%s16886_s0 + $0x730] sm:$0xff]  ;;  %v16136_v62 = vpack.c.bf16 %v670_v23, %v640_v63  ;;  %v13776_v63 = vld [vmem:[#allocation4 + $0x328] ss:$120 sps:$4 sm:$0xff]  }
 0x3b1   :  { %8806 = vmatprep.subr.bf16.mxu0 %v13772_v30  ;;  %8781 = vmatprep.mubr.bf16.mxu0 %v16112_v34  ;;  %v13781_v30 = vld [vmem:[#allocation4 + $0x11ec] ss:$120 sps:$4 sm:$0xff]   ;;  %v669_v56 = vmul.f32 %v16062_v38, %v271_v42  ;;  %v492_v38 = vmul.f32 %v16140_v11, %v94_v0  ;;  %v13779_v23 = vld [vmem:[#allocation4 + $0x11e8] ss:$120 sps:$4 sm:$0xff]   ;;  %v13784_v42 = vld [vmem:[#allocation4 + $0x41c] ss:$120 sps:$4 sm:$0xff]  }
 0x3b2   :  { %9292 = vmatprep.mubr.bf16.mxu1 %v15548_v43  ;;  %17118 = vst [vmem:[#allocation72_spill] sm:$0xff] %v16136_v62  ;;  %v13799_v0 = vld [vmem:[#allocation4 + $0x14bc] ss:$120 sps:$4 sm:$0xff]  }
 0x3b3   :  { %v16156_v31 = vpack.c.bf16 %v669_v56, %v639_v5  ;;  %v16158_v34 = vpack.c.bf16 %v492_v38, %v462_v40  ;;  %v13788_v5 = vld [vmem:[#allocation4 + $0x508] ss:$120 sps:$4 sm:$0xff]   ;;  %v13797_v40 = vld [vmem:[#allocation4 + $0x14b8] ss:$120 sps:$4 sm:$0xff]   ;;  %v13802_v38 = vld [vmem:[#allocation4 + $0x6ec] ss:$120 sps:$4 sm:$0xff]  }
 0x3b4   :  { %v13791_v56 = vld [vmem:[#allocation4 + $0x13c8] ss:$120 sps:$4 sm:$0xff]  }
 0x3b5   :  { %17119 = vst [vmem:[#allocation73_spill] sm:$0xff] %v16156_v31  ;;  %17120 = vst [vmem:[#allocation74_spill] sm:$0xff] %v16158_v34 }
 0x3b6   :  { %9293 = vmatmul.mubr.bf16.gmra.mrb[24].mxu1 %v15585_v2 }
 0x3b7   :  { %8782 = vmatmul.mubr.bf16.gmra.mrb[8].mxu0 %v16128_v26  ;;  %9318 = vmatpush1.bf16.xpose.msra.mxu1 %v13773_v48  ;;  %v13787_v26 = vld [vmem:[#allocation4 + $0x12dc] ss:$120 sps:$4 sm:$0xff]   ;;  %v13782_v48 = vld [vmem:[#allocation4 + $0x418] ss:$120 sps:$4 sm:$0xff]  }
 0x3b8   :  { %8807 = vmatpush1.bf16.xpose.msra.mxu0 %v13770_v51  ;;  %9319 = vmatprep.subr.bf16.mxu1 %v13781_v30  ;;  %v13785_v51 = vld [vmem:[#allocation4 + $0x12d8] ss:$120 sps:$4 sm:$0xff]   ;;  %v13793_v30 = vld [vmem:[#allocation4 + $0x13cc] ss:$120 sps:$4 sm:$0xff]  }
 0x3b9   :  { %8808 = vmatprep.subr.bf16.mxu0 %v13778_v7  ;;  %8791 = vmatprep.mubr.bf16.mxu0 %v16136_v62  ;;  %v13790_v7 = vld [vmem:[#allocation4 + $0x50c] ss:$120 sps:$4 sm:$0xff]  }
 0x3ba   :  { %9302 = vmatprep.mubr.bf16.mxu1 %v15599_v33  ;;  %v245_v62 = vld [vmem:[%s16886_s0 + $0x660] sm:$0xff] }
 0x3be   :  { %9303 = vmatmul.mubr.bf16.gmra.mrb[28].mxu1 %v15625_v22 }
 0x3bf   :  { %8792 = vmatmul.mubr.bf16.gmra.mrb[12].mxu0 %v16156_v31  ;;  %9320 = vmatpush1.bf16.xpose.msra.mxu1 %v13779_v23  ;;  %v13800_v23 = vld [vmem:[#allocation4 + $0x6e8] ss:$120 sps:$4 sm:$0xff]  }
 0x3c0   :  { %8809 = vmatpush1.bf16.xpose.msra.mxu0 %v13776_v63  ;;  %9321 = vmatprep.subr.bf16.mxu1 %v13787_v26  ;;  %v13794_v26 = vld [vmem:[#allocation4 + $0x5f8] ss:$120 sps:$4 sm:$0xff]   ;;  %v13805_v63 = vld [vmem:[#allocation4 + $0x15ac] ss:$120 sps:$4 sm:$0xff]   ;;  %v13965_v31 = vld [vmem:[#allocation4 + $0x1108] ss:$120 sps:$4 sm:$0xff]  }
 0x3c1   :  { %8810 = vmatprep.subr.bf16.mxu0 %v13784_v42  ;;  %8834 = vmatprep.mubr.bf16.mxu0 %v16158_v34  ;;  %v13803_v42 = vld [vmem:[#allocation4 + $0x15a8] ss:$120 sps:$4 sm:$0xff]  }
 0x3c2   :  { %9345 = vmatprep.mubr.bf16.mxu1 %v15629_v4 }
 0x3c7   :  { %9322 = vmatpush1.bf16.xpose.msra.mxu1 %v13785_v51  ;;  %v13811_v51 = vld [vmem:[#allocation4 + $0x169c] ss:$120 sps:$4 sm:$0xff]  }
 0x3c8   :  { %8811 = vmatpush1.bf16.xpose.msra.mxu0 %v13782_v48  ;;  %9323 = vmatprep.subr.bf16.mxu1 %v13793_v30  ;;  %v13808_v48 = vld [vmem:[#allocation4 + $0x7dc] ss:$120 sps:$4 sm:$0xff]   ;;  %v13809_v30 = vld [vmem:[#allocation4 + $0x1698] ss:$120 sps:$4 sm:$0xff]  }
 0x3c9   :  { %8812 = vmatprep.subr.bf16.mxu0 %v13790_v7  ;;  %v13806_v7 = vld [vmem:[#allocation4 + $0x7d8] ss:$120 sps:$4 sm:$0xff]  }
 0x3cf   :  { %9324 = vmatpush1.bf16.xpose.msra.mxu1 %v13791_v56  ;;  %v13817_v56 = vld [vmem:[#allocation4 + $0x178c] ss:$120 sps:$4 sm:$0xff]  }
 0x3d0   :  { %8813 = vmatpush1.bf16.xpose.msra.mxu0 %v13788_v5  ;;  %9325 = vmatprep.subr.bf16.mxu1 %v13799_v0  ;;  %v13814_v5 = vld [vmem:[#allocation4 + $0x8cc] ss:$120 sps:$4 sm:$0xff]   ;;  %v13815_v0 = vld [vmem:[#allocation4 + $0x1788] ss:$120 sps:$4 sm:$0xff]  }
 0x3d1   :  { %8814 = vmatprep.subr.bf16.mxu0 %v13796_v24  ;;  %v13812_v24 = vld [vmem:[#allocation4 + $0x8c8] ss:$120 sps:$4 sm:$0xff]  }
 0x3d7   :  { %9326 = vmatpush1.bf16.xpose.msra.mxu1 %v13797_v40  ;;  %v13823_v40 = vld [vmem:[#allocation4 + $0x187c] ss:$120 sps:$4 sm:$0xff]  }
 0x3d8   :  { %8815 = vmatpush1.bf16.xpose.msra.mxu0 %v13794_v26  ;;  %9327 = vmatprep.subr.bf16.mxu1 %v13805_v63  ;;  %v13820_v26 = vld [vmem:[#allocation4 + $0x9bc] ss:$120 sps:$4 sm:$0xff]   ;;  %v13821_v63 = vld [vmem:[#allocation4 + $0x1878] ss:$120 sps:$4 sm:$0xff]  }
 0x3d9   :  { %8816 = vmatprep.subr.bf16.mxu0 %v13802_v38  ;;  %v13818_v38 = vld [vmem:[#allocation4 + $0x9b8] ss:$120 sps:$4 sm:$0xff]  }
 0x3df   :  { %9328 = vmatpush1.bf16.xpose.msra.mxu1 %v13803_v42  ;;  %v13829_v42 = vld [vmem:[#allocation4 + $0x196c] ss:$120 sps:$4 sm:$0xff]  }
 0x3e0   :  { %8817 = vmatpush1.bf16.xpose.msra.mxu0 %v13800_v23  ;;  %9329 = vmatprep.subr.bf16.mxu1 %v13811_v51  ;;  %v13826_v23 = vld [vmem:[#allocation4 + $0xaac] ss:$120 sps:$4 sm:$0xff]   ;;  %v13827_v51 = vld [vmem:[#allocation4 + $0x1968] ss:$120 sps:$4 sm:$0xff]  }
 0x3e1   :  { %8818 = vmatprep.subr.bf16.mxu0 %v13808_v48  ;;  %v13824_v48 = vld [vmem:[#allocation4 + $0xaa8] ss:$120 sps:$4 sm:$0xff]  }
 0x3e7   :  { %9330 = vmatpush1.bf16.xpose.msra.mxu1 %v13809_v30  ;;  %v13835_v30 = vld [vmem:[#allocation4 + $0x1a5c] ss:$120 sps:$4 sm:$0xff]  }
 0x3e8   :  { %8819 = vmatpush1.bf16.xpose.msra.mxu0 %v13806_v7  ;;  %9331 = vmatprep.subr.bf16.mxu1 %v13817_v56  ;;  %v13832_v7 = vld [vmem:[#allocation4 + $0xb9c] ss:$120 sps:$4 sm:$0xff]   ;;  %v13833_v56 = vld [vmem:[#allocation4 + $0x1a58] ss:$120 sps:$4 sm:$0xff]  }
 0x3e9   :  { %8820 = vmatprep.subr.bf16.mxu0 %v13814_v5  ;;  %v13830_v5 = vld [vmem:[#allocation4 + $0xb98] ss:$120 sps:$4 sm:$0xff]  }
 0x3ef   :  { %9332 = vmatpush1.bf16.xpose.msra.mxu1 %v13815_v0  ;;  %v13841_v0 = vld [vmem:[#allocation4 + $0x1b4c] ss:$120 sps:$4 sm:$0xff]  }
 0x3f0   :  { %8821 = vmatpush1.bf16.xpose.msra.mxu0 %v13812_v24  ;;  %9333 = vmatprep.subr.bf16.mxu1 %v13823_v40  ;;  %v13838_v24 = vld [vmem:[#allocation4 + $0xc8c] ss:$120 sps:$4 sm:$0xff]   ;;  %v13839_v40 = vld [vmem:[#allocation4 + $0x1b48] ss:$120 sps:$4 sm:$0xff]  }
 0x3f1   :  { %8822 = vmatprep.subr.bf16.mxu0 %v13820_v26  ;;  %v13836_v26 = vld [vmem:[#allocation4 + $0xc88] ss:$120 sps:$4 sm:$0xff]  }
 0x3f7   :  { %9334 = vmatpush1.bf16.xpose.msra.mxu1 %v13821_v63  ;;  %v13847_v63 = vld [vmem:[#allocation4 + $0x1c3c] ss:$120 sps:$4 sm:$0xff]  }
 0x3f8   :  { %8823 = vmatpush1.bf16.xpose.msra.mxu0 %v13818_v38  ;;  %9335 = vmatprep.subr.bf16.mxu1 %v13829_v42  ;;  %v13844_v38 = vld [vmem:[#allocation4 + $0xd7c] ss:$120 sps:$4 sm:$0xff]   ;;  %v13845_v42 = vld [vmem:[#allocation4 + $0x1c38] ss:$120 sps:$4 sm:$0xff]  }
 0x3f9   :  { %8824 = vmatprep.subr.bf16.mxu0 %v13826_v23  ;;  %v13842_v23 = vld [vmem:[#allocation4 + $0xd78] ss:$120 sps:$4 sm:$0xff]  }
 0x3ff   :  { %9336 = vmatpush1.bf16.xpose.msra.mxu1 %v13827_v51  ;;  %v13853_v51 = vld [vmem:[#allocation4 + $0x1d2c] ss:$120 sps:$4 sm:$0xff]  }
 0x400   :  { %8825 = vmatpush1.bf16.xpose.msra.mxu0 %v13824_v48  ;;  %9337 = vmatprep.subr.bf16.mxu1 %v13835_v30  ;;  %v13850_v48 = vld [vmem:[#allocation4 + $0xe6c] ss:$120 sps:$4 sm:$0xff]   ;;  %v16166_v30 = vrot.slane %v16058_v61, %v15638_v28  ;;  %v124_v28 = vld [vmem:[%s16886_s0 + $0x298] sm:$0xff] }
 0x401   :  { %8826 = vmatprep.subr.bf16.mxu0 %v13832_v7  ;;  %v13848_v7 = vld [vmem:[#allocation4 + $0xe68] ss:$120 sps:$4 sm:$0xff]  }
 0x402   :  { %v154_v61 = vld [vmem:[%s16886_s0 + $0x388] sm:$0xff] }
 0x407   :  { %9338 = vmatpush1.bf16.xpose.msra.mxu1 %v13833_v56  ;;  %v63_v56 = vld [vmem:[%s16886_s0 + $0xb0] sm:$0xff] }
 0x408   :  { %8827 = vmatpush1.bf16.xpose.msra.mxu0 %v13830_v5  ;;  %9339 = vmatprep.subr.bf16.mxu1 %v13841_v0  ;;  %v13851_v5 = vld [vmem:[#allocation4 + $0x1d28] ss:$120 sps:$4 sm:$0xff]   ;;  %v13856_v0 = vld [vmem:[#allocation4 + $0x64] ss:$120 sps:$4 sm:$0xff]  }
 0x409   :  { %8828 = vmatprep.subr.bf16.mxu0 %v13838_v24  ;;  %v93_v24 = vld [vmem:[%s16886_s0 + $0x1a0] sm:$0xff] }
 0x40f   :  { %9340 = vmatpush1.bf16.xpose.msra.mxu1 %v13839_v40  ;;  %v461_v40 = vmul.f32 %v16166_v30, %v63_v56  ;;  %v123_v56 = vld [vmem:[%s16886_s0 + $0x290] sm:$0xff] }
 0x410   :  { %8829 = vmatpush1.bf16.xpose.msra.mxu0 %v13836_v26  ;;  %9341 = vmatprep.subr.bf16.mxu1 %v13847_v63  ;;  %v13859_v26 = vld [vmem:[#allocation4 + $0xf24] ss:$120 sps:$4 sm:$0xff]   ;;  %v522_v63 = vmul.f32 %v16140_v11, %v124_v28  ;;  %v214_v28 = vld [vmem:[%s16886_s0 + $0x568] sm:$0xff] }
 0x411   :  { %8830 = vmatprep.subr.bf16.mxu0 %v13844_v38  ;;  %v491_v38 = vmul.f32 %v16166_v30, %v93_v24  ;;  %v153_v24 = vld [vmem:[%s16886_s0 + $0x380] sm:$0xff] }
 0x417   :  { %9342 = vmatpush1.bf16.xpose.msra.mxu1 %v13845_v42  ;;  %v13854_v42 = vld [vmem:[#allocation4 + $0x60] ss:$120 sps:$4 sm:$0xff]  }
 0x418   :  { %8831 = vmatpush1.bf16.xpose.msra.mxu0 %v13842_v23  ;;  %9343 = vmatprep.subr.bf16.mxu1 %v13853_v51  ;;  %v552_v23 = vmul.f32 %v16140_v11, %v154_v61  ;;  %v13857_v51 = vld [vmem:[#allocation4 + $0xf20] ss:$120 sps:$4 sm:$0xff]  }
 0x419   :  { %8832 = vmatprep.subr.bf16.mxu0 %v13850_v48  ;;  %v16184_v48 = vpack.c.bf16 %v491_v38, %v461_v40  ;;  %v551_v40 = vmul.f32 %v16166_v30, %v153_v24  ;;  %v184_v38 = vld [vmem:[%s16886_s0 + $0x478] sm:$0xff]  ;;  %v13863_v24 = vld [vmem:[#allocation4 + $0x1010] ss:$120 sps:$4 sm:$0xff]  }
 0x41a   :  { %v582_v61 = vmul.f32 %v16140_v11, %v184_v38  ;;  %v244_v38 = vld [vmem:[%s16886_s0 + $0x658] sm:$0xff] }
 0x41b   :  { %17121 = vst [vmem:[#allocation75_spill] sm:$0xff] %v16184_v48 }
 0x41f   :  { %9344 = vmatpush1.bf16.xpose.msra.mxu1 %v13851_v5  ;;  %v13865_v5 = vld [vmem:[#allocation4 + $0x1014] ss:$120 sps:$4 sm:$0xff]  }
 0x420   :  { %8833 = vmatpush1.bf16.xpose.msra.mxu0 %v13848_v7  ;;  %9386 = vmatprep.subr.bf16.mxu1 %v13859_v26  ;;  %v13862_v7 = vld [vmem:[#allocation4 + $0x154] ss:$120 sps:$4 sm:$0xff]   ;;  %v521_v26 = vmul.f32 %v16166_v30, %v123_v56 }
 0x421   :  { %8875 = vmatprep.subr.bf16.mxu0 %v13856_v0  ;;  %v16192_v0 = vpack.c.bf16 %v552_v23, %v522_v63  ;;  %v612_v63 = vmul.f32 %v16140_v11, %v214_v28  ;;  %v13860_v23 = vld [vmem:[#allocation4 + $0x150] ss:$120 sps:$4 sm:$0xff]  }
 0x422   :  { %v16208_v56 = vpack.c.bf16 %v551_v40, %v521_v26  ;;  %v274_v28 = vld [vmem:[%s16886_s0 + $0x748] sm:$0xff] }
 0x423   :  { %17122 = vst [vmem:[#allocation76_spill] sm:$0xff] %v16192_v0 }
 0x424   :  { %17123 = vst [vmem:[#allocation77_spill] sm:$0xff] %v16208_v56 }
 0x426   :  { %9346 = vmatmul.mubr.bf16.vlgmr.msra.gmra.mrb[16].mxu1 %v15690_v54 }
 0x427   :  { %8835 = vmatmul.mubr.bf16.vlgmr.msra.gmra.mrb[0].mxu0 %v16184_v48  ;;  %9387 = vmatpush1.bf16.xpose.msra.mxu1 %v13857_v51  ;;  %v183_v48 = vld [vmem:[%s16886_s0 + $0x470] sm:$0xff]  ;;  %v13868_v51 = vld [vmem:[#allocation4 + $0x244] ss:$120 sps:$4 sm:$0xff]  }
 0x428   :  { %8876 = vmatpush1.bf16.xpose.msra.mxu0 %v13854_v42  ;;  %9388 = vmatprep.subr.bf16.mxu1 %v13865_v5  ;;  %v213_v42 = vld [vmem:[%s16886_s0 + $0x560] sm:$0xff]  ;;  %v16216_v5 = vpack.c.bf16 %v612_v63, %v582_v61  ;;  %v581_v26 = vmul.f32 %v16166_v30, %v183_v48  ;;  %v642_v48 = vmul.f32 %v16140_v11, %v244_v38  ;;  %v66_v38 = vld [vmem:[%s16886_s0 + $0xc8] sm:$0xff] }
 0x429   :  { %8877 = vmatprep.subr.bf16.mxu0 %v13862_v7  ;;  %8844 = vmatprep.mubr.bf16.mxu0 %v16192_v0  ;;  %v13871_v7 = vld [vmem:[#allocation4 + $0x1104] ss:$120 sps:$4 sm:$0xff]   ;;  %v611_v40 = vmul.f32 %v16166_v30, %v213_v42  ;;  %v672_v61 = vmul.f32 %v16140_v11, %v274_v28  ;;  %v13866_v63 = vld [vmem:[#allocation4 + $0x240] ss:$120 sps:$4 sm:$0xff]  }
 0x42a   :  { %9355 = vmatprep.mubr.bf16.mxu1 %v15700_v58  ;;  %17124 = vst [vmem:[#allocation78_spill] sm:$0xff] %v16216_v5  ;;  %v13869_v0 = vld [vmem:[#allocation4 + $0x1100] ss:$120 sps:$4 sm:$0xff]  }
 0x42b   :  { %v16232_v42 = vpack.c.bf16 %v611_v40, %v581_v26  ;;  %v96_v28 = vld [vmem:[%s16886_s0 + $0x1b8] sm:$0xff] }
 0x42d   :  { %17125 = vst [vmem:[#allocation79_spill] sm:$0xff] %v16232_v42 }
 0x42e   :  { %9356 = vmatmul.mubr.bf16.gmra.mrb[20].mxu1 %v15734_v20 }
 0x42f   :  { %8845 = vmatmul.mubr.bf16.gmra.mrb[4].mxu0 %v16208_v56  ;;  %9389 = vmatpush1.bf16.xpose.msra.mxu1 %v13863_v24  ;;  %v16234_v56 = vld [vmem:[#allocation2 + $0x18] sm:$0x3f]  ;;  %v273_v24 = vld [vmem:[%s16886_s0 + $0x740] sm:$0xff] }
 0x430   :  { %8878 = vmatpush1.bf16.xpose.msra.mxu0 %v13860_v23  ;;  %9390 = vmatprep.subr.bf16.mxu1 %v13871_v7  ;;  %v243_v23 = vld [vmem:[%s16886_s0 + $0x650] sm:$0xff]  ;;  %v16246_v11 = vrot.slane %v16234_v56, %v14999_v27  ;;  %v671_v40 = vmul.f32 %v16166_v30, %v273_v24  ;;  %v13880_v24 = vld [vmem:[#allocation4 + $0x424] ss:$120 sps:$4 sm:$0xff]  }
 0x431   :  { %8879 = vmatprep.subr.bf16.mxu0 %v13868_v51  ;;  %8854 = vmatprep.mubr.bf16.mxu0 %v16216_v5  ;;  %v13874_v51 = vld [vmem:[#allocation4 + $0x334] ss:$120 sps:$4 sm:$0xff]   ;;  %v16242_v5 = vpack.c.bf16 %v672_v61, %v642_v48  ;;  %v641_v26 = vmul.f32 %v16166_v30, %v243_v23  ;;  %v13872_v61 = vld [vmem:[#allocation4 + $0x330] ss:$120 sps:$4 sm:$0xff]  }
 0x432   :  { %9365 = vmatprep.mubr.bf16.mxu1 %v15744_v44  ;;  %v13877_v7 = vld [vmem:[#allocation4 + $0x11f4] ss:$120 sps:$4 sm:$0xff]   ;;  %v464_v27 = vmul.f32 %v16246_v11, %v66_v38  ;;  %v494_v30 = vmul.f32 %v16246_v11, %v96_v28  ;;  %v13875_v23 = vld [vmem:[#allocation4 + $0x11f0] ss:$120 sps:$4 sm:$0xff]   ;;  %v13892_v38 = vld [vmem:[#allocation4 + $0x604] ss:$120 sps:$4 sm:$0xff]  }
 0x433   :  { %17126 = vst [vmem:[#allocation80_spill] sm:$0xff] %v16242_v5  ;;  %v16262_v48 = vpack.c.bf16 %v671_v40, %v641_v26  ;;  %v13884_v26 = vld [vmem:[#allocation4 + $0x510] ss:$120 sps:$4 sm:$0xff]   ;;  %v13895_v28 = vld [vmem:[#allocation4 + $0x14c4] ss:$120 sps:$4 sm:$0xff]  }
 0x434   :  { %v16264_v34 = vpack.c.bf16 %v494_v30, %v464_v27  ;;  %v13887_v40 = vld [vmem:[#allocation4 + $0x13d0] ss:$120 sps:$4 sm:$0xff]   ;;  %v13893_v27 = vld [vmem:[#allocation4 + $0x14c0] ss:$120 sps:$4 sm:$0xff]   ;;  %v13898_v30 = vld [vmem:[#allocation4 + $0x6f4] ss:$120 sps:$4 sm:$0xff]  }
 0x435   :  { %17127 = vst [vmem:[#allocation81_spill] sm:$0xff] %v16262_v48 }
 0x436   :  { %9366 = vmatmul.mubr.bf16.gmra.mrb[24].mxu1 %v15780_v47  ;;  %17128 = vst [vmem:[#allocation82_spill] sm:$0xff] %v16264_v34 }
 0x437   :  { %8855 = vmatmul.mubr.bf16.gmra.mrb[8].mxu0 %v16232_v42  ;;  %9391 = vmatpush1.bf16.xpose.msra.mxu1 %v13869_v0  ;;  %v13883_v42 = vld [vmem:[#allocation4 + $0x12e4] ss:$120 sps:$4 sm:$0xff]   ;;  %v13878_v0 = vld [vmem:[#allocation4 + $0x420] ss:$120 sps:$4 sm:$0xff]  }
 0x438   :  { %8880 = vmatpush1.bf16.xpose.msra.mxu0 %v13866_v63  ;;  %9392 = vmatprep.subr.bf16.mxu1 %v13877_v7  ;;  %v13881_v63 = vld [vmem:[#allocation4 + $0x12e0] ss:$120 sps:$4 sm:$0xff]   ;;  %v13889_v7 = vld [vmem:[#allocation4 + $0x13d4] ss:$120 sps:$4 sm:$0xff]  }
 0x439   :  { %8881 = vmatprep.subr.bf16.mxu0 %v13874_v51  ;;  %8864 = vmatprep.mubr.bf16.mxu0 %v16242_v5  ;;  %v13886_v51 = vld [vmem:[#allocation4 + $0x514] ss:$120 sps:$4 sm:$0xff]   ;;  %v185_v5 = vld [vmem:[%s16886_s0 + $0x480] sm:$0xff] }
 0x43a   :  { %9375 = vmatprep.mubr.bf16.mxu1 %v15784_v50 }
 0x43e   :  { %9376 = vmatmul.mubr.bf16.gmra.mrb[28].mxu1 %v15808_v9 }
 0x43f   :  { %8865 = vmatmul.mubr.bf16.gmra.mrb[12].mxu0 %v16262_v48  ;;  %9393 = vmatpush1.bf16.xpose.msra.mxu1 %v13875_v23  ;;  %v13896_v23 = vld [vmem:[#allocation4 + $0x6f0] ss:$120 sps:$4 sm:$0xff]  }
 0x440   :  { %8882 = vmatpush1.bf16.xpose.msra.mxu0 %v13872_v61  ;;  %9394 = vmatprep.subr.bf16.mxu1 %v13883_v42  ;;  %v13890_v42 = vld [vmem:[#allocation4 + $0x600] ss:$120 sps:$4 sm:$0xff]   ;;  %v13901_v61 = vld [vmem:[#allocation4 + $0x15b4] ss:$120 sps:$4 sm:$0xff]  }
 0x441   :  { %8883 = vmatprep.subr.bf16.mxu0 %v13880_v24  ;;  %8907 = vmatprep.mubr.bf16.mxu0 %v16264_v34  ;;  %v13899_v24 = vld [vmem:[#allocation4 + $0x15b0] ss:$120 sps:$4 sm:$0xff]  }
 0x442   :  { %9418 = vmatprep.mubr.bf16.mxu1 %v15032_v46  ;;  %v155_v34 = vld [vmem:[%s16886_s0 + $0x390] sm:$0xff] }
 0x443   :  { %v13959_v48 = vld [vmem:[#allocation4 + $0x1018] ss:$120 sps:$4 sm:$0xff]  }
 0x447   :  { %9395 = vmatpush1.bf16.xpose.msra.mxu1 %v13881_v63  ;;  %v13907_v63 = vld [vmem:[#allocation4 + $0x16a4] ss:$120 sps:$4 sm:$0xff]  }
 0x448   :  { %8884 = vmatpush1.bf16.xpose.msra.mxu0 %v13878_v0  ;;  %9396 = vmatprep.subr.bf16.mxu1 %v13889_v7  ;;  %v13904_v0 = vld [vmem:[#allocation4 + $0x7e4] ss:$120 sps:$4 sm:$0xff]   ;;  %v13905_v7 = vld [vmem:[#allocation4 + $0x16a0] ss:$120 sps:$4 sm:$0xff]  }
 0x449   :  { %8885 = vmatprep.subr.bf16.mxu0 %v13886_v51  ;;  %v13902_v51 = vld [vmem:[#allocation4 + $0x7e0] ss:$120 sps:$4 sm:$0xff]  }
 0x44f   :  { %9397 = vmatpush1.bf16.xpose.msra.mxu1 %v13887_v40  ;;  %v13913_v40 = vld [vmem:[#allocation4 + $0x1794] ss:$120 sps:$4 sm:$0xff]  }
 0x450   :  { %8886 = vmatpush1.bf16.xpose.msra.mxu0 %v13884_v26  ;;  %9398 = vmatprep.subr.bf16.mxu1 %v13895_v28  ;;  %v13910_v26 = vld [vmem:[#allocation4 + $0x8d4] ss:$120 sps:$4 sm:$0xff]   ;;  %v13911_v28 = vld [vmem:[#allocation4 + $0x1790] ss:$120 sps:$4 sm:$0xff]  }
 0x451   :  { %8887 = vmatprep.subr.bf16.mxu0 %v13892_v38  ;;  %v13908_v38 = vld [vmem:[#allocation4 + $0x8d0] ss:$120 sps:$4 sm:$0xff]  }
 0x457   :  { %9399 = vmatpush1.bf16.xpose.msra.mxu1 %v13893_v27  ;;  %v13919_v27 = vld [vmem:[#allocation4 + $0x1884] ss:$120 sps:$4 sm:$0xff]  }
 0x458   :  { %8888 = vmatpush1.bf16.xpose.msra.mxu0 %v13890_v42  ;;  %9400 = vmatprep.subr.bf16.mxu1 %v13901_v61  ;;  %v13916_v42 = vld [vmem:[#allocation4 + $0x9c4] ss:$120 sps:$4 sm:$0xff]   ;;  %v13917_v61 = vld [vmem:[#allocation4 + $0x1880] ss:$120 sps:$4 sm:$0xff]  }
 0x459   :  { %8889 = vmatprep.subr.bf16.mxu0 %v13898_v30  ;;  %v13914_v30 = vld [vmem:[#allocation4 + $0x9c0] ss:$120 sps:$4 sm:$0xff]  }
 0x45f   :  { %9401 = vmatpush1.bf16.xpose.msra.mxu1 %v13899_v24  ;;  %v13925_v24 = vld [vmem:[#allocation4 + $0x1974] ss:$120 sps:$4 sm:$0xff]  }
 0x460   :  { %8890 = vmatpush1.bf16.xpose.msra.mxu0 %v13896_v23  ;;  %9402 = vmatprep.subr.bf16.mxu1 %v13907_v63  ;;  %v13922_v23 = vld [vmem:[#allocation4 + $0xab4] ss:$120 sps:$4 sm:$0xff]   ;;  %v13923_v63 = vld [vmem:[#allocation4 + $0x1970] ss:$120 sps:$4 sm:$0xff]  }
 0x461   :  { %8891 = vmatprep.subr.bf16.mxu0 %v13904_v0  ;;  %v13920_v0 = vld [vmem:[#allocation4 + $0xab0] ss:$120 sps:$4 sm:$0xff]  }
 0x467   :  { %9403 = vmatpush1.bf16.xpose.msra.mxu1 %v13905_v7  ;;  %v13931_v7 = vld [vmem:[#allocation4 + $0x1a64] ss:$120 sps:$4 sm:$0xff]  }
 0x468   :  { %8892 = vmatpush1.bf16.xpose.msra.mxu0 %v13902_v51  ;;  %9404 = vmatprep.subr.bf16.mxu1 %v13913_v40  ;;  %v13928_v51 = vld [vmem:[#allocation4 + $0xba4] ss:$120 sps:$4 sm:$0xff]   ;;  %v13929_v40 = vld [vmem:[#allocation4 + $0x1a60] ss:$120 sps:$4 sm:$0xff]  }
 0x469   :  { %8893 = vmatprep.subr.bf16.mxu0 %v13910_v26  ;;  %v13926_v26 = vld [vmem:[#allocation4 + $0xba0] ss:$120 sps:$4 sm:$0xff]  }
 0x46f   :  { %9405 = vmatpush1.bf16.xpose.msra.mxu1 %v13911_v28  ;;  %v13937_v28 = vld [vmem:[#allocation4 + $0x1b54] ss:$120 sps:$4 sm:$0xff]  }
 0x470   :  { %8894 = vmatpush1.bf16.xpose.msra.mxu0 %v13908_v38  ;;  %9406 = vmatprep.subr.bf16.mxu1 %v13919_v27  ;;  %v13934_v38 = vld [vmem:[#allocation4 + $0xc94] ss:$120 sps:$4 sm:$0xff]   ;;  %v13935_v27 = vld [vmem:[#allocation4 + $0x1b50] ss:$120 sps:$4 sm:$0xff]  }
 0x471   :  { %8895 = vmatprep.subr.bf16.mxu0 %v13916_v42  ;;  %v13932_v42 = vld [vmem:[#allocation4 + $0xc90] ss:$120 sps:$4 sm:$0xff]  }
 0x477   :  { %9407 = vmatpush1.bf16.xpose.msra.mxu1 %v13917_v61  ;;  %v13943_v61 = vld [vmem:[#allocation4 + $0x1c44] ss:$120 sps:$4 sm:$0xff]  }
 0x478   :  { %8896 = vmatpush1.bf16.xpose.msra.mxu0 %v13914_v30  ;;  %9408 = vmatprep.subr.bf16.mxu1 %v13925_v24  ;;  %v13940_v30 = vld [vmem:[#allocation4 + $0xd84] ss:$120 sps:$4 sm:$0xff]   ;;  %v13941_v24 = vld [vmem:[#allocation4 + $0x1c40] ss:$120 sps:$4 sm:$0xff]  }
 0x479   :  { %8897 = vmatprep.subr.bf16.mxu0 %v13922_v23  ;;  %v13938_v23 = vld [vmem:[#allocation4 + $0xd80] ss:$120 sps:$4 sm:$0xff]  }
 0x47f   :  { %9409 = vmatpush1.bf16.xpose.msra.mxu1 %v13923_v63  ;;  %v13949_v63 = vld [vmem:[#allocation4 + $0x1d34] ss:$120 sps:$4 sm:$0xff]  }
 0x480   :  { %8898 = vmatpush1.bf16.xpose.msra.mxu0 %v13920_v0  ;;  %9410 = vmatprep.subr.bf16.mxu1 %v13931_v7  ;;  %v13946_v0 = vld [vmem:[#allocation4 + $0xe74] ss:$120 sps:$4 sm:$0xff]   ;;  %v16272_v7 = vrot.slane %v16234_v56, %v15036_v15 }
 0x481   :  { %8899 = vmatprep.subr.bf16.mxu0 %v13928_v51  ;;  %v13944_v51 = vld [vmem:[#allocation4 + $0xe70] ss:$120 sps:$4 sm:$0xff]  }
 0x482   :  { %v126_v15 = vld [vmem:[%s16886_s0 + $0x2a8] sm:$0xff] }
 0x487   :  { %9411 = vmatpush1.bf16.xpose.msra.mxu1 %v13929_v40  ;;  %v65_v40 = vld [vmem:[%s16886_s0 + $0xc0] sm:$0xff] }
 0x488   :  { %8900 = vmatpush1.bf16.xpose.msra.mxu0 %v13926_v26  ;;  %9412 = vmatprep.subr.bf16.mxu1 %v13937_v28  ;;  %v13947_v26 = vld [vmem:[#allocation4 + $0x1d30] ss:$120 sps:$4 sm:$0xff]   ;;  %v13952_v28 = vld [vmem:[#allocation4 + $0x6c] ss:$120 sps:$4 sm:$0xff]  }
 0x489   :  { %8901 = vmatprep.subr.bf16.mxu0 %v13934_v38  ;;  %v95_v38 = vld [vmem:[%s16886_s0 + $0x1b0] sm:$0xff] }
 0x48f   :  { %9413 = vmatpush1.bf16.xpose.msra.mxu1 %v13935_v27  ;;  %v463_v27 = vmul.f32 %v16272_v7, %v65_v40  ;;  %v13953_v40 = vld [vmem:[#allocation4 + $0xf28] ss:$120 sps:$4 sm:$0xff]  }
 0x490   :  { %8902 = vmatpush1.bf16.xpose.msra.mxu0 %v13932_v42  ;;  %9414 = vmatprep.subr.bf16.mxu1 %v13943_v61  ;;  %v13955_v42 = vld [vmem:[#allocation4 + $0xf2c] ss:$120 sps:$4 sm:$0xff]   ;;  %v156_v61 = vld [vmem:[%s16886_s0 + $0x398] sm:$0xff] }
 0x491   :  { %8903 = vmatprep.subr.bf16.mxu0 %v13940_v30  ;;  %v493_v30 = vmul.f32 %v16272_v7, %v95_v38  ;;  %v125_v38 = vld [vmem:[%s16886_s0 + $0x2a0] sm:$0xff] }
 0x497   :  { %9415 = vmatpush1.bf16.xpose.msra.mxu1 %v13941_v24  ;;  %v554_v24 = vmul.f32 %v16246_v11, %v156_v61  ;;  %v216_v61 = vld [vmem:[%s16886_s0 + $0x578] sm:$0xff] }
 0x498   :  { %8904 = vmatpush1.bf16.xpose.msra.mxu0 %v13938_v23  ;;  %9416 = vmatprep.subr.bf16.mxu1 %v13949_v63  ;;  %v524_v23 = vmul.f32 %v16246_v11, %v126_v15  ;;  %v16290_v63 = vpack.c.bf16 %v493_v30, %v463_v27  ;;  %v523_v27 = vmul.f32 %v16272_v7, %v125_v38  ;;  %v186_v15 = vld [vmem:[%s16886_s0 + $0x488] sm:$0xff] }
 0x499   :  { %8905 = vmatprep.subr.bf16.mxu0 %v13946_v0  ;;  %v13950_v0 = vld [vmem:[#allocation4 + $0x68] ss:$120 sps:$4 sm:$0xff]   ;;  %v553_v30 = vmul.f32 %v16272_v7, %v155_v34  ;;  %v614_v34 = vmul.f32 %v16246_v11, %v216_v61  ;;  %v13956_v38 = vld [vmem:[#allocation4 + $0x158] ss:$120 sps:$4 sm:$0xff]  }
 0x49a   :  { %17129 = vst [vmem:[#allocation83_spill] sm:$0xff] %v16290_v63  ;;  %v246_v61 = vld [vmem:[%s16886_s0 + $0x668] sm:$0xff] }
 0x49f   :  { %9417 = vmatpush1.bf16.xpose.msra.mxu1 %v13947_v26  ;;  %v13961_v26 = vld [vmem:[#allocation4 + $0x101c] ss:$120 sps:$4 sm:$0xff]  }
 0x4a0   :  { %8906 = vmatpush1.bf16.xpose.msra.mxu0 %v13944_v51  ;;  %9459 = vmatprep.subr.bf16.mxu1 %v13955_v42  ;;  %v13958_v51 = vld [vmem:[#allocation4 + $0x15c] ss:$120 sps:$4 sm:$0xff]   ;;  %v17131_v42 = vld [vmem:[#allocation8_spill] sm:$0xff] }
 0x4a1   :  { %8948 = vmatprep.subr.bf16.mxu0 %v13952_v28  ;;  %v16298_v28 = vpack.c.bf16 %v554_v24, %v524_v23  ;;  %v17132_v23 = vld [vmem:[#allocation9_spill] sm:$0xff]  ;;  %v584_v24 = vmul.f32 %v16246_v11, %v186_v15  ;;  %v17135_v15 = vld [vmem:[#allocation10_spill] sm:$0xff] }
 0x4a3   :  { %17130 = vst [vmem:[#allocation84_spill] sm:$0xff] %v16298_v28 }
 0x4a6   :  { %9419 = vmatmul.mubr.bf16.vlgmr.msra.gmra.mrb[16].mxu1 %v17131_v42 }
 0x4a7   :  { %8908 = vmatmul.mubr.bf16.vlgmr.msra.gmra.mrb[0].mxu0 %v16290_v63  ;;  %9460 = vmatpush1.bf16.xpose.msra.mxu1 %v13953_v40  ;;  %v16314_v63 = vpack.c.bf16 %v553_v30, %v523_v27  ;;  %v13964_v40 = vld [vmem:[#allocation4 + $0x24c] ss:$120 sps:$4 sm:$0xff]   ;;  %v583_v27 = vmul.f32 %v16272_v7, %v185_v5  ;;  %v644_v5 = vmul.f32 %v16246_v11, %v246_v61 }
 0x4a8   :  { %8949 = vmatpush1.bf16.xpose.msra.mxu0 %v13950_v0  ;;  %9461 = vmatprep.subr.bf16.mxu1 %v13961_v26  ;;  %v215_v0 = vld [vmem:[%s16886_s0 + $0x570] sm:$0xff]  ;;  %v16322_v26 = vpack.c.bf16 %v614_v34, %v584_v24  ;;  %v16350_v61 = vrot.slane %v16234_v56, %v15165_v36  ;;  %v17140_v36 = vld [vmem:[#allocation13_spill] sm:$0xff] }
 0x4a9   :  { %8950 = vmatprep.subr.bf16.mxu0 %v13958_v51  ;;  %8917 = vmatprep.mubr.bf16.mxu0 %v16298_v28  ;;  %17133 = vst [vmem:[#allocation8_spill] sm:$0xff] %v16314_v63  ;;  %v13967_v51 = vld [vmem:[#allocation4 + $0x110c] ss:$120 sps:$4 sm:$0xff]   ;;  %v613_v30 = vmul.f32 %v16272_v7, %v215_v0  ;;  %v276_v28 = vld [vmem:[%s16886_s0 + $0x758] sm:$0xff] }
 0x4aa   :  { %9428 = vmatprep.mubr.bf16.mxu1 %v17132_v23  ;;  %17134 = vst [vmem:[#allocation9_spill] sm:$0xff] %v16322_v26  ;;  %v17136_v24 = vld [vmem:[#allocation11_spill] sm:$0xff]  ;;  %v674_v34 = vmul.f32 %v16246_v11, %v276_v28  ;;  %v13962_v0 = vld [vmem:[#allocation4 + $0x248] ss:$120 sps:$4 sm:$0xff]   ;;  %v643_v28 = vmul.f32 %v16272_v7, %v245_v62 }
 0x4ab   :  { %v17139_v11 = vld [vmem:[#allocation12_spill] sm:$0xff] }
 0x4ae   :  { %9429 = vmatmul.mubr.bf16.gmra.mrb[20].mxu1 %v17135_v15 }
 0x4af   :  { %8918 = vmatmul.mubr.bf16.gmra.mrb[4].mxu0 %v16314_v63  ;;  %9462 = vmatpush1.bf16.xpose.msra.mxu1 %v13959_v48  ;;  %v16338_v63 = vpack.c.bf16 %v613_v30, %v583_v27  ;;  %v275_v48 = vld [vmem:[%s16886_s0 + $0x750] sm:$0xff]  ;;  %v68_v30 = vld [vmem:[%s16886_s0 + $0xd8] sm:$0xff] }
 0x4b0   :  { %8951 = vmatpush1.bf16.xpose.msra.mxu0 %v13956_v38  ;;  %9463 = vmatprep.subr.bf16.mxu1 %v13967_v51  ;;  %v13970_v38 = vld [vmem:[#allocation4 + $0x33c] ss:$120 sps:$4 sm:$0xff]   ;;  %v16346_v51 = vpack.c.bf16 %v674_v34, %v644_v5  ;;  %v673_v27 = vmul.f32 %v16272_v7, %v275_v48  ;;  %v98_v5 = vld [vmem:[%s16886_s0 + $0x1c8] sm:$0xff]  ;;  %v466_v62 = vmul.f32 %v16350_v61, %v68_v30 }
 0x4b1   :  { %8952 = vmatprep.subr.bf16.mxu0 %v13964_v40  ;;  %8927 = vmatprep.mubr.bf16.mxu0 %v16322_v26  ;;  %17137 = vst [vmem:[#allocation10_spill] sm:$0xff] %v16338_v63  ;;  %v13973_v40 = vld [vmem:[#allocation4 + $0x11fc] ss:$120 sps:$4 sm:$0xff]   ;;  %v496_v7 = vmul.f32 %v16350_v61, %v98_v5  ;;  %v13968_v48 = vld [vmem:[#allocation4 + $0x338] ss:$120 sps:$4 sm:$0xff]  }
 0x4b2   :  { %9438 = vmatprep.mubr.bf16.mxu1 %v17136_v24  ;;  %17138 = vst [vmem:[#allocation85_spill] sm:$0xff] %v16346_v51  ;;  %v16366_v34 = vpack.c.bf16 %v673_v27, %v643_v28  ;;  %v13976_v26 = vld [vmem:[#allocation4 + $0x42c] ss:$120 sps:$4 sm:$0xff]   ;;  %v13982_v28 = vld [vmem:[#allocation4 + $0x51c] ss:$120 sps:$4 sm:$0xff]  }
 0x4b3   :  { %v16368_v24 = vpack.c.bf16 %v496_v7, %v466_v62  ;;  %v13985_v27 = vld [vmem:[#allocation4 + $0x13dc] ss:$120 sps:$4 sm:$0xff]   ;;  %v13980_v30 = vld [vmem:[#allocation4 + $0x518] ss:$120 sps:$4 sm:$0xff]   ;;  %v13988_v62 = vld [vmem:[#allocation4 + $0x60c] ss:$120 sps:$4 sm:$0xff]  }
 0x4b4   :  { %17141 = vst [vmem:[#allocation13_spill] sm:$0xff] %v16366_v34  ;;  %v13983_v5 = vld [vmem:[#allocation4 + $0x13d8] ss:$120 sps:$4 sm:$0xff]   ;;  %v13991_v7 = vld [vmem:[#allocation4 + $0x14cc] ss:$120 sps:$4 sm:$0xff]  }
 0x4b5   :  { %17142 = vst [vmem:[#allocation86_spill] sm:$0xff] %v16368_v24 }
 0x4b6   :  { %9439 = vmatmul.mubr.bf16.gmra.mrb[24].mxu1 %v17139_v11  ;;  %v13979_v11 = vld [vmem:[#allocation4 + $0x12ec] ss:$120 sps:$4 sm:$0xff]  }
 0x4b7   :  { %8928 = vmatmul.mubr.bf16.gmra.mrb[8].mxu0 %v16338_v63  ;;  %9464 = vmatpush1.bf16.xpose.msra.mxu1 %v13965_v31  ;;  %v13971_v63 = vld [vmem:[#allocation4 + $0x11f8] ss:$120 sps:$4 sm:$0xff]  }
 0x4b8   :  { %8953 = vmatpush1.bf16.xpose.msra.mxu0 %v13962_v0  ;;  %9465 = vmatprep.subr.bf16.mxu1 %v13973_v40  ;;  %v17143_v31 = vld [vmem:[#allocation14_spill] sm:$0xff]  ;;  %v17144_v0 = vld [vmem:[#allocation15_spill] sm:$0xff]  ;;  %v13977_v40 = vld [vmem:[#allocation4 + $0x12e8] ss:$120 sps:$4 sm:$0xff]  }
 0x4b9   :  { %8954 = vmatprep.subr.bf16.mxu0 %v13970_v38  ;;  %8937 = vmatprep.mubr.bf16.mxu0 %v16346_v51  ;;  %v13974_v38 = vld [vmem:[#allocation4 + $0x428] ss:$120 sps:$4 sm:$0xff]  }
 0x4ba   :  { %9448 = vmatprep.mubr.bf16.mxu1 %v17140_v36  ;;  %v157_v51 = vld [vmem:[%s16886_s0 + $0x3a0] sm:$0xff] }
 0x4be   :  { %9449 = vmatmul.mubr.bf16.gmra.mrb[28].mxu1 %v17143_v31 }
 0x4bf   :  { %8938 = vmatmul.mubr.bf16.gmra.mrb[12].mxu0 %v16366_v34  ;;  %9466 = vmatpush1.bf16.xpose.msra.mxu1 %v13971_v63  ;;  %v13986_v63 = vld [vmem:[#allocation4 + $0x608] ss:$120 sps:$4 sm:$0xff]   ;;  %v127_v34 = vld [vmem:[%s16886_s0 + $0x2b0] sm:$0xff] }
 0x4c0   :  { %8955 = vmatpush1.bf16.xpose.msra.mxu0 %v13968_v48  ;;  %9467 = vmatprep.subr.bf16.mxu1 %v13979_v11  ;;  %v13994_v11 = vld [vmem:[#allocation4 + $0x6fc] ss:$120 sps:$4 sm:$0xff]  }
 0x4c1   :  { %8956 = vmatprep.subr.bf16.mxu0 %v13976_v26  ;;  %8980 = vmatprep.mubr.bf16.mxu0 %v16368_v24  ;;  %v13989_v26 = vld [vmem:[#allocation4 + $0x14c8] ss:$120 sps:$4 sm:$0xff]   ;;  %v13997_v48 = vld [vmem:[#allocation4 + $0x15bc] ss:$120 sps:$4 sm:$0xff]  }
 0x4c2   :  { %9491 = vmatprep.mubr.bf16.mxu1 %v17144_v0  ;;  %v14046_v24 = vld [vmem:[#allocation4 + $0x70] ss:$120 sps:$4 sm:$0xff]  }
 0x4c3   :  { %v187_v0 = vld [vmem:[%s16886_s0 + $0x490] sm:$0xff] }
 0x4c7   :  { %9468 = vmatpush1.bf16.xpose.msra.mxu1 %v13977_v40  ;;  %v13995_v40 = vld [vmem:[#allocation4 + $0x15b8] ss:$120 sps:$4 sm:$0xff]  }
 0x4c8   :  { %8957 = vmatpush1.bf16.xpose.msra.mxu0 %v13974_v38  ;;  %9469 = vmatprep.subr.bf16.mxu1 %v13985_v27  ;;  %v13992_v38 = vld [vmem:[#allocation4 + $0x6f8] ss:$120 sps:$4 sm:$0xff]   ;;  %v14003_v27 = vld [vmem:[#allocation4 + $0x16ac] ss:$120 sps:$4 sm:$0xff]  }
 0x4c9   :  { %8958 = vmatprep.subr.bf16.mxu0 %v13982_v28  ;;  %v14000_v28 = vld [vmem:[#allocation4 + $0x7ec] ss:$120 sps:$4 sm:$0xff]  }
 0x4cf   :  { %9470 = vmatpush1.bf16.xpose.msra.mxu1 %v13983_v5  ;;  %v14001_v5 = vld [vmem:[#allocation4 + $0x16a8] ss:$120 sps:$4 sm:$0xff]  }
 0x4d0   :  { %8959 = vmatpush1.bf16.xpose.msra.mxu0 %v13980_v30  ;;  %9471 = vmatprep.subr.bf16.mxu1 %v13991_v7  ;;  %v13998_v30 = vld [vmem:[#allocation4 + $0x7e8] ss:$120 sps:$4 sm:$0xff]   ;;  %v14009_v7 = vld [vmem:[#allocation4 + $0x179c] ss:$120 sps:$4 sm:$0xff]  }
 0x4d1   :  { %8960 = vmatprep.subr.bf16.mxu0 %v13988_v62  ;;  %v14006_v62 = vld [vmem:[#allocation4 + $0x8dc] ss:$120 sps:$4 sm:$0xff]  }
 0x4d7   :  { %9472 = vmatpush1.bf16.xpose.msra.mxu1 %v13989_v26  ;;  %v14007_v26 = vld [vmem:[#allocation4 + $0x1798] ss:$120 sps:$4 sm:$0xff]  }
 0x4d8   :  { %8961 = vmatpush1.bf16.xpose.msra.mxu0 %v13986_v63  ;;  %9473 = vmatprep.subr.bf16.mxu1 %v13997_v48  ;;  %v14004_v63 = vld [vmem:[#allocation4 + $0x8d8] ss:$120 sps:$4 sm:$0xff]   ;;  %v14015_v48 = vld [vmem:[#allocation4 + $0x188c] ss:$120 sps:$4 sm:$0xff]  }
 0x4d9   :  { %8962 = vmatprep.subr.bf16.mxu0 %v13994_v11  ;;  %v14012_v11 = vld [vmem:[#allocation4 + $0x9cc] ss:$120 sps:$4 sm:$0xff]  }
 0x4df   :  { %9474 = vmatpush1.bf16.xpose.msra.mxu1 %v13995_v40  ;;  %v14013_v40 = vld [vmem:[#allocation4 + $0x1888] ss:$120 sps:$4 sm:$0xff]  }
 0x4e0   :  { %8963 = vmatpush1.bf16.xpose.msra.mxu0 %v13992_v38  ;;  %9475 = vmatprep.subr.bf16.mxu1 %v14003_v27  ;;  %v14010_v38 = vld [vmem:[#allocation4 + $0x9c8] ss:$120 sps:$4 sm:$0xff]   ;;  %v14021_v27 = vld [vmem:[#allocation4 + $0x197c] ss:$120 sps:$4 sm:$0xff]  }
 0x4e1   :  { %8964 = vmatprep.subr.bf16.mxu0 %v14000_v28  ;;  %v14018_v28 = vld [vmem:[#allocation4 + $0xabc] ss:$120 sps:$4 sm:$0xff]  }
 0x4e7   :  { %9476 = vmatpush1.bf16.xpose.msra.mxu1 %v14001_v5  ;;  %v14019_v5 = vld [vmem:[#allocation4 + $0x1978] ss:$120 sps:$4 sm:$0xff]  }
 0x4e8   :  { %8965 = vmatpush1.bf16.xpose.msra.mxu0 %v13998_v30  ;;  %9477 = vmatprep.subr.bf16.mxu1 %v14009_v7  ;;  %v14016_v30 = vld [vmem:[#allocation4 + $0xab8] ss:$120 sps:$4 sm:$0xff]   ;;  %v14027_v7 = vld [vmem:[#allocation4 + $0x1a6c] ss:$120 sps:$4 sm:$0xff]  }
 0x4e9   :  { %8966 = vmatprep.subr.bf16.mxu0 %v14006_v62  ;;  %v14024_v62 = vld [vmem:[#allocation4 + $0xbac] ss:$120 sps:$4 sm:$0xff]  }
 0x4ef   :  { %9478 = vmatpush1.bf16.xpose.msra.mxu1 %v14007_v26  ;;  %v14025_v26 = vld [vmem:[#allocation4 + $0x1a68] ss:$120 sps:$4 sm:$0xff]  }
 0x4f0   :  { %8967 = vmatpush1.bf16.xpose.msra.mxu0 %v14004_v63  ;;  %9479 = vmatprep.subr.bf16.mxu1 %v14015_v48  ;;  %v14022_v63 = vld [vmem:[#allocation4 + $0xba8] ss:$120 sps:$4 sm:$0xff]   ;;  %v14033_v48 = vld [vmem:[#allocation4 + $0x1b5c] ss:$120 sps:$4 sm:$0xff]  }
 0x4f1   :  { %8968 = vmatprep.subr.bf16.mxu0 %v14012_v11  ;;  %v14030_v11 = vld [vmem:[#allocation4 + $0xc9c] ss:$120 sps:$4 sm:$0xff]  }
 0x4f7   :  { %9480 = vmatpush1.bf16.xpose.msra.mxu1 %v14013_v40  ;;  %v14031_v40 = vld [vmem:[#allocation4 + $0x1b58] ss:$120 sps:$4 sm:$0xff]  }
 0x4f8   :  { %8969 = vmatpush1.bf16.xpose.msra.mxu0 %v14010_v38  ;;  %9481 = vmatprep.subr.bf16.mxu1 %v14021_v27  ;;  %v14028_v38 = vld [vmem:[#allocation4 + $0xc98] ss:$120 sps:$4 sm:$0xff]   ;;  %v14039_v27 = vld [vmem:[#allocation4 + $0x1c4c] ss:$120 sps:$4 sm:$0xff]  }
 0x4f9   :  { %8970 = vmatprep.subr.bf16.mxu0 %v14018_v28  ;;  %v14036_v28 = vld [vmem:[#allocation4 + $0xd8c] ss:$120 sps:$4 sm:$0xff]  }
 0x4ff   :  { %9482 = vmatpush1.bf16.xpose.msra.mxu1 %v14019_v5  ;;  %v14037_v5 = vld [vmem:[#allocation4 + $0x1c48] ss:$120 sps:$4 sm:$0xff]  }
 0x500   :  { %8971 = vmatpush1.bf16.xpose.msra.mxu0 %v14016_v30  ;;  %9483 = vmatprep.subr.bf16.mxu1 %v14027_v7  ;;  %v14034_v30 = vld [vmem:[#allocation4 + $0xd88] ss:$120 sps:$4 sm:$0xff]   ;;  %v14045_v7 = vld [vmem:[#allocation4 + $0x1d3c] ss:$120 sps:$4 sm:$0xff]  }
 0x501   :  { %8972 = vmatprep.subr.bf16.mxu0 %v14024_v62  ;;  %v14042_v62 = vld [vmem:[#allocation4 + $0xe7c] ss:$120 sps:$4 sm:$0xff]  }
 0x507   :  { %9484 = vmatpush1.bf16.xpose.msra.mxu1 %v14025_v26  ;;  %v16376_v26 = vrot.slane %v16234_v56, %v15234_v17  ;;  %v128_v17 = vld [vmem:[%s16886_s0 + $0x2b8] sm:$0xff] }
 0x508   :  { %8973 = vmatpush1.bf16.xpose.msra.mxu0 %v14022_v63  ;;  %9485 = vmatprep.subr.bf16.mxu1 %v14033_v48  ;;  %v14040_v63 = vld [vmem:[#allocation4 + $0xe78] ss:$120 sps:$4 sm:$0xff]  }
 0x509   :  { %8974 = vmatprep.subr.bf16.mxu0 %v14030_v11  ;;  %v14043_v11 = vld [vmem:[#allocation4 + $0x1d38] ss:$120 sps:$4 sm:$0xff]  }
 0x50a   :  { %v67_v48 = vld [vmem:[%s16886_s0 + $0xd0] sm:$0xff] }
 0x50f   :  { %9486 = vmatpush1.bf16.xpose.msra.mxu1 %v14031_v40  ;;  %v14048_v40 = vld [vmem:[#allocation4 + $0x74] ss:$120 sps:$4 sm:$0xff]  }
 0x510   :  { %8975 = vmatpush1.bf16.xpose.msra.mxu0 %v14028_v38  ;;  %9487 = vmatprep.subr.bf16.mxu1 %v14039_v27  ;;  %v97_v38 = vld [vmem:[%s16886_s0 + $0x1c0] sm:$0xff]  ;;  %v465_v27 = vmul.f32 %v16376_v26, %v67_v48 }
 0x511   :  { %8976 = vmatprep.subr.bf16.mxu0 %v14036_v28  ;;  %v14051_v28 = vld [vmem:[#allocation4 + $0xf34] ss:$120 sps:$4 sm:$0xff]  }
 0x517   :  { %9488 = vmatpush1.bf16.xpose.msra.mxu1 %v14037_v5  ;;  %v158_v5 = vld [vmem:[%s16886_s0 + $0x3a8] sm:$0xff] }
 0x518   :  { %8977 = vmatpush1.bf16.xpose.msra.mxu0 %v14034_v30  ;;  %9489 = vmatprep.subr.bf16.mxu1 %v14045_v7  ;;  %v495_v30 = vmul.f32 %v16376_v26, %v97_v38  ;;  %v556_v7 = vmul.f32 %v16350_v61, %v158_v5  ;;  %v14049_v38 = vld [vmem:[#allocation4 + $0xf30] ss:$120 sps:$4 sm:$0xff]  }
 0x519   :  { %8978 = vmatprep.subr.bf16.mxu0 %v14042_v62  ;;  %v526_v62 = vmul.f32 %v16350_v61, %v128_v17  ;;  %v188_v17 = vld [vmem:[%s16886_s0 + $0x498] sm:$0xff]  ;;  %v218_v5 = vld [vmem:[%s16886_s0 + $0x588] sm:$0xff] }
 0x51a   :  { %v16394_v48 = vpack.c.bf16 %v495_v30, %v465_v27  ;;  %v525_v27 = vmul.f32 %v16376_v26, %v127_v34  ;;  %v555_v30 = vmul.f32 %v16376_v26, %v157_v51  ;;  %v586_v34 = vmul.f32 %v16350_v61, %v188_v17  ;;  %v17151_v17 = vld [vmem:[#allocation18_spill] sm:$0xff] }
 0x51b   :  { %v616_v51 = vmul.f32 %v16350_v61, %v218_v5  ;;  %v248_v5 = vld [vmem:[%s16886_s0 + $0x678] sm:$0xff] }
 0x51c   :  { %17145 = vst [vmem:[#allocation14_spill] sm:$0xff] %v16394_v48 }
 0x51f   :  { %9490 = vmatpush1.bf16.xpose.msra.mxu1 %v14043_v11  ;;  %v14057_v11 = vld [vmem:[#allocation4 + $0x1024] ss:$120 sps:$4 sm:$0xff]  }
 0x520   :  { %8979 = vmatpush1.bf16.xpose.msra.mxu0 %v14040_v63  ;;  %9532 = vmatprep.subr.bf16.mxu1 %v14051_v28  ;;  %v14054_v63 = vld [vmem:[#allocation4 + $0x164] ss:$120 sps:$4 sm:$0xff]  }
 0x521   :  { %9021 = vmatprep.subr.bf16.mxu0 %v14048_v40  ;;  %v16402_v40 = vpack.c.bf16 %v556_v7, %v526_v62  ;;  %v17147_v28 = vld [vmem:[#allocation16_spill] sm:$0xff]  ;;  %v17148_v62 = vld [vmem:[#allocation17_spill] sm:$0xff] }
 0x522   :  { %v14052_v7 = vld [vmem:[#allocation4 + $0x160] ss:$120 sps:$4 sm:$0xff]  }
 0x523   :  { %17146 = vst [vmem:[#allocation87_spill] sm:$0xff] %v16402_v40 }
 0x526   :  { %9492 = vmatmul.mubr.bf16.vlgmr.msra.gmra.mrb[16].mxu1 %v17147_v28  ;;  %v14055_v28 = vld [vmem:[#allocation4 + $0x1020] ss:$120 sps:$4 sm:$0xff]  }
 0x527   :  { %8981 = vmatmul.mubr.bf16.vlgmr.msra.gmra.mrb[0].mxu0 %v16394_v48  ;;  %9533 = vmatpush1.bf16.xpose.msra.mxu1 %v14049_v38  ;;  %v16418_v48 = vpack.c.bf16 %v555_v30, %v525_v27  ;;  %v14060_v38 = vld [vmem:[#allocation4 + $0x254] ss:$120 sps:$4 sm:$0xff]   ;;  %v585_v27 = vmul.f32 %v16376_v26, %v187_v0  ;;  %v646_v0 = vmul.f32 %v16350_v61, %v248_v5 }
 0x528   :  { %9022 = vmatpush1.bf16.xpose.msra.mxu0 %v14046_v24  ;;  %9534 = vmatprep.subr.bf16.mxu1 %v14057_v11  ;;  %v217_v24 = vld [vmem:[%s16886_s0 + $0x580] sm:$0xff]  ;;  %v16426_v11 = vpack.c.bf16 %v616_v51, %v586_v34  ;;  %v17152_v34 = vld [vmem:[#allocation19_spill] sm:$0xff]  ;;  %v16454_v5 = vrot.slane %v16234_v56, %v15367_v12 }
 0x529   :  { %9023 = vmatprep.subr.bf16.mxu0 %v14054_v63  ;;  %8990 = vmatprep.mubr.bf16.mxu0 %v16402_v40  ;;  %17149 = vst [vmem:[#allocation88_spill] sm:$0xff] %v16418_v48  ;;  %v14063_v63 = vld [vmem:[#allocation4 + $0x1114] ss:$120 sps:$4 sm:$0xff]   ;;  %v615_v30 = vmul.f32 %v16376_v26, %v217_v24  ;;  %v14058_v24 = vld [vmem:[#allocation4 + $0x250] ss:$120 sps:$4 sm:$0xff]  }
 0x52a   :  { %9501 = vmatprep.mubr.bf16.mxu1 %v17148_v62  ;;  %17150 = vst [vmem:[#allocation89_spill] sm:$0xff] %v16426_v11  ;;  %v278_v40 = vld [vmem:[%s16886_s0 + $0x768] sm:$0xff]  ;;  %v247_v62 = vld [vmem:[%s16886_s0 + $0x670] sm:$0xff] }
 0x52b   :  { %v676_v51 = vmul.f32 %v16350_v61, %v278_v40  ;;  %v17155_v61 = vld [vmem:[#allocation20_spill] sm:$0xff]  ;;  %v645_v40 = vmul.f32 %v16376_v26, %v247_v62  ;;  %v17156_v12 = vld [vmem:[#allocation21_spill] sm:$0xff] }
 0x52e   :  { %9502 = vmatmul.mubr.bf16.gmra.mrb[20].mxu1 %v17151_v17  ;;  %v14061_v17 = vld [vmem:[#allocation4 + $0x1110] ss:$120 sps:$4 sm:$0xff]  }
 0x52f   :  { %8991 = vmatmul.mubr.bf16.gmra.mrb[4].mxu0 %v16418_v48  ;;  %9535 = vmatpush1.bf16.xpose.msra.mxu1 %v14055_v28  ;;  %v16442_v48 = vpack.c.bf16 %v615_v30, %v585_v27  ;;  %v277_v28 = vld [vmem:[%s16886_s0 + $0x760] sm:$0xff]  ;;  %v70_v30 = vld [vmem:[%s16886_s0 + $0xe8] sm:$0xff] }
 0x530   :  { %9024 = vmatpush1.bf16.xpose.msra.mxu0 %v14052_v7  ;;  %9536 = vmatprep.subr.bf16.mxu1 %v14063_v63  ;;  %v14066_v7 = vld [vmem:[#allocation4 + $0x344] ss:$120 sps:$4 sm:$0xff]   ;;  %v16450_v63 = vpack.c.bf16 %v676_v51, %v646_v0  ;;  %v675_v27 = vmul.f32 %v16376_v26, %v277_v28  ;;  %v468_v62 = vmul.f32 %v16454_v5, %v70_v30  ;;  %v14064_v28 = vld [vmem:[#allocation4 + $0x340] ss:$120 sps:$4 sm:$0xff]  }
 0x531   :  { %9025 = vmatprep.subr.bf16.mxu0 %v14060_v38  ;;  %9000 = vmatprep.mubr.bf16.mxu0 %v16426_v11  ;;  %17153 = vst [vmem:[#allocation90_spill] sm:$0xff] %v16442_v48  ;;  %v14069_v38 = vld [vmem:[#allocation4 + $0x1204] ss:$120 sps:$4 sm:$0xff]   ;;  %v14072_v11 = vld [vmem:[#allocation4 + $0x434] ss:$120 sps:$4 sm:$0xff]  }
 0x532   :  { %9511 = vmatprep.mubr.bf16.mxu1 %v17152_v34  ;;  %17154 = vst [vmem:[#allocation91_spill] sm:$0xff] %v16450_v63  ;;  %v100_v0 = vld [vmem:[%s16886_s0 + $0x1d8] sm:$0xff]  ;;  %v16470_v51 = vpack.c.bf16 %v675_v27, %v645_v40 }
 0x533   :  { %v498_v26 = vmul.f32 %v16454_v5, %v100_v0  ;;  %v14078_v40 = vld [vmem:[#allocation4 + $0x524] ss:$120 sps:$4 sm:$0xff]   ;;  %v14076_v30 = vld [vmem:[#allocation4 + $0x520] ss:$120 sps:$4 sm:$0xff]  }
 0x534   :  { %17157 = vst [vmem:[#allocation21_spill] sm:$0xff] %v16470_v51  ;;  %v14081_v27 = vld [vmem:[#allocation4 + $0x13e4] ss:$120 sps:$4 sm:$0xff]   ;;  %v14079_v0 = vld [vmem:[#allocation4 + $0x13e0] ss:$120 sps:$4 sm:$0xff]  }
 0x535   :  { %v16472_v34 = vpack.c.bf16 %v498_v26, %v468_v62  ;;  %v14084_v62 = vld [vmem:[#allocation4 + $0x614] ss:$120 sps:$4 sm:$0xff]  }
 0x536   :  { %9512 = vmatmul.mubr.bf16.gmra.mrb[24].mxu1 %v17155_v61  ;;  %v14075_v61 = vld [vmem:[#allocation4 + $0x12f4] ss:$120 sps:$4 sm:$0xff]  }
 0x537   :  { %9001 = vmatmul.mubr.bf16.gmra.mrb[8].mxu0 %v16442_v48  ;;  %9537 = vmatpush1.bf16.xpose.msra.mxu1 %v14061_v17  ;;  %v14067_v48 = vld [vmem:[#allocation4 + $0x1200] ss:$120 sps:$4 sm:$0xff]   ;;  %17158 = vst [vmem:[#allocation92_spill] sm:$0xff] %v16472_v34  ;;  %v17159_v17 = vld [vmem:[#allocation22_spill] sm:$0xff] }
 0x538   :  { %9026 = vmatpush1.bf16.xpose.msra.mxu0 %v14058_v24  ;;  %9538 = vmatprep.subr.bf16.mxu1 %v14069_v38  ;;  %v17160_v24 = vld [vmem:[#allocation23_spill] sm:$0xff]  ;;  %v14073_v38 = vld [vmem:[#allocation4 + $0x12f0] ss:$120 sps:$4 sm:$0xff]   ;;  %v14087_v26 = vld [vmem:[#allocation4 + $0x14d4] ss:$120 sps:$4 sm:$0xff]  }
 0x539   :  { %9027 = vmatprep.subr.bf16.mxu0 %v14066_v7  ;;  %9010 = vmatprep.mubr.bf16.mxu0 %v16450_v63  ;;  %v14070_v7 = vld [vmem:[#allocation4 + $0x430] ss:$120 sps:$4 sm:$0xff]  }
 0x53a   :  { %9521 = vmatprep.mubr.bf16.mxu1 %v17156_v12  ;;  %v129_v63 = vld [vmem:[%s16886_s0 + $0x2c0] sm:$0xff] }
 0x53e   :  { %9522 = vmatmul.mubr.bf16.gmra.mrb[28].mxu1 %v17159_v17 }
 0x53f   :  { %9011 = vmatmul.mubr.bf16.gmra.mrb[12].mxu0 %v16470_v51  ;;  %9539 = vmatpush1.bf16.xpose.msra.mxu1 %v14067_v48  ;;  %v14082_v48 = vld [vmem:[#allocation4 + $0x610] ss:$120 sps:$4 sm:$0xff]   ;;  %v14145_v51 = vld [vmem:[#allocation4 + $0x1e00] ss:$120 sps:$4 sm:$0xff]  }
 0x540   :  { %9028 = vmatpush1.bf16.xpose.msra.mxu0 %v14064_v28  ;;  %9540 = vmatprep.subr.bf16.mxu1 %v14075_v61  ;;  %v14090_v61 = vld [vmem:[#allocation4 + $0x704] ss:$120 sps:$4 sm:$0xff]  }
 0x541   :  { %9029 = vmatprep.subr.bf16.mxu0 %v14072_v11  ;;  %9053 = vmatprep.mubr.bf16.mxu0 %v16472_v34  ;;  %v14085_v11 = vld [vmem:[#allocation4 + $0x14d0] ss:$120 sps:$4 sm:$0xff]   ;;  %v14093_v28 = vld [vmem:[#allocation4 + $0x15c4] ss:$120 sps:$4 sm:$0xff]  }
 0x542   :  { %9564 = vmatprep.mubr.bf16.mxu1 %v17160_v24  ;;  %v14142_v34 = vld [vmem:[#allocation4 + $0xf38] ss:$120 sps:$4 sm:$0xff]  }
 0x547   :  { %9541 = vmatpush1.bf16.xpose.msra.mxu1 %v14073_v38  ;;  %v14091_v38 = vld [vmem:[#allocation4 + $0x15c0] ss:$120 sps:$4 sm:$0xff]  }
 0x548   :  { %9030 = vmatpush1.bf16.xpose.msra.mxu0 %v14070_v7  ;;  %9542 = vmatprep.subr.bf16.mxu1 %v14081_v27  ;;  %v14088_v7 = vld [vmem:[#allocation4 + $0x700] ss:$120 sps:$4 sm:$0xff]   ;;  %v14099_v27 = vld [vmem:[#allocation4 + $0x16b4] ss:$120 sps:$4 sm:$0xff]  }
 0x549   :  { %9031 = vmatprep.subr.bf16.mxu0 %v14078_v40  ;;  %v14096_v40 = vld [vmem:[#allocation4 + $0x7f4] ss:$120 sps:$4 sm:$0xff]  }
 0x54f   :  { %9543 = vmatpush1.bf16.xpose.msra.mxu1 %v14079_v0  ;;  %v14097_v0 = vld [vmem:[#allocation4 + $0x16b0] ss:$120 sps:$4 sm:$0xff]  }
 0x550   :  { %9032 = vmatpush1.bf16.xpose.msra.mxu0 %v14076_v30  ;;  %9544 = vmatprep.subr.bf16.mxu1 %v14087_v26  ;;  %v14094_v30 = vld [vmem:[#allocation4 + $0x7f0] ss:$120 sps:$4 sm:$0xff]   ;;  %v14105_v26 = vld [vmem:[#allocation4 + $0x17a4] ss:$120 sps:$4 sm:$0xff]  }
 0x551   :  { %9033 = vmatprep.subr.bf16.mxu0 %v14084_v62  ;;  %v14102_v62 = vld [vmem:[#allocation4 + $0x8e4] ss:$120 sps:$4 sm:$0xff]  }
 0x557   :  { %9545 = vmatpush1.bf16.xpose.msra.mxu1 %v14085_v11  ;;  %v14103_v11 = vld [vmem:[#allocation4 + $0x17a0] ss:$120 sps:$4 sm:$0xff]  }
 0x558   :  { %9034 = vmatpush1.bf16.xpose.msra.mxu0 %v14082_v48  ;;  %9546 = vmatprep.subr.bf16.mxu1 %v14093_v28  ;;  %v14100_v48 = vld [vmem:[#allocation4 + $0x8e0] ss:$120 sps:$4 sm:$0xff]   ;;  %v14111_v28 = vld [vmem:[#allocation4 + $0x1894] ss:$120 sps:$4 sm:$0xff]  }
 0x559   :  { %9035 = vmatprep.subr.bf16.mxu0 %v14090_v61  ;;  %v14108_v61 = vld [vmem:[#allocation4 + $0x9d4] ss:$120 sps:$4 sm:$0xff]  }
 0x55f   :  { %9547 = vmatpush1.bf16.xpose.msra.mxu1 %v14091_v38  ;;  %v14109_v38 = vld [vmem:[#allocation4 + $0x1890] ss:$120 sps:$4 sm:$0xff]  }
 0x560   :  { %9036 = vmatpush1.bf16.xpose.msra.mxu0 %v14088_v7  ;;  %9548 = vmatprep.subr.bf16.mxu1 %v14099_v27  ;;  %v14106_v7 = vld [vmem:[#allocation4 + $0x9d0] ss:$120 sps:$4 sm:$0xff]   ;;  %v14117_v27 = vld [vmem:[#allocation4 + $0x1984] ss:$120 sps:$4 sm:$0xff]  }
 0x561   :  { %9037 = vmatprep.subr.bf16.mxu0 %v14096_v40  ;;  %v14114_v40 = vld [vmem:[#allocation4 + $0xac4] ss:$120 sps:$4 sm:$0xff]  }
 0x567   :  { %9549 = vmatpush1.bf16.xpose.msra.mxu1 %v14097_v0  ;;  %v14115_v0 = vld [vmem:[#allocation4 + $0x1980] ss:$120 sps:$4 sm:$0xff]  }
 0x568   :  { %9038 = vmatpush1.bf16.xpose.msra.mxu0 %v14094_v30  ;;  %9550 = vmatprep.subr.bf16.mxu1 %v14105_v26  ;;  %v14112_v30 = vld [vmem:[#allocation4 + $0xac0] ss:$120 sps:$4 sm:$0xff]   ;;  %v14123_v26 = vld [vmem:[#allocation4 + $0x1a74] ss:$120 sps:$4 sm:$0xff]  }
 0x569   :  { %9039 = vmatprep.subr.bf16.mxu0 %v14102_v62  ;;  %v14120_v62 = vld [vmem:[#allocation4 + $0xbb4] ss:$120 sps:$4 sm:$0xff]  }
 0x56f   :  { %9551 = vmatpush1.bf16.xpose.msra.mxu1 %v14103_v11  ;;  %v14121_v11 = vld [vmem:[#allocation4 + $0x1a70] ss:$120 sps:$4 sm:$0xff]  }
 0x570   :  { %9040 = vmatpush1.bf16.xpose.msra.mxu0 %v14100_v48  ;;  %9552 = vmatprep.subr.bf16.mxu1 %v14111_v28  ;;  %v14118_v48 = vld [vmem:[#allocation4 + $0xbb0] ss:$120 sps:$4 sm:$0xff]   ;;  %v14129_v28 = vld [vmem:[#allocation4 + $0x1b64] ss:$120 sps:$4 sm:$0xff]  }
 0x571   :  { %9041 = vmatprep.subr.bf16.mxu0 %v14108_v61  ;;  %v14126_v61 = vld [vmem:[#allocation4 + $0xca4] ss:$120 sps:$4 sm:$0xff]  }
 0x577   :  { %9553 = vmatpush1.bf16.xpose.msra.mxu1 %v14109_v38  ;;  %v14127_v38 = vld [vmem:[#allocation4 + $0x1b60] ss:$120 sps:$4 sm:$0xff]  }
 0x578   :  { %9042 = vmatpush1.bf16.xpose.msra.mxu0 %v14106_v7  ;;  %9554 = vmatprep.subr.bf16.mxu1 %v14117_v27  ;;  %v14124_v7 = vld [vmem:[#allocation4 + $0xca0] ss:$120 sps:$4 sm:$0xff]   ;;  %v14135_v27 = vld [vmem:[#allocation4 + $0x1c54] ss:$120 sps:$4 sm:$0xff]  }
 0x579   :  { %9043 = vmatprep.subr.bf16.mxu0 %v14114_v40  ;;  %v14132_v40 = vld [vmem:[#allocation4 + $0xd94] ss:$120 sps:$4 sm:$0xff]  }
 0x57f   :  { %9555 = vmatpush1.bf16.xpose.msra.mxu1 %v14115_v0  ;;  %v14133_v0 = vld [vmem:[#allocation4 + $0x1c50] ss:$120 sps:$4 sm:$0xff]  }
 0x580   :  { %9044 = vmatpush1.bf16.xpose.msra.mxu0 %v14112_v30  ;;  %9556 = vmatprep.subr.bf16.mxu1 %v14123_v26  ;;  %v14130_v30 = vld [vmem:[#allocation4 + $0xd90] ss:$120 sps:$4 sm:$0xff]   ;;  %v14141_v26 = vld [vmem:[#allocation4 + $0x1d44] ss:$120 sps:$4 sm:$0xff]  }
 0x581   :  { %9045 = vmatprep.subr.bf16.mxu0 %v14120_v62  ;;  %v14138_v62 = vld [vmem:[#allocation4 + $0xe84] ss:$120 sps:$4 sm:$0xff]  }
 0x587   :  { %9557 = vmatpush1.bf16.xpose.msra.mxu1 %v14121_v11  ;;  %v16480_v11 = vrot.slane %v16234_v56, %v15436_v29  ;;  %v160_v29 = vld [vmem:[%s16886_s0 + $0x3b8] sm:$0xff] }
 0x588   :  { %9046 = vmatpush1.bf16.xpose.msra.mxu0 %v14118_v48  ;;  %9558 = vmatprep.subr.bf16.mxu1 %v14129_v28  ;;  %v14136_v48 = vld [vmem:[#allocation4 + $0xe80] ss:$120 sps:$4 sm:$0xff]  }
 0x589   :  { %9047 = vmatprep.subr.bf16.mxu0 %v14126_v61  ;;  %v14139_v61 = vld [vmem:[#allocation4 + $0x1d40] ss:$120 sps:$4 sm:$0xff]  }
 0x58a   :  { %v69_v28 = vld [vmem:[%s16886_s0 + $0xe0] sm:$0xff] }
 0x58b   :  { %v467_v56 = vmul.f32 %v16480_v11, %v69_v28  ;;  %v159_v28 = vld [vmem:[%s16886_s0 + $0x3b0] sm:$0xff] }
 0x58f   :  { %9559 = vmatpush1.bf16.xpose.msra.mxu1 %v14127_v38  ;;  %v14144_v38 = vld [vmem:[#allocation4 + $0xf3c] ss:$120 sps:$4 sm:$0xff]  }
 0x590   :  { %9048 = vmatpush1.bf16.xpose.msra.mxu0 %v14124_v7  ;;  %9560 = vmatprep.subr.bf16.mxu1 %v14135_v27  ;;  %v99_v7 = vld [vmem:[%s16886_s0 + $0x1d0] sm:$0xff]  ;;  %v130_v27 = vld [vmem:[%s16886_s0 + $0x2c8] sm:$0xff] }
 0x591   :  { %9049 = vmatprep.subr.bf16.mxu0 %v14132_v40  ;;  %v14147_v40 = vld [vmem:[#allocation4 + $0x1e04] ss:$120 sps:$4 sm:$0xff]  }
 0x597   :  { %9561 = vmatpush1.bf16.xpose.msra.mxu1 %v14133_v0  ;;  %v528_v0 = vmul.f32 %v16454_v5, %v130_v27  ;;  %v17163_v27 = vld [vmem:[#allocation24_spill] sm:$0xff] }
 0x598   :  { %9050 = vmatpush1.bf16.xpose.msra.mxu0 %v14130_v30  ;;  %9562 = vmatprep.subr.bf16.mxu1 %v14141_v26  ;;  %v497_v30 = vmul.f32 %v16480_v11, %v99_v7  ;;  %v14153_v7 = vld [vmem:[#allocation4 + $0x1ef4] ss:$120 sps:$4 sm:$0xff]  }
 0x599   :  { %9051 = vmatprep.subr.bf16.mxu0 %v14138_v62  ;;  %v558_v62 = vmul.f32 %v16454_v5, %v160_v29  ;;  %v527_v29 = vmul.f32 %v16480_v11, %v129_v63  ;;  %v189_v63 = vld [vmem:[%s16886_s0 + $0x4a0] sm:$0xff] }
 0x59a   :  { %v16498_v26 = vpack.c.bf16 %v497_v30, %v467_v56  ;;  %v557_v56 = vmul.f32 %v16480_v11, %v159_v28  ;;  %v14156_v28 = vld [vmem:[#allocation4 + $0x111c] ss:$120 sps:$4 sm:$0xff]  }
 0x59c   :  { %17161 = vst [vmem:[#allocation22_spill] sm:$0xff] %v16498_v26  ;;  %v16522_v24 = vpack.c.bf16 %v557_v56, %v527_v29  ;;  %v17167_v56 = vld [vmem:[#allocation26_spill] sm:$0xff] }
 0x59e   :  { %17165 = vst [vmem:[#allocation94_spill] sm:$0xff] %v16522_v24 }
 0x59f   :  { %9563 = vmatpush1.bf16.xpose.msra.mxu1 %v14139_v61  ;;  %v14150_v61 = vld [vmem:[#allocation4 + $0x102c] ss:$120 sps:$4 sm:$0xff]  }
 0x5a0   :  { %9052 = vmatpush1.bf16.xpose.msra.mxu0 %v14136_v48  ;;  %9605 = vmatprep.subr.bf16.mxu1 %v14144_v38  ;;  %v16506_v48 = vpack.c.bf16 %v558_v62, %v528_v0  ;;  %v190_v38 = vld [vmem:[%s16886_s0 + $0x4a8] sm:$0xff] }
 0x5a1   :  { %10189 = vmatprep.subr.bf16.mxu0 %v14147_v40  ;;  %v220_v40 = vld [vmem:[%s16886_s0 + $0x598] sm:$0xff]  ;;  %v588_v30 = vmul.f32 %v16454_v5, %v190_v38  ;;  %v17164_v62 = vld [vmem:[#allocation25_spill] sm:$0xff] }
 0x5a2   :  { %17162 = vst [vmem:[#allocation93_spill] sm:$0xff] %v16506_v48  ;;  %v618_v0 = vmul.f32 %v16454_v5, %v220_v40  ;;  %v280_v38 = vld [vmem:[%s16886_s0 + $0x778] sm:$0xff]  ;;  %v587_v40 = vmul.f32 %v16480_v11, %v189_v63 }
 0x5a3   :  { %v14157_v63 = vld [vmem:[#allocation4 + $0x1fe0] ss:$120 sps:$4 sm:$0xff]  }
 0x5a6   :  { %9565 = vmatmul.mubr.bf16.vlgmr.msra.gmra.mrb[16].mxu1 %v17163_v27  ;;  %v14151_v27 = vld [vmem:[#allocation4 + $0x1ef0] ss:$120 sps:$4 sm:$0xff]  }
 0x5a7   :  { %9054 = vmatmul.mubr.bf16.vlgmr.msra.gmra.mrb[0].mxu0 %v16498_v26  ;;  %9606 = vmatpush1.bf16.xpose.msra.mxu1 %v14142_v34  ;;  %v14148_v26 = vld [vmem:[#allocation4 + $0x1028] ss:$120 sps:$4 sm:$0xff]   ;;  %v219_v34 = vld [vmem:[%s16886_s0 + $0x590] sm:$0xff] }
 0x5a8   :  { %10190 = vmatpush1.bf16.xpose.msra.mxu0 %v14145_v51  ;;  %9063 = vmatprep.mubr.bf16.mxu0 %v16506_v48  ;;  %v16530_v51 = vpack.c.bf16 %v618_v0, %v588_v30  ;;  %v617_v29 = vmul.f32 %v16480_v11, %v219_v34  ;;  %v678_v0 = vmul.f32 %v16454_v5, %v280_v38  ;;  %v17168_v48 = vld [vmem:[#allocation27_spill] sm:$0xff]  ;;  %v249_v34 = vld [vmem:[%s16886_s0 + $0x680] sm:$0xff] }
 0x5a9   :  { %9607 = vmatprep.subr.bf16.mxu1 %v14150_v61  ;;  %10191 = vmatprep.subr.bf16.mxu0 %v14153_v7  ;;  %v14159_v61 = vld [vmem:[#allocation4 + $0x1fe4] ss:$120 sps:$4 sm:$0xff]   ;;  %v250_v7 = vld [vmem:[%s16886_s0 + $0x688] sm:$0xff] }
 0x5aa   :  { %9574 = vmatprep.mubr.bf16.mxu1 %v17164_v62  ;;  %17166 = vst [vmem:[#allocation95_spill] sm:$0xff] %v16530_v51  ;;  %v648_v30 = vmul.f32 %v16454_v5, %v250_v7  ;;  %v16546_v62 = vpack.c.bf16 %v617_v29, %v587_v40  ;;  %v14165_v7 = vld [vmem:[#allocation4 + $0x20d4] ss:$120 sps:$4 sm:$0xff]   ;;  %v647_v5 = vmul.f32 %v16480_v11, %v249_v34  ;;  %v17170_v38 = vld [vmem:[#allocation28_spill] sm:$0xff] }
 0x5ab   :  { %v17171_v40 = vld [vmem:[#allocation29_spill] sm:$0xff]  ;;  %v17173_v34 = vld [vmem:[#allocation30_spill] sm:$0xff] }
 0x5ac   :  { %17169 = vst [vmem:[#allocation26_spill] sm:$0xff] %v16546_v62 }
 0x5ae   :  { %9575 = vmatmul.mubr.bf16.gmra.mrb[20].mxu1 %v17167_v56 }
 0x5af   :  { %9064 = vmatmul.mubr.bf16.gmra.mrb[4].mxu0 %v16522_v24  ;;  %9608 = vmatpush1.bf16.xpose.msra.mxu1 %v14148_v26  ;;  %v14154_v24 = vld [vmem:[#allocation4 + $0x1118] ss:$120 sps:$4 sm:$0xff]  }
 0x5b0   :  { %10192 = vmatpush1.bf16.xpose.msra.mxu0 %v14151_v27  ;;  %9073 = vmatprep.mubr.bf16.mxu0 %v16530_v51  ;;  %v279_v26 = vld [vmem:[%s16886_s0 + $0x770] sm:$0xff]  ;;  %v16554_v27 = vpack.c.bf16 %v678_v0, %v648_v30  ;;  %v14160_v30 = vld [vmem:[#allocation4 + $0x1208] ss:$120 sps:$4 sm:$0xff]  }
 0x5b1   :  { %9609 = vmatprep.subr.bf16.mxu1 %v14156_v28  ;;  %10193 = vmatprep.subr.bf16.mxu0 %v14159_v61  ;;  %v14162_v28 = vld [vmem:[#allocation4 + $0x120c] ss:$120 sps:$4 sm:$0xff]   ;;  %v677_v61 = vmul.f32 %v16480_v11, %v279_v26  ;;  %v14163_v0 = vld [vmem:[#allocation4 + $0x20d0] ss:$120 sps:$4 sm:$0xff]   ;;  %v14168_v51 = vld [vmem:[#allocation4 + $0x12fc] ss:$120 sps:$4 sm:$0xff]  }
 0x5b2   :  { %9584 = vmatprep.mubr.bf16.mxu1 %v17168_v48  ;;  %v14166_v11 = vld [vmem:[#allocation4 + $0x12f8] ss:$120 sps:$4 sm:$0xff]   ;;  %v14174_v26 = vld [vmem:[#allocation4 + $0x13ec] ss:$120 sps:$4 sm:$0xff]  }
 0x5b3   :  { %v16562_v29 = vpack.c.bf16 %v677_v61, %v647_v5  ;;  %v14175_v5 = vld [vmem:[#allocation4 + $0x22b0] ss:$120 sps:$4 sm:$0xff]   ;;  %v14180_v61 = vld [vmem:[#allocation4 + $0x14dc] ss:$120 sps:$4 sm:$0xff]  }
 0x5b5   :  { %17172 = vst [vmem:[#allocation27_spill] sm:$0xff] %v16562_v29 }
 0x5b6   :  { %9585 = vmatmul.mubr.bf16.gmra.mrb[24].mxu1 %v17170_v38 }
 0x5b7   :  { %9074 = vmatmul.mubr.bf16.gmra.mrb[8].mxu0 %v16546_v62  ;;  %9610 = vmatpush1.bf16.xpose.msra.mxu1 %v14154_v24  ;;  %v14171_v62 = vld [vmem:[#allocation4 + $0x21c4] ss:$120 sps:$4 sm:$0xff]  }
 0x5b8   :  { %10194 = vmatpush1.bf16.xpose.msra.mxu0 %v14157_v63  ;;  %9083 = vmatprep.mubr.bf16.mxu0 %v16554_v27  ;;  %v17174_v24 = vld [vmem:[#allocation31_spill] sm:$0xff] }
 0x5b9   :  { %9611 = vmatprep.subr.bf16.mxu1 %v14162_v28  ;;  %10195 = vmatprep.subr.bf16.mxu0 %v14165_v7  ;;  %v14169_v63 = vld [vmem:[#allocation4 + $0x21c0] ss:$120 sps:$4 sm:$0xff]   ;;  %v14177_v28 = vld [vmem:[#allocation4 + $0x22b4] ss:$120 sps:$4 sm:$0xff]  }
 0x5ba   :  { %9594 = vmatprep.mubr.bf16.mxu1 %v17171_v40  ;;  %v14172_v7 = vld [vmem:[#allocation4 + $0x13e8] ss:$120 sps:$4 sm:$0xff]  }
 0x5be   :  { %9595 = vmatmul.mubr.bf16.gmra.mrb[28].mxu1 %v17173_v34 }
 0x5bf   :  { %9084 = vmatmul.mubr.bf16.gmra.mrb[12].mxu0 %v16562_v29  ;;  %9612 = vmatpush1.bf16.xpose.msra.mxu1 %v14160_v30  ;;  %v14183_v29 = vld [vmem:[#allocation4 + $0x23a4] ss:$120 sps:$4 sm:$0xff]   ;;  %v14189_v30 = vld [vmem:[#allocation4 + $0x2494] ss:$120 sps:$4 sm:$0xff]  }
 0x5c0   :  { %10196 = vmatpush1.bf16.xpose.msra.mxu0 %v14163_v0  ;;  %9613 = vmatprep.subr.bf16.mxu1 %v14168_v51  ;;  %v14186_v51 = vld [vmem:[#allocation4 + $0x15cc] ss:$120 sps:$4 sm:$0xff]   ;;  %v14184_v0 = vld [vmem:[#allocation4 + $0x15c8] ss:$120 sps:$4 sm:$0xff]  }
 0x5c1   :  { %10197 = vmatprep.subr.bf16.mxu0 %v14171_v62  ;;  %10221 = vmatprep.mubr.bf16.mxu0 %v15027_v41  ;;  %v14178_v62 = vld [vmem:[#allocation4 + $0x14d8] ss:$120 sps:$4 sm:$0xff]  }
 0x5c2   :  { %9637 = vmatprep.mubr.bf16.mxu1 %v17174_v24  ;;  %v14181_v41 = vld [vmem:[#allocation4 + $0x23a0] ss:$120 sps:$4 sm:$0xff]  }
 0x5c7   :  { %9614 = vmatpush1.bf16.xpose.msra.mxu1 %v14166_v11  ;;  %v14187_v11 = vld [vmem:[#allocation4 + $0x2490] ss:$120 sps:$4 sm:$0xff]  }
 0x5c8   :  { %10198 = vmatpush1.bf16.xpose.msra.mxu0 %v14169_v63  ;;  %9615 = vmatprep.subr.bf16.mxu1 %v14174_v26  ;;  %v14192_v63 = vld [vmem:[#allocation4 + $0x16bc] ss:$120 sps:$4 sm:$0xff]   ;;  %v14195_v26 = vld [vmem:[#allocation4 + $0x1e0c] ss:$120 sps:$4 sm:$0xff]  }
 0x5c9   :  { %10199 = vmatprep.subr.bf16.mxu0 %v14177_v28  ;;  %v14190_v28 = vld [vmem:[#allocation4 + $0x16b8] ss:$120 sps:$4 sm:$0xff]  }
 0x5cf   :  { %9616 = vmatpush1.bf16.xpose.msra.mxu1 %v14172_v7  ;;  %v14193_v7 = vld [vmem:[#allocation4 + $0x1e08] ss:$120 sps:$4 sm:$0xff]  }
 0x5d0   :  { %10200 = vmatpush1.bf16.xpose.msra.mxu0 %v14175_v5  ;;  %9617 = vmatprep.subr.bf16.mxu1 %v14180_v61  ;;  %v14198_v5 = vld [vmem:[#allocation4 + $0x17ac] ss:$120 sps:$4 sm:$0xff]   ;;  %v14196_v61 = vld [vmem:[#allocation4 + $0x17a8] ss:$120 sps:$4 sm:$0xff]  }
 0x5d1   :  { %10201 = vmatprep.subr.bf16.mxu0 %v14183_v29  ;;  %v14201_v29 = vld [vmem:[#allocation4 + $0x1efc] ss:$120 sps:$4 sm:$0xff]  }
 0x5d7   :  { %9618 = vmatpush1.bf16.xpose.msra.mxu1 %v14178_v62  ;;  %v14199_v62 = vld [vmem:[#allocation4 + $0x1ef8] ss:$120 sps:$4 sm:$0xff]  }
 0x5d8   :  { %10202 = vmatpush1.bf16.xpose.msra.mxu0 %v14181_v41  ;;  %9619 = vmatprep.subr.bf16.mxu1 %v14186_v51  ;;  %v14204_v41 = vld [vmem:[#allocation4 + $0x189c] ss:$120 sps:$4 sm:$0xff]   ;;  %v14207_v51 = vld [vmem:[#allocation4 + $0x1fec] ss:$120 sps:$4 sm:$0xff]  }
 0x5d9   :  { %10203 = vmatprep.subr.bf16.mxu0 %v14189_v30  ;;  %v14202_v30 = vld [vmem:[#allocation4 + $0x1898] ss:$120 sps:$4 sm:$0xff]  }
 0x5df   :  { %9620 = vmatpush1.bf16.xpose.msra.mxu1 %v14184_v0  ;;  %v14210_v0 = vld [vmem:[#allocation4 + $0x198c] ss:$120 sps:$4 sm:$0xff]  }
 0x5e0   :  { %10204 = vmatpush1.bf16.xpose.msra.mxu0 %v14187_v11  ;;  %9621 = vmatprep.subr.bf16.mxu1 %v14192_v63  ;;  %v14213_v11 = vld [vmem:[#allocation4 + $0x20dc] ss:$120 sps:$4 sm:$0xff]  }
 0x5e1   :  { %10254 = vmatprep.subr.bf16.mxu0 %v14195_v26  ;;  %v14216_v63 = vld [vmem:[#allocation4 + $0x1a7c] ss:$120 sps:$4 sm:$0xff]   ;;  %v14219_v26 = vld [vmem:[#allocation4 + $0x21cc] ss:$120 sps:$4 sm:$0xff]  }
 0x5e7   :  { %10222 = vmatmul.mubr.bf16.vlgmr.msra.gmra.mrb[16].mxu0 %v15081_v49  ;;  %9622 = vmatpush1.bf16.xpose.msra.mxu1 %v14190_v28  ;;  %v14205_v49 = vld [vmem:[#allocation4 + $0x1fe8] ss:$120 sps:$4 sm:$0xff]   ;;  %v14222_v28 = vld [vmem:[#allocation4 + $0x1b6c] ss:$120 sps:$4 sm:$0xff]  }
 0x5e8   :  { %10255 = vmatpush1.bf16.xpose.msra.mxu0 %v14193_v7  ;;  %9623 = vmatprep.subr.bf16.mxu1 %v14198_v5  ;;  %v14225_v7 = vld [vmem:[#allocation4 + $0x22bc] ss:$120 sps:$4 sm:$0xff]   ;;  %v14223_v5 = vld [vmem:[#allocation4 + $0x22b8] ss:$120 sps:$4 sm:$0xff]  }
 0x5e9   :  { %10256 = vmatprep.subr.bf16.mxu0 %v14201_v29  ;;  %10229 = vmatprep.mubr.bf16.mxu0 %v15106_v60  ;;  %v14208_v60 = vld [vmem:[#allocation4 + $0x1988] ss:$120 sps:$4 sm:$0xff]   ;;  %v14228_v29 = vld [vmem:[#allocation4 + $0x1c5c] ss:$120 sps:$4 sm:$0xff]  }
 0x5ef   :  { %10230 = vmatmul.mubr.bf16.gmra.mrb[20].mxu0 %v15134_v14  ;;  %9624 = vmatpush1.bf16.xpose.msra.mxu1 %v14196_v61  ;;  %v14211_v14 = vld [vmem:[#allocation4 + $0x20d8] ss:$120 sps:$4 sm:$0xff]   ;;  %v14231_v61 = vld [vmem:[#allocation4 + $0x23ac] ss:$120 sps:$4 sm:$0xff]  }
 0x5f0   :  { %10257 = vmatpush1.bf16.xpose.msra.mxu0 %v14199_v62  ;;  %9625 = vmatprep.subr.bf16.mxu1 %v14204_v41  ;;  %v14229_v62 = vld [vmem:[#allocation4 + $0x23a8] ss:$120 sps:$4 sm:$0xff]   ;;  %v14234_v41 = vld [vmem:[#allocation4 + $0x1d4c] ss:$120 sps:$4 sm:$0xff]  }
 0x5f1   :  { %10258 = vmatprep.subr.bf16.mxu0 %v14207_v51  ;;  %10237 = vmatprep.mubr.bf16.mxu0 %v15150_v21  ;;  %v14214_v21 = vld [vmem:[#allocation4 + $0x1a78] ss:$120 sps:$4 sm:$0xff]   ;;  %v14232_v51 = vld [vmem:[#allocation4 + $0x1d48] ss:$120 sps:$4 sm:$0xff]  }
 0x5f7   :  { %10238 = vmatmul.mubr.bf16.gmra.mrb[24].mxu0 %v15181_v52  ;;  %9626 = vmatpush1.bf16.xpose.msra.mxu1 %v14202_v30  ;;  %v14217_v52 = vld [vmem:[#allocation4 + $0x21c8] ss:$120 sps:$4 sm:$0xff]   ;;  %v14235_v30 = vld [vmem:[#allocation4 + $0x2498] ss:$120 sps:$4 sm:$0xff]  }
 0x5f8   :  { %10259 = vmatpush1.bf16.xpose.msra.mxu0 %v14205_v49  ;;  %9627 = vmatprep.subr.bf16.mxu1 %v14210_v0  ;;  %v14240_v49 = vld [vmem:[#allocation4 + $0xf44] ss:$120 sps:$4 sm:$0xff]   ;;  %v14243_v0 = vld [vmem:[#allocation4 + $0x1e14] ss:$120 sps:$4 sm:$0xff]  }
 0x5f9   :  { %10260 = vmatprep.subr.bf16.mxu0 %v14213_v11  ;;  %10245 = vmatprep.mubr.bf16.mxu0 %v15201_v57  ;;  %v14220_v57 = vld [vmem:[#allocation4 + $0x1b68] ss:$120 sps:$4 sm:$0xff]  }
 0x5fa   :  { %v14238_v11 = vld [vmem:[#allocation4 + $0xf40] ss:$120 sps:$4 sm:$0xff]  }
 0x5ff   :  { %10246 = vmatmul.mubr.bf16.gmra.mrb[28].mxu0 %v15221_v6  ;;  %9628 = vmatpush1.bf16.xpose.msra.mxu1 %v14208_v60  ;;  %v14226_v6 = vld [vmem:[#allocation4 + $0x1c58] ss:$120 sps:$4 sm:$0xff]  }
 0x600   :  { %10261 = vmatpush1.bf16.xpose.msra.mxu0 %v14211_v14  ;;  %9629 = vmatprep.subr.bf16.mxu1 %v14216_v63  ;;  %v14241_v60 = vld [vmem:[#allocation4 + $0x1e10] ss:$120 sps:$4 sm:$0xff]   ;;  %v14246_v14 = vld [vmem:[#allocation4 + $0x1034] ss:$120 sps:$4 sm:$0xff]   ;;  %v14249_v63 = vld [vmem:[#allocation4 + $0x1f04] ss:$120 sps:$4 sm:$0xff]  }
 0x601   :  { %10262 = vmatprep.subr.bf16.mxu0 %v14219_v26  ;;  %10286 = vmatprep.mubr.bf16.mxu0 %v15225_v8  ;;  %v14237_v8 = vld [vmem:[#allocation4 + $0x249c] ss:$120 sps:$4 sm:$0xff]   ;;  %v17175_v26 = vld [vmem:[#allocation32_spill] sm:$0xff] }
 0x607   :  { %9630 = vmatpush1.bf16.xpose.msra.mxu1 %v14214_v21  ;;  %v17176_v21 = vld [vmem:[#allocation33_spill] sm:$0xff] }
 0x608   :  { %10263 = vmatpush1.bf16.xpose.msra.mxu0 %v14217_v52  ;;  %9631 = vmatprep.subr.bf16.mxu1 %v14222_v28  ;;  %v14244_v52 = vld [vmem:[#allocation4 + $0x1030] ss:$120 sps:$4 sm:$0xff]   ;;  %v14247_v28 = vld [vmem:[#allocation4 + $0x1f00] ss:$120 sps:$4 sm:$0xff]  }
 0x609   :  { %10264 = vmatprep.subr.bf16.mxu0 %v14225_v7  ;;  %v14252_v7 = vld [vmem:[#allocation4 + $0x1124] ss:$120 sps:$4 sm:$0xff]  }
 0x60f   :  { %9632 = vmatpush1.bf16.xpose.msra.mxu1 %v14220_v57  ;;  %v14255_v57 = vld [vmem:[#allocation4 + $0x1ff4] ss:$120 sps:$4 sm:$0xff]  }
 0x610   :  { %10265 = vmatpush1.bf16.xpose.msra.mxu0 %v14223_v5  ;;  %9633 = vmatprep.subr.bf16.mxu1 %v14228_v29  ;;  %v17177_v5 = vld [vmem:[#allocation34_spill] sm:$0xff]  ;;  %v14250_v29 = vld [vmem:[#allocation4 + $0x1120] ss:$120 sps:$4 sm:$0xff]  }
 0x611   :  { %10266 = vmatprep.subr.bf16.mxu0 %v14231_v61  ;;  %v14258_v61 = vld [vmem:[#allocation4 + $0x1214] ss:$120 sps:$4 sm:$0xff]  }
 0x617   :  { %9634 = vmatpush1.bf16.xpose.msra.mxu1 %v14226_v6  ;;  %v14261_v6 = vld [vmem:[#allocation4 + $0x20e4] ss:$120 sps:$4 sm:$0xff]  }
 0x618   :  { %10267 = vmatpush1.bf16.xpose.msra.mxu0 %v14229_v62  ;;  %9635 = vmatprep.subr.bf16.mxu1 %v14234_v41  ;;  %v14264_v62 = vld [vmem:[#allocation4 + $0x1304] ss:$120 sps:$4 sm:$0xff]   ;;  %v14267_v41 = vld [vmem:[#allocation4 + $0x21d4] ss:$120 sps:$4 sm:$0xff]  }
 0x619   :  { %10268 = vmatprep.subr.bf16.mxu0 %v14237_v8  ;;  %v14270_v8 = vld [vmem:[#allocation4 + $0x13f4] ss:$120 sps:$4 sm:$0xff]  }
 0x61f   :  { %9636 = vmatpush1.bf16.xpose.msra.mxu1 %v14232_v51  ;;  %v14273_v51 = vld [vmem:[#allocation4 + $0x22c4] ss:$120 sps:$4 sm:$0xff]  }
 0x620   :  { %10269 = vmatpush1.bf16.xpose.msra.mxu0 %v14235_v30  ;;  %9678 = vmatprep.subr.bf16.mxu1 %v14240_v49  ;;  %v14268_v30 = vld [vmem:[#allocation4 + $0x13f0] ss:$120 sps:$4 sm:$0xff]   ;;  %v14276_v49 = vld [vmem:[#allocation4 + $0x14e4] ss:$120 sps:$4 sm:$0xff]  }
 0x621   :  { %10319 = vmatprep.subr.bf16.mxu0 %v14243_v0  ;;  %v14279_v0 = vld [vmem:[#allocation4 + $0x23b4] ss:$120 sps:$4 sm:$0xff]  }
 0x626   :  { %9638 = vmatmul.mubr.bf16.vlgmr.msra.gmra.mrb[16].mxu1 %v17175_v26 }
 0x627   :  { %10287 = vmatmul.mubr.bf16.vlgmr.msra.gmra.mrb[16].mxu0 %v15283_v1  ;;  %9679 = vmatpush1.bf16.xpose.msra.mxu1 %v14238_v11  ;;  %v17178_v1 = vld [vmem:[#allocation35_spill] sm:$0xff] }
 0x628   :  { %10320 = vmatpush1.bf16.xpose.msra.mxu0 %v14241_v60  ;;  %9680 = vmatprep.subr.bf16.mxu1 %v14246_v14  ;;  %v14274_v11 = vld [vmem:[#allocation4 + $0x14e0] ss:$120 sps:$4 sm:$0xff]   ;;  %v14282_v60 = vld [vmem:[#allocation4 + $0x15d4] ss:$120 sps:$4 sm:$0xff]   ;;  %v14285_v14 = vld [vmem:[#allocation4 + $0x24a4] ss:$120 sps:$4 sm:$0xff]  }
 0x629   :  { %10321 = vmatprep.subr.bf16.mxu0 %v14249_v63  ;;  %10294 = vmatprep.mubr.bf16.mxu0 %v15308_v13  ;;  %v14253_v13 = vld [vmem:[#allocation4 + $0x1ff0] ss:$120 sps:$4 sm:$0xff]  }
 0x62a   :  { %9647 = vmatprep.mubr.bf16.mxu1 %v17176_v21  ;;  %v14280_v63 = vld [vmem:[#allocation4 + $0x15d0] ss:$120 sps:$4 sm:$0xff]  }
 0x62e   :  { %9648 = vmatmul.mubr.bf16.gmra.mrb[20].mxu1 %v17177_v5 }
 0x62f   :  { %10295 = vmatmul.mubr.bf16.gmra.mrb[20].mxu0 %v15336_v55  ;;  %9681 = vmatpush1.bf16.xpose.msra.mxu1 %v14244_v52  ;;  %v14256_v55 = vld [vmem:[#allocation4 + $0x1210] ss:$120 sps:$4 sm:$0xff]   ;;  %v14283_v52 = vld [vmem:[#allocation4 + $0x24a0] ss:$120 sps:$4 sm:$0xff]  }
 0x630   :  { %10322 = vmatpush1.bf16.xpose.msra.mxu0 %v14247_v28  ;;  %9682 = vmatprep.subr.bf16.mxu1 %v14252_v7  ;;  %v14288_v28 = vld [vmem:[#allocation4 + $0x16c4] ss:$120 sps:$4 sm:$0xff]  }
 0x631   :  { %10323 = vmatprep.subr.bf16.mxu0 %v14255_v57  ;;  %10302 = vmatprep.mubr.bf16.mxu0 %v15352_v3  ;;  %v14259_v3 = vld [vmem:[#allocation4 + $0x20e0] ss:$120 sps:$4 sm:$0xff]   ;;  %v14291_v7 = vld [vmem:[#allocation4 + $0x1e1c] ss:$120 sps:$4 sm:$0xff]  }
 0x632   :  { %9657 = vmatprep.mubr.bf16.mxu1 %v17178_v1  ;;  %v14286_v57 = vld [vmem:[#allocation4 + $0x16c0] ss:$120 sps:$4 sm:$0xff]  }
 0x636   :  { %9658 = vmatmul.mubr.bf16.gmra.mrb[24].mxu1 %v15782_v32 }
 0x637   :  { %10303 = vmatmul.mubr.bf16.gmra.mrb[24].mxu0 %v15383_v45  ;;  %9683 = vmatpush1.bf16.xpose.msra.mxu1 %v14250_v29  ;;  %v14262_v45 = vld [vmem:[#allocation4 + $0x1300] ss:$120 sps:$4 sm:$0xff]  }
 0x638   :  { %10324 = vmatpush1.bf16.xpose.msra.mxu0 %v14253_v13  ;;  %9684 = vmatprep.subr.bf16.mxu1 %v14258_v61  ;;  %v14289_v29 = vld [vmem:[#allocation4 + $0x1e18] ss:$120 sps:$4 sm:$0xff]   ;;  %v14294_v13 = vld [vmem:[#allocation4 + $0x17b4] ss:$120 sps:$4 sm:$0xff]  }
 0x639   :  { %10325 = vmatprep.subr.bf16.mxu0 %v14261_v6  ;;  %10310 = vmatprep.mubr.bf16.mxu0 %v15403_v53  ;;  %v14265_v53 = vld [vmem:[#allocation4 + $0x21d0] ss:$120 sps:$4 sm:$0xff]   ;;  %v14297_v61 = vld [vmem:[#allocation4 + $0x1f0c] ss:$120 sps:$4 sm:$0xff]  }
 0x63a   :  { %9667 = vmatprep.mubr.bf16.mxu1 %v15793_v18  ;;  %v14292_v6 = vld [vmem:[#allocation4 + $0x17b0] ss:$120 sps:$4 sm:$0xff]  }
 0x63e   :  { %9668 = vmatmul.mubr.bf16.gmra.mrb[28].mxu1 %v15810_v35 }
 0x63f   :  { %10311 = vmatmul.mubr.bf16.gmra.mrb[28].mxu0 %v15423_v19  ;;  %9685 = vmatpush1.bf16.xpose.msra.mxu1 %v14256_v55  ;;  %v14271_v19 = vld [vmem:[#allocation4 + $0x22c0] ss:$120 sps:$4 sm:$0xff]  }
 0x640   :  { %10326 = vmatpush1.bf16.xpose.msra.mxu0 %v14259_v3  ;;  %9686 = vmatprep.subr.bf16.mxu1 %v14264_v62  ;;  %v14295_v55 = vld [vmem:[#allocation4 + $0x1f08] ss:$120 sps:$4 sm:$0xff]   ;;  %v14300_v3 = vld [vmem:[#allocation4 + $0x18a4] ss:$120 sps:$4 sm:$0xff]  }
 0x641   :  { %10327 = vmatprep.subr.bf16.mxu0 %v14267_v41  ;;  %10351 = vmatprep.mubr.bf16.mxu0 %v15427_v25  ;;  %v14277_v25 = vld [vmem:[#allocation4 + $0x23b0] ss:$120 sps:$4 sm:$0xff]   ;;  %v14303_v62 = vld [vmem:[#allocation4 + $0x1ffc] ss:$120 sps:$4 sm:$0xff]   ;;  %v14298_v41 = vld [vmem:[#allocation4 + $0x18a0] ss:$120 sps:$4 sm:$0xff]  }
 0x642   :  { %9710 = vmatprep.mubr.bf16.mxu1 %v15812_v59 }
 0x647   :  { %9687 = vmatpush1.bf16.xpose.msra.mxu1 %v14262_v45  ;;  %v14306_v45 = vld [vmem:[#allocation4 + $0x1994] ss:$120 sps:$4 sm:$0xff]  }
 0x648   :  { %10328 = vmatpush1.bf16.xpose.msra.mxu0 %v14265_v53  ;;  %9688 = vmatprep.subr.bf16.mxu1 %v14270_v8  ;;  %v14309_v53 = vld [vmem:[#allocation4 + $0x20ec] ss:$120 sps:$4 sm:$0xff]  }
 0x649   :  { %10329 = vmatprep.subr.bf16.mxu0 %v14273_v51  ;;  %v17179_v51 = vld [vmem:[#allocation44_spill] sm:$0xff] }
 0x64f   :  { %9689 = vmatpush1.bf16.xpose.msra.mxu1 %v14268_v30 }
 0x650   :  { %10330 = vmatpush1.bf16.xpose.msra.mxu0 %v14271_v19  ;;  %9690 = vmatprep.subr.bf16.mxu1 %v14276_v49  ;;  %v14307_v49 = vld [vmem:[#allocation4 + $0x20e8] ss:$120 sps:$4 sm:$0xff]  }
 0x651   :  { %10331 = vmatprep.subr.bf16.mxu0 %v14279_v0 }
 0x657   :  { %9691 = vmatpush1.bf16.xpose.msra.mxu1 %v14274_v11 }
 0x658   :  { %10332 = vmatpush1.bf16.xpose.msra.mxu0 %v14277_v25  ;;  %9692 = vmatprep.subr.bf16.mxu1 %v14282_v60  ;;  %v14312_v25 = vld [vmem:[#allocation4 + $0x1a84] ss:$120 sps:$4 sm:$0xff]  }
 0x659   :  { %10333 = vmatprep.subr.bf16.mxu0 %v14285_v14  ;;  %v14315_v60 = vld [vmem:[#allocation4 + $0x21dc] ss:$120 sps:$4 sm:$0xff]  }
 0x65f   :  { %9693 = vmatpush1.bf16.xpose.msra.mxu1 %v14280_v63  ;;  %v17182_v63 = vld [vmem:[#allocation47_spill] sm:$0xff] }
 0x660   :  { %10334 = vmatpush1.bf16.xpose.msra.mxu0 %v14283_v52  ;;  %9694 = vmatprep.subr.bf16.mxu1 %v14288_v28 }
 0x661   :  { %10384 = vmatprep.subr.bf16.mxu0 %v14291_v7  ;;  %v17183_v7 = vld [vmem:[#allocation48_spill] sm:$0xff] }
 0x667   :  { %10352 = vmatmul.mubr.bf16.vlgmr.msra.gmra.mrb[16].mxu0 %v15488_v37  ;;  %9695 = vmatpush1.bf16.xpose.msra.mxu1 %v14286_v57  ;;  %v14301_v37 = vld [vmem:[#allocation4 + $0x1ff8] ss:$120 sps:$4 sm:$0xff]  }
 0x668   :  { %10385 = vmatpush1.bf16.xpose.msra.mxu0 %v14289_v29  ;;  %9696 = vmatprep.subr.bf16.mxu1 %v14294_v13  ;;  %v14310_v13 = vld [vmem:[#allocation4 + $0x1a80] ss:$120 sps:$4 sm:$0xff]  }
 0x669   :  { %10386 = vmatprep.subr.bf16.mxu0 %v14297_v61  ;;  %10359 = vmatprep.mubr.bf16.mxu0 %v15504_v39  ;;  %v14313_v61 = vld [vmem:[#allocation4 + $0x21d8] ss:$120 sps:$4 sm:$0xff]  }
 0x66f   :  { %10360 = vmatmul.mubr.bf16.gmra.mrb[20].mxu0 %v15538_v10  ;;  %9697 = vmatpush1.bf16.xpose.msra.mxu1 %v14292_v6 }
 0x670   :  { %10387 = vmatpush1.bf16.xpose.msra.mxu0 %v14295_v55  ;;  %9698 = vmatprep.subr.bf16.mxu1 %v14300_v3  ;;  %v14318_v3 = vld [vmem:[#allocation4 + $0x1b74] ss:$120 sps:$4 sm:$0xff]  }
 0x671   :  { %10388 = vmatprep.subr.bf16.mxu0 %v14303_v62  ;;  %10367 = vmatprep.mubr.bf16.mxu0 %v15548_v43  ;;  %v14304_v43 = vld [vmem:[#allocation4 + $0x1990] ss:$120 sps:$4 sm:$0xff]   ;;  %v14321_v62 = vld [vmem:[#allocation4 + $0x22cc] ss:$120 sps:$4 sm:$0xff]  }
 0x677   :  { %10368 = vmatmul.mubr.bf16.gmra.mrb[24].mxu0 %v15585_v2  ;;  %9699 = vmatpush1.bf16.xpose.msra.mxu1 %v14298_v41  ;;  %v17180_v2 = vld [vmem:[#allocation45_spill] sm:$0xff] }
 0x678   :  { %10389 = vmatpush1.bf16.xpose.msra.mxu0 %v14301_v37  ;;  %9700 = vmatprep.subr.bf16.mxu1 %v14306_v45  ;;  %v17186_v45 = vld [vmem:[#allocation51_spill] sm:$0xff] }
 0x679   :  { %10390 = vmatprep.subr.bf16.mxu0 %v14309_v53  ;;  %10375 = vmatprep.mubr.bf16.mxu0 %v15599_v33  ;;  %v17181_v33 = vld [vmem:[#allocation46_spill] sm:$0xff] }
 0x67a   :  { %v9055_v39 = vpop.f32.mrb[0].mxu0 }
 0x67b   :  { %v12410_v10 = vadd.f32 %v9055_v39, %v15922_v16  ;;  %v9057_v8 = vpop.f32.mrb[1].mxu0 }
 0x67c   :  { %v12411_v30 = vadd.f32 %v9057_v8, %v17179_v51  ;;  %v9059_v19 = vpop.f32.mrb[2].mxu0 }
 0x67d   :  { %11164 = vst [vmem:[%s16889_s3] sm:$0xff] %v12410_v10  ;;  %v12412_v0 = vadd.f32 %v9059_v19, %v17180_v2  ;;  %v9061_v11 = vpop.f32.mrb[3].mxu0  ;;  %v17187_v10 = vld [vmem:[#allocation52_spill] sm:$0xff] }
 0x67e   :  { %11165 = vst [vmem:[%s16889_s3 + $0x8] sm:$0xff] %v12411_v30  ;;  %v12413_v16 = vadd.f32 %v9061_v11, %v17181_v33  ;;  %v14316_v30 = vld [vmem:[#allocation4 + $0x1b70] ss:$120 sps:$4 sm:$0xff]   ;;  %v14327_v11 = vld [vmem:[#allocation4 + $0x23bc] ss:$120 sps:$4 sm:$0xff]  }
 0x67f   :  { %11169 = vst [vmem:[%s16889_s3 + $0x28] sm:$0xff] %v12412_v0  ;;  %10376 = vmatmul.mubr.bf16.gmra.mrb[28].mxu0 %v15625_v22  ;;  %9701 = vmatpush1.bf16.xpose.msra.mxu1 %v14304_v43  ;;  %v17184_v22 = vld [vmem:[#allocation49_spill] sm:$0xff]  ;;  %v14324_v0 = vld [vmem:[#allocation4 + $0x1c64] ss:$120 sps:$4 sm:$0xff]  }
 0x680   :  { %11170 = vst [vmem:[%s16889_s3 + $0x30] sm:$0xff] %v12413_v16  ;;  %10391 = vmatpush1.bf16.xpose.msra.mxu0 %v14307_v49  ;;  %9702 = vmatprep.subr.bf16.mxu1 %v14312_v25  ;;  %v14319_v19 = vld [vmem:[#allocation4 + $0x22c8] ss:$120 sps:$4 sm:$0xff]   ;;  %v17189_v25 = vld [vmem:[#allocation54_spill] sm:$0xff]  ;;  %v17190_v16 = vld [vmem:[#allocation55_spill] sm:$0xff] }
 0x681   :  { %10392 = vmatprep.subr.bf16.mxu0 %v14315_v60  ;;  %10416 = vmatprep.mubr.bf16.mxu0 %v15629_v4  ;;  %v17185_v4 = vld [vmem:[#allocation50_spill] sm:$0xff]  ;;  %v17188_v43 = vld [vmem:[#allocation53_spill] sm:$0xff] }
 0x682   :  { %v9065_v14 = vpop.f32.mrb[4].mxu0 }
 0x683   :  { %v12414_v52 = vadd.f32 %v9065_v14, %v17182_v63  ;;  %v9067_v28 = vpop.f32.mrb[5].mxu0 }
 0x684   :  { %v12415_v57 = vadd.f32 %v9067_v28, %v17183_v7  ;;  %v9069_v29 = vpop.f32.mrb[6].mxu0 }
 0x685   :  { %11174 = vst [vmem:[%s16889_s3 + $0x50] sm:$0xff] %v12414_v52  ;;  %v12416_v6 = vadd.f32 %v9069_v29, %v17184_v22  ;;  %v9071_v55 = vpop.f32.mrb[7].mxu0  ;;  %v17191_v52 = vld [vmem:[#allocation56_spill] sm:$0xff]  ;;  %v14325_v29 = vld [vmem:[#allocation4 + $0x23b8] ss:$120 sps:$4 sm:$0xff]  }
 0x686   :  { %11175 = vst [vmem:[%s16889_s3 + $0x58] sm:$0xff] %v12415_v57  ;;  %v12417_v41 = vadd.f32 %v9071_v55, %v17185_v4  ;;  %v14322_v57 = vld [vmem:[#allocation4 + $0x1c60] ss:$120 sps:$4 sm:$0xff]   ;;  %v14333_v55 = vld [vmem:[#allocation4 + $0x24ac] ss:$120 sps:$4 sm:$0xff]  }
 0x687   :  { %11179 = vst [vmem:[%s16889_s3 + $0x78] sm:$0xff] %v12416_v6  ;;  %9703 = vmatpush1.bf16.xpose.msra.mxu1 %v14310_v13  ;;  %v17192_v13 = vld [vmem:[#allocation57_spill] sm:$0xff] }
 0x688   :  { %11180 = vst [vmem:[%s16889_s3 + $0x80] sm:$0xff] %v12417_v41  ;;  %10393 = vmatpush1.bf16.xpose.msra.mxu0 %v14313_v61  ;;  %9704 = vmatprep.subr.bf16.mxu1 %v14318_v3  ;;  %v14330_v6 = vld [vmem:[#allocation4 + $0x1d54] ss:$120 sps:$4 sm:$0xff]   ;;  %v14328_v4 = vld [vmem:[#allocation4 + $0x1d50] ss:$120 sps:$4 sm:$0xff]  }
 0x689   :  { %10394 = vmatprep.subr.bf16.mxu0 %v14321_v62  ;;  %v17193_v3 = vld [vmem:[#allocation58_spill] sm:$0xff]  ;;  %v14331_v41 = vld [vmem:[#allocation4 + $0x24a8] ss:$120 sps:$4 sm:$0xff]  }
 0x68a   :  { %v9075_v37 = vpop.f32.mrb[8].mxu0 }
 0x68b   :  { %v12418_v53 = vadd.f32 %v9075_v37, %v17186_v45  ;;  %v9077_v39 = vpop.f32.mrb[9].mxu0  ;;  %v14336_v37 = vld [vmem:[#allocation4 + $0xf4c] ss:$120 sps:$4 sm:$0xff]  }
 0x68c   :  { %v12419_v8 = vadd.f32 %v9077_v39, %v17187_v10  ;;  %v9079_v51 = vpop.f32.mrb[10].mxu0  ;;  %v14339_v45 = vld [vmem:[#allocation4 + $0x1e24] ss:$120 sps:$4 sm:$0xff]   ;;  %v14337_v39 = vld [vmem:[#allocation4 + $0x1e20] ss:$120 sps:$4 sm:$0xff]  }
 0x68d   :  { %11184 = vst [vmem:[%s16889_s3 + $0xa0] sm:$0xff] %v12418_v53  ;;  %v12420_v49 = vadd.f32 %v9079_v51, %v17188_v43  ;;  %v9081_v2 = vpop.f32.mrb[11].mxu0  ;;  %v14334_v53 = vld [vmem:[#allocation4 + $0xf48] ss:$120 sps:$4 sm:$0xff]   ;;  %v14342_v10 = vld [vmem:[#allocation4 + $0x103c] ss:$120 sps:$4 sm:$0xff]  }
 0x68e   :  { %11185 = vst [vmem:[%s16889_s3 + $0xa8] sm:$0xff] %v12419_v8  ;;  %v12421_v60 = vadd.f32 %v9081_v2, %v17189_v25  ;;  %v14345_v8 = vld [vmem:[#allocation4 + $0x1f14] ss:$120 sps:$4 sm:$0xff]   ;;  %v17194_v51 = vld [vmem:[#allocation36_spill] sm:$0xff]  ;;  %v14343_v43 = vld [vmem:[#allocation4 + $0x1f10] ss:$120 sps:$4 sm:$0xff]  }
 0x68f   :  { %11189 = vst [vmem:[%s16889_s3 + $0xc8] sm:$0xff] %v12420_v49  ;;  %9705 = vmatpush1.bf16.xpose.msra.mxu1 %v14316_v30  ;;  %v17195_v30 = vld [vmem:[#allocation37_spill] sm:$0xff]  ;;  %v14351_v2 = vld [vmem:[#allocation4 + $0x2004] ss:$120 sps:$4 sm:$0xff]  }
 0x690   :  { %11190 = vst [vmem:[%s16889_s3 + $0xd0] sm:$0xff] %v12421_v60  ;;  %10395 = vmatpush1.bf16.xpose.msra.mxu0 %v14319_v19  ;;  %9706 = vmatprep.subr.bf16.mxu1 %v14324_v0  ;;  %v14340_v19 = vld [vmem:[#allocation4 + $0x1038] ss:$120 sps:$4 sm:$0xff]   ;;  %v14348_v49 = vld [vmem:[#allocation4 + $0x112c] ss:$120 sps:$4 sm:$0xff]  }
 0x691   :  { %10396 = vmatprep.subr.bf16.mxu0 %v14327_v11  ;;  %v17196_v0 = vld [vmem:[#allocation38_spill] sm:$0xff]  ;;  %v14346_v11 = vld [vmem:[#allocation4 + $0x1128] ss:$120 sps:$4 sm:$0xff]  }
 0x692   :  { %v9085_v33 = vpop.f32.mrb[12].mxu0  ;;  %v14354_v25 = vld [vmem:[#allocation4 + $0x121c] ss:$120 sps:$4 sm:$0xff]  }
 0x693   :  { %v12422_v14 = vadd.f32 %v9085_v33, %v17190_v16  ;;  %v9087_v63 = vpop.f32.mrb[13].mxu0  ;;  %v14357_v60 = vld [vmem:[#allocation4 + $0x20f4] ss:$120 sps:$4 sm:$0xff]   ;;  %v17198_v33 = vld [vmem:[#allocation40_spill] sm:$0xff]  ;;  %v14352_v16 = vld [vmem:[#allocation4 + $0x1218] ss:$120 sps:$4 sm:$0xff]  }
 0x694   :  { %v12423_v28 = vadd.f32 %v9087_v63, %v17191_v52  ;;  %v9089_v7 = vpop.f32.mrb[14].mxu0  ;;  %v14363_v63 = vld [vmem:[#allocation4 + $0x21e4] ss:$120 sps:$4 sm:$0xff]   ;;  %v17200_v52 = vld [vmem:[#allocation42_spill] sm:$0xff] }
 0x695   :  { %11194 = vst [vmem:[%s16889_s3 + $0xf0] sm:$0xff] %v12422_v14  ;;  %v12424_v61 = vadd.f32 %v9089_v7, %v17192_v13  ;;  %v9091_v22 = vpop.f32.mrb[15].mxu0  ;;  %v14360_v14 = vld [vmem:[#allocation4 + $0x130c] ss:$120 sps:$4 sm:$0xff]   ;;  %v14366_v7 = vld [vmem:[#allocation4 + $0x13fc] ss:$120 sps:$4 sm:$0xff]  }
 0x696   :  { %11195 = vst [vmem:[%s16889_s3 + $0xf8] sm:$0xff] %v12423_v28  ;;  %v12425_v62 = vadd.f32 %v9091_v22, %v17193_v3  ;;  %v14358_v28 = vld [vmem:[#allocation4 + $0x1308] ss:$120 sps:$4 sm:$0xff]   ;;  %v14372_v13 = vld [vmem:[#allocation4 + $0x14ec] ss:$120 sps:$4 sm:$0xff]  }
 0x697   :  { %11199 = vst [vmem:[%s16889_s3 + $0x118] sm:$0xff] %v12424_v61  ;;  %9707 = vmatpush1.bf16.xpose.msra.mxu1 %v14322_v57  ;;  %v14369_v57 = vld [vmem:[#allocation4 + $0x22d4] ss:$120 sps:$4 sm:$0xff]   ;;  %v14375_v61 = vld [vmem:[#allocation4 + $0x23c4] ss:$120 sps:$4 sm:$0xff]  }
 0x698   :  { %11200 = vst [vmem:[%s16889_s3 + $0x120] sm:$0xff] %v12425_v62  ;;  %10397 = vmatpush1.bf16.xpose.msra.mxu0 %v14325_v29  ;;  %9708 = vmatprep.subr.bf16.mxu1 %v14330_v6  ;;  %v14364_v29 = vld [vmem:[#allocation4 + $0x13f8] ss:$120 sps:$4 sm:$0xff]   ;;  %v14370_v22 = vld [vmem:[#allocation4 + $0x14e8] ss:$120 sps:$4 sm:$0xff]  }
 0x699   :  { %10398 = vmatprep.subr.bf16.mxu0 %v14333_v55  ;;  %v14378_v6 = vld [vmem:[#allocation4 + $0x15dc] ss:$120 sps:$4 sm:$0xff]   ;;  %v14376_v3 = vld [vmem:[#allocation4 + $0x15d8] ss:$120 sps:$4 sm:$0xff]  }
 0x69a   :  { %v14381_v55 = vld [vmem:[#allocation4 + $0x24b4] ss:$120 sps:$4 sm:$0xff]   ;;  %v14379_v62 = vld [vmem:[#allocation4 + $0x24b0] ss:$120 sps:$4 sm:$0xff]  }
 0x69f   :  { %9709 = vmatpush1.bf16.xpose.msra.mxu1 %v14328_v4  ;;  %v14384_v4 = vld [vmem:[#allocation4 + $0x16cc] ss:$120 sps:$4 sm:$0xff]  }
 0x6a0   :  { %10399 = vmatpush1.bf16.xpose.msra.mxu0 %v14331_v41  ;;  %9751 = vmatprep.subr.bf16.mxu1 %v14336_v37  ;;  %v14387_v41 = vld [vmem:[#allocation4 + $0x1e2c] ss:$120 sps:$4 sm:$0xff]   ;;  %v14382_v37 = vld [vmem:[#allocation4 + $0x16c8] ss:$120 sps:$4 sm:$0xff]  }
 0x6a1   :  { %10449 = vmatprep.subr.bf16.mxu0 %v14339_v45  ;;  %v14385_v45 = vld [vmem:[#allocation4 + $0x1e28] ss:$120 sps:$4 sm:$0xff]  }
 0x6a6   :  { %9711 = vmatmul.mubr.bf16.vlgmr.msra.gmra.mrb[16].mxu1 %v17194_v51 }
 0x6a7   :  { %10417 = vmatmul.mubr.bf16.vlgmr.msra.gmra.mrb[16].mxu0 %v15690_v54  ;;  %9752 = vmatpush1.bf16.xpose.msra.mxu1 %v14334_v53  ;;  %v17197_v54 = vld [vmem:[#allocation39_spill] sm:$0xff] }
 0x6a8   :  { %10450 = vmatpush1.bf16.xpose.msra.mxu0 %v14337_v39  ;;  %9753 = vmatprep.subr.bf16.mxu1 %v14342_v10  ;;  %v14390_v53 = vld [vmem:[#allocation4 + $0x17bc] ss:$120 sps:$4 sm:$0xff]   ;;  %v14388_v10 = vld [vmem:[#allocation4 + $0x17b8] ss:$120 sps:$4 sm:$0xff]  }
 0x6a9   :  { %10451 = vmatprep.subr.bf16.mxu0 %v14345_v8  ;;  %10424 = vmatprep.mubr.bf16.mxu0 %v15700_v58  ;;  %v14349_v58 = vld [vmem:[#allocation4 + $0x2000] ss:$120 sps:$4 sm:$0xff]   ;;  %v14393_v39 = vld [vmem:[#allocation4 + $0x1f1c] ss:$120 sps:$4 sm:$0xff]  }
 0x6aa   :  { %9720 = vmatprep.mubr.bf16.mxu1 %v17195_v30  ;;  %v14391_v8 = vld [vmem:[#allocation4 + $0x1f18] ss:$120 sps:$4 sm:$0xff]  }
 0x6ae   :  { %9721 = vmatmul.mubr.bf16.gmra.mrb[20].mxu1 %v17196_v0 }
 0x6af   :  { %10425 = vmatmul.mubr.bf16.gmra.mrb[20].mxu0 %v15734_v20  ;;  %9754 = vmatpush1.bf16.xpose.msra.mxu1 %v14340_v19  ;;  %v17199_v20 = vld [vmem:[#allocation41_spill] sm:$0xff] }
 0x6b0   :  { %10452 = vmatpush1.bf16.xpose.msra.mxu0 %v14343_v43  ;;  %9755 = vmatprep.subr.bf16.mxu1 %v14348_v49  ;;  %v14396_v19 = vld [vmem:[#allocation4 + $0x18ac] ss:$120 sps:$4 sm:$0xff]   ;;  %v17202_v49 = vld [vmem:[#allocation11_spill] sm:$0xff] }
 0x6b1   :  { %10453 = vmatprep.subr.bf16.mxu0 %v14351_v2  ;;  %10432 = vmatprep.mubr.bf16.mxu0 %v15744_v44  ;;  %v14355_v44 = vld [vmem:[#allocation4 + $0x20f0] ss:$120 sps:$4 sm:$0xff]   ;;  %v14399_v43 = vld [vmem:[#allocation4 + $0x200c] ss:$120 sps:$4 sm:$0xff]  }
 0x6b2   :  { %9730 = vmatprep.mubr.bf16.mxu1 %v17197_v54  ;;  %v14394_v2 = vld [vmem:[#allocation4 + $0x18a8] ss:$120 sps:$4 sm:$0xff]  }
 0x6b6   :  { %9731 = vmatmul.mubr.bf16.gmra.mrb[24].mxu1 %v17198_v33 }
 0x6b7   :  { %10433 = vmatmul.mubr.bf16.gmra.mrb[24].mxu0 %v15780_v47  ;;  %9756 = vmatpush1.bf16.xpose.msra.mxu1 %v14346_v11  ;;  %v17201_v47 = vld [vmem:[#allocation43_spill] sm:$0xff] }
 0x6b8   :  { %10454 = vmatpush1.bf16.xpose.msra.mxu0 %v14349_v58  ;;  %9757 = vmatprep.subr.bf16.mxu1 %v14354_v25  ;;  %v14402_v11 = vld [vmem:[#allocation4 + $0x199c] ss:$120 sps:$4 sm:$0xff]   ;;  %v17203_v25 = vld [vmem:[#allocation12_spill] sm:$0xff] }
 0x6b9   :  { %10455 = vmatprep.subr.bf16.mxu0 %v14357_v60  ;;  %10440 = vmatprep.mubr.bf16.mxu0 %v15784_v50  ;;  %v14361_v50 = vld [vmem:[#allocation4 + $0x21e0] ss:$120 sps:$4 sm:$0xff]   ;;  %v14405_v58 = vld [vmem:[#allocation4 + $0x20fc] ss:$120 sps:$4 sm:$0xff]   ;;  %v14408_v60 = vld [vmem:[#allocation4 + $0x1a8c] ss:$120 sps:$4 sm:$0xff]  }
 0x6ba   :  { %9740 = vmatprep.mubr.bf16.mxu1 %v17199_v20 }
 0x6be   :  { %9741 = vmatmul.mubr.bf16.gmra.mrb[28].mxu1 %v17200_v52 }
 0x6bf   :  { %10441 = vmatmul.mubr.bf16.gmra.mrb[28].mxu0 %v15808_v9  ;;  %9758 = vmatpush1.bf16.xpose.msra.mxu1 %v14352_v16  ;;  %v14367_v9 = vld [vmem:[#allocation4 + $0x22d0] ss:$120 sps:$4 sm:$0xff]   ;;  %v14411_v16 = vld [vmem:[#allocation4 + $0x21ec] ss:$120 sps:$4 sm:$0xff]  }
 0x6c0   :  { %10456 = vmatpush1.bf16.xpose.msra.mxu0 %v14355_v44  ;;  %9759 = vmatprep.subr.bf16.mxu1 %v14360_v14  ;;  %v17204_v44 = vld [vmem:[#allocation15_spill] sm:$0xff]  ;;  %v14406_v14 = vld [vmem:[#allocation4 + $0x1a88] ss:$120 sps:$4 sm:$0xff]  }
 0x6c1   :  { %10457 = vmatprep.subr.bf16.mxu0 %v14363_v63  ;;  %10481 = vmatprep.mubr.bf16.mxu0 %v15032_v46  ;;  %v14373_v46 = vld [vmem:[#allocation4 + $0x23c0] ss:$120 sps:$4 sm:$0xff]  }
 0x6c2   :  { %9783 = vmatprep.mubr.bf16.mxu1 %v17201_v47  ;;  %v14409_v63 = vld [vmem:[#allocation4 + $0x21e8] ss:$120 sps:$4 sm:$0xff]  }
 0x6c7   :  { %9760 = vmatpush1.bf16.xpose.msra.mxu1 %v14358_v28  ;;  %v14414_v28 = vld [vmem:[#allocation4 + $0x1b7c] ss:$120 sps:$4 sm:$0xff]  }
 0x6c8   :  { %10458 = vmatpush1.bf16.xpose.msra.mxu0 %v14361_v50  ;;  %9761 = vmatprep.subr.bf16.mxu1 %v14366_v7  ;;  %v14417_v50 = vld [vmem:[#allocation4 + $0x22dc] ss:$120 sps:$4 sm:$0xff]   ;;  %v14415_v7 = vld [vmem:[#allocation4 + $0x22d8] ss:$120 sps:$4 sm:$0xff]  }
 0x6c9   :  { %10459 = vmatprep.subr.bf16.mxu0 %v14369_v57  ;;  %v14420_v57 = vld [vmem:[#allocation4 + $0x1c6c] ss:$120 sps:$4 sm:$0xff]  }
 0x6cf   :  { %9762 = vmatpush1.bf16.xpose.msra.mxu1 %v14364_v29  ;;  %v14423_v29 = vld [vmem:[#allocation4 + $0x23cc] ss:$120 sps:$4 sm:$0xff]  }
 0x6d0   :  { %10460 = vmatpush1.bf16.xpose.msra.mxu0 %v14367_v9  ;;  %9763 = vmatprep.subr.bf16.mxu1 %v14372_v13  ;;  %v14421_v9 = vld [vmem:[#allocation4 + $0x23c8] ss:$120 sps:$4 sm:$0xff]   ;;  %v14426_v13 = vld [vmem:[#allocation4 + $0x1d5c] ss:$120 sps:$4 sm:$0xff]  }
 0x6d1   :  { %10461 = vmatprep.subr.bf16.mxu0 %v14375_v61  ;;  %v14429_v61 = vld [vmem:[#allocation4 + $0x24bc] ss:$120 sps:$4 sm:$0xff]  }
 0x6d7   :  { %9764 = vmatpush1.bf16.xpose.msra.mxu1 %v14370_v22  ;;  %v14424_v22 = vld [vmem:[#allocation4 + $0x1d58] ss:$120 sps:$4 sm:$0xff]  }
 0x6d8   :  { %10462 = vmatpush1.bf16.xpose.msra.mxu0 %v14373_v46  ;;  %9765 = vmatprep.subr.bf16.mxu1 %v14378_v6  ;;  %v14427_v46 = vld [vmem:[#allocation4 + $0x24b8] ss:$120 sps:$4 sm:$0xff]   ;;  %v14432_v6 = vld [vmem:[#allocation4 + $0xf54] ss:$120 sps:$4 sm:$0xff]  }
 0x6d9   :  { %10463 = vmatprep.subr.bf16.mxu0 %v14381_v55  ;;  %v14435_v55 = vld [vmem:[#allocation4 + $0x1e34] ss:$120 sps:$4 sm:$0xff]  }
 0x6df   :  { %9766 = vmatpush1.bf16.xpose.msra.mxu1 %v14376_v3  ;;  %v14430_v3 = vld [vmem:[#allocation4 + $0xf50] ss:$120 sps:$4 sm:$0xff]  }
 0x6e0   :  { %10464 = vmatpush1.bf16.xpose.msra.mxu0 %v14379_v62  ;;  %9767 = vmatprep.subr.bf16.mxu1 %v14384_v4  ;;  %v14433_v62 = vld [vmem:[#allocation4 + $0x1e30] ss:$120 sps:$4 sm:$0xff]   ;;  %v14438_v4 = vld [vmem:[#allocation4 + $0x1044] ss:$120 sps:$4 sm:$0xff]  }
 0x6e1   :  { %10514 = vmatprep.subr.bf16.mxu0 %v14387_v41  ;;  %v14441_v41 = vld [vmem:[#allocation4 + $0x1f24] ss:$120 sps:$4 sm:$0xff]  }
 0x6e7   :  { %10482 = vmatmul.mubr.bf16.vlgmr.msra.gmra.mrb[16].mxu0 %v17131_v42  ;;  %9768 = vmatpush1.bf16.xpose.msra.mxu1 %v14382_v37  ;;  %v14397_v42 = vld [vmem:[#allocation4 + $0x2008] ss:$120 sps:$4 sm:$0xff]   ;;  %v17205_v37 = vld [vmem:[#allocation59_spill] sm:$0xff] }
 0x6e8   :  { %10515 = vmatpush1.bf16.xpose.msra.mxu0 %v14385_v45  ;;  %9769 = vmatprep.subr.bf16.mxu1 %v14390_v53  ;;  %v17206_v45 = vld [vmem:[#allocation16_spill] sm:$0xff]  ;;  %v17207_v53 = vld [vmem:[#allocation17_spill] sm:$0xff] }
 0x6e9   :  { %10516 = vmatprep.subr.bf16.mxu0 %v14393_v39  ;;  %10489 = vmatprep.mubr.bf16.mxu0 %v17132_v23  ;;  %v14400_v23 = vld [vmem:[#allocation4 + $0x1998] ss:$120 sps:$4 sm:$0xff]   ;;  %v17208_v39 = vld [vmem:[#allocation60_spill] sm:$0xff] }
 0x6ef   :  { %10490 = vmatmul.mubr.bf16.gmra.mrb[20].mxu0 %v17135_v15  ;;  %9770 = vmatpush1.bf16.xpose.msra.mxu1 %v14388_v10  ;;  %v14403_v15 = vld [vmem:[#allocation4 + $0x20f8] ss:$120 sps:$4 sm:$0xff]  }
 0x6f0   :  { %10517 = vmatpush1.bf16.xpose.msra.mxu0 %v14391_v8  ;;  %9771 = vmatprep.subr.bf16.mxu1 %v14396_v19  ;;  %v14436_v10 = vld [vmem:[#allocation4 + $0x1040] ss:$120 sps:$4 sm:$0xff]   ;;  %v14444_v19 = vld [vmem:[#allocation4 + $0x1134] ss:$120 sps:$4 sm:$0xff]  }
 0x6f1   :  { %10518 = vmatprep.subr.bf16.mxu0 %v14399_v43  ;;  %10497 = vmatprep.mubr.bf16.mxu0 %v17202_v49  ;;  %v14439_v8 = vld [vmem:[#allocation4 + $0x1f20] ss:$120 sps:$4 sm:$0xff]   ;;  %v14447_v43 = vld [vmem:[#allocation4 + $0x2014] ss:$120 sps:$4 sm:$0xff]  }
 0x6f2   :  { %v17209_v49 = vld [vmem:[#allocation18_spill] sm:$0xff] }
 0x6f7   :  { %10498 = vmatmul.mubr.bf16.gmra.mrb[24].mxu0 %v17203_v25  ;;  %9772 = vmatpush1.bf16.xpose.msra.mxu1 %v14394_v2  ;;  %v17210_v2 = vld [vmem:[#allocation61_spill] sm:$0xff] }
 0x6f8   :  { %10519 = vmatpush1.bf16.xpose.msra.mxu0 %v14397_v42  ;;  %9773 = vmatprep.subr.bf16.mxu1 %v14402_v11  ;;  %v17211_v42 = vld [vmem:[#allocation19_spill] sm:$0xff]  ;;  %v17212_v11 = vld [vmem:[#allocation62_spill] sm:$0xff] }
 0x6f9   :  { %10520 = vmatprep.subr.bf16.mxu0 %v14405_v58  ;;  %10505 = vmatprep.mubr.bf16.mxu0 %v17140_v36  ;;  %v14412_v36 = vld [vmem:[#allocation4 + $0x1b78] ss:$120 sps:$4 sm:$0xff]  }
 0x6fa   :  { %v14442_v58 = vld [vmem:[#allocation4 + $0x1130] ss:$120 sps:$4 sm:$0xff]  }
 0x6fb   :  { %v14445_v25 = vld [vmem:[#allocation4 + $0x2010] ss:$120 sps:$4 sm:$0xff]  }
 0x6ff   :  { %10506 = vmatmul.mubr.bf16.gmra.mrb[28].mxu0 %v17143_v31  ;;  %9774 = vmatpush1.bf16.xpose.msra.mxu1 %v14400_v23  ;;  %v14418_v31 = vld [vmem:[#allocation4 + $0x1c68] ss:$120 sps:$4 sm:$0xff]   ;;  %v14450_v23 = vld [vmem:[#allocation4 + $0x1224] ss:$120 sps:$4 sm:$0xff]  }
 0x700   :  { %10521 = vmatpush1.bf16.xpose.msra.mxu0 %v14403_v15  ;;  %9775 = vmatprep.subr.bf16.mxu1 %v14408_v60  ;;  %v14453_v15 = vld [vmem:[#allocation4 + $0x2104] ss:$120 sps:$4 sm:$0xff]  }
 0x701   :  { %10522 = vmatprep.subr.bf16.mxu0 %v14411_v16  ;;  %10546 = vmatprep.mubr.bf16.mxu0 %v17204_v44  ;;  %v17213_v60 = vld [vmem:[#allocation20_spill] sm:$0xff]  ;;  %v17214_v16 = vld [vmem:[#allocation63_spill] sm:$0xff] }
 0x702   :  { %v17215_v44 = vld [vmem:[#allocation64_spill] sm:$0xff] }
 0x707   :  { %9776 = vmatpush1.bf16.xpose.msra.mxu1 %v14406_v14  ;;  %v14448_v14 = vld [vmem:[#allocation4 + $0x1220] ss:$120 sps:$4 sm:$0xff]  }
 0x708   :  { %10523 = vmatpush1.bf16.xpose.msra.mxu0 %v14409_v63  ;;  %9777 = vmatprep.subr.bf16.mxu1 %v14414_v28  ;;  %v14451_v63 = vld [vmem:[#allocation4 + $0x2100] ss:$120 sps:$4 sm:$0xff]   ;;  %v14456_v28 = vld [vmem:[#allocation4 + $0x1314] ss:$120 sps:$4 sm:$0xff]  }
 0x709   :  { %10524 = vmatprep.subr.bf16.mxu0 %v14417_v50  ;;  %v14459_v50 = vld [vmem:[#allocation4 + $0x21f4] ss:$120 sps:$4 sm:$0xff]  }
 0x70f   :  { %9778 = vmatpush1.bf16.xpose.msra.mxu1 %v14412_v36  ;;  %v17216_v36 = vld [vmem:[#allocation65_spill] sm:$0xff] }
 0x710   :  { %10525 = vmatpush1.bf16.xpose.msra.mxu0 %v14415_v7  ;;  %9779 = vmatprep.subr.bf16.mxu1 %v14420_v57  ;;  %v17217_v7 = vld [vmem:[#allocation23_spill] sm:$0xff]  ;;  %v17218_v57 = vld [vmem:[#allocation66_spill] sm:$0xff] }
 0x711   :  { %10526 = vmatprep.subr.bf16.mxu0 %v14423_v29  ;;  %v14454_v29 = vld [vmem:[#allocation4 + $0x1310] ss:$120 sps:$4 sm:$0xff]  }
 0x717   :  { %9780 = vmatpush1.bf16.xpose.msra.mxu1 %v14418_v31  ;;  %v14462_v31 = vld [vmem:[#allocation4 + $0x1404] ss:$120 sps:$4 sm:$0xff]  }
 0x718   :  { %10527 = vmatpush1.bf16.xpose.msra.mxu0 %v14421_v9  ;;  %9781 = vmatprep.subr.bf16.mxu1 %v14426_v13  ;;  %v14465_v9 = vld [vmem:[#allocation4 + $0x22e4] ss:$120 sps:$4 sm:$0xff]   ;;  %v14460_v13 = vld [vmem:[#allocation4 + $0x1400] ss:$120 sps:$4 sm:$0xff]  }
 0x719   :  { %10528 = vmatprep.subr.bf16.mxu0 %v14429_v61  ;;  %v14468_v61 = vld [vmem:[#allocation4 + $0x14f4] ss:$120 sps:$4 sm:$0xff]  }
 0x71f   :  { %9782 = vmatpush1.bf16.xpose.msra.mxu1 %v14424_v22  ;;  %v14471_v22 = vld [vmem:[#allocation4 + $0x23d4] ss:$120 sps:$4 sm:$0xff]  }
 0x720   :  { %10529 = vmatpush1.bf16.xpose.msra.mxu0 %v14427_v46  ;;  %9824 = vmatprep.subr.bf16.mxu1 %v14432_v6  ;;  %v14466_v46 = vld [vmem:[#allocation4 + $0x14f0] ss:$120 sps:$4 sm:$0xff]  }
 0x721   :  { %10579 = vmatprep.subr.bf16.mxu0 %v14435_v55  ;;  %v14469_v6 = vld [vmem:[#allocation4 + $0x23d0] ss:$120 sps:$4 sm:$0xff]   ;;  %v14474_v55 = vld [vmem:[#allocation4 + $0x15e4] ss:$120 sps:$4 sm:$0xff]  }
 0x726   :  { %9784 = vmatmul.mubr.bf16.vlgmr.msra.gmra.mrb[16].mxu1 %v17205_v37 }
 0x727   :  { %10547 = vmatmul.mubr.bf16.vlgmr.msra.gmra.mrb[16].mxu0 %v17206_v45  ;;  %9825 = vmatpush1.bf16.xpose.msra.mxu1 %v14430_v3  ;;  %v14477_v3 = vld [vmem:[#allocation4 + $0x24c4] ss:$120 sps:$4 sm:$0xff]  }
 0x728   :  { %10580 = vmatpush1.bf16.xpose.msra.mxu0 %v14433_v62  ;;  %9826 = vmatprep.subr.bf16.mxu1 %v14438_v4  ;;  %v14472_v62 = vld [vmem:[#allocation4 + $0x15e0] ss:$120 sps:$4 sm:$0xff]   ;;  %v14483_v45 = vld [vmem:[#allocation4 + $0x1e3c] ss:$120 sps:$4 sm:$0xff]  }
 0x729   :  { %10581 = vmatprep.subr.bf16.mxu0 %v14441_v41  ;;  %10554 = vmatprep.mubr.bf16.mxu0 %v17207_v53  ;;  %v14475_v4 = vld [vmem:[#allocation4 + $0x24c0] ss:$120 sps:$4 sm:$0xff]   ;;  %v14480_v41 = vld [vmem:[#allocation4 + $0x16d4] ss:$120 sps:$4 sm:$0xff]   ;;  %v14478_v53 = vld [vmem:[#allocation4 + $0x16d0] ss:$120 sps:$4 sm:$0xff]  }
 0x72a   :  { %9793 = vmatprep.mubr.bf16.mxu1 %v17208_v39 }
 0x72e   :  { %9794 = vmatmul.mubr.bf16.gmra.mrb[20].mxu1 %v17210_v2 }
 0x72f   :  { %10555 = vmatmul.mubr.bf16.gmra.mrb[20].mxu0 %v17209_v49  ;;  %9827 = vmatpush1.bf16.xpose.msra.mxu1 %v14436_v10  ;;  %v14481_v10 = vld [vmem:[#allocation4 + $0x1e38] ss:$120 sps:$4 sm:$0xff]   ;;  %v17220_v49 = vld [vmem:[#allocation25_spill] sm:$0xff] }
 0x730   :  { %10582 = vmatpush1.bf16.xpose.msra.mxu0 %v14439_v8  ;;  %9828 = vmatprep.subr.bf16.mxu1 %v14444_v19  ;;  %v14486_v8 = vld [vmem:[#allocation4 + $0x17c4] ss:$120 sps:$4 sm:$0xff]  }
 0x731   :  { %10583 = vmatprep.subr.bf16.mxu0 %v14447_v43  ;;  %10562 = vmatprep.mubr.bf16.mxu0 %v17211_v42  ;;  %v14489_v19 = vld [vmem:[#allocation4 + $0x1f2c] ss:$120 sps:$4 sm:$0xff]   ;;  %v14484_v42 = vld [vmem:[#allocation4 + $0x17c0] ss:$120 sps:$4 sm:$0xff]  }
 0x732   :  { %9803 = vmatprep.mubr.bf16.mxu1 %v17212_v11  ;;  %v17219_v43 = vld [vmem:[#allocation24_spill] sm:$0xff] }
 0x736   :  { %9804 = vmatmul.mubr.bf16.gmra.mrb[24].mxu1 %v17214_v16 }
 0x737   :  { %10563 = vmatmul.mubr.bf16.gmra.mrb[24].mxu0 %v17213_v60  ;;  %9829 = vmatpush1.bf16.xpose.msra.mxu1 %v14442_v58  ;;  %v14487_v58 = vld [vmem:[#allocation4 + $0x1f28] ss:$120 sps:$4 sm:$0xff]   ;;  %v14493_v60 = vld [vmem:[#allocation4 + $0x2018] ss:$120 sps:$4 sm:$0xff]  }
 0x738   :  { %10584 = vmatpush1.bf16.xpose.msra.mxu0 %v14445_v25  ;;  %9830 = vmatprep.subr.bf16.mxu1 %v14450_v23  ;;  %v14492_v25 = vld [vmem:[#allocation4 + $0x18b4] ss:$120 sps:$4 sm:$0xff]  }
 0x739   :  { %10585 = vmatprep.subr.bf16.mxu0 %v14453_v15  ;;  %10570 = vmatprep.mubr.bf16.mxu0 %v17156_v12  ;;  %v14457_v12 = vld [vmem:[#allocation4 + $0x21f0] ss:$120 sps:$4 sm:$0xff]   ;;  %v14495_v23 = vld [vmem:[#allocation4 + $0x201c] ss:$120 sps:$4 sm:$0xff]  }
 0x73a   :  { %9813 = vmatprep.mubr.bf16.mxu1 %v17215_v44  ;;  %v14490_v15 = vld [vmem:[#allocation4 + $0x18b0] ss:$120 sps:$4 sm:$0xff]  }
 0x73e   :  { %9814 = vmatmul.mubr.bf16.gmra.mrb[28].mxu1 %v17216_v36 }
 0x73f   :  { %10571 = vmatmul.mubr.bf16.gmra.mrb[28].mxu0 %v17159_v17  ;;  %9831 = vmatpush1.bf16.xpose.msra.mxu1 %v14448_v14  ;;  %v14463_v17 = vld [vmem:[#allocation4 + $0x22e0] ss:$120 sps:$4 sm:$0xff]   ;;  %v14498_v14 = vld [vmem:[#allocation4 + $0x19a4] ss:$120 sps:$4 sm:$0xff]  }
 0x740   :  { %10586 = vmatpush1.bf16.xpose.msra.mxu0 %v14451_v63  ;;  %9832 = vmatprep.subr.bf16.mxu1 %v14456_v28  ;;  %v14501_v63 = vld [vmem:[#allocation4 + $0x210c] ss:$120 sps:$4 sm:$0xff]   ;;  %v14496_v28 = vld [vmem:[#allocation4 + $0x19a0] ss:$120 sps:$4 sm:$0xff]  }
 0x741   :  { %10587 = vmatprep.subr.bf16.mxu0 %v14459_v50  ;;  %10611 = vmatprep.mubr.bf16.mxu0 %v17217_v7  ;;  %v14504_v50 = vld [vmem:[#allocation4 + $0x1a94] ss:$120 sps:$4 sm:$0xff]  }
 0x742   :  { %9856 = vmatprep.mubr.bf16.mxu1 %v17218_v57  ;;  %v14507_v7 = vld [vmem:[#allocation4 + $0x21fc] ss:$120 sps:$4 sm:$0xff]  }
 0x747   :  { %9833 = vmatpush1.bf16.xpose.msra.mxu1 %v14454_v29  ;;  %v14510_v29 = vld [vmem:[#allocation4 + $0x1b84] ss:$120 sps:$4 sm:$0xff]  }
 0x748   :  { %10588 = vmatpush1.bf16.xpose.msra.mxu0 %v14457_v12  ;;  %9834 = vmatprep.subr.bf16.mxu1 %v14462_v31  ;;  %v14513_v12 = vld [vmem:[#allocation4 + $0x22ec] ss:$120 sps:$4 sm:$0xff]   ;;  %v14511_v31 = vld [vmem:[#allocation4 + $0x22e8] ss:$120 sps:$4 sm:$0xff]  }
 0x749   :  { %10589 = vmatprep.subr.bf16.mxu0 %v14465_v9  ;;  %v14516_v9 = vld [vmem:[#allocation4 + $0x1c74] ss:$120 sps:$4 sm:$0xff]  }
 0x74f   :  { %9835 = vmatpush1.bf16.xpose.msra.mxu1 %v14460_v13  ;;  %v14519_v13 = vld [vmem:[#allocation4 + $0x23dc] ss:$120 sps:$4 sm:$0xff]  }
 0x750   :  { %10590 = vmatpush1.bf16.xpose.msra.mxu0 %v14463_v17  ;;  %9836 = vmatprep.subr.bf16.mxu1 %v14468_v61  ;;  %v14517_v17 = vld [vmem:[#allocation4 + $0x23d8] ss:$120 sps:$4 sm:$0xff]   ;;  %v14522_v61 = vld [vmem:[#allocation4 + $0x1d64] ss:$120 sps:$4 sm:$0xff]  }
 0x751   :  { %10591 = vmatprep.subr.bf16.mxu0 %v14471_v22  ;;  %v14520_v22 = vld [vmem:[#allocation4 + $0x1d60] ss:$120 sps:$4 sm:$0xff]  }
 0x757   :  { %9837 = vmatpush1.bf16.xpose.msra.mxu1 %v14466_v46  ;;  %v14523_v46 = vld [vmem:[#allocation4 + $0x24c8] ss:$120 sps:$4 sm:$0xff]  }
 0x758   :  { %10592 = vmatpush1.bf16.xpose.msra.mxu0 %v14469_v6  ;;  %9838 = vmatprep.subr.bf16.mxu1 %v14474_v55  ;;  %v14528_v6 = vld [vmem:[#allocation4 + $0xf5c] ss:$120 sps:$4 sm:$0xff]  }
 0x759   :  { %10593 = vmatprep.subr.bf16.mxu0 %v14477_v3  ;;  %v14531_v55 = vld [vmem:[#allocation4 + $0x1e44] ss:$120 sps:$4 sm:$0xff]   ;;  %v14526_v3 = vld [vmem:[#allocation4 + $0xf58] ss:$120 sps:$4 sm:$0xff]  }
 0x75f   :  { %9839 = vmatpush1.bf16.xpose.msra.mxu1 %v14472_v62  ;;  %v14529_v62 = vld [vmem:[#allocation4 + $0x1e40] ss:$120 sps:$4 sm:$0xff]  }
 0x760   :  { %10594 = vmatpush1.bf16.xpose.msra.mxu0 %v14475_v4  ;;  %9840 = vmatprep.subr.bf16.mxu1 %v14480_v41  ;;  %v14534_v4 = vld [vmem:[#allocation4 + $0x104c] ss:$120 sps:$4 sm:$0xff]  }
 0x761   :  { %10644 = vmatprep.subr.bf16.mxu0 %v14483_v45  ;;  %v14537_v41 = vld [vmem:[#allocation4 + $0x1f34] ss:$120 sps:$4 sm:$0xff]   ;;  %v17221_v45 = vld [vmem:[#allocation67_spill] sm:$0xff] }
 0x767   :  { %10612 = vmatmul.mubr.bf16.vlgmr.msra.gmra.mrb[16].mxu0 %v17219_v43  ;;  %9841 = vmatpush1.bf16.xpose.msra.mxu1 %v14478_v53  ;;  %v17222_v53 = vld [vmem:[#allocation68_spill] sm:$0xff] }
 0x768   :  { %10645 = vmatpush1.bf16.xpose.msra.mxu0 %v14481_v10  ;;  %9842 = vmatprep.subr.bf16.mxu1 %v14486_v8  ;;  %v14532_v10 = vld [vmem:[#allocation4 + $0x1048] ss:$120 sps:$4 sm:$0xff]   ;;  %v14543_v43 = vld [vmem:[#allocation4 + $0x2024] ss:$120 sps:$4 sm:$0xff]  }
 0x769   :  { %10646 = vmatprep.subr.bf16.mxu0 %v14489_v19  ;;  %10619 = vmatprep.mubr.bf16.mxu0 %v17220_v49  ;;  %v14535_v8 = vld [vmem:[#allocation4 + $0x1f30] ss:$120 sps:$4 sm:$0xff]   ;;  %v14540_v19 = vld [vmem:[#allocation4 + $0x113c] ss:$120 sps:$4 sm:$0xff]  }
 0x76a   :  { %v17223_v49 = vld [vmem:[#allocation69_spill] sm:$0xff] }
 0x76f   :  { %10620 = vmatmul.mubr.bf16.gmra.mrb[20].mxu0 %v17167_v56  ;;  %9843 = vmatpush1.bf16.xpose.msra.mxu1 %v14484_v42  ;;  %v14499_v56 = vld [vmem:[#allocation4 + $0x2108] ss:$120 sps:$4 sm:$0xff]   ;;  %v14538_v42 = vld [vmem:[#allocation4 + $0x1138] ss:$120 sps:$4 sm:$0xff]  }
 0x770   :  { %10647 = vmatpush1.bf16.xpose.msra.mxu0 %v14487_v58  ;;  %9844 = vmatprep.subr.bf16.mxu1 %v14492_v25  ;;  %v14546_v58 = vld [vmem:[#allocation4 + $0x122c] ss:$120 sps:$4 sm:$0xff]  }
 0x771   :  { %10648 = vmatprep.subr.bf16.mxu0 %v14495_v23  ;;  %10627 = vmatprep.mubr.bf16.mxu0 %v17168_v48  ;;  %v14502_v48 = vld [vmem:[#allocation4 + $0x1a90] ss:$120 sps:$4 sm:$0xff]   ;;  %v14549_v25 = vld [vmem:[#allocation4 + $0x2114] ss:$120 sps:$4 sm:$0xff]   ;;  %v17225_v23 = vld [vmem:[#allocation71_spill] sm:$0xff] }
 0x777   :  { %10628 = vmatmul.mubr.bf16.gmra.mrb[24].mxu0 %v17170_v38  ;;  %9845 = vmatpush1.bf16.xpose.msra.mxu1 %v14490_v15  ;;  %v14505_v38 = vld [vmem:[#allocation4 + $0x21f8] ss:$120 sps:$4 sm:$0xff]   ;;  %v14544_v15 = vld [vmem:[#allocation4 + $0x1228] ss:$120 sps:$4 sm:$0xff]  }
 0x778   :  { %10649 = vmatpush1.bf16.xpose.msra.mxu0 %v14493_v60  ;;  %9846 = vmatprep.subr.bf16.mxu1 %v14498_v14  ;;  %v14552_v60 = vld [vmem:[#allocation4 + $0x131c] ss:$120 sps:$4 sm:$0xff]  }
 0x779   :  { %10650 = vmatprep.subr.bf16.mxu0 %v14501_v63  ;;  %10635 = vmatprep.mubr.bf16.mxu0 %v17171_v40  ;;  %v14508_v40 = vld [vmem:[#allocation4 + $0x1b80] ss:$120 sps:$4 sm:$0xff]   ;;  %v14555_v14 = vld [vmem:[#allocation4 + $0x2204] ss:$120 sps:$4 sm:$0xff]   ;;  %v17227_v63 = vld [vmem:[#allocation73_spill] sm:$0xff] }
 0x77f   :  { %10636 = vmatmul.mubr.bf16.gmra.mrb[28].mxu0 %v17173_v34  ;;  %9847 = vmatpush1.bf16.xpose.msra.mxu1 %v14496_v28  ;;  %v14514_v34 = vld [vmem:[#allocation4 + $0x1c70] ss:$120 sps:$4 sm:$0xff]  }
 0x780   :  { %10651 = vmatpush1.bf16.xpose.msra.mxu0 %v14499_v56  ;;  %9848 = vmatprep.subr.bf16.mxu1 %v14504_v50  ;;  %v14550_v28 = vld [vmem:[#allocation4 + $0x1318] ss:$120 sps:$4 sm:$0xff]   ;;  %v14558_v56 = vld [vmem:[#allocation4 + $0x140c] ss:$120 sps:$4 sm:$0xff]  }
 0x781   :  { %10652 = vmatprep.subr.bf16.mxu0 %v14507_v7  ;;  %10676 = vmatprep.mubr.bf16.mxu0 %v17174_v24  ;;  %v14525_v24 = vld [vmem:[#allocation4 + $0x24cc] ss:$120 sps:$4 sm:$0xff]   ;;  %v14556_v7 = vld [vmem:[#allocation4 + $0x1408] ss:$120 sps:$4 sm:$0xff]  }
 0x782   :  { %v14561_v50 = vld [vmem:[#allocation4 + $0x22f4] ss:$120 sps:$4 sm:$0xff]  }
 0x787   :  { %9849 = vmatpush1.bf16.xpose.msra.mxu1 %v14502_v48  ;;  %v14564_v48 = vld [vmem:[#allocation4 + $0x14fc] ss:$120 sps:$4 sm:$0xff]  }
 0x788   :  { %10653 = vmatpush1.bf16.xpose.msra.mxu0 %v14505_v38  ;;  %9850 = vmatprep.subr.bf16.mxu1 %v14510_v29  ;;  %v14567_v38 = vld [vmem:[#allocation4 + $0x23e4] ss:$120 sps:$4 sm:$0xff]   ;;  %v14562_v29 = vld [vmem:[#allocation4 + $0x14f8] ss:$120 sps:$4 sm:$0xff]  }
 0x789   :  { %10654 = vmatprep.subr.bf16.mxu0 %v14513_v12  ;;  %v14570_v12 = vld [vmem:[#allocation4 + $0x15ec] ss:$120 sps:$4 sm:$0xff]  }
 0x78f   :  { %9851 = vmatpush1.bf16.xpose.msra.mxu1 %v14508_v40  ;;  %v14573_v40 = vld [vmem:[#allocation4 + $0x24d4] ss:$120 sps:$4 sm:$0xff]  }
 0x790   :  { %10655 = vmatpush1.bf16.xpose.msra.mxu0 %v14511_v31  ;;  %9852 = vmatprep.subr.bf16.mxu1 %v14516_v9  ;;  %v14568_v31 = vld [vmem:[#allocation4 + $0x15e8] ss:$120 sps:$4 sm:$0xff]  }
 0x791   :  { %10656 = vmatprep.subr.bf16.mxu0 %v14519_v13  ;;  %v14571_v9 = vld [vmem:[#allocation4 + $0x24d0] ss:$120 sps:$4 sm:$0xff]   ;;  %v14576_v13 = vld [vmem:[#allocation4 + $0x16dc] ss:$120 sps:$4 sm:$0xff]  }
 0x797   :  { %9853 = vmatpush1.bf16.xpose.msra.mxu1 %v14514_v34  ;;  %v14579_v34 = vld [vmem:[#allocation4 + $0x1e4c] ss:$120 sps:$4 sm:$0xff]  }
 0x798   :  { %10657 = vmatpush1.bf16.xpose.msra.mxu0 %v14517_v17  ;;  %9854 = vmatprep.subr.bf16.mxu1 %v14522_v61  ;;  %v14574_v17 = vld [vmem:[#allocation4 + $0x16d8] ss:$120 sps:$4 sm:$0xff]   ;;  %v14577_v61 = vld [vmem:[#allocation4 + $0x1e48] ss:$120 sps:$4 sm:$0xff]  }
 0x799   :  { %10658 = vmatprep.subr.bf16.mxu0 %v14525_v24  ;;  %v14582_v24 = vld [vmem:[#allocation4 + $0x17cc] ss:$120 sps:$4 sm:$0xff]  }
 0x79f   :  { %9855 = vmatpush1.bf16.xpose.msra.mxu1 %v14520_v22  ;;  %v14585_v22 = vld [vmem:[#allocation4 + $0x1f3c] ss:$120 sps:$4 sm:$0xff]  }
 0x7a0   :  { %10659 = vmatpush1.bf16.xpose.msra.mxu0 %v14523_v46  ;;  %9897 = vmatprep.subr.bf16.mxu1 %v14528_v6  ;;  %v14580_v46 = vld [vmem:[#allocation4 + $0x17c8] ss:$120 sps:$4 sm:$0xff]   ;;  %v14583_v6 = vld [vmem:[#allocation4 + $0x1f38] ss:$120 sps:$4 sm:$0xff]  }
 0x7a1   :  { %10709 = vmatprep.subr.bf16.mxu0 %v14531_v55  ;;  %v14588_v55 = vld [vmem:[#allocation4 + $0x18bc] ss:$120 sps:$4 sm:$0xff]  }
 0x7a6   :  { %9857 = vmatmul.mubr.bf16.vlgmr.msra.gmra.mrb[16].mxu1 %v17221_v45 }
 0x7a7   :  { %10677 = vmatmul.mubr.bf16.vlgmr.msra.gmra.mrb[16].mxu0 %v17175_v26  ;;  %9898 = vmatpush1.bf16.xpose.msra.mxu1 %v14526_v3  ;;  %v17224_v26 = vld [vmem:[#allocation70_spill] sm:$0xff]  ;;  %v14591_v3 = vld [vmem:[#allocation4 + $0x202c] ss:$120 sps:$4 sm:$0xff]  }
 0x7a8   :  { %10710 = vmatpush1.bf16.xpose.msra.mxu0 %v14529_v62  ;;  %9899 = vmatprep.subr.bf16.mxu1 %v14534_v4  ;;  %v14586_v62 = vld [vmem:[#allocation4 + $0x18b8] ss:$120 sps:$4 sm:$0xff]   ;;  %v14594_v4 = vld [vmem:[#allocation4 + $0x19ac] ss:$120 sps:$4 sm:$0xff]  }
 0x7a9   :  { %10711 = vmatprep.subr.bf16.mxu0 %v14537_v41  ;;  %10684 = vmatprep.mubr.bf16.mxu0 %v17176_v21  ;;  %v14541_v21 = vld [vmem:[#allocation4 + $0x2020] ss:$120 sps:$4 sm:$0xff]   ;;  %v14597_v41 = vld [vmem:[#allocation4 + $0x211c] ss:$120 sps:$4 sm:$0xff]  }
 0x7aa   :  { %9866 = vmatprep.mubr.bf16.mxu1 %v17222_v53 }
 0x7ae   :  { %9867 = vmatmul.mubr.bf16.gmra.mrb[20].mxu1 %v17223_v49 }
 0x7af   :  { %10685 = vmatmul.mubr.bf16.gmra.mrb[20].mxu0 %v17177_v5  ;;  %9900 = vmatpush1.bf16.xpose.msra.mxu1 %v14532_v10  ;;  %v17226_v5 = vld [vmem:[#allocation72_spill] sm:$0xff]  ;;  %v14600_v10 = vld [vmem:[#allocation4 + $0x1a9c] ss:$120 sps:$4 sm:$0xff]  }
 0x7b0   :  { %10712 = vmatpush1.bf16.xpose.msra.mxu0 %v14535_v8  ;;  %9901 = vmatprep.subr.bf16.mxu1 %v14540_v19  ;;  %v14603_v8 = vld [vmem:[#allocation4 + $0x220c] ss:$120 sps:$4 sm:$0xff]  }
 0x7b1   :  { %10713 = vmatprep.subr.bf16.mxu0 %v14543_v43  ;;  %10692 = vmatprep.mubr.bf16.mxu0 %v17178_v1  ;;  %v14547_v1 = vld [vmem:[#allocation4 + $0x2110] ss:$120 sps:$4 sm:$0xff]   ;;  %v14606_v19 = vld [vmem:[#allocation4 + $0x1b8c] ss:$120 sps:$4 sm:$0xff]   ;;  %v14609_v43 = vld [vmem:[#allocation4 + $0x22fc] ss:$120 sps:$4 sm:$0xff]  }
 0x7b2   :  { %9876 = vmatprep.mubr.bf16.mxu1 %v17224_v26 }
 0x7b6   :  { %9877 = vmatmul.mubr.bf16.gmra.mrb[24].mxu1 %v17225_v23 }
 0x7b7   :  { %10693 = vmatmul.mubr.bf16.gmra.mrb[24].mxu0 %v15782_v32  ;;  %9902 = vmatpush1.bf16.xpose.msra.mxu1 %v14538_v42  ;;  %v17228_v32 = vld [vmem:[#allocation74_spill] sm:$0xff] }
 0x7b8   :  { %10714 = vmatpush1.bf16.xpose.msra.mxu0 %v14541_v21  ;;  %9903 = vmatprep.subr.bf16.mxu1 %v14546_v58  ;;  %v14607_v42 = vld [vmem:[#allocation4 + $0x22f8] ss:$120 sps:$4 sm:$0xff]   ;;  %v14612_v21 = vld [vmem:[#allocation4 + $0x1c7c] ss:$120 sps:$4 sm:$0xff]   ;;  %v14615_v58 = vld [vmem:[#allocation4 + $0x23ec] ss:$120 sps:$4 sm:$0xff]  }
 0x7b9   :  { %10715 = vmatprep.subr.bf16.mxu0 %v14549_v25  ;;  %10700 = vmatprep.mubr.bf16.mxu0 %v15793_v18  ;;  %v14553_v18 = vld [vmem:[#allocation4 + $0x2200] ss:$120 sps:$4 sm:$0xff]  }
 0x7ba   :  { %9886 = vmatprep.mubr.bf16.mxu1 %v17226_v5  ;;  %v14613_v25 = vld [vmem:[#allocation4 + $0x23e8] ss:$120 sps:$4 sm:$0xff]  }
 0x7be   :  { %9887 = vmatmul.mubr.bf16.gmra.mrb[28].mxu1 %v17227_v63 }
 0x7bf   :  { %10701 = vmatmul.mubr.bf16.gmra.mrb[28].mxu0 %v15810_v35  ;;  %9904 = vmatpush1.bf16.xpose.msra.mxu1 %v14544_v15  ;;  %v14559_v35 = vld [vmem:[#allocation4 + $0x22f0] ss:$120 sps:$4 sm:$0xff]   ;;  %v14618_v15 = vld [vmem:[#allocation4 + $0x1d6c] ss:$120 sps:$4 sm:$0xff]  }
 0x7c0   :  { %10716 = vmatpush1.bf16.xpose.msra.mxu0 %v14547_v1  ;;  %9905 = vmatprep.subr.bf16.mxu1 %v14552_v60  ;;  %v14616_v1 = vld [vmem:[#allocation4 + $0x1d68] ss:$120 sps:$4 sm:$0xff]   ;;  %v14619_v60 = vld [vmem:[#allocation4 + $0x24d8] ss:$120 sps:$4 sm:$0xff]  }
 0x7c1   :  { %10717 = vmatprep.subr.bf16.mxu0 %v14555_v14  ;;  %10741 = vmatprep.mubr.bf16.mxu0 %v15812_v59  ;;  %v14565_v59 = vld [vmem:[#allocation4 + $0x23e0] ss:$120 sps:$4 sm:$0xff]   ;;  %v14624_v14 = vld [vmem:[#allocation4 + $0xf64] ss:$120 sps:$4 sm:$0xff]  }
 0x7c2   :  { %9929 = vmatprep.mubr.bf16.mxu1 %v17228_v32 }
 0x7c7   :  { %9906 = vmatpush1.bf16.xpose.msra.mxu1 %v14550_v28  ;;  %v14627_v28 = vld [vmem:[#allocation4 + $0x1e54] ss:$120 sps:$4 sm:$0xff]  }
 0x7c8   :  { %10718 = vmatpush1.bf16.xpose.msra.mxu0 %v14553_v18  ;;  %9907 = vmatprep.subr.bf16.mxu1 %v14558_v56  ;;  %v14622_v18 = vld [vmem:[#allocation4 + $0xf60] ss:$120 sps:$4 sm:$0xff]   ;;  %v14625_v56 = vld [vmem:[#allocation4 + $0x1e50] ss:$120 sps:$4 sm:$0xff]  }
 0x7c9   :  { %10719 = vmatprep.subr.bf16.mxu0 %v14561_v50  ;;  %v14630_v50 = vld [vmem:[#allocation4 + $0x1054] ss:$120 sps:$4 sm:$0xff]  }
 0x7cf   :  { %9908 = vmatpush1.bf16.xpose.msra.mxu1 %v14556_v7  ;;  %v14633_v7 = vld [vmem:[#allocation4 + $0x1f44] ss:$120 sps:$4 sm:$0xff]  }
 0x7d0   :  { %10720 = vmatpush1.bf16.xpose.msra.mxu0 %v14559_v35  ;;  %9909 = vmatprep.subr.bf16.mxu1 %v14564_v48  ;;  %v17229_v35 = vld [vmem:[#allocation75_spill] sm:$0xff]  ;;  %v17230_v48 = vld [vmem:[#allocation76_spill] sm:$0xff] }
 0x7d1   :  { %10721 = vmatprep.subr.bf16.mxu0 %v14567_v38  ;;  %v14628_v38 = vld [vmem:[#allocation4 + $0x1050] ss:$120 sps:$4 sm:$0xff]  }
 0x7d7   :  { %9910 = vmatpush1.bf16.xpose.msra.mxu1 %v14562_v29  ;;  %v14631_v29 = vld [vmem:[#allocation4 + $0x1f40] ss:$120 sps:$4 sm:$0xff]  }
 0x7d8   :  { %10722 = vmatpush1.bf16.xpose.msra.mxu0 %v14565_v59  ;;  %9911 = vmatprep.subr.bf16.mxu1 %v14570_v12  ;;  %v14636_v59 = vld [vmem:[#allocation4 + $0x1144] ss:$120 sps:$4 sm:$0xff]   ;;  %v14639_v12 = vld [vmem:[#allocation4 + $0x2034] ss:$120 sps:$4 sm:$0xff]  }
 0x7d9   :  { %10723 = vmatprep.subr.bf16.mxu0 %v14573_v40  ;;  %v17231_v40 = vld [vmem:[#allocation77_spill] sm:$0xff] }
 0x7df   :  { %9912 = vmatpush1.bf16.xpose.msra.mxu1 %v14568_v31  ;;  %v14634_v31 = vld [vmem:[#allocation4 + $0x1140] ss:$120 sps:$4 sm:$0xff]  }
 0x7e0   :  { %10724 = vmatpush1.bf16.xpose.msra.mxu0 %v14571_v9  ;;  %9913 = vmatprep.subr.bf16.mxu1 %v14576_v13  ;;  %v14642_v9 = vld [vmem:[#allocation4 + $0x1234] ss:$120 sps:$4 sm:$0xff]   ;;  %v14645_v13 = vld [vmem:[#allocation4 + $0x2124] ss:$120 sps:$4 sm:$0xff]  }
 0x7e1   :  { %10774 = vmatprep.subr.bf16.mxu0 %v14579_v34  ;;  %v17233_v34 = vld [vmem:[#allocation79_spill] sm:$0xff] }
 0x7e7   :  { %10742 = vmatmul.mubr.bf16.vlgmr.msra.gmra.mrb[16].mxu0 %v17194_v51  ;;  %9914 = vmatpush1.bf16.xpose.msra.mxu1 %v14574_v17  ;;  %v14589_v51 = vld [vmem:[#allocation4 + $0x2028] ss:$120 sps:$4 sm:$0xff]  }
 0x7e8   :  { %10775 = vmatpush1.bf16.xpose.msra.mxu0 %v14577_v61  ;;  %9915 = vmatprep.subr.bf16.mxu1 %v14582_v24  ;;  %v14640_v17 = vld [vmem:[#allocation4 + $0x1230] ss:$120 sps:$4 sm:$0xff]   ;;  %v14648_v61 = vld [vmem:[#allocation4 + $0x1324] ss:$120 sps:$4 sm:$0xff]   ;;  %v14651_v24 = vld [vmem:[#allocation4 + $0x2214] ss:$120 sps:$4 sm:$0xff]  }
 0x7e9   :  { %10776 = vmatprep.subr.bf16.mxu0 %v14585_v22  ;;  %10749 = vmatprep.mubr.bf16.mxu0 %v17195_v30  ;;  %v14592_v30 = vld [vmem:[#allocation4 + $0x19a8] ss:$120 sps:$4 sm:$0xff]  }
 0x7ea   :  { %v17235_v22 = vld [vmem:[#allocation81_spill] sm:$0xff] }
 0x7ef   :  { %10750 = vmatmul.mubr.bf16.gmra.mrb[20].mxu0 %v17196_v0  ;;  %9916 = vmatpush1.bf16.xpose.msra.mxu1 %v14580_v46  ;;  %v14595_v0 = vld [vmem:[#allocation4 + $0x2118] ss:$120 sps:$4 sm:$0xff]  }
 0x7f0   :  { %10777 = vmatpush1.bf16.xpose.msra.mxu0 %v14583_v6  ;;  %9917 = vmatprep.subr.bf16.mxu1 %v14588_v55  ;;  %v14646_v46 = vld [vmem:[#allocation4 + $0x1320] ss:$120 sps:$4 sm:$0xff]   ;;  %v14654_v6 = vld [vmem:[#allocation4 + $0x1414] ss:$120 sps:$4 sm:$0xff]   ;;  %v14657_v55 = vld [vmem:[#allocation4 + $0x2304] ss:$120 sps:$4 sm:$0xff]  }
 0x7f1   :  { %10778 = vmatprep.subr.bf16.mxu0 %v14591_v3  ;;  %10757 = vmatprep.mubr.bf16.mxu0 %v17197_v54  ;;  %v14598_v54 = vld [vmem:[#allocation4 + $0x1a98] ss:$120 sps:$4 sm:$0xff]  }
 0x7f2   :  { %v14652_v3 = vld [vmem:[#allocation4 + $0x1410] ss:$120 sps:$4 sm:$0xff]  }
 0x7f7   :  { %10758 = vmatmul.mubr.bf16.gmra.mrb[24].mxu0 %v17198_v33  ;;  %9918 = vmatpush1.bf16.xpose.msra.mxu1 %v14586_v62  ;;  %v14601_v33 = vld [vmem:[#allocation4 + $0x2208] ss:$120 sps:$4 sm:$0xff]   ;;  %v14660_v62 = vld [vmem:[#allocation4 + $0x1504] ss:$120 sps:$4 sm:$0xff]  }
 0x7f8   :  { %10779 = vmatpush1.bf16.xpose.msra.mxu0 %v14589_v51  ;;  %9919 = vmatprep.subr.bf16.mxu1 %v14594_v4  ;;  %v14663_v51 = vld [vmem:[#allocation4 + $0x23f4] ss:$120 sps:$4 sm:$0xff]   ;;  %v14658_v4 = vld [vmem:[#allocation4 + $0x1500] ss:$120 sps:$4 sm:$0xff]  }
 0x7f9   :  { %10780 = vmatprep.subr.bf16.mxu0 %v14597_v41  ;;  %10765 = vmatprep.mubr.bf16.mxu0 %v17199_v20  ;;  %v14604_v20 = vld [vmem:[#allocation4 + $0x1b88] ss:$120 sps:$4 sm:$0xff]   ;;  %v14666_v41 = vld [vmem:[#allocation4 + $0x15f4] ss:$120 sps:$4 sm:$0xff]  }
 0x7ff   :  { %10766 = vmatmul.mubr.bf16.gmra.mrb[28].mxu0 %v17200_v52  ;;  %9920 = vmatpush1.bf16.xpose.msra.mxu1 %v14592_v30  ;;  %v14610_v52 = vld [vmem:[#allocation4 + $0x1c78] ss:$120 sps:$4 sm:$0xff]   ;;  %v14669_v30 = vld [vmem:[#allocation4 + $0x24e4] ss:$120 sps:$4 sm:$0xff]  }
 0x800   :  { %10781 = vmatpush1.bf16.xpose.msra.mxu0 %v14595_v0  ;;  %9921 = vmatprep.subr.bf16.mxu1 %v14600_v10  ;;  %v14664_v0 = vld [vmem:[#allocation4 + $0x15f0] ss:$120 sps:$4 sm:$0xff]   ;;  %v14667_v10 = vld [vmem:[#allocation4 + $0x24e0] ss:$120 sps:$4 sm:$0xff]  }
 0x801   :  { %10782 = vmatprep.subr.bf16.mxu0 %v14603_v8  ;;  %10806 = vmatprep.mubr.bf16.mxu0 %v17201_v47  ;;  %v14621_v47 = vld [vmem:[#allocation4 + $0x24dc] ss:$120 sps:$4 sm:$0xff]  }
 0x802   :  { %v14672_v8 = vld [vmem:[#allocation4 + $0x16e4] ss:$120 sps:$4 sm:$0xff]  }
 0x807   :  { %9922 = vmatpush1.bf16.xpose.msra.mxu1 %v14598_v54  ;;  %v14675_v54 = vld [vmem:[#allocation4 + $0x1e5c] ss:$120 sps:$4 sm:$0xff]  }
 0x808   :  { %10783 = vmatpush1.bf16.xpose.msra.mxu0 %v14601_v33  ;;  %9923 = vmatprep.subr.bf16.mxu1 %v14606_v19  ;;  %v14670_v33 = vld [vmem:[#allocation4 + $0x16e0] ss:$120 sps:$4 sm:$0xff]  }
 0x809   :  { %10784 = vmatprep.subr.bf16.mxu0 %v14609_v43  ;;  %v14673_v19 = vld [vmem:[#allocation4 + $0x1e58] ss:$120 sps:$4 sm:$0xff]   ;;  %v14678_v43 = vld [vmem:[#allocation4 + $0x17d4] ss:$120 sps:$4 sm:$0xff]  }
 0x80f   :  { %9924 = vmatpush1.bf16.xpose.msra.mxu1 %v14604_v20  ;;  %v14681_v20 = vld [vmem:[#allocation4 + $0x1f4c] ss:$120 sps:$4 sm:$0xff]  }
 0x810   :  { %10785 = vmatpush1.bf16.xpose.msra.mxu0 %v14607_v42  ;;  %9925 = vmatprep.subr.bf16.mxu1 %v14612_v21  ;;  %v14676_v42 = vld [vmem:[#allocation4 + $0x17d0] ss:$120 sps:$4 sm:$0xff]  }
 0x811   :  { %10786 = vmatprep.subr.bf16.mxu0 %v14615_v58  ;;  %v14679_v21 = vld [vmem:[#allocation4 + $0x1f48] ss:$120 sps:$4 sm:$0xff]   ;;  %v14684_v58 = vld [vmem:[#allocation4 + $0x18c4] ss:$120 sps:$4 sm:$0xff]  }
 0x817   :  { %9926 = vmatpush1.bf16.xpose.msra.mxu1 %v14610_v52  ;;  %v14687_v52 = vld [vmem:[#allocation4 + $0x203c] ss:$120 sps:$4 sm:$0xff]  }
 0x818   :  { %10787 = vmatpush1.bf16.xpose.msra.mxu0 %v14613_v25  ;;  %9927 = vmatprep.subr.bf16.mxu1 %v14618_v15  ;;  %v14682_v25 = vld [vmem:[#allocation4 + $0x18c0] ss:$120 sps:$4 sm:$0xff]   ;;  %v14690_v15 = vld [vmem:[#allocation4 + $0x19b4] ss:$120 sps:$4 sm:$0xff]  }
 0x819   :  { %10788 = vmatprep.subr.bf16.mxu0 %v14621_v47  ;;  %v14693_v47 = vld [vmem:[#allocation4 + $0x212c] ss:$120 sps:$4 sm:$0xff]  }
 0x81f   :  { %9928 = vmatpush1.bf16.xpose.msra.mxu1 %v14616_v1  ;;  %v14696_v1 = vld [vmem:[#allocation4 + $0x1aa4] ss:$120 sps:$4 sm:$0xff]  }
 0x820   :  { %10789 = vmatpush1.bf16.xpose.msra.mxu0 %v14619_v60  ;;  %9970 = vmatprep.subr.bf16.mxu1 %v14624_v14  ;;  %v14699_v60 = vld [vmem:[#allocation4 + $0x221c] ss:$120 sps:$4 sm:$0xff]  }
 0x821   :  { %10839 = vmatprep.subr.bf16.mxu0 %v14627_v28  ;;  %v14702_v14 = vld [vmem:[#allocation4 + $0x1b94] ss:$120 sps:$4 sm:$0xff]  }
 0x822   :  { %v14705_v28 = vld [vmem:[#allocation4 + $0x230c] ss:$120 sps:$4 sm:$0xff]  }
 0x826   :  { %9930 = vmatmul.mubr.bf16.vlgmr.msra.gmra.mrb[16].mxu1 %v17229_v35 }
 0x827   :  { %10807 = vmatmul.mubr.bf16.vlgmr.msra.gmra.mrb[16].mxu0 %v17205_v37  ;;  %9971 = vmatpush1.bf16.xpose.msra.mxu1 %v14622_v18  ;;  %v17232_v37 = vld [vmem:[#allocation78_spill] sm:$0xff]  ;;  %v14703_v18 = vld [vmem:[#allocation4 + $0x2308] ss:$120 sps:$4 sm:$0xff]  }
 0x828   :  { %10840 = vmatpush1.bf16.xpose.msra.mxu0 %v14625_v56  ;;  %9972 = vmatprep.subr.bf16.mxu1 %v14630_v50  ;;  %v14708_v56 = vld [vmem:[#allocation4 + $0x1c84] ss:$120 sps:$4 sm:$0xff]  }
 0x829   :  { %10841 = vmatprep.subr.bf16.mxu0 %v14633_v7  ;;  %10814 = vmatprep.mubr.bf16.mxu0 %v17208_v39  ;;  %v14637_v39 = vld [vmem:[#allocation4 + $0x2030] ss:$120 sps:$4 sm:$0xff]   ;;  %v14711_v50 = vld [vmem:[#allocation4 + $0x23fc] ss:$120 sps:$4 sm:$0xff]  }
 0x82a   :  { %9939 = vmatprep.mubr.bf16.mxu1 %v17230_v48  ;;  %v14709_v7 = vld [vmem:[#allocation4 + $0x23f8] ss:$120 sps:$4 sm:$0xff]  }
 0x82e   :  { %9940 = vmatmul.mubr.bf16.gmra.mrb[20].mxu1 %v17231_v40 }
 0x82f   :  { %10815 = vmatmul.mubr.bf16.gmra.mrb[20].mxu0 %v17210_v2  ;;  %9973 = vmatpush1.bf16.xpose.msra.mxu1 %v14628_v38  ;;  %v17234_v2 = vld [vmem:[#allocation80_spill] sm:$0xff]  ;;  %v14714_v38 = vld [vmem:[#allocation4 + $0x1d74] ss:$120 sps:$4 sm:$0xff]  }
 0x830   :  { %10842 = vmatpush1.bf16.xpose.msra.mxu0 %v14631_v29  ;;  %9974 = vmatprep.subr.bf16.mxu1 %v14636_v59  ;;  %v14712_v29 = vld [vmem:[#allocation4 + $0x1d70] ss:$120 sps:$4 sm:$0xff]  }
 0x831   :  { %10843 = vmatprep.subr.bf16.mxu0 %v14639_v12  ;;  %10822 = vmatprep.mubr.bf16.mxu0 %v17212_v11  ;;  %v14643_v11 = vld [vmem:[#allocation4 + $0x2120] ss:$120 sps:$4 sm:$0xff]   ;;  %v14720_v12 = vld [vmem:[#allocation4 + $0xf6c] ss:$120 sps:$4 sm:$0xff]  }
 0x832   :  { %9949 = vmatprep.mubr.bf16.mxu1 %v17232_v37  ;;  %v14715_v59 = vld [vmem:[#allocation4 + $0x24e8] ss:$120 sps:$4 sm:$0xff]  }
 0x836   :  { %9950 = vmatmul.mubr.bf16.gmra.mrb[24].mxu1 %v17233_v34 }
 0x837   :  { %10823 = vmatmul.mubr.bf16.gmra.mrb[24].mxu0 %v17214_v16  ;;  %9975 = vmatpush1.bf16.xpose.msra.mxu1 %v14634_v31  ;;  %v17236_v16 = vld [vmem:[#allocation82_spill] sm:$0xff]  ;;  %v14723_v31 = vld [vmem:[#allocation4 + $0x1e64] ss:$120 sps:$4 sm:$0xff]  }
 0x838   :  { %10844 = vmatpush1.bf16.xpose.msra.mxu0 %v14637_v39  ;;  %9976 = vmatprep.subr.bf16.mxu1 %v14642_v9  ;;  %v14718_v39 = vld [vmem:[#allocation4 + $0xf68] ss:$120 sps:$4 sm:$0xff]  }
 0x839   :  { %10845 = vmatprep.subr.bf16.mxu0 %v14645_v13  ;;  %10830 = vmatprep.mubr.bf16.mxu0 %v17215_v44  ;;  %v14649_v44 = vld [vmem:[#allocation4 + $0x2210] ss:$120 sps:$4 sm:$0xff]   ;;  %v14721_v9 = vld [vmem:[#allocation4 + $0x1e60] ss:$120 sps:$4 sm:$0xff]   ;;  %v14726_v13 = vld [vmem:[#allocation4 + $0x105c] ss:$120 sps:$4 sm:$0xff]  }
 0x83a   :  { %9959 = vmatprep.mubr.bf16.mxu1 %v17234_v2 }
 0x83e   :  { %9960 = vmatmul.mubr.bf16.gmra.mrb[28].mxu1 %v17235_v22 }
 0x83f   :  { %10831 = vmatmul.mubr.bf16.gmra.mrb[28].mxu0 %v17216_v36  ;;  %9977 = vmatpush1.bf16.xpose.msra.mxu1 %v14640_v17  ;;  %v14655_v36 = vld [vmem:[#allocation4 + $0x2300] ss:$120 sps:$4 sm:$0xff]   ;;  %v14729_v17 = vld [vmem:[#allocation4 + $0x1f54] ss:$120 sps:$4 sm:$0xff]  }
 0x840   :  { %10846 = vmatpush1.bf16.xpose.msra.mxu0 %v14643_v11  ;;  %9978 = vmatprep.subr.bf16.mxu1 %v14648_v61  ;;  %v17237_v11 = vld [vmem:[#allocation83_spill] sm:$0xff]  ;;  %v17238_v61 = vld [vmem:[#allocation84_spill] sm:$0xff] }
 0x841   :  { %10847 = vmatprep.subr.bf16.mxu0 %v14651_v24  ;;  %10871 = vmatprep.mubr.bf16.mxu0 %v17218_v57  ;;  %v14661_v57 = vld [vmem:[#allocation4 + $0x23f0] ss:$120 sps:$4 sm:$0xff]  }
 0x842   :  { %10002 = vmatprep.mubr.bf16.mxu1 %v17236_v16  ;;  %v14724_v24 = vld [vmem:[#allocation4 + $0x1058] ss:$120 sps:$4 sm:$0xff]  }
 0x847   :  { %9979 = vmatpush1.bf16.xpose.msra.mxu1 %v14646_v46  ;;  %v14727_v46 = vld [vmem:[#allocation4 + $0x1f50] ss:$120 sps:$4 sm:$0xff]  }
 0x848   :  { %10848 = vmatpush1.bf16.xpose.msra.mxu0 %v14649_v44  ;;  %9980 = vmatprep.subr.bf16.mxu1 %v14654_v6  ;;  %v14732_v44 = vld [vmem:[#allocation4 + $0x114c] ss:$120 sps:$4 sm:$0xff]  }
 0x849   :  { %10849 = vmatprep.subr.bf16.mxu0 %v14657_v55  ;;  %v14735_v6 = vld [vmem:[#allocation4 + $0x2044] ss:$120 sps:$4 sm:$0xff]  }
 0x84a   :  { %v17239_v55 = vld [vmem:[#allocation8_spill] sm:$0xff] }
 0x84f   :  { %9981 = vmatpush1.bf16.xpose.msra.mxu1 %v14652_v3  ;;  %v14730_v3 = vld [vmem:[#allocation4 + $0x1148] ss:$120 sps:$4 sm:$0xff]  }
 0x850   :  { %10850 = vmatpush1.bf16.xpose.msra.mxu0 %v14655_v36  ;;  %9982 = vmatprep.subr.bf16.mxu1 %v14660_v62  ;;  %v14738_v36 = vld [vmem:[#allocation4 + $0x123c] ss:$120 sps:$4 sm:$0xff]  }
 0x851   :  { %10851 = vmatprep.subr.bf16.mxu0 %v14663_v51  ;;  %v14741_v62 = vld [vmem:[#allocation4 + $0x2134] ss:$120 sps:$4 sm:$0xff]  }
 0x852   :  { %v17241_v51 = vld [vmem:[#allocation10_spill] sm:$0xff] }
 0x857   :  { %9983 = vmatpush1.bf16.xpose.msra.mxu1 %v14658_v4  ;;  %v14736_v4 = vld [vmem:[#allocation4 + $0x1238] ss:$120 sps:$4 sm:$0xff]  }
 0x858   :  { %10852 = vmatpush1.bf16.xpose.msra.mxu0 %v14661_v57  ;;  %9984 = vmatprep.subr.bf16.mxu1 %v14666_v41  ;;  %v14744_v57 = vld [vmem:[#allocation4 + $0x132c] ss:$120 sps:$4 sm:$0xff]  }
 0x859   :  { %10853 = vmatprep.subr.bf16.mxu0 %v14669_v30  ;;  %v14747_v41 = vld [vmem:[#allocation4 + $0x2224] ss:$120 sps:$4 sm:$0xff]   ;;  %v17243_v30 = vld [vmem:[#allocation13_spill] sm:$0xff] }
 0x85f   :  { %9985 = vmatpush1.bf16.xpose.msra.mxu1 %v14664_v0  ;;  %v14742_v0 = vld [vmem:[#allocation4 + $0x1328] ss:$120 sps:$4 sm:$0xff]  }
 0x860   :  { %10854 = vmatpush1.bf16.xpose.msra.mxu0 %v14667_v10  ;;  %9986 = vmatprep.subr.bf16.mxu1 %v14672_v8  ;;  %v14750_v10 = vld [vmem:[#allocation4 + $0x141c] ss:$120 sps:$4 sm:$0xff]  }
 0x861   :  { %10904 = vmatprep.subr.bf16.mxu0 %v14675_v54  ;;  %v14753_v8 = vld [vmem:[#allocation4 + $0x2314] ss:$120 sps:$4 sm:$0xff]   ;;  %v14748_v54 = vld [vmem:[#allocation4 + $0x1418] ss:$120 sps:$4 sm:$0xff]  }
 0x867   :  { %10872 = vmatmul.mubr.bf16.vlgmr.msra.gmra.mrb[16].mxu0 %v17221_v45  ;;  %9987 = vmatpush1.bf16.xpose.msra.mxu1 %v14670_v33  ;;  %v14685_v45 = vld [vmem:[#allocation4 + $0x2038] ss:$120 sps:$4 sm:$0xff]   ;;  %v14756_v33 = vld [vmem:[#allocation4 + $0x150c] ss:$120 sps:$4 sm:$0xff]  }
 0x868   :  { %10905 = vmatpush1.bf16.xpose.msra.mxu0 %v14673_v19  ;;  %9988 = vmatprep.subr.bf16.mxu1 %v14678_v43  ;;  %v14759_v19 = vld [vmem:[#allocation4 + $0x2404] ss:$120 sps:$4 sm:$0xff]   ;;  %v14754_v43 = vld [vmem:[#allocation4 + $0x1508] ss:$120 sps:$4 sm:$0xff]  }
 0x869   :  { %10906 = vmatprep.subr.bf16.mxu0 %v14681_v20  ;;  %10879 = vmatprep.mubr.bf16.mxu0 %v17222_v53  ;;  %v14688_v53 = vld [vmem:[#allocation4 + $0x19b0] ss:$120 sps:$4 sm:$0xff]   ;;  %v14762_v20 = vld [vmem:[#allocation4 + $0x15fc] ss:$120 sps:$4 sm:$0xff]  }
 0x86f   :  { %10880 = vmatmul.mubr.bf16.gmra.mrb[20].mxu0 %v17223_v49  ;;  %9989 = vmatpush1.bf16.xpose.msra.mxu1 %v14676_v42  ;;  %v14691_v49 = vld [vmem:[#allocation4 + $0x2128] ss:$120 sps:$4 sm:$0xff]   ;;  %v14765_v42 = vld [vmem:[#allocation4 + $0x24f4] ss:$120 sps:$4 sm:$0xff]  }
 0x870   :  { %10907 = vmatpush1.bf16.xpose.msra.mxu0 %v14679_v21  ;;  %9990 = vmatprep.subr.bf16.mxu1 %v14684_v58  ;;  %v14760_v21 = vld [vmem:[#allocation4 + $0x15f8] ss:$120 sps:$4 sm:$0xff]  }
 0x871   :  { %10908 = vmatprep.subr.bf16.mxu0 %v14687_v52  ;;  %10887 = vmatprep.mubr.bf16.mxu0 %v17224_v26  ;;  %v14694_v26 = vld [vmem:[#allocation4 + $0x1aa0] ss:$120 sps:$4 sm:$0xff]   ;;  %v14763_v58 = vld [vmem:[#allocation4 + $0x24f0] ss:$120 sps:$4 sm:$0xff]   ;;  %v14768_v52 = vld [vmem:[#allocation4 + $0x16ec] ss:$120 sps:$4 sm:$0xff]  }
 0x877   :  { %10888 = vmatmul.mubr.bf16.gmra.mrb[24].mxu0 %v17225_v23  ;;  %9991 = vmatpush1.bf16.xpose.msra.mxu1 %v14682_v25  ;;  %v14697_v23 = vld [vmem:[#allocation4 + $0x2218] ss:$120 sps:$4 sm:$0xff]   ;;  %v14771_v25 = vld [vmem:[#allocation4 + $0x1e6c] ss:$120 sps:$4 sm:$0xff]  }
 0x878   :  { %10909 = vmatpush1.bf16.xpose.msra.mxu0 %v14685_v45  ;;  %9992 = vmatprep.subr.bf16.mxu1 %v14690_v15  ;;  %v14766_v45 = vld [vmem:[#allocation4 + $0x16e8] ss:$120 sps:$4 sm:$0xff]  }
 0x879   :  { %10910 = vmatprep.subr.bf16.mxu0 %v14693_v47  ;;  %10895 = vmatprep.mubr.bf16.mxu0 %v17226_v5  ;;  %v14700_v5 = vld [vmem:[#allocation4 + $0x1b90] ss:$120 sps:$4 sm:$0xff]   ;;  %v14774_v47 = vld [vmem:[#allocation4 + $0x17dc] ss:$120 sps:$4 sm:$0xff]  }
 0x87a   :  { %v14769_v15 = vld [vmem:[#allocation4 + $0x1e68] ss:$120 sps:$4 sm:$0xff]  }
 0x87f   :  { %10896 = vmatmul.mubr.bf16.gmra.mrb[28].mxu0 %v17227_v63  ;;  %9993 = vmatpush1.bf16.xpose.msra.mxu1 %v14688_v53  ;;  %v14706_v63 = vld [vmem:[#allocation4 + $0x1c80] ss:$120 sps:$4 sm:$0xff]   ;;  %v14777_v53 = vld [vmem:[#allocation4 + $0x1f5c] ss:$120 sps:$4 sm:$0xff]  }
 0x880   :  { %10911 = vmatpush1.bf16.xpose.msra.mxu0 %v14691_v49  ;;  %9994 = vmatprep.subr.bf16.mxu1 %v14696_v1  ;;  %v14772_v49 = vld [vmem:[#allocation4 + $0x17d8] ss:$120 sps:$4 sm:$0xff]  }
 0x881   :  { %10912 = vmatprep.subr.bf16.mxu0 %v14699_v60  ;;  %10936 = vmatprep.mubr.bf16.mxu0 %v17228_v32  ;;  %v14717_v32 = vld [vmem:[#allocation4 + $0x24ec] ss:$120 sps:$4 sm:$0xff]   ;;  %v14775_v1 = vld [vmem:[#allocation4 + $0x1f58] ss:$120 sps:$4 sm:$0xff]  }
 0x882   :  { %v14780_v60 = vld [vmem:[#allocation4 + $0x18cc] ss:$120 sps:$4 sm:$0xff]  }
 0x887   :  { %9995 = vmatpush1.bf16.xpose.msra.mxu1 %v14694_v26  ;;  %v14783_v26 = vld [vmem:[#allocation4 + $0x204c] ss:$120 sps:$4 sm:$0xff]  }
 0x888   :  { %10913 = vmatpush1.bf16.xpose.msra.mxu0 %v14697_v23  ;;  %9996 = vmatprep.subr.bf16.mxu1 %v14702_v14  ;;  %v14778_v23 = vld [vmem:[#allocation4 + $0x18c8] ss:$120 sps:$4 sm:$0xff]  }
 0x889   :  { %10914 = vmatprep.subr.bf16.mxu0 %v14705_v28  ;;  %v14781_v14 = vld [vmem:[#allocation4 + $0x2048] ss:$120 sps:$4 sm:$0xff]   ;;  %v14786_v28 = vld [vmem:[#allocation4 + $0x19bc] ss:$120 sps:$4 sm:$0xff]  }
 0x88f   :  { %9997 = vmatpush1.bf16.xpose.msra.mxu1 %v14700_v5  ;;  %v14789_v5 = vld [vmem:[#allocation4 + $0x213c] ss:$120 sps:$4 sm:$0xff]  }
 0x890   :  { %10915 = vmatpush1.bf16.xpose.msra.mxu0 %v14703_v18  ;;  %9998 = vmatprep.subr.bf16.mxu1 %v14708_v56  ;;  %v14784_v18 = vld [vmem:[#allocation4 + $0x19b8] ss:$120 sps:$4 sm:$0xff]  }
 0x891   :  { %10916 = vmatprep.subr.bf16.mxu0 %v14711_v50  ;;  %v14787_v56 = vld [vmem:[#allocation4 + $0x2138] ss:$120 sps:$4 sm:$0xff]   ;;  %v14792_v50 = vld [vmem:[#allocation4 + $0x1aac] ss:$120 sps:$4 sm:$0xff]  }
 0x897   :  { %9999 = vmatpush1.bf16.xpose.msra.mxu1 %v14706_v63  ;;  %v14795_v63 = vld [vmem:[#allocation4 + $0x222c] ss:$120 sps:$4 sm:$0xff]  }
 0x898   :  { %10917 = vmatpush1.bf16.xpose.msra.mxu0 %v14709_v7  ;;  %10000 = vmatprep.subr.bf16.mxu1 %v14714_v38  ;;  %v14790_v7 = vld [vmem:[#allocation4 + $0x1aa8] ss:$120 sps:$4 sm:$0xff]  }
 0x899   :  { %10918 = vmatprep.subr.bf16.mxu0 %v14717_v32  ;;  %v14793_v38 = vld [vmem:[#allocation4 + $0x2228] ss:$120 sps:$4 sm:$0xff]   ;;  %v14798_v32 = vld [vmem:[#allocation4 + $0x1b9c] ss:$120 sps:$4 sm:$0xff]  }
 0x89f   :  { %10001 = vmatpush1.bf16.xpose.msra.mxu1 %v14712_v29  ;;  %v14801_v29 = vld [vmem:[#allocation4 + $0x231c] ss:$120 sps:$4 sm:$0xff]  }
 0x8a0   :  { %10919 = vmatpush1.bf16.xpose.msra.mxu0 %v14715_v59  ;;  %10043 = vmatprep.subr.bf16.mxu1 %v14720_v12  ;;  %v14796_v59 = vld [vmem:[#allocation4 + $0x1b98] ss:$120 sps:$4 sm:$0xff]  }
 0x8a1   :  { %10969 = vmatprep.subr.bf16.mxu0 %v14723_v31  ;;  %v14799_v12 = vld [vmem:[#allocation4 + $0x2318] ss:$120 sps:$4 sm:$0xff]   ;;  %v14804_v31 = vld [vmem:[#allocation4 + $0x1c8c] ss:$120 sps:$4 sm:$0xff]  }
 0x8a6   :  { %10003 = vmatmul.mubr.bf16.vlgmr.msra.gmra.mrb[16].mxu1 %v17237_v11 }
 0x8a7   :  { %10937 = vmatmul.mubr.bf16.vlgmr.msra.gmra.mrb[16].mxu0 %v17229_v35  ;;  %10044 = vmatpush1.bf16.xpose.msra.mxu1 %v14718_v39  ;;  %v17240_v35 = vld [vmem:[#allocation9_spill] sm:$0xff] }
 0x8a8   :  { %10970 = vmatpush1.bf16.xpose.msra.mxu0 %v14721_v9  ;;  %10045 = vmatprep.subr.bf16.mxu1 %v14726_v13  ;;  %v14807_v39 = vld [vmem:[#allocation4 + $0x240c] ss:$120 sps:$4 sm:$0xff]   ;;  %v14802_v9 = vld [vmem:[#allocation4 + $0x1c88] ss:$120 sps:$4 sm:$0xff]  }
 0x8a9   :  { %10971 = vmatprep.subr.bf16.mxu0 %v14729_v17  ;;  %10944 = vmatprep.mubr.bf16.mxu0 %v17230_v48  ;;  %v14733_v48 = vld [vmem:[#allocation4 + $0x2040] ss:$120 sps:$4 sm:$0xff]   ;;  %v14810_v17 = vld [vmem:[#allocation4 + $0x1d7c] ss:$120 sps:$4 sm:$0xff]  }
 0x8aa   :  { %10012 = vmatprep.mubr.bf16.mxu1 %v17238_v61  ;;  %v14805_v13 = vld [vmem:[#allocation4 + $0x2408] ss:$120 sps:$4 sm:$0xff]  }
 0x8ae   :  { %10013 = vmatmul.mubr.bf16.gmra.mrb[20].mxu1 %v17239_v55 }
 0x8af   :  { %10945 = vmatmul.mubr.bf16.gmra.mrb[20].mxu0 %v17231_v40  ;;  %10046 = vmatpush1.bf16.xpose.msra.mxu1 %v14724_v24  ;;  %v17242_v40 = vld [vmem:[#allocation85_spill] sm:$0xff]  ;;  %v14811_v24 = vld [vmem:[#allocation4 + $0x24f8] ss:$120 sps:$4 sm:$0xff]  }
 0x8b0   :  { %10972 = vmatpush1.bf16.xpose.msra.mxu0 %v14727_v46  ;;  %10047 = vmatprep.subr.bf16.mxu1 %v14732_v44  ;;  %v14816_v46 = vld [vmem:[#allocation4 + $0xf74] ss:$120 sps:$4 sm:$0xff]  }
 0x8b1   :  { %10973 = vmatprep.subr.bf16.mxu0 %v14735_v6  ;;  %10952 = vmatprep.mubr.bf16.mxu0 %v17232_v37  ;;  %v14739_v37 = vld [vmem:[#allocation4 + $0x2130] ss:$120 sps:$4 sm:$0xff]   ;;  %v14819_v44 = vld [vmem:[#allocation4 + $0x1e74] ss:$120 sps:$4 sm:$0xff]  }
 0x8b2   :  { %10022 = vmatprep.mubr.bf16.mxu1 %v17240_v35  ;;  %v14814_v6 = vld [vmem:[#allocation4 + $0xf70] ss:$120 sps:$4 sm:$0xff]  }
 0x8b6   :  { %10023 = vmatmul.mubr.bf16.gmra.mrb[24].mxu1 %v17241_v51 }
 0x8b7   :  { %10953 = vmatmul.mubr.bf16.gmra.mrb[24].mxu0 %v17233_v34  ;;  %10048 = vmatpush1.bf16.xpose.msra.mxu1 %v14730_v3  ;;  %v17244_v34 = vld [vmem:[#allocation86_spill] sm:$0xff]  ;;  %v14825_v3 = vld [vmem:[#allocation4 + $0x1f64] ss:$120 sps:$4 sm:$0xff]  }
 0x8b8   :  { %10974 = vmatpush1.bf16.xpose.msra.mxu0 %v14733_v48  ;;  %10049 = vmatprep.subr.bf16.mxu1 %v14738_v36  ;;  %v17245_v48 = vld [vmem:[#allocation14_spill] sm:$0xff]  ;;  %v17246_v36 = vld [vmem:[#allocation87_spill] sm:$0xff] }
 0x8b9   :  { %10975 = vmatprep.subr.bf16.mxu0 %v14741_v62  ;;  %10960 = vmatprep.mubr.bf16.mxu0 %v17234_v2  ;;  %v14745_v2 = vld [vmem:[#allocation4 + $0x2220] ss:$120 sps:$4 sm:$0xff]  }
 0x8ba   :  { %10032 = vmatprep.mubr.bf16.mxu1 %v17242_v40  ;;  %v14820_v62 = vld [vmem:[#allocation4 + $0x1060] ss:$120 sps:$4 sm:$0xff]  }
 0x8be   :  { %10033 = vmatmul.mubr.bf16.gmra.mrb[28].mxu1 %v17243_v30 }
 0x8bf   :  { %10961 = vmatmul.mubr.bf16.gmra.mrb[28].mxu0 %v17235_v22  ;;  %10050 = vmatpush1.bf16.xpose.msra.mxu1 %v14736_v4  ;;  %v14751_v22 = vld [vmem:[#allocation4 + $0x2310] ss:$120 sps:$4 sm:$0xff]   ;;  %v14831_v4 = vld [vmem:[#allocation4 + $0x2054] ss:$120 sps:$4 sm:$0xff]  }
 0x8c0   :  { %10976 = vmatpush1.bf16.xpose.msra.mxu0 %v14739_v37  ;;  %10051 = vmatprep.subr.bf16.mxu1 %v14744_v57  ;;  %v17247_v37 = vld [vmem:[#allocation88_spill] sm:$0xff]  ;;  %v17248_v57 = vld [vmem:[#allocation89_spill] sm:$0xff] }
 0x8c1   :  { %10977 = vmatprep.subr.bf16.mxu0 %v14747_v41  ;;  %11001 = vmatprep.mubr.bf16.mxu0 %v17236_v16  ;;  %v14757_v16 = vld [vmem:[#allocation4 + $0x2400] ss:$120 sps:$4 sm:$0xff]   ;;  %v14826_v41 = vld [vmem:[#allocation4 + $0x1150] ss:$120 sps:$4 sm:$0xff]  }
 0x8c2   :  { %10075 = vmatprep.mubr.bf16.mxu1 %v17244_v34 }
 0x8c7   :  { %10052 = vmatpush1.bf16.xpose.msra.mxu1 %v14742_v0  ;;  %v14837_v0 = vld [vmem:[#allocation4 + $0x2144] ss:$120 sps:$4 sm:$0xff]  }
 0x8c8   :  { %10978 = vmatpush1.bf16.xpose.msra.mxu0 %v14745_v2  ;;  %10053 = vmatprep.subr.bf16.mxu1 %v14750_v10  ;;  %v17249_v2 = vld [vmem:[#allocation90_spill] sm:$0xff]  ;;  %v17250_v10 = vld [vmem:[#allocation91_spill] sm:$0xff] }
 0x8c9   :  { %10979 = vmatprep.subr.bf16.mxu0 %v14753_v8  ;;  %v14832_v8 = vld [vmem:[#allocation4 + $0x1240] ss:$120 sps:$4 sm:$0xff]  }
 0x8cf   :  { %10054 = vmatpush1.bf16.xpose.msra.mxu1 %v14748_v54  ;;  %v14835_v54 = vld [vmem:[#allocation4 + $0x2140] ss:$120 sps:$4 sm:$0xff]  }
 0x8d0   :  { %10980 = vmatpush1.bf16.xpose.msra.mxu0 %v14751_v22  ;;  %10055 = vmatprep.subr.bf16.mxu1 %v14756_v33  ;;  %v14840_v22 = vld [vmem:[#allocation4 + $0x1334] ss:$120 sps:$4 sm:$0xff]  }
 0x8d1   :  { %10981 = vmatprep.subr.bf16.mxu0 %v14759_v19  ;;  %v14843_v33 = vld [vmem:[#allocation4 + $0x2234] ss:$120 sps:$4 sm:$0xff]  }
 0x8d2   :  { %v17251_v19 = vld [vmem:[#allocation21_spill] sm:$0xff] }
 0x8d7   :  { %10056 = vmatpush1.bf16.xpose.msra.mxu1 %v14754_v43  ;;  %v17252_v43 = vld [vmem:[#allocation92_spill] sm:$0xff] }
 0x8d8   :  { %10982 = vmatpush1.bf16.xpose.msra.mxu0 %v14757_v16  ;;  %10057 = vmatprep.subr.bf16.mxu1 %v14762_v20  ;;  %v14838_v16 = vld [vmem:[#allocation4 + $0x1330] ss:$120 sps:$4 sm:$0xff]  }
 0x8d9   :  { %10983 = vmatprep.subr.bf16.mxu0 %v14765_v42  ;;  %v14841_v20 = vld [vmem:[#allocation4 + $0x2230] ss:$120 sps:$4 sm:$0xff]   ;;  %v14846_v42 = vld [vmem:[#allocation4 + $0x1424] ss:$120 sps:$4 sm:$0xff]  }
 0x8df   :  { %10058 = vmatpush1.bf16.xpose.msra.mxu1 %v14760_v21  ;;  %v14849_v21 = vld [vmem:[#allocation4 + $0x2324] ss:$120 sps:$4 sm:$0xff]  }
 0x8e0   :  { %10984 = vmatpush1.bf16.xpose.msra.mxu0 %v14763_v58  ;;  %10059 = vmatprep.subr.bf16.mxu1 %v14768_v52  ;;  %v14844_v58 = vld [vmem:[#allocation4 + $0x1420] ss:$120 sps:$4 sm:$0xff]  }
 0x8e1   :  { %11034 = vmatprep.subr.bf16.mxu0 %v14771_v25  ;;  %v14847_v52 = vld [vmem:[#allocation4 + $0x2320] ss:$120 sps:$4 sm:$0xff]   ;;  %v14852_v25 = vld [vmem:[#allocation4 + $0x1514] ss:$120 sps:$4 sm:$0xff]  }
 0x8e7   :  { %11002 = vmatmul.mubr.bf16.vlgmr.msra.gmra.mrb[16].mxu0 %v17237_v11  ;;  %10060 = vmatpush1.bf16.xpose.msra.mxu1 %v14766_v45  ;;  %v14813_v11 = vld [vmem:[#allocation4 + $0x24fc] ss:$120 sps:$4 sm:$0xff]  }
 0x8e8   :  { %11035 = vmatpush1.bf16.xpose.msra.mxu0 %v14769_v15  ;;  %10061 = vmatprep.subr.bf16.mxu1 %v14774_v47  ;;  %v14855_v45 = vld [vmem:[#allocation4 + $0x2414] ss:$120 sps:$4 sm:$0xff]   ;;  %v14850_v15 = vld [vmem:[#allocation4 + $0x1510] ss:$120 sps:$4 sm:$0xff]  }
 0x8e9   :  { %11036 = vmatprep.subr.bf16.mxu0 %v14777_v53  ;;  %11009 = vmatprep.mubr.bf16.mxu0 %v17238_v61  ;;  %v14808_v61 = vld [vmem:[#allocation4 + $0x1d78] ss:$120 sps:$4 sm:$0xff]   ;;  %v14858_v53 = vld [vmem:[#allocation4 + $0x1604] ss:$120 sps:$4 sm:$0xff]  }
 0x8ea   :  { %v14853_v47 = vld [vmem:[#allocation4 + $0x2410] ss:$120 sps:$4 sm:$0xff]  }
 0x8ef   :  { %11010 = vmatmul.mubr.bf16.gmra.mrb[20].mxu0 %v17239_v55  ;;  %10062 = vmatpush1.bf16.xpose.msra.mxu1 %v14772_v49  ;;  %v14817_v55 = vld [vmem:[#allocation4 + $0x1e70] ss:$120 sps:$4 sm:$0xff]   ;;  %v14861_v49 = vld [vmem:[#allocation4 + $0x2504] ss:$120 sps:$4 sm:$0xff]  }
 0x8f0   :  { %11037 = vmatpush1.bf16.xpose.msra.mxu0 %v14775_v1  ;;  %10063 = vmatprep.subr.bf16.mxu1 %v14780_v60  ;;  %v14856_v1 = vld [vmem:[#allocation4 + $0x1600] ss:$120 sps:$4 sm:$0xff]  }
 0x8f1   :  { %11038 = vmatprep.subr.bf16.mxu0 %v14783_v26  ;;  %11017 = vmatprep.mubr.bf16.mxu0 %v17240_v35  ;;  %v14822_v35 = vld [vmem:[#allocation4 + $0x1064] ss:$120 sps:$4 sm:$0xff]   ;;  %v14859_v60 = vld [vmem:[#allocation4 + $0x2500] ss:$120 sps:$4 sm:$0xff]   ;;  %v14864_v26 = vld [vmem:[#allocation4 + $0x16f4] ss:$120 sps:$4 sm:$0xff]  }
 0x8f7   :  { %11018 = vmatmul.mubr.bf16.gmra.mrb[24].mxu0 %v17241_v51  ;;  %10064 = vmatpush1.bf16.xpose.msra.mxu1 %v14778_v23  ;;  %v14823_v51 = vld [vmem:[#allocation4 + $0x1f60] ss:$120 sps:$4 sm:$0xff]   ;;  %v14862_v23 = vld [vmem:[#allocation4 + $0x16f0] ss:$120 sps:$4 sm:$0xff]  }
 0x8f8   :  { %11039 = vmatpush1.bf16.xpose.msra.mxu0 %v14781_v14  ;;  %10065 = vmatprep.subr.bf16.mxu1 %v14786_v28  ;;  %v14867_v14 = vld [vmem:[#allocation4 + $0x17e4] ss:$120 sps:$4 sm:$0xff]   ;;  %v17253_v28 = vld [vmem:[#allocation22_spill] sm:$0xff] }
 0x8f9   :  { %11040 = vmatprep.subr.bf16.mxu0 %v14789_v5  ;;  %11025 = vmatprep.mubr.bf16.mxu0 %v17242_v40  ;;  %v14828_v40 = vld [vmem:[#allocation4 + $0x1154] ss:$120 sps:$4 sm:$0xff]  }
 0x8fa   :  { %v17254_v5 = vld [vmem:[#allocation93_spill] sm:$0xff] }
 0x8ff   :  { %11026 = vmatmul.mubr.bf16.gmra.mrb[28].mxu0 %v17243_v30  ;;  %10066 = vmatpush1.bf16.xpose.msra.mxu1 %v14784_v18  ;;  %v14829_v30 = vld [vmem:[#allocation4 + $0x2050] ss:$120 sps:$4 sm:$0xff]   ;;  %v14865_v18 = vld [vmem:[#allocation4 + $0x17e0] ss:$120 sps:$4 sm:$0xff]  }
 0x900   :  { %11041 = vmatpush1.bf16.xpose.msra.mxu0 %v14787_v56  ;;  %10067 = vmatprep.subr.bf16.mxu1 %v14792_v50  ;;  %v14870_v56 = vld [vmem:[#allocation4 + $0x18d4] ss:$120 sps:$4 sm:$0xff]  }
 0x901   :  { %11042 = vmatprep.subr.bf16.mxu0 %v14795_v63  ;;  %11066 = vmatprep.mubr.bf16.mxu0 %v17244_v34  ;;  %v14834_v34 = vld [vmem:[#allocation4 + $0x1244] ss:$120 sps:$4 sm:$0xff]   ;;  %v17255_v50 = vld [vmem:[#allocation94_spill] sm:$0xff] }
 0x902   :  { %v17256_v63 = vld [vmem:[#allocation95_spill] sm:$0xff] }
 0x907   :  { %10068 = vmatpush1.bf16.xpose.msra.mxu1 %v14790_v7  ;;  %v14868_v7 = vld [vmem:[#allocation4 + $0x18d0] ss:$120 sps:$4 sm:$0xff]  }
 0x908   :  { %11043 = vmatpush1.bf16.xpose.msra.mxu0 %v14793_v38  ;;  %10069 = vmatprep.subr.bf16.mxu1 %v14798_v32  ;;  %v14873_v38 = vld [vmem:[#allocation4 + $0x19c4] ss:$120 sps:$4 sm:$0xff]   ;;  %v17257_v32 = vld [vmem:[#allocation26_spill] sm:$0xff] }
 0x909   :  { %11044 = vmatprep.subr.bf16.mxu0 %v14801_v29  ;;  %v14871_v29 = vld [vmem:[#allocation4 + $0x19c0] ss:$120 sps:$4 sm:$0xff]  }
 0x90f   :  { %10070 = vmatpush1.bf16.xpose.msra.mxu1 %v14796_v59  ;;  %v14876_v59 = vld [vmem:[#allocation4 + $0x1ab4] ss:$120 sps:$4 sm:$0xff]  }
 0x910   :  { %11045 = vmatpush1.bf16.xpose.msra.mxu0 %v14799_v12  ;;  %10071 = vmatprep.subr.bf16.mxu1 %v14804_v31  ;;  %v17258_v12 = vld [vmem:[#allocation27_spill] sm:$0xff]  ;;  %v14874_v31 = vld [vmem:[#allocation4 + $0x1ab0] ss:$120 sps:$4 sm:$0xff]  }
 0x911   :  { %11046 = vmatprep.subr.bf16.mxu0 %v14807_v39  ;;  %v14879_v39 = vld [vmem:[#allocation4 + $0x1ba4] ss:$120 sps:$4 sm:$0xff]  }
 0x917   :  { %10072 = vmatpush1.bf16.xpose.msra.mxu1 %v14802_v9  ;;  %v14877_v9 = vld [vmem:[#allocation4 + $0x1ba0] ss:$120 sps:$4 sm:$0xff]  }
 0x918   :  { %11047 = vmatpush1.bf16.xpose.msra.mxu0 %v14805_v13  ;;  %10073 = vmatprep.subr.bf16.mxu1 %v14810_v17  ;;  %v14882_v13 = vld [vmem:[#allocation4 + $0x1c94] ss:$120 sps:$4 sm:$0xff]   ;;  %v14880_v17 = vld [vmem:[#allocation4 + $0x1c90] ss:$120 sps:$4 sm:$0xff]  }
 0x919   :  { %11048 = vmatprep.subr.bf16.mxu0 %v14813_v11  ;;  %v14885_v11 = vld [vmem:[#allocation4 + $0x1d84] ss:$120 sps:$4 sm:$0xff]  }
 0x91f   :  { %10074 = vmatpush1.bf16.xpose.msra.mxu1 %v14808_v61  ;;  %v14883_v61 = vld [vmem:[#allocation4 + $0x1d80] ss:$120 sps:$4 sm:$0xff]  }
 0x920   :  { %11049 = vmatpush1.bf16.xpose.msra.mxu0 %v14811_v24  ;;  %10116 = vmatprep.subr.bf16.mxu1 %v14816_v46 }
 0x921   :  { %11099 = vmatprep.subr.bf16.mxu0 %v14819_v44 }
 0x926   :  { %10076 = vmatmul.mubr.bf16.vlgmr.msra.gmra.mrb[16].mxu1 %v17245_v48 }
 0x927   :  { %11067 = vmatmul.mubr.bf16.vlgmr.msra.gmra.mrb[16].mxu0 %v17245_v48  ;;  %10117 = vmatpush1.bf16.xpose.msra.mxu1 %v14814_v6 }
 0x928   :  { %11100 = vmatpush1.bf16.xpose.msra.mxu0 %v14817_v55  ;;  %10118 = vmatprep.subr.bf16.mxu1 %v14822_v35 }
 0x929   :  { %11101 = vmatprep.subr.bf16.mxu0 %v14825_v3  ;;  %11074 = vmatprep.mubr.bf16.mxu0 %v17246_v36 }
 0x92a   :  { %10085 = vmatprep.mubr.bf16.mxu1 %v17246_v36 }
 0x92e   :  { %10086 = vmatmul.mubr.bf16.gmra.mrb[20].mxu1 %v17247_v37 }
 0x92f   :  { %11075 = vmatmul.mubr.bf16.gmra.mrb[20].mxu0 %v17247_v37  ;;  %10119 = vmatpush1.bf16.xpose.msra.mxu1 %v14820_v62 }
 0x930   :  { %11102 = vmatpush1.bf16.xpose.msra.mxu0 %v14823_v51  ;;  %10120 = vmatprep.subr.bf16.mxu1 %v14828_v40 }
 0x931   :  { %11103 = vmatprep.subr.bf16.mxu0 %v14831_v4  ;;  %11082 = vmatprep.mubr.bf16.mxu0 %v17248_v57 }
 0x932   :  { %10095 = vmatprep.mubr.bf16.mxu1 %v17248_v57 }
 0x936   :  { %10096 = vmatmul.mubr.bf16.gmra.mrb[24].mxu1 %v17249_v2 }
 0x937   :  { %11083 = vmatmul.mubr.bf16.gmra.mrb[24].mxu0 %v17249_v2  ;;  %10121 = vmatpush1.bf16.xpose.msra.mxu1 %v14826_v41 }
 0x938   :  { %11104 = vmatpush1.bf16.xpose.msra.mxu0 %v14829_v30  ;;  %10122 = vmatprep.subr.bf16.mxu1 %v14834_v34 }
 0x939   :  { %11105 = vmatprep.subr.bf16.mxu0 %v14837_v0  ;;  %11090 = vmatprep.mubr.bf16.mxu0 %v17250_v10 }
 0x93a   :  { %10105 = vmatprep.mubr.bf16.mxu1 %v17250_v10 }
 0x93e   :  { %10106 = vmatmul.mubr.bf16.gmra.mrb[28].mxu1 %v17251_v19 }
 0x93f   :  { %11091 = vmatmul.mubr.bf16.gmra.mrb[28].mxu0 %v17251_v19  ;;  %10123 = vmatpush1.bf16.xpose.msra.mxu1 %v14832_v8 }
 0x940   :  { %11106 = vmatpush1.bf16.xpose.msra.mxu0 %v14835_v54  ;;  %10124 = vmatprep.subr.bf16.mxu1 %v14840_v22 }
 0x941   :  { %11107 = vmatprep.subr.bf16.mxu0 %v14843_v33  ;;  %11131 = vmatprep.mubr.bf16.mxu0 %v17252_v43 }
 0x942   :  { %10148 = vmatprep.mubr.bf16.mxu1 %v17252_v43 }
 0x947   :  { %10125 = vmatpush1.bf16.xpose.msra.mxu1 %v14838_v16 }
 0x948   :  { %11108 = vmatpush1.bf16.xpose.msra.mxu0 %v14841_v20  ;;  %10126 = vmatprep.subr.bf16.mxu1 %v14846_v42 }
 0x949   :  { %11109 = vmatprep.subr.bf16.mxu0 %v14849_v21 }
 0x94f   :  { %10127 = vmatpush1.bf16.xpose.msra.mxu1 %v14844_v58 }
 0x950   :  { %11110 = vmatpush1.bf16.xpose.msra.mxu0 %v14847_v52  ;;  %10128 = vmatprep.subr.bf16.mxu1 %v14852_v25 }
 0x951   :  { %11111 = vmatprep.subr.bf16.mxu0 %v14855_v45 }
 0x957   :  { %10129 = vmatpush1.bf16.xpose.msra.mxu1 %v14850_v15 }
 0x958   :  { %11112 = vmatpush1.bf16.xpose.msra.mxu0 %v14853_v47  ;;  %10130 = vmatprep.subr.bf16.mxu1 %v14858_v53 }
 0x959   :  { %11113 = vmatprep.subr.bf16.mxu0 %v14861_v49 }
 0x95f   :  { %10131 = vmatpush1.bf16.xpose.msra.mxu1 %v14856_v1 }
 0x960   :  { %11114 = vmatpush1.bf16.xpose.msra.mxu0 %v14859_v60  ;;  %10132 = vmatprep.subr.bf16.mxu1 %v14864_v26 }
 0x967   :  { %11132 = vmatmul.mubr.bf16.vlgmr.msra.gmra.mrb[16].mxu0 %v17253_v28  ;;  %10133 = vmatpush1.bf16.xpose.msra.mxu1 %v14862_v23 }
 0x968   :  { %11139 = vmatprep.mubr.bf16.mxu0 %v17254_v5  ;;  %10134 = vmatprep.subr.bf16.mxu1 %v14867_v14 }
 0x96f   :  { %11140 = vmatmul.mubr.bf16.gmra.mrb[20].mxu0 %v17255_v50  ;;  %10135 = vmatpush1.bf16.xpose.msra.mxu1 %v14865_v18 }
 0x970   :  { %11147 = vmatprep.mubr.bf16.mxu0 %v17256_v63  ;;  %10136 = vmatprep.subr.bf16.mxu1 %v14870_v56 }
 0x977   :  { %11148 = vmatmul.mubr.bf16.gmra.mrb[24].mxu0 %v17257_v32  ;;  %10137 = vmatpush1.bf16.xpose.msra.mxu1 %v14868_v7 }
 0x978   :  { %11155 = vmatprep.mubr.bf16.mxu0 %v16554_v27  ;;  %10138 = vmatprep.subr.bf16.mxu1 %v14873_v38 }
 0x97f   :  { %11156 = vmatmul.mubr.bf16.gmra.mrb[28].mxu0 %v17258_v12  ;;  %10139 = vmatpush1.bf16.xpose.msra.mxu1 %v14871_v29 }
 0x980   :  { %10140 = vmatprep.subr.bf16.mxu1 %v14876_v59 }
 0x987   :  { %10141 = vmatpush1.bf16.xpose.msra.mxu1 %v14874_v31 }
 0x988   :  { %10142 = vmatprep.subr.bf16.mxu1 %v14879_v39 }
 0x98f   :  { %10143 = vmatpush1.bf16.xpose.msra.mxu1 %v14877_v9 }
 0x990   :  { %10144 = vmatprep.subr.bf16.mxu1 %v14882_v13 }
 0x997   :  { %10145 = vmatpush1.bf16.xpose.msra.mxu1 %v14880_v17 }
 0x998   :  { %10146 = vmatprep.subr.bf16.mxu1 %v14885_v11 }
 0x99f   :  { %10147 = vmatpush1.bf16.xpose.msra.mxu1 %v14883_v61 }
 0x9a6   :  { %10149 = vmatmul.mubr.bf16.vlgmr.msra.gmra.mrb[16].mxu1 %v17253_v28 }
 0x9a7   :  { %10158 = vmatprep.mubr.bf16.mxu1 %v17254_v5 }
 0x9ae   :  { %10159 = vmatmul.mubr.bf16.gmra.mrb[20].mxu1 %v17255_v50 }
 0x9af   :  { %10168 = vmatprep.mubr.bf16.mxu1 %v17256_v63 }
 0x9b6   :  { %10169 = vmatmul.mubr.bf16.gmra.mrb[24].mxu1 %v17257_v32 }
 0x9b7   :  { %10178 = vmatprep.mubr.bf16.mxu1 %v16554_v27 }
 0x9be   :  { %10179 = vmatmul.mubr.bf16.gmra.mrb[28].mxu1 %v17258_v12 }
 0xa3a   :  { %v11133_v24 = vpop.f32.mrb[16].mxu0 }
 0xa3b   :  { %11168 = vst [vmem:[%s16889_s3 + $0x20] sm:$0xff] %v11133_v24  ;;  %v11135_v46 = vpop.f32.mrb[17].mxu0 }
 0xa3c   :  { %v11136_v44 = vpop.f32.mrb[18].mxu0 }
 0xa3d   :  { %11173 = vst [vmem:[%s16889_s3 + $0x48] sm:$0xff] %v11136_v44  ;;  %v11138_v6 = vpop.f32.mrb[19].mxu0 }
 0xa42   :  { %v11141_v55 = vpop.f32.mrb[20].mxu0 }
 0xa43   :  { %11178 = vst [vmem:[%s16889_s3 + $0x70] sm:$0xff] %v11141_v55  ;;  %v11143_v27 = vpop.f32.mrb[21].mxu0 }
 0xa44   :  { %v11144_v35 = vpop.f32.mrb[22].mxu0 }
 0xa45   :  { %11183 = vst [vmem:[%s16889_s3 + $0x98] sm:$0xff] %v11144_v35  ;;  %v11146_v3 = vpop.f32.mrb[23].mxu0 }
 0xa4a   :  { %v11149_v48 = vpop.f32.mrb[24].mxu0 }
 0xa4b   :  { %11188 = vst [vmem:[%s16889_s3 + $0xc0] sm:$0xff] %v11149_v48  ;;  %v11151_v36 = vpop.f32.mrb[25].mxu0 }
 0xa4c   :  { %v11152_v62 = vpop.f32.mrb[26].mxu0 }
 0xa4d   :  { %11193 = vst [vmem:[%s16889_s3 + $0xe8] sm:$0xff] %v11152_v62  ;;  %v11154_v51 = vpop.f32.mrb[27].mxu0 }
 0xa52   :  { %v11157_v40 = vpop.f32.mrb[28].mxu0 }
 0xa53   :  { %11198 = vst [vmem:[%s16889_s3 + $0x110] sm:$0xff] %v11157_v40  ;;  %v11159_v4 = vpop.f32.mrb[29].mxu0 }
 0xa54   :  { %v11160_v37 = vpop.f32.mrb[30].mxu0 }
 0xa55   :  { %11203 = vst [vmem:[%s16889_s3 + $0x138] sm:$0xff] %v11160_v37  ;;  %v11162_v57 = vpop.f32.mrb[31].mxu0 }
 0xa79   :  { %v10150_v41 = vpop.f32.mrb[16].mxu1 }
 0xa7a   :  { %11166 = vst [vmem:[%s16889_s3 + $0x10] sm:$0xff] %v10150_v41  ;;  %v10152_v30 = vpop.f32.mrb[17].mxu1 }
 0xa7b   :  { %11167 = vst [vmem:[%s16889_s3 + $0x18] sm:$0xff] %v10152_v30  ;;  %v10154_v34 = vpop.f32.mrb[18].mxu1 }
 0xa7c   :  { %11171 = vst [vmem:[%s16889_s3 + $0x38] sm:$0xff] %v10154_v34  ;;  %v10156_v0 = vpop.f32.mrb[19].mxu1 }
 0xa7d   :  { %11172 = vst [vmem:[%s16889_s3 + $0x40] sm:$0xff] %v10156_v0 }
 0xa81   :  { %v10160_v2 = vpop.f32.mrb[20].mxu1 }
 0xa82   :  { %11176 = vst [vmem:[%s16889_s3 + $0x60] sm:$0xff] %v10160_v2  ;;  %v10162_v10 = vpop.f32.mrb[21].mxu1 }
 0xa83   :  { %11177 = vst [vmem:[%s16889_s3 + $0x68] sm:$0xff] %v10162_v10  ;;  %v10164_v8 = vpop.f32.mrb[22].mxu1 }
 0xa84   :  { %11181 = vst [vmem:[%s16889_s3 + $0x88] sm:$0xff] %v10164_v8  ;;  %v10166_v54 = vpop.f32.mrb[23].mxu1 }
 0xa85   :  { %11182 = vst [vmem:[%s16889_s3 + $0x90] sm:$0xff] %v10166_v54 }
 0xa89   :  { %v10170_v22 = vpop.f32.mrb[24].mxu1 }
 0xa8a   :  { %11186 = vst [vmem:[%s16889_s3 + $0xb0] sm:$0xff] %v10170_v22  ;;  %v10172_v33 = vpop.f32.mrb[25].mxu1 }
 0xa8b   :  { %11187 = vst [vmem:[%s16889_s3 + $0xb8] sm:$0xff] %v10172_v33  ;;  %v10174_v19 = vpop.f32.mrb[26].mxu1 }
 0xa8c   :  { %11191 = vst [vmem:[%s16889_s3 + $0xd8] sm:$0xff] %v10174_v19  ;;  %v10176_v43 = vpop.f32.mrb[27].mxu1 }
 0xa8d   :  { %11192 = vst [vmem:[%s16889_s3 + $0xe0] sm:$0xff] %v10176_v43 }
 0xa91   :  { %v10180_v16 = vpop.f32.mrb[28].mxu1 }
 0xa92   :  { %11196 = vst [vmem:[%s16889_s3 + $0x100] sm:$0xff] %v10180_v16  ;;  %v10182_v20 = vpop.f32.mrb[29].mxu1 }
 0xa93   :  { %11197 = vst [vmem:[%s16889_s3 + $0x108] sm:$0xff] %v10182_v20  ;;  %v10184_v42 = vpop.f32.mrb[30].mxu1 }
 0xa94   :  { %11201 = vst [vmem:[%s16889_s3 + $0x128] sm:$0xff] %v10184_v42  ;;  %v10186_v21 = vpop.f32.mrb[31].mxu1 }
 0xa95   :  { %11202 = vst [vmem:[%s16889_s3 + $0x130] sm:$0xff] %v10186_v21 }
 0xa96   :  { %11208 = vsyncpa [#allocation3], 1 }
 0xa97   :  { %11209 = vsyncpa [#allocation5], 1 }

</bundles_post_ra>
